<compile_context>
chip_gen: v7x
topology: tpu7x:2x2x1
jax: 0.10.0
libtpu: 0.0.40
codegen_flags: <defaults>
</compile_context>

<pallas_src>
import math

import jax
import jax.numpy as jnp
from jax.experimental import pallas as pl
from jax.experimental.pallas import tpu as pltpu


# Bias rows inside the packed (8, 128) bias block.
_B_CONV1, _B_CONV2, _B_FC1, _B_FC2, _B_FC3 = range(5)


# ----------------------------- Pallas kernel ------------------------------- #

def _lenet_kernel(x_ref, w1_ref, w2_ref, wf1_ref, wf2_ref, wf3_ref, b_ref,
                  o_ref, p1_ref, c2_ref):
    """Whole LeNet forward for one sample; every intermediate stays in VMEM."""
    f32 = jnp.float32

    # ---- conv1 (im2col matmul, one per 2x2-pool quadrant) + ReLU + max-pool ----
    # x_ref rows are ordered q*200 + (bi*14 + bj), q = position inside the 2x2 pool
    # window, so pooling is a max over four aligned 200-row slices.
    m = jnp.dot(x_ref[pl.ds(0, 200), :], w1_ref[...], preferred_element_type=f32)
    for q in range(1, 4):
        m = jnp.maximum(
            m,
            jnp.dot(x_ref[pl.ds(200 * q, 200), :], w1_ref[...],
                    preferred_element_type=f32))
    # rows 0..195 = pooled 14x14 map in row-major order (channels in lanes 0..5)
    p1_ref[...] = jnp.maximum(m + b_ref[pl.ds(_B_CONV1, 1), :], 0.0)

    # ---- conv2 as 25 shifted-tap matmuls over the pooled map + ReLU ----
    acc2 = jnp.zeros((136, 128), f32)
    for kh in range(5):
        for kw in range(5):
            t = kh * 5 + kw
            lhs = p1_ref[pl.ds(kh * 14 + kw, 136), :][:, :8]       # (136, 8)
            rhs = w2_ref[pl.ds(8 * t, 8), :]                       # (8, 128)
            acc2 = acc2 + jnp.dot(lhs, rhs, preferred_element_type=f32)
    # rows i*14 + j (i, j < 10) hold the valid 10x10 conv2 outputs (channels 0..15)
    c2_ref[...] = jnp.maximum(acc2 + b_ref[pl.ds(_B_CONV2, 1), :], 0.0)

    # ---- 2x2 max-pool + NCHW flatten + fc1, fused ----
    acc_fc1 = jnp.zeros((1, 128), f32)
    for pi in range(5):
        for pj in range(5):
            base = 28 * pi + 2 * pj
            top = c2_ref[pl.ds(base, 2), :]          # rows (2pi, 2pj), (2pi, 2pj+1)
            bot = c2_ref[pl.ds(base + 14, 2), :]     # rows (2pi+1, 2pj), (2pi+1, 2pj+1)
            cell = jnp.max(jnp.maximum(top, bot), axis=0, keepdims=True)   # (1, 128)
            s = pi * 5 + pj
            acc_fc1 = acc_fc1 + jnp.dot(
                cell[:, :16], wf1_ref[pl.ds(16 * s, 16), :],
                preferred_element_type=f32)
    h1 = jnp.maximum(acc_fc1 + b_ref[pl.ds(_B_FC1, 1), :], 0.0)

    # ---- fc2 + ReLU, fc3 ----
    h2 = jnp.maximum(
        jnp.dot(h1, wf2_ref[...], preferred_element_type=f32)
        + b_ref[pl.ds(_B_FC2, 1), :], 0.0)
    out = (jnp.dot(h2, wf3_ref[...], preferred_element_type=f32)
           + b_ref[pl.ds(_B_FC3, 1), :])

    # Lane-dense, tile-aligned (8, 128) store; row 0 carries the logits.
    o_ref[...] = jnp.broadcast_to(out, (8, 128))


# ------------------------- trace-time input / weight prep ------------------ #

def _conv1_cols(x_nchw):
    """im2col for conv1 with rows ordered pool-quadrant-major.

    Output (B, 800, 80): row q*200 + (bi*14 + bj) holds the 5x5x3 patch (feature order
    (kh, kw, cin), zero-padded 75 -> 80) of conv1 output pixel (2*bi + q//2, 2*bj + q%2);
    rows 196..199 of each quadrant block are zero padding.
    """
    B = x_nchw.shape[0]
    x = jnp.transpose(x_nchw, (0, 2, 3, 1)).astype(jnp.float32)           # (B,32,32,3)
    pieces = [x[:, kh:kh + 28, kw:kw + 28, :]
              for kh in range(5) for kw in range(5)]
    p = jnp.concatenate(pieces, axis=-1)                                  # (B,28,28,75)
    p = jnp.pad(p, ((0, 0), (0, 0), (0, 0), (0, 5)))                      # (B,28,28,80)
    p = p.reshape(B, 14, 2, 14, 2, 80)
    p = jnp.transpose(p, (0, 2, 4, 1, 3, 5))                              # (B,2,2,14,14,80)
    p = p.reshape(B, 4, 196, 80)
    p = jnp.pad(p, ((0, 0), (0, 0), (0, 4), (0, 0)))                      # (B,4,200,80)
    return p.reshape(B, 800, 80)


def prepare_params(params):
    """One-time repack of PyTorch-layout params into lane-dense (K, 128) matrices."""
    f32 = jnp.float32

    # conv1: (6,3,5,5) -> (80,128), row = (kh*5+kw)*3 + cin, col = cout
    w1 = jnp.transpose(params["conv1_w"].astype(f32), (2, 3, 1, 0)).reshape(75, 6)
    w1p = jnp.zeros((80, 128), f32).at[:75, :6].set(w1)

    # conv2: (16,6,5,5) -> (200,128), row = (kh*5+kw)*8 + cin, col = cout
    w2 = jnp.transpose(params["conv2_w"].astype(f32), (2, 3, 1, 0)).reshape(25, 6, 16)
    w2p = jnp.zeros((25, 8, 128), f32).at[:, :6, :16].set(w2).reshape(200, 128)

    # fc1: (120, 400) with PyTorch flatten index cout*25 + (pi*5+pj)
    #   -> (400,128), row = (pi*5+pj)*16 + cout  (folds the NCHW flatten permutation)
    wf1 = jnp.transpose(params["fc1_w"].astype(f32).reshape(120, 16, 25), (2, 1, 0))
    wf1p = jnp.zeros((25, 16, 128), f32).at[:, :, :120].set(wf1).reshape(400, 128)

    # fc2 / fc3: transposed and zero-padded to 128x128
    wf2p = jnp.zeros((128, 128), f32).at[:120, :84].set(params["fc2_w"].astype(f32).T)
    wf3p = jnp.zeros((128, 128), f32).at[:84, :100].set(params["fc3_w"].astype(f32).T)

    # all biases packed into one (8, 128) block
    bp = jnp.zeros((8, 128), f32)
    bp = bp.at[_B_CONV1, :6].set(params["conv1_b"].astype(f32))
    bp = bp.at[_B_CONV2, :16].set(params["conv2_b"].astype(f32))
    bp = bp.at[_B_FC1, :120].set(params["fc1_b"].astype(f32))
    bp = bp.at[_B_FC2, :84].set(params["fc2_b"].astype(f32))
    bp = bp.at[_B_FC3, :100].set(params["fc3_b"].astype(f32))

    return {"w1": w1p, "w2": w2p, "wf1": wf1p, "wf2": wf2p, "wf3": wf3p, "b": bp}


# ------------------------------ forward pass -------------------------------- #

def net_forward(prepared, x_nchw):
    """Reproduces Net.forward.  x_nchw: (B, 3, 32, 32) float32 -> (B, 100)."""
    B = x_nchw.shape[0]
    cols = _conv1_cols(x_nchw)

    flops_per_sample = (4 * 2 * 200 * 80 * 128       # conv1
                        + 25 * 2 * 136 * 8 * 128     # conv2
                        + 25 * 2 * 16 * 128          # fc1
                        + 2 * 2 * 128 * 128)         # fc2 + fc3
    weight_bytes = 4 * 128 * (80 + 200 + 400 + 128 + 128 + 8)
    cost = pl.CostEstimate(
        flops=B * flops_per_sample,
        transcendentals=0,
        bytes_accessed=B * (800 * 80 + 8 * 128) * 4 + weight_bytes)

    out = pl.pallas_call(
        _lenet_kernel,
        out_shape=jax.ShapeDtypeStruct((B, 8, 128), jnp.float32),
        grid=(B,),
        in_specs=[
            pl.BlockSpec((None, 800, 80), lambda b: (b, 0, 0)),   # conv1 patches
            pl.BlockSpec((80, 128), lambda b: (0, 0)),            # w1 (VMEM-resident)
            pl.BlockSpec((200, 128), lambda b: (0, 0)),           # w2
            pl.BlockSpec((400, 128), lambda b: (0, 0)),           # fc1
            pl.BlockSpec((128, 128), lambda b: (0, 0)),           # fc2
            pl.BlockSpec((128, 128), lambda b: (0, 0)),           # fc3
            pl.BlockSpec((8, 128), lambda b: (0, 0)),             # packed biases
        ],
        out_specs=pl.BlockSpec((None, 8, 128), lambda b: (b, 0, 0)),
        scratch_shapes=[
            pltpu.VMEM((200, 128), jnp.float32),   # pooled conv1 activation
            pltpu.VMEM((136, 128), jnp.float32),   # conv2 activation
        ],
        compiler_params=pltpu.CompilerParams(
            dimension_semantics=("parallel",)),
        cost_estimate=cost,
    )(cols, prepared["w1"], prepared["w2"], prepared["wf1"],
      prepared["wf2"], prepared["wf3"], prepared["b"])

    return out[:, 0, :100]


# ------------------------------ params / reference -------------------------- #

def init_params(key):
    """Deterministic synthetic params with PyTorch-default-like uniform init."""
    def u(k, shape, fan_in):
        bound = 1.0 / math.sqrt(fan_in)
        return jax.random.uniform(k, shape, jnp.float32, -bound, bound)

    ks = jax.random.split(key, 10)
    return {
        # PyTorch-native shapes: conv (cout, cin, kh, kw); linear (out, in)
        "conv1_w": u(ks[0], (6, 3, 5, 5), 3 * 5 * 5),
        "conv1_b": u(ks[1], (6,), 3 * 5 * 5),
        "conv2_w": u(ks[2], (16, 6, 5, 5), 6 * 5 * 5),
        "conv2_b": u(ks[3], (16,), 6 * 5 * 5),
        "fc1_w": u(ks[4], (120, 16 * 5 * 5), 16 * 5 * 5),
        "fc1_b": u(ks[5], (120,), 16 * 5 * 5),
        "fc2_w": u(ks[6], (84, 120), 120),
        "fc2_b": u(ks[7], (84,), 120),
        "fc3_w": u(ks[8], (100, 84), 84),
        "fc3_b": u(ks[9], (100,), 84),
    }


def _reference_forward(params, x):
    """Plain-XLA reference used only for a one-shot numerical sanity check."""
    dn = ("NCHW", "OIHW", "NCHW")
    hi = jax.lax.Precision.HIGHEST
    y = jax.lax.conv_general_dilated(x, params["conv1_w"], (1, 1), "VALID",
                                     dimension_numbers=dn, precision=hi)
    y = jax.nn.relu(y + params["conv1_b"][None, :, None, None])
    y = jax.lax.reduce_window(y, -jnp.inf, jax.lax.max,
                              (1, 1, 2, 2), (1, 1, 2, 2), "VALID")
    y = jax.lax.conv_general_dilated(y, params["conv2_w"], (1, 1), "VALID",
                                     dimension_numbers=dn, precision=hi)
    y = jax.nn.relu(y + params["conv2_b"][None, :, None, None])
    y = jax.lax.reduce_window(y, -jnp.inf, jax.lax.max,
                              (1, 1, 2, 2), (1, 1, 2, 2), "VALID")
    y = y.reshape(y.shape[0], -1)
    y = jax.nn.relu(jnp.dot(y, params["fc1_w"].T, precision=hi) + params["fc1_b"])
    y = jax.nn.relu(jnp.dot(y, params["fc2_w"].T, precision=hi) + params["fc2_b"])
    return jnp.dot(y, params["fc3_w"].T, precision=hi) + params["fc3_b"]


if __name__ == "__main__":
    key = jax.random.PRNGKey(0)
    k_params, k_x = jax.random.split(key)

    params = init_params(k_params)
    prepared = prepare_params(params)            # one-time weight repack (hoisted)
    # CIFAR-sized input implied by the 16*5*5 flatten: (B, 3, 32, 32), small batch=2.
    x = jax.random.normal(k_x, (2, 3, 32, 32), dtype=jnp.float32)

    fwd = jax.jit(net_forward)
    out = jax.block_until_ready(fwd(prepared, x))

    assert out.shape == (2, 100), out.shape
    assert out.dtype == jnp.float32, out.dtype

    # One-shot sanity check against a plain-XLA reference (loose tol for MXU rounding).
    ref = _reference_forward(params, x)
    err = float(jnp.max(jnp.abs(out - ref)))
    tol = 5e-2 + 5e-2 * float(jnp.max(jnp.abs(ref)))
    assert err <= tol, (err, tol)

    print("KERNEL_OK")
</pallas_src>

<mosaic_0001>
module attributes {stable_mosaic.version = 11 : i64} {
  func.func @_lenet_kernel(%arg0: i32, %arg1: memref<1x800x80xf32, #tpu.memory_space<vmem>>, %arg2: memref<80x128xf32, #tpu.memory_space<vmem>>, %arg3: memref<200x128xf32, #tpu.memory_space<vmem>>, %arg4: memref<400x128xf32, #tpu.memory_space<vmem>>, %arg5: memref<128x128xf32, #tpu.memory_space<vmem>>, %arg6: memref<128x128xf32, #tpu.memory_space<vmem>>, %arg7: memref<8x128xf32, #tpu.memory_space<vmem>>, %arg8: memref<1x8x128xf32, #tpu.memory_space<vmem>>, %arg9: memref<200x128xf32, #tpu.memory_space<vmem>>, %arg10: memref<136x128xf32, #tpu.memory_space<vmem>>) attributes {dimension_semantics = [#tpu.dimension_semantics<parallel>], iteration_bounds = array<i64: 2>, scalar_prefetch = 0 : i64, scratch_operands = 2 : i64, tpu.core_type = #tpu.core_type<tc>, window_params = [{transform_indices = @transform_0, window_bounds = array<i64: 1, 800, 80>}, {pipeline_mode = #tpu.pipeline_mode<synchronous>, transform_indices = @transform_1, window_bounds = array<i64: 80, 128>}, {pipeline_mode = #tpu.pipeline_mode<synchronous>, transform_indices = @transform_2, window_bounds = array<i64: 200, 128>}, {pipeline_mode = #tpu.pipeline_mode<synchronous>, transform_indices = @transform_3, window_bounds = array<i64: 400, 128>}, {pipeline_mode = #tpu.pipeline_mode<synchronous>, transform_indices = @transform_4, window_bounds = array<i64: 128, 128>}, {pipeline_mode = #tpu.pipeline_mode<synchronous>, transform_indices = @transform_5, window_bounds = array<i64: 128, 128>}, {pipeline_mode = #tpu.pipeline_mode<synchronous>, transform_indices = @transform_6, window_bounds = array<i64: 8, 128>}, {transform_indices = @transform_7, window_bounds = array<i64: 1, 8, 128>}]} {
    %c0 = arith.constant 0 : index
    %c0_0 = arith.constant 0 : index
    %c0_1 = arith.constant 0 : index
    %0 = vector.load %arg1[%c0, %c0_0, %c0_1] : memref<1x800x80xf32, #tpu.memory_space<vmem>>, vector<1x200x80xf32>
    %1 = vector.shape_cast %0 : vector<1x200x80xf32> to vector<200x80xf32>
    %c0_2 = arith.constant 0 : index
    %c0_3 = arith.constant 0 : index
    %2 = vector.load %arg2[%c0_2, %c0_3] : memref<80x128xf32, #tpu.memory_space<vmem>>, vector<80x128xf32>
    %cst = arith.constant dense<0.000000e+00> : vector<200x128xf32>
    %3 = tpu.matmul %1, %2, %cst {dimension_numbers = #tpu.dot_dimension_numbers<[1], [0], [0], [1], [0, 0, 1, 1], [], []>} : vector<200x80xf32>, vector<80x128xf32>, vector<200x128xf32> -> vector<200x128xf32>
    %c0_4 = arith.constant 0 : index
    %c200 = arith.constant 200 : index
    %c0_5 = arith.constant 0 : index
    %4 = vector.load %arg1[%c0_4, %c200, %c0_5] : memref<1x800x80xf32, #tpu.memory_space<vmem>>, vector<1x200x80xf32>
    %5 = vector.shape_cast %4 : vector<1x200x80xf32> to vector<200x80xf32>
    %c0_6 = arith.constant 0 : index
    %c0_7 = arith.constant 0 : index
    %6 = vector.load %arg2[%c0_6, %c0_7] : memref<80x128xf32, #tpu.memory_space<vmem>>, vector<80x128xf32>
    %cst_8 = arith.constant dense<0.000000e+00> : vector<200x128xf32>
    %7 = tpu.matmul %5, %6, %cst_8 {dimension_numbers = #tpu.dot_dimension_numbers<[1], [0], [0], [1], [0, 0, 1, 1], [], []>} : vector<200x80xf32>, vector<80x128xf32>, vector<200x128xf32> -> vector<200x128xf32>
    %8 = arith.maximumf %3, %7 : vector<200x128xf32>
    %c0_9 = arith.constant 0 : index
    %c400 = arith.constant 400 : index
    %c0_10 = arith.constant 0 : index
    %9 = vector.load %arg1[%c0_9, %c400, %c0_10] : memref<1x800x80xf32, #tpu.memory_space<vmem>>, vector<1x200x80xf32>
    %10 = vector.shape_cast %9 : vector<1x200x80xf32> to vector<200x80xf32>
    %c0_11 = arith.constant 0 : index
    %c0_12 = arith.constant 0 : index
    %11 = vector.load %arg2[%c0_11, %c0_12] : memref<80x128xf32, #tpu.memory_space<vmem>>, vector<80x128xf32>
    %cst_13 = arith.constant dense<0.000000e+00> : vector<200x128xf32>
    %12 = tpu.matmul %10, %11, %cst_13 {dimension_numbers = #tpu.dot_dimension_numbers<[1], [0], [0], [1], [0, 0, 1, 1], [], []>} : vector<200x80xf32>, vector<80x128xf32>, vector<200x128xf32> -> vector<200x128xf32>
    %13 = arith.maximumf %8, %12 : vector<200x128xf32>
    %c0_14 = arith.constant 0 : index
    %c600 = arith.constant 600 : index
    %c0_15 = arith.constant 0 : index
    %14 = vector.load %arg1[%c0_14, %c600, %c0_15] : memref<1x800x80xf32, #tpu.memory_space<vmem>>, vector<1x200x80xf32>
    %15 = vector.shape_cast %14 : vector<1x200x80xf32> to vector<200x80xf32>
    %c0_16 = arith.constant 0 : index
    %c0_17 = arith.constant 0 : index
    %16 = vector.load %arg2[%c0_16, %c0_17] : memref<80x128xf32, #tpu.memory_space<vmem>>, vector<80x128xf32>
    %cst_18 = arith.constant dense<0.000000e+00> : vector<200x128xf32>
    %17 = tpu.matmul %15, %16, %cst_18 {dimension_numbers = #tpu.dot_dimension_numbers<[1], [0], [0], [1], [0, 0, 1, 1], [], []>} : vector<200x80xf32>, vector<80x128xf32>, vector<200x128xf32> -> vector<200x128xf32>
    %18 = arith.maximumf %13, %17 : vector<200x128xf32>
    %c0_19 = arith.constant 0 : index
    %c0_20 = arith.constant 0 : index
    %19 = vector.load %arg7[%c0_19, %c0_20] : memref<8x128xf32, #tpu.memory_space<vmem>>, vector<1x128xf32>
    %20 = vector.broadcast %19 : vector<1x128xf32> to vector<200x128xf32>
    %21 = arith.addf %18, %20 : vector<200x128xf32>
    %cst_21 = arith.constant 0.000000e+00 : f32
    %22 = vector.broadcast %cst_21 : f32 to vector<200x128xf32>
    %23 = arith.maximumf %21, %22 : vector<200x128xf32>
    %c0_22 = arith.constant 0 : index
    %c0_23 = arith.constant 0 : index
    %24 = vector.load %arg9[%c0_22, %c0_23] : memref<200x128xf32, #tpu.memory_space<vmem>>, vector<200x128xf32>
    tpu.vector_store %arg9[%c0_22, %c0_23], %23 {strides = array<i32>} : memref<200x128xf32, #tpu.memory_space<vmem>>, vector<200x128xf32>,
    %cst_24 = arith.constant 0.000000e+00 : f32
    %25 = vector.broadcast %cst_24 : f32 to vector<136x128xf32>
    %c0_25 = arith.constant 0 : index
    %c0_26 = arith.constant 0 : index
    %26 = vector.load %arg9[%c0_25, %c0_26] : memref<200x128xf32, #tpu.memory_space<vmem>>, vector<136x128xf32>
    %27 = vector.extract_strided_slice %26 {offsets = [0, 0], sizes = [136, 8], strides = [1, 1]} : vector<136x128xf32> to vector<136x8xf32>
    %c0_27 = arith.constant 0 : index
    %c0_28 = arith.constant 0 : index
    %28 = vector.load %arg3[%c0_27, %c0_28] : memref<200x128xf32, #tpu.memory_space<vmem>>, vector<8x128xf32>
    %cst_29 = arith.constant dense<0.000000e+00> : vector<136x128xf32>
    %29 = tpu.matmul %27, %28, %cst_29 {dimension_numbers = #tpu.dot_dimension_numbers<[1], [0], [0], [1], [0, 0, 1, 1], [], []>} : vector<136x8xf32>, vector<8x128xf32>, vector<136x128xf32> -> vector<136x128xf32>
    %30 = arith.addf %25, %29 : vector<136x128xf32>
    %c1 = arith.constant 1 : index
    %c0_30 = arith.constant 0 : index
    %31 = vector.load %arg9[%c1, %c0_30] : memref<200x128xf32, #tpu.memory_space<vmem>>, vector<136x128xf32>
    %32 = vector.extract_strided_slice %31 {offsets = [0, 0], sizes = [136, 8], strides = [1, 1]} : vector<136x128xf32> to vector<136x8xf32>
    %c8 = arith.constant 8 : index
    %c0_31 = arith.constant 0 : index
    %33 = vector.load %arg3[%c8, %c0_31] : memref<200x128xf32, #tpu.memory_space<vmem>>, vector<8x128xf32>
    %cst_32 = arith.constant dense<0.000000e+00> : vector<136x128xf32>
    %34 = tpu.matmul %32, %33, %cst_32 {dimension_numbers = #tpu.dot_dimension_numbers<[1], [0], [0], [1], [0, 0, 1, 1], [], []>} : vector<136x8xf32>, vector<8x128xf32>, vector<136x128xf32> -> vector<136x128xf32>
    %35 = arith.addf %30, %34 : vector<136x128xf32>
    %c2 = arith.constant 2 : index
    %c0_33 = arith.constant 0 : index
    %36 = vector.load %arg9[%c2, %c0_33] : memref<200x128xf32, #tpu.memory_space<vmem>>, vector<136x128xf32>
    %37 = vector.extract_strided_slice %36 {offsets = [0, 0], sizes = [136, 8], strides = [1, 1]} : vector<136x128xf32> to vector<136x8xf32>
    %c16 = arith.constant 16 : index
    %c0_34 = arith.constant 0 : index
    %38 = vector.load %arg3[%c16, %c0_34] : memref<200x128xf32, #tpu.memory_space<vmem>>, vector<8x128xf32>
    %cst_35 = arith.constant dense<0.000000e+00> : vector<136x128xf32>
    %39 = tpu.matmul %37, %38, %cst_35 {dimension_numbers = #tpu.dot_dimension_numbers<[1], [0], [0], [1], [0, 0, 1, 1], [], []>} : vector<136x8xf32>, vector<8x128xf32>, vector<136x128xf32> -> vector<136x128xf32>
    %40 = arith.addf %35, %39 : vector<136x128xf32>
    %c3 = arith.constant 3 : index
    %c0_36 = arith.constant 0 : index
    %41 = vector.load %arg9[%c3, %c0_36] : memref<200x128xf32, #tpu.memory_space<vmem>>, vector<136x128xf32>
    %42 = vector.extract_strided_slice %41 {offsets = [0, 0], sizes = [136, 8], strides = [1, 1]} : vector<136x128xf32> to vector<136x8xf32>
    %c24 = arith.constant 24 : index
    %c0_37 = arith.constant 0 : index
    %43 = vector.load %arg3[%c24, %c0_37] : memref<200x128xf32, #tpu.memory_space<vmem>>, vector<8x128xf32>
    %cst_38 = arith.constant dense<0.000000e+00> : vector<136x128xf32>
    %44 = tpu.matmul %42, %43, %cst_38 {dimension_numbers = #tpu.dot_dimension_numbers<[1], [0], [0], [1], [0, 0, 1, 1], [], []>} : vector<136x8xf32>, vector<8x128xf32>, vector<136x128xf32> -> vector<136x128xf32>
    %45 = arith.addf %40, %44 : vector<136x128xf32>
    %c4 = arith.constant 4 : index
    %c0_39 = arith.constant 0 : index
    %46 = vector.load %arg9[%c4, %c0_39] : memref<200x128xf32, #tpu.memory_space<vmem>>, vector<136x128xf32>
    %47 = vector.extract_strided_slice %46 {offsets = [0, 0], sizes = [136, 8], strides = [1, 1]} : vector<136x128xf32> to vector<136x8xf32>
    %c32 = arith.constant 32 : index
    %c0_40 = arith.constant 0 : index
    %48 = vector.load %arg3[%c32, %c0_40] : memref<200x128xf32, #tpu.memory_space<vmem>>, vector<8x128xf32>
    %cst_41 = arith.constant dense<0.000000e+00> : vector<136x128xf32>
    %49 = tpu.matmul %47, %48, %cst_41 {dimension_numbers = #tpu.dot_dimension_numbers<[1], [0], [0], [1], [0, 0, 1, 1], [], []>} : vector<136x8xf32>, vector<8x128xf32>, vector<136x128xf32> -> vector<136x128xf32>
    %50 = arith.addf %45, %49 : vector<136x128xf32>
    %c14 = arith.constant 14 : index
    %c0_42 = arith.constant 0 : index
    %51 = vector.load %arg9[%c14, %c0_42] : memref<200x128xf32, #tpu.memory_space<vmem>>, vector<136x128xf32>
    %52 = vector.extract_strided_slice %51 {offsets = [0, 0], sizes = [136, 8], strides = [1, 1]} : vector<136x128xf32> to vector<136x8xf32>
    %c40 = arith.constant 40 : index
    %c0_43 = arith.constant 0 : index
    %53 = vector.load %arg3[%c40, %c0_43] : memref<200x128xf32, #tpu.memory_space<vmem>>, vector<8x128xf32>
    %cst_44 = arith.constant dense<0.000000e+00> : vector<136x128xf32>
    %54 = tpu.matmul %52, %53, %cst_44 {dimension_numbers = #tpu.dot_dimension_numbers<[1], [0], [0], [1], [0, 0, 1, 1], [], []>} : vector<136x8xf32>, vector<8x128xf32>, vector<136x128xf32> -> vector<136x128xf32>
    %55 = arith.addf %50, %54 : vector<136x128xf32>
    %c15 = arith.constant 15 : index
    %c0_45 = arith.constant 0 : index
    %56 = vector.load %arg9[%c15, %c0_45] : memref<200x128xf32, #tpu.memory_space<vmem>>, vector<136x128xf32>
    %57 = vector.extract_strided_slice %56 {offsets = [0, 0], sizes = [136, 8], strides = [1, 1]} : vector<136x128xf32> to vector<136x8xf32>
    %c48 = arith.constant 48 : index
    %c0_46 = arith.constant 0 : index
    %58 = vector.load %arg3[%c48, %c0_46] : memref<200x128xf32, #tpu.memory_space<vmem>>, vector<8x128xf32>
    %cst_47 = arith.constant dense<0.000000e+00> : vector<136x128xf32>
    %59 = tpu.matmul %57, %58, %cst_47 {dimension_numbers = #tpu.dot_dimension_numbers<[1], [0], [0], [1], [0, 0, 1, 1], [], []>} : vector<136x8xf32>, vector<8x128xf32>, vector<136x128xf32> -> vector<136x128xf32>
    %60 = arith.addf %55, %59 : vector<136x128xf32>
    %c16_48 = arith.constant 16 : index
    %c0_49 = arith.constant 0 : index
    %61 = vector.load %arg9[%c16_48, %c0_49] : memref<200x128xf32, #tpu.memory_space<vmem>>, vector<136x128xf32>
    %62 = vector.extract_strided_slice %61 {offsets = [0, 0], sizes = [136, 8], strides = [1, 1]} : vector<136x128xf32> to vector<136x8xf32>
    %c56 = arith.constant 56 : index
    %c0_50 = arith.constant 0 : index
    %63 = vector.load %arg3[%c56, %c0_50] : memref<200x128xf32, #tpu.memory_space<vmem>>, vector<8x128xf32>
    %cst_51 = arith.constant dense<0.000000e+00> : vector<136x128xf32>
    %64 = tpu.matmul %62, %63, %cst_51 {dimension_numbers = #tpu.dot_dimension_numbers<[1], [0], [0], [1], [0, 0, 1, 1], [], []>} : vector<136x8xf32>, vector<8x128xf32>, vector<136x128xf32> -> vector<136x128xf32>
    %65 = arith.addf %60, %64 : vector<136x128xf32>
    %c17 = arith.constant 17 : index
    %c0_52 = arith.constant 0 : index
    %66 = vector.load %arg9[%c17, %c0_52] : memref<200x128xf32, #tpu.memory_space<vmem>>, vector<136x128xf32>
    %67 = vector.extract_strided_slice %66 {offsets = [0, 0], sizes = [136, 8], strides = [1, 1]} : vector<136x128xf32> to vector<136x8xf32>
    %c64 = arith.constant 64 : index
    %c0_53 = arith.constant 0 : index
    %68 = vector.load %arg3[%c64, %c0_53] : memref<200x128xf32, #tpu.memory_space<vmem>>, vector<8x128xf32>
    %cst_54 = arith.constant dense<0.000000e+00> : vector<136x128xf32>
    %69 = tpu.matmul %67, %68, %cst_54 {dimension_numbers = #tpu.dot_dimension_numbers<[1], [0], [0], [1], [0, 0, 1, 1], [], []>} : vector<136x8xf32>, vector<8x128xf32>, vector<136x128xf32> -> vector<136x128xf32>
    %70 = arith.addf %65, %69 : vector<136x128xf32>
    %c18 = arith.constant 18 : index
    %c0_55 = arith.constant 0 : index
    %71 = vector.load %arg9[%c18, %c0_55] : memref<200x128xf32, #tpu.memory_space<vmem>>, vector<136x128xf32>
    %72 = vector.extract_strided_slice %71 {offsets = [0, 0], sizes = [136, 8], strides = [1, 1]} : vector<136x128xf32> to vector<136x8xf32>
    %c72 = arith.constant 72 : index
    %c0_56 = arith.constant 0 : index
    %73 = vector.load %arg3[%c72, %c0_56] : memref<200x128xf32, #tpu.memory_space<vmem>>, vector<8x128xf32>
    %cst_57 = arith.constant dense<0.000000e+00> : vector<136x128xf32>
    %74 = tpu.matmul %72, %73, %cst_57 {dimension_numbers = #tpu.dot_dimension_numbers<[1], [0], [0], [1], [0, 0, 1, 1], [], []>} : vector<136x8xf32>, vector<8x128xf32>, vector<136x128xf32> -> vector<136x128xf32>
    %75 = arith.addf %70, %74 : vector<136x128xf32>
    %c28 = arith.constant 28 : index
    %c0_58 = arith.constant 0 : index
    %76 = vector.load %arg9[%c28, %c0_58] : memref<200x128xf32, #tpu.memory_space<vmem>>, vector<136x128xf32>
    %77 = vector.extract_strided_slice %76 {offsets = [0, 0], sizes = [136, 8], strides = [1, 1]} : vector<136x128xf32> to vector<136x8xf32>
    %c80 = arith.constant 80 : index
    %c0_59 = arith.constant 0 : index
    %78 = vector.load %arg3[%c80, %c0_59] : memref<200x128xf32, #tpu.memory_space<vmem>>, vector<8x128xf32>
    %cst_60 = arith.constant dense<0.000000e+00> : vector<136x128xf32>
    %79 = tpu.matmul %77, %78, %cst_60 {dimension_numbers = #tpu.dot_dimension_numbers<[1], [0], [0], [1], [0, 0, 1, 1], [], []>} : vector<136x8xf32>, vector<8x128xf32>, vector<136x128xf32> -> vector<136x128xf32>
    %80 = arith.addf %75, %79 : vector<136x128xf32>
    %c29 = arith.constant 29 : index
    %c0_61 = arith.constant 0 : index
    %81 = vector.load %arg9[%c29, %c0_61] : memref<200x128xf32, #tpu.memory_space<vmem>>, vector<136x128xf32>
    %82 = vector.extract_strided_slice %81 {offsets = [0, 0], sizes = [136, 8], strides = [1, 1]} : vector<136x128xf32> to vector<136x8xf32>
    %c88 = arith.constant 88 : index
    %c0_62 = arith.constant 0 : index
    %83 = vector.load %arg3[%c88, %c0_62] : memref<200x128xf32, #tpu.memory_space<vmem>>, vector<8x128xf32>
    %cst_63 = arith.constant dense<0.000000e+00> : vector<136x128xf32>
    %84 = tpu.matmul %82, %83, %cst_63 {dimension_numbers = #tpu.dot_dimension_numbers<[1], [0], [0], [1], [0, 0, 1, 1], [], []>} : vector<136x8xf32>, vector<8x128xf32>, vector<136x128xf32> -> vector<136x128xf32>
    %85 = arith.addf %80, %84 : vector<136x128xf32>
    %c30 = arith.constant 30 : index
    %c0_64 = arith.constant 0 : index
    %86 = vector.load %arg9[%c30, %c0_64] : memref<200x128xf32, #tpu.memory_space<vmem>>, vector<136x128xf32>
    %87 = vector.extract_strided_slice %86 {offsets = [0, 0], sizes = [136, 8], strides = [1, 1]} : vector<136x128xf32> to vector<136x8xf32>
    %c96 = arith.constant 96 : index
    %c0_65 = arith.constant 0 : index
    %88 = vector.load %arg3[%c96, %c0_65] : memref<200x128xf32, #tpu.memory_space<vmem>>, vector<8x128xf32>
    %cst_66 = arith.constant dense<0.000000e+00> : vector<136x128xf32>
    %89 = tpu.matmul %87, %88, %cst_66 {dimension_numbers = #tpu.dot_dimension_numbers<[1], [0], [0], [1], [0, 0, 1, 1], [], []>} : vector<136x8xf32>, vector<8x128xf32>, vector<136x128xf32> -> vector<136x128xf32>
    %90 = arith.addf %85, %89 : vector<136x128xf32>
    %c31 = arith.constant 31 : index
    %c0_67 = arith.constant 0 : index
    %91 = vector.load %arg9[%c31, %c0_67] : memref<200x128xf32, #tpu.memory_space<vmem>>, vector<136x128xf32>
    %92 = vector.extract_strided_slice %91 {offsets = [0, 0], sizes = [136, 8], strides = [1, 1]} : vector<136x128xf32> to vector<136x8xf32>
    %c104 = arith.constant 104 : index
    %c0_68 = arith.constant 0 : index
    %93 = vector.load %arg3[%c104, %c0_68] : memref<200x128xf32, #tpu.memory_space<vmem>>, vector<8x128xf32>
    %cst_69 = arith.constant dense<0.000000e+00> : vector<136x128xf32>
    %94 = tpu.matmul %92, %93, %cst_69 {dimension_numbers = #tpu.dot_dimension_numbers<[1], [0], [0], [1], [0, 0, 1, 1], [], []>} : vector<136x8xf32>, vector<8x128xf32>, vector<136x128xf32> -> vector<136x128xf32>
    %95 = arith.addf %90, %94 : vector<136x128xf32>
    %c32_70 = arith.constant 32 : index
    %c0_71 = arith.constant 0 : index
    %96 = vector.load %arg9[%c32_70, %c0_71] : memref<200x128xf32, #tpu.memory_space<vmem>>, vector<136x128xf32>
    %97 = vector.extract_strided_slice %96 {offsets = [0, 0], sizes = [136, 8], strides = [1, 1]} : vector<136x128xf32> to vector<136x8xf32>
    %c112 = arith.constant 112 : index
    %c0_72 = arith.constant 0 : index
    %98 = vector.load %arg3[%c112, %c0_72] : memref<200x128xf32, #tpu.memory_space<vmem>>, vector<8x128xf32>
    %cst_73 = arith.constant dense<0.000000e+00> : vector<136x128xf32>
    %99 = tpu.matmul %97, %98, %cst_73 {dimension_numbers = #tpu.dot_dimension_numbers<[1], [0], [0], [1], [0, 0, 1, 1], [], []>} : vector<136x8xf32>, vector<8x128xf32>, vector<136x128xf32> -> vector<136x128xf32>
    %100 = arith.addf %95, %99 : vector<136x128xf32>
    %c42 = arith.constant 42 : index
    %c0_74 = arith.constant 0 : index
    %101 = vector.load %arg9[%c42, %c0_74] : memref<200x128xf32, #tpu.memory_space<vmem>>, vector<136x128xf32>
    %102 = vector.extract_strided_slice %101 {offsets = [0, 0], sizes = [136, 8], strides = [1, 1]} : vector<136x128xf32> to vector<136x8xf32>
    %c120 = arith.constant 120 : index
    %c0_75 = arith.constant 0 : index
    %103 = vector.load %arg3[%c120, %c0_75] : memref<200x128xf32, #tpu.memory_space<vmem>>, vector<8x128xf32>
    %cst_76 = arith.constant dense<0.000000e+00> : vector<136x128xf32>
    %104 = tpu.matmul %102, %103, %cst_76 {dimension_numbers = #tpu.dot_dimension_numbers<[1], [0], [0], [1], [0, 0, 1, 1], [], []>} : vector<136x8xf32>, vector<8x128xf32>, vector<136x128xf32> -> vector<136x128xf32>
    %105 = arith.addf %100, %104 : vector<136x128xf32>
    %c43 = arith.constant 43 : index
    %c0_77 = arith.constant 0 : index
    %106 = vector.load %arg9[%c43, %c0_77] : memref<200x128xf32, #tpu.memory_space<vmem>>, vector<136x128xf32>
    %107 = vector.extract_strided_slice %106 {offsets = [0, 0], sizes = [136, 8], strides = [1, 1]} : vector<136x128xf32> to vector<136x8xf32>
    %c128 = arith.constant 128 : index
    %c0_78 = arith.constant 0 : index
    %108 = vector.load %arg3[%c128, %c0_78] : memref<200x128xf32, #tpu.memory_space<vmem>>, vector<8x128xf32>
    %cst_79 = arith.constant dense<0.000000e+00> : vector<136x128xf32>
    %109 = tpu.matmul %107, %108, %cst_79 {dimension_numbers = #tpu.dot_dimension_numbers<[1], [0], [0], [1], [0, 0, 1, 1], [], []>} : vector<136x8xf32>, vector<8x128xf32>, vector<136x128xf32> -> vector<136x128xf32>
    %110 = arith.addf %105, %109 : vector<136x128xf32>
    %c44 = arith.constant 44 : index
    %c0_80 = arith.constant 0 : index
    %111 = vector.load %arg9[%c44, %c0_80] : memref<200x128xf32, #tpu.memory_space<vmem>>, vector<136x128xf32>
    %112 = vector.extract_strided_slice %111 {offsets = [0, 0], sizes = [136, 8], strides = [1, 1]} : vector<136x128xf32> to vector<136x8xf32>
    %c136 = arith.constant 136 : index
    %c0_81 = arith.constant 0 : index
    %113 = vector.load %arg3[%c136, %c0_81] : memref<200x128xf32, #tpu.memory_space<vmem>>, vector<8x128xf32>
    %cst_82 = arith.constant dense<0.000000e+00> : vector<136x128xf32>
    %114 = tpu.matmul %112, %113, %cst_82 {dimension_numbers = #tpu.dot_dimension_numbers<[1], [0], [0], [1], [0, 0, 1, 1], [], []>} : vector<136x8xf32>, vector<8x128xf32>, vector<136x128xf32> -> vector<136x128xf32>
    %115 = arith.addf %110, %114 : vector<136x128xf32>
    %c45 = arith.constant 45 : index
    %c0_83 = arith.constant 0 : index
    %116 = vector.load %arg9[%c45, %c0_83] : memref<200x128xf32, #tpu.memory_space<vmem>>, vector<136x128xf32>
    %117 = vector.extract_strided_slice %116 {offsets = [0, 0], sizes = [136, 8], strides = [1, 1]} : vector<136x128xf32> to vector<136x8xf32>
    %c144 = arith.constant 144 : index
    %c0_84 = arith.constant 0 : index
    %118 = vector.load %arg3[%c144, %c0_84] : memref<200x128xf32, #tpu.memory_space<vmem>>, vector<8x128xf32>
    %cst_85 = arith.constant dense<0.000000e+00> : vector<136x128xf32>
    %119 = tpu.matmul %117, %118, %cst_85 {dimension_numbers = #tpu.dot_dimension_numbers<[1], [0], [0], [1], [0, 0, 1, 1], [], []>} : vector<136x8xf32>, vector<8x128xf32>, vector<136x128xf32> -> vector<136x128xf32>
    %120 = arith.addf %115, %119 : vector<136x128xf32>
    %c46 = arith.constant 46 : index
    %c0_86 = arith.constant 0 : index
    %121 = vector.load %arg9[%c46, %c0_86] : memref<200x128xf32, #tpu.memory_space<vmem>>, vector<136x128xf32>
    %122 = vector.extract_strided_slice %121 {offsets = [0, 0], sizes = [136, 8], strides = [1, 1]} : vector<136x128xf32> to vector<136x8xf32>
    %c152 = arith.constant 152 : index
    %c0_87 = arith.constant 0 : index
    %123 = vector.load %arg3[%c152, %c0_87] : memref<200x128xf32, #tpu.memory_space<vmem>>, vector<8x128xf32>
    %cst_88 = arith.constant dense<0.000000e+00> : vector<136x128xf32>
    %124 = tpu.matmul %122, %123, %cst_88 {dimension_numbers = #tpu.dot_dimension_numbers<[1], [0], [0], [1], [0, 0, 1, 1], [], []>} : vector<136x8xf32>, vector<8x128xf32>, vector<136x128xf32> -> vector<136x128xf32>
    %125 = arith.addf %120, %124 : vector<136x128xf32>
    %c56_89 = arith.constant 56 : index
    %c0_90 = arith.constant 0 : index
    %126 = vector.load %arg9[%c56_89, %c0_90] : memref<200x128xf32, #tpu.memory_space<vmem>>, vector<136x128xf32>
    %127 = vector.extract_strided_slice %126 {offsets = [0, 0], sizes = [136, 8], strides = [1, 1]} : vector<136x128xf32> to vector<136x8xf32>
    %c160 = arith.constant 160 : index
    %c0_91 = arith.constant 0 : index
    %128 = vector.load %arg3[%c160, %c0_91] : memref<200x128xf32, #tpu.memory_space<vmem>>, vector<8x128xf32>
    %cst_92 = arith.constant dense<0.000000e+00> : vector<136x128xf32>
    %129 = tpu.matmul %127, %128, %cst_92 {dimension_numbers = #tpu.dot_dimension_numbers<[1], [0], [0], [1], [0, 0, 1, 1], [], []>} : vector<136x8xf32>, vector<8x128xf32>, vector<136x128xf32> -> vector<136x128xf32>
    %130 = arith.addf %125, %129 : vector<136x128xf32>
    %c57 = arith.constant 57 : index
    %c0_93 = arith.constant 0 : index
    %131 = vector.load %arg9[%c57, %c0_93] : memref<200x128xf32, #tpu.memory_space<vmem>>, vector<136x128xf32>
    %132 = vector.extract_strided_slice %131 {offsets = [0, 0], sizes = [136, 8], strides = [1, 1]} : vector<136x128xf32> to vector<136x8xf32>
    %c168 = arith.constant 168 : index
    %c0_94 = arith.constant 0 : index
    %133 = vector.load %arg3[%c168, %c0_94] : memref<200x128xf32, #tpu.memory_space<vmem>>, vector<8x128xf32>
    %cst_95 = arith.constant dense<0.000000e+00> : vector<136x128xf32>
    %134 = tpu.matmul %132, %133, %cst_95 {dimension_numbers = #tpu.dot_dimension_numbers<[1], [0], [0], [1], [0, 0, 1, 1], [], []>} : vector<136x8xf32>, vector<8x128xf32>, vector<136x128xf32> -> vector<136x128xf32>
    %135 = arith.addf %130, %134 : vector<136x128xf32>
    %c58 = arith.constant 58 : index
    %c0_96 = arith.constant 0 : index
    %136 = vector.load %arg9[%c58, %c0_96] : memref<200x128xf32, #tpu.memory_space<vmem>>, vector<136x128xf32>
    %137 = vector.extract_strided_slice %136 {offsets = [0, 0], sizes = [136, 8], strides = [1, 1]} : vector<136x128xf32> to vector<136x8xf32>
    %c176 = arith.constant 176 : index
    %c0_97 = arith.constant 0 : index
    %138 = vector.load %arg3[%c176, %c0_97] : memref<200x128xf32, #tpu.memory_space<vmem>>, vector<8x128xf32>
    %cst_98 = arith.constant dense<0.000000e+00> : vector<136x128xf32>
    %139 = tpu.matmul %137, %138, %cst_98 {dimension_numbers = #tpu.dot_dimension_numbers<[1], [0], [0], [1], [0, 0, 1, 1], [], []>} : vector<136x8xf32>, vector<8x128xf32>, vector<136x128xf32> -> vector<136x128xf32>
    %140 = arith.addf %135, %139 : vector<136x128xf32>
    %c59 = arith.constant 59 : index
    %c0_99 = arith.constant 0 : index
    %141 = vector.load %arg9[%c59, %c0_99] : memref<200x128xf32, #tpu.memory_space<vmem>>, vector<136x128xf32>
    %142 = vector.extract_strided_slice %141 {offsets = [0, 0], sizes = [136, 8], strides = [1, 1]} : vector<136x128xf32> to vector<136x8xf32>
    %c184 = arith.constant 184 : index
    %c0_100 = arith.constant 0 : index
    %143 = vector.load %arg3[%c184, %c0_100] : memref<200x128xf32, #tpu.memory_space<vmem>>, vector<8x128xf32>
    %cst_101 = arith.constant dense<0.000000e+00> : vector<136x128xf32>
    %144 = tpu.matmul %142, %143, %cst_101 {dimension_numbers = #tpu.dot_dimension_numbers<[1], [0], [0], [1], [0, 0, 1, 1], [], []>} : vector<136x8xf32>, vector<8x128xf32>, vector<136x128xf32> -> vector<136x128xf32>
    %145 = arith.addf %140, %144 : vector<136x128xf32>
    %c60 = arith.constant 60 : index
    %c0_102 = arith.constant 0 : index
    %146 = vector.load %arg9[%c60, %c0_102] : memref<200x128xf32, #tpu.memory_space<vmem>>, vector<136x128xf32>
    %147 = vector.extract_strided_slice %146 {offsets = [0, 0], sizes = [136, 8], strides = [1, 1]} : vector<136x128xf32> to vector<136x8xf32>
    %c192 = arith.constant 192 : index
    %c0_103 = arith.constant 0 : index
    %148 = vector.load %arg3[%c192, %c0_103] : memref<200x128xf32, #tpu.memory_space<vmem>>, vector<8x128xf32>
    %cst_104 = arith.constant dense<0.000000e+00> : vector<136x128xf32>
    %149 = tpu.matmul %147, %148, %cst_104 {dimension_numbers = #tpu.dot_dimension_numbers<[1], [0], [0], [1], [0, 0, 1, 1], [], []>} : vector<136x8xf32>, vector<8x128xf32>, vector<136x128xf32> -> vector<136x128xf32>
    %150 = arith.addf %145, %149 : vector<136x128xf32>
    %c1_105 = arith.constant 1 : index
    %c0_106 = arith.constant 0 : index
    %151 = vector.load %arg7[%c1_105, %c0_106] : memref<8x128xf32, #tpu.memory_space<vmem>>, vector<1x128xf32>
    %152 = vector.broadcast %151 : vector<1x128xf32> to vector<136x128xf32>
    %153 = arith.addf %150, %152 : vector<136x128xf32>
    %cst_107 = arith.constant 0.000000e+00 : f32
    %154 = vector.broadcast %cst_107 : f32 to vector<136x128xf32>
    %155 = arith.maximumf %153, %154 : vector<136x128xf32>
    %c0_108 = arith.constant 0 : index
    %c0_109 = arith.constant 0 : index
    %156 = vector.load %arg10[%c0_108, %c0_109] : memref<136x128xf32, #tpu.memory_space<vmem>>, vector<136x128xf32>
    tpu.vector_store %arg10[%c0_108, %c0_109], %155 {strides = array<i32>} : memref<136x128xf32, #tpu.memory_space<vmem>>, vector<136x128xf32>,
    %cst_110 = arith.constant 0.000000e+00 : f32
    %157 = vector.broadcast %cst_110 : f32 to vector<1x128xf32>
    %c0_111 = arith.constant 0 : index
    %c0_112 = arith.constant 0 : index
    %158 = vector.load %arg10[%c0_111, %c0_112] : memref<136x128xf32, #tpu.memory_space<vmem>>, vector<2x128xf32>
    %c14_113 = arith.constant 14 : index
    %c0_114 = arith.constant 0 : index
    %159 = vector.load %arg10[%c14_113, %c0_114] : memref<136x128xf32, #tpu.memory_space<vmem>>, vector<2x128xf32>
    %160 = arith.maximumf %158, %159 : vector<2x128xf32>
    %cst_115 = arith.constant dense<0xFF800000> : vector<128xf32>
    %161 = vector.multi_reduction <maximumf>, %160, %cst_115 [0] : vector<2x128xf32> to vector<128xf32>
    %162 = vector.shape_cast %161 : vector<128xf32> to vector<1x128xf32>
    %163 = vector.extract_strided_slice %162 {offsets = [0, 0], sizes = [1, 16], strides = [1, 1]} : vector<1x128xf32> to vector<1x16xf32>
    %c0_116 = arith.constant 0 : index
    %c0_117 = arith.constant 0 : index
    %164 = vector.load %arg4[%c0_116, %c0_117] : memref<400x128xf32, #tpu.memory_space<vmem>>, vector<16x128xf32>
    %cst_118 = arith.constant dense<0.000000e+00> : vector<1x128xf32>
    %165 = tpu.matmul %163, %164, %cst_118 {dimension_numbers = #tpu.dot_dimension_numbers<[1], [0], [0], [1], [0, 0, 1, 1], [], []>} : vector<1x16xf32>, vector<16x128xf32>, vector<1x128xf32> -> vector<1x128xf32>
    %166 = arith.addf %157, %165 : vector<1x128xf32>
    %c2_119 = arith.constant 2 : index
    %c0_120 = arith.constant 0 : index
    %167 = vector.load %arg10[%c2_119, %c0_120] : memref<136x128xf32, #tpu.memory_space<vmem>>, vector<2x128xf32>
    %c16_121 = arith.constant 16 : index
    %c0_122 = arith.constant 0 : index
    %168 = vector.load %arg10[%c16_121, %c0_122] : memref<136x128xf32, #tpu.memory_space<vmem>>, vector<2x128xf32>
    %169 = arith.maximumf %167, %168 : vector<2x128xf32>
    %cst_123 = arith.constant dense<0xFF800000> : vector<128xf32>
    %170 = vector.multi_reduction <maximumf>, %169, %cst_123 [0] : vector<2x128xf32> to vector<128xf32>
    %171 = vector.shape_cast %170 : vector<128xf32> to vector<1x128xf32>
    %172 = vector.extract_strided_slice %171 {offsets = [0, 0], sizes = [1, 16], strides = [1, 1]} : vector<1x128xf32> to vector<1x16xf32>
    %c16_124 = arith.constant 16 : index
    %c0_125 = arith.constant 0 : index
    %173 = vector.load %arg4[%c16_124, %c0_125] : memref<400x128xf32, #tpu.memory_space<vmem>>, vector<16x128xf32>
    %cst_126 = arith.constant dense<0.000000e+00> : vector<1x128xf32>
    %174 = tpu.matmul %172, %173, %cst_126 {dimension_numbers = #tpu.dot_dimension_numbers<[1], [0], [0], [1], [0, 0, 1, 1], [], []>} : vector<1x16xf32>, vector<16x128xf32>, vector<1x128xf32> -> vector<1x128xf32>
    %175 = arith.addf %166, %174 : vector<1x128xf32>
    %c4_127 = arith.constant 4 : index
    %c0_128 = arith.constant 0 : index
    %176 = vector.load %arg10[%c4_127, %c0_128] : memref<136x128xf32, #tpu.memory_space<vmem>>, vector<2x128xf32>
    %c18_129 = arith.constant 18 : index
    %c0_130 = arith.constant 0 : index
    %177 = vector.load %arg10[%c18_129, %c0_130] : memref<136x128xf32, #tpu.memory_space<vmem>>, vector<2x128xf32>
    %178 = arith.maximumf %176, %177 : vector<2x128xf32>
    %cst_131 = arith.constant dense<0xFF800000> : vector<128xf32>
    %179 = vector.multi_reduction <maximumf>, %178, %cst_131 [0] : vector<2x128xf32> to vector<128xf32>
    %180 = vector.shape_cast %179 : vector<128xf32> to vector<1x128xf32>
    %181 = vector.extract_strided_slice %180 {offsets = [0, 0], sizes = [1, 16], strides = [1, 1]} : vector<1x128xf32> to vector<1x16xf32>
    %c32_132 = arith.constant 32 : index
    %c0_133 = arith.constant 0 : index
    %182 = vector.load %arg4[%c32_132, %c0_133] : memref<400x128xf32, #tpu.memory_space<vmem>>, vector<16x128xf32>
    %cst_134 = arith.constant dense<0.000000e+00> : vector<1x128xf32>
    %183 = tpu.matmul %181, %182, %cst_134 {dimension_numbers = #tpu.dot_dimension_numbers<[1], [0], [0], [1], [0, 0, 1, 1], [], []>} : vector<1x16xf32>, vector<16x128xf32>, vector<1x128xf32> -> vector<1x128xf32>
    %184 = arith.addf %175, %183 : vector<1x128xf32>
    %c6 = arith.constant 6 : index
    %c0_135 = arith.constant 0 : index
    %185 = vector.load %arg10[%c6, %c0_135] : memref<136x128xf32, #tpu.memory_space<vmem>>, vector<2x128xf32>
    %c20 = arith.constant 20 : index
    %c0_136 = arith.constant 0 : index
    %186 = vector.load %arg10[%c20, %c0_136] : memref<136x128xf32, #tpu.memory_space<vmem>>, vector<2x128xf32>
    %187 = arith.maximumf %185, %186 : vector<2x128xf32>
    %cst_137 = arith.constant dense<0xFF800000> : vector<128xf32>
    %188 = vector.multi_reduction <maximumf>, %187, %cst_137 [0] : vector<2x128xf32> to vector<128xf32>
    %189 = vector.shape_cast %188 : vector<128xf32> to vector<1x128xf32>
    %190 = vector.extract_strided_slice %189 {offsets = [0, 0], sizes = [1, 16], strides = [1, 1]} : vector<1x128xf32> to vector<1x16xf32>
    %c48_138 = arith.constant 48 : index
    %c0_139 = arith.constant 0 : index
    %191 = vector.load %arg4[%c48_138, %c0_139] : memref<400x128xf32, #tpu.memory_space<vmem>>, vector<16x128xf32>
    %cst_140 = arith.constant dense<0.000000e+00> : vector<1x128xf32>
    %192 = tpu.matmul %190, %191, %cst_140 {dimension_numbers = #tpu.dot_dimension_numbers<[1], [0], [0], [1], [0, 0, 1, 1], [], []>} : vector<1x16xf32>, vector<16x128xf32>, vector<1x128xf32> -> vector<1x128xf32>
    %193 = arith.addf %184, %192 : vector<1x128xf32>
    %c8_141 = arith.constant 8 : index
    %c0_142 = arith.constant 0 : index
    %194 = vector.load %arg10[%c8_141, %c0_142] : memref<136x128xf32, #tpu.memory_space<vmem>>, vector<2x128xf32>
    %c22 = arith.constant 22 : index
    %c0_143 = arith.constant 0 : index
    %195 = vector.load %arg10[%c22, %c0_143] : memref<136x128xf32, #tpu.memory_space<vmem>>, vector<2x128xf32>
    %196 = arith.maximumf %194, %195 : vector<2x128xf32>
    %cst_144 = arith.constant dense<0xFF800000> : vector<128xf32>
    %197 = vector.multi_reduction <maximumf>, %196, %cst_144 [0] : vector<2x128xf32> to vector<128xf32>
    %198 = vector.shape_cast %197 : vector<128xf32> to vector<1x128xf32>
    %199 = vector.extract_strided_slice %198 {offsets = [0, 0], sizes = [1, 16], strides = [1, 1]} : vector<1x128xf32> to vector<1x16xf32>
    %c64_145 = arith.constant 64 : index
    %c0_146 = arith.constant 0 : index
    %200 = vector.load %arg4[%c64_145, %c0_146] : memref<400x128xf32, #tpu.memory_space<vmem>>, vector<16x128xf32>
    %cst_147 = arith.constant dense<0.000000e+00> : vector<1x128xf32>
    %201 = tpu.matmul %199, %200, %cst_147 {dimension_numbers = #tpu.dot_dimension_numbers<[1], [0], [0], [1], [0, 0, 1, 1], [], []>} : vector<1x16xf32>, vector<16x128xf32>, vector<1x128xf32> -> vector<1x128xf32>
    %202 = arith.addf %193, %201 : vector<1x128xf32>
    %c28_148 = arith.constant 28 : index
    %c0_149 = arith.constant 0 : index
    %203 = vector.load %arg10[%c28_148, %c0_149] : memref<136x128xf32, #tpu.memory_space<vmem>>, vector<2x128xf32>
    %c42_150 = arith.constant 42 : index
    %c0_151 = arith.constant 0 : index
    %204 = vector.load %arg10[%c42_150, %c0_151] : memref<136x128xf32, #tpu.memory_space<vmem>>, vector<2x128xf32>
    %205 = arith.maximumf %203, %204 : vector<2x128xf32>
    %cst_152 = arith.constant dense<0xFF800000> : vector<128xf32>
    %206 = vector.multi_reduction <maximumf>, %205, %cst_152 [0] : vector<2x128xf32> to vector<128xf32>
    %207 = vector.shape_cast %206 : vector<128xf32> to vector<1x128xf32>
    %208 = vector.extract_strided_slice %207 {offsets = [0, 0], sizes = [1, 16], strides = [1, 1]} : vector<1x128xf32> to vector<1x16xf32>
    %c80_153 = arith.constant 80 : index
    %c0_154 = arith.constant 0 : index
    %209 = vector.load %arg4[%c80_153, %c0_154] : memref<400x128xf32, #tpu.memory_space<vmem>>, vector<16x128xf32>
    %cst_155 = arith.constant dense<0.000000e+00> : vector<1x128xf32>
    %210 = tpu.matmul %208, %209, %cst_155 {dimension_numbers = #tpu.dot_dimension_numbers<[1], [0], [0], [1], [0, 0, 1, 1], [], []>} : vector<1x16xf32>, vector<16x128xf32>, vector<1x128xf32> -> vector<1x128xf32>
    %211 = arith.addf %202, %210 : vector<1x128xf32>
    %c30_156 = arith.constant 30 : index
    %c0_157 = arith.constant 0 : index
    %212 = vector.load %arg10[%c30_156, %c0_157] : memref<136x128xf32, #tpu.memory_space<vmem>>, vector<2x128xf32>
    %c44_158 = arith.constant 44 : index
    %c0_159 = arith.constant 0 : index
    %213 = vector.load %arg10[%c44_158, %c0_159] : memref<136x128xf32, #tpu.memory_space<vmem>>, vector<2x128xf32>
    %214 = arith.maximumf %212, %213 : vector<2x128xf32>
    %cst_160 = arith.constant dense<0xFF800000> : vector<128xf32>
    %215 = vector.multi_reduction <maximumf>, %214, %cst_160 [0] : vector<2x128xf32> to vector<128xf32>
    %216 = vector.shape_cast %215 : vector<128xf32> to vector<1x128xf32>
    %217 = vector.extract_strided_slice %216 {offsets = [0, 0], sizes = [1, 16], strides = [1, 1]} : vector<1x128xf32> to vector<1x16xf32>
    %c96_161 = arith.constant 96 : index
    %c0_162 = arith.constant 0 : index
    %218 = vector.load %arg4[%c96_161, %c0_162] : memref<400x128xf32, #tpu.memory_space<vmem>>, vector<16x128xf32>
    %cst_163 = arith.constant dense<0.000000e+00> : vector<1x128xf32>
    %219 = tpu.matmul %217, %218, %cst_163 {dimension_numbers = #tpu.dot_dimension_numbers<[1], [0], [0], [1], [0, 0, 1, 1], [], []>} : vector<1x16xf32>, vector<16x128xf32>, vector<1x128xf32> -> vector<1x128xf32>
    %220 = arith.addf %211, %219 : vector<1x128xf32>
    %c32_164 = arith.constant 32 : index
    %c0_165 = arith.constant 0 : index
    %221 = vector.load %arg10[%c32_164, %c0_165] : memref<136x128xf32, #tpu.memory_space<vmem>>, vector<2x128xf32>
    %c46_166 = arith.constant 46 : index
    %c0_167 = arith.constant 0 : index
    %222 = vector.load %arg10[%c46_166, %c0_167] : memref<136x128xf32, #tpu.memory_space<vmem>>, vector<2x128xf32>
    %223 = arith.maximumf %221, %222 : vector<2x128xf32>
    %cst_168 = arith.constant dense<0xFF800000> : vector<128xf32>
    %224 = vector.multi_reduction <maximumf>, %223, %cst_168 [0] : vector<2x128xf32> to vector<128xf32>
    %225 = vector.shape_cast %224 : vector<128xf32> to vector<1x128xf32>
    %226 = vector.extract_strided_slice %225 {offsets = [0, 0], sizes = [1, 16], strides = [1, 1]} : vector<1x128xf32> to vector<1x16xf32>
    %c112_169 = arith.constant 112 : index
    %c0_170 = arith.constant 0 : index
    %227 = vector.load %arg4[%c112_169, %c0_170] : memref<400x128xf32, #tpu.memory_space<vmem>>, vector<16x128xf32>
    %cst_171 = arith.constant dense<0.000000e+00> : vector<1x128xf32>
    %228 = tpu.matmul %226, %227, %cst_171 {dimension_numbers = #tpu.dot_dimension_numbers<[1], [0], [0], [1], [0, 0, 1, 1], [], []>} : vector<1x16xf32>, vector<16x128xf32>, vector<1x128xf32> -> vector<1x128xf32>
    %229 = arith.addf %220, %228 : vector<1x128xf32>
    %c34 = arith.constant 34 : index
    %c0_172 = arith.constant 0 : index
    %230 = vector.load %arg10[%c34, %c0_172] : memref<136x128xf32, #tpu.memory_space<vmem>>, vector<2x128xf32>
    %c48_173 = arith.constant 48 : index
    %c0_174 = arith.constant 0 : index
    %231 = vector.load %arg10[%c48_173, %c0_174] : memref<136x128xf32, #tpu.memory_space<vmem>>, vector<2x128xf32>
    %232 = arith.maximumf %230, %231 : vector<2x128xf32>
    %cst_175 = arith.constant dense<0xFF800000> : vector<128xf32>
    %233 = vector.multi_reduction <maximumf>, %232, %cst_175 [0] : vector<2x128xf32> to vector<128xf32>
    %234 = vector.shape_cast %233 : vector<128xf32> to vector<1x128xf32>
    %235 = vector.extract_strided_slice %234 {offsets = [0, 0], sizes = [1, 16], strides = [1, 1]} : vector<1x128xf32> to vector<1x16xf32>
    %c128_176 = arith.constant 128 : index
    %c0_177 = arith.constant 0 : index
    %236 = vector.load %arg4[%c128_176, %c0_177] : memref<400x128xf32, #tpu.memory_space<vmem>>, vector<16x128xf32>
    %cst_178 = arith.constant dense<0.000000e+00> : vector<1x128xf32>
    %237 = tpu.matmul %235, %236, %cst_178 {dimension_numbers = #tpu.dot_dimension_numbers<[1], [0], [0], [1], [0, 0, 1, 1], [], []>} : vector<1x16xf32>, vector<16x128xf32>, vector<1x128xf32> -> vector<1x128xf32>
    %238 = arith.addf %229, %237 : vector<1x128xf32>
    %c36 = arith.constant 36 : index
    %c0_179 = arith.constant 0 : index
    %239 = vector.load %arg10[%c36, %c0_179] : memref<136x128xf32, #tpu.memory_space<vmem>>, vector<2x128xf32>
    %c50 = arith.constant 50 : index
    %c0_180 = arith.constant 0 : index
    %240 = vector.load %arg10[%c50, %c0_180] : memref<136x128xf32, #tpu.memory_space<vmem>>, vector<2x128xf32>
    %241 = arith.maximumf %239, %240 : vector<2x128xf32>
    %cst_181 = arith.constant dense<0xFF800000> : vector<128xf32>
    %242 = vector.multi_reduction <maximumf>, %241, %cst_181 [0] : vector<2x128xf32> to vector<128xf32>
    %243 = vector.shape_cast %242 : vector<128xf32> to vector<1x128xf32>
    %244 = vector.extract_strided_slice %243 {offsets = [0, 0], sizes = [1, 16], strides = [1, 1]} : vector<1x128xf32> to vector<1x16xf32>
    %c144_182 = arith.constant 144 : index
    %c0_183 = arith.constant 0 : index
    %245 = vector.load %arg4[%c144_182, %c0_183] : memref<400x128xf32, #tpu.memory_space<vmem>>, vector<16x128xf32>
    %cst_184 = arith.constant dense<0.000000e+00> : vector<1x128xf32>
    %246 = tpu.matmul %244, %245, %cst_184 {dimension_numbers = #tpu.dot_dimension_numbers<[1], [0], [0], [1], [0, 0, 1, 1], [], []>} : vector<1x16xf32>, vector<16x128xf32>, vector<1x128xf32> -> vector<1x128xf32>
    %247 = arith.addf %238, %246 : vector<1x128xf32>
    %c56_185 = arith.constant 56 : index
    %c0_186 = arith.constant 0 : index
    %248 = vector.load %arg10[%c56_185, %c0_186] : memref<136x128xf32, #tpu.memory_space<vmem>>, vector<2x128xf32>
    %c70 = arith.constant 70 : index
    %c0_187 = arith.constant 0 : index
    %249 = vector.load %arg10[%c70, %c0_187] : memref<136x128xf32, #tpu.memory_space<vmem>>, vector<2x128xf32>
    %250 = arith.maximumf %248, %249 : vector<2x128xf32>
    %cst_188 = arith.constant dense<0xFF800000> : vector<128xf32>
    %251 = vector.multi_reduction <maximumf>, %250, %cst_188 [0] : vector<2x128xf32> to vector<128xf32>
    %252 = vector.shape_cast %251 : vector<128xf32> to vector<1x128xf32>
    %253 = vector.extract_strided_slice %252 {offsets = [0, 0], sizes = [1, 16], strides = [1, 1]} : vector<1x128xf32> to vector<1x16xf32>
    %c160_189 = arith.constant 160 : index
    %c0_190 = arith.constant 0 : index
    %254 = vector.load %arg4[%c160_189, %c0_190] : memref<400x128xf32, #tpu.memory_space<vmem>>, vector<16x128xf32>
    %cst_191 = arith.constant dense<0.000000e+00> : vector<1x128xf32>
    %255 = tpu.matmul %253, %254, %cst_191 {dimension_numbers = #tpu.dot_dimension_numbers<[1], [0], [0], [1], [0, 0, 1, 1], [], []>} : vector<1x16xf32>, vector<16x128xf32>, vector<1x128xf32> -> vector<1x128xf32>
    %256 = arith.addf %247, %255 : vector<1x128xf32>
    %c58_192 = arith.constant 58 : index
    %c0_193 = arith.constant 0 : index
    %257 = vector.load %arg10[%c58_192, %c0_193] : memref<136x128xf32, #tpu.memory_space<vmem>>, vector<2x128xf32>
    %c72_194 = arith.constant 72 : index
    %c0_195 = arith.constant 0 : index
    %258 = vector.load %arg10[%c72_194, %c0_195] : memref<136x128xf32, #tpu.memory_space<vmem>>, vector<2x128xf32>
    %259 = arith.maximumf %257, %258 : vector<2x128xf32>
    %cst_196 = arith.constant dense<0xFF800000> : vector<128xf32>
    %260 = vector.multi_reduction <maximumf>, %259, %cst_196 [0] : vector<2x128xf32> to vector<128xf32>
    %261 = vector.shape_cast %260 : vector<128xf32> to vector<1x128xf32>
    %262 = vector.extract_strided_slice %261 {offsets = [0, 0], sizes = [1, 16], strides = [1, 1]} : vector<1x128xf32> to vector<1x16xf32>
    %c176_197 = arith.constant 176 : index
    %c0_198 = arith.constant 0 : index
    %263 = vector.load %arg4[%c176_197, %c0_198] : memref<400x128xf32, #tpu.memory_space<vmem>>, vector<16x128xf32>
    %cst_199 = arith.constant dense<0.000000e+00> : vector<1x128xf32>
    %264 = tpu.matmul %262, %263, %cst_199 {dimension_numbers = #tpu.dot_dimension_numbers<[1], [0], [0], [1], [0, 0, 1, 1], [], []>} : vector<1x16xf32>, vector<16x128xf32>, vector<1x128xf32> -> vector<1x128xf32>
    %265 = arith.addf %256, %264 : vector<1x128xf32>
    %c60_200 = arith.constant 60 : index
    %c0_201 = arith.constant 0 : index
    %266 = vector.load %arg10[%c60_200, %c0_201] : memref<136x128xf32, #tpu.memory_space<vmem>>, vector<2x128xf32>
    %c74 = arith.constant 74 : index
    %c0_202 = arith.constant 0 : index
    %267 = vector.load %arg10[%c74, %c0_202] : memref<136x128xf32, #tpu.memory_space<vmem>>, vector<2x128xf32>
    %268 = arith.maximumf %266, %267 : vector<2x128xf32>
    %cst_203 = arith.constant dense<0xFF800000> : vector<128xf32>
    %269 = vector.multi_reduction <maximumf>, %268, %cst_203 [0] : vector<2x128xf32> to vector<128xf32>
    %270 = vector.shape_cast %269 : vector<128xf32> to vector<1x128xf32>
    %271 = vector.extract_strided_slice %270 {offsets = [0, 0], sizes = [1, 16], strides = [1, 1]} : vector<1x128xf32> to vector<1x16xf32>
    %c192_204 = arith.constant 192 : index
    %c0_205 = arith.constant 0 : index
    %272 = vector.load %arg4[%c192_204, %c0_205] : memref<400x128xf32, #tpu.memory_space<vmem>>, vector<16x128xf32>
    %cst_206 = arith.constant dense<0.000000e+00> : vector<1x128xf32>
    %273 = tpu.matmul %271, %272, %cst_206 {dimension_numbers = #tpu.dot_dimension_numbers<[1], [0], [0], [1], [0, 0, 1, 1], [], []>} : vector<1x16xf32>, vector<16x128xf32>, vector<1x128xf32> -> vector<1x128xf32>
    %274 = arith.addf %265, %273 : vector<1x128xf32>
    %c62 = arith.constant 62 : index
    %c0_207 = arith.constant 0 : index
    %275 = vector.load %arg10[%c62, %c0_207] : memref<136x128xf32, #tpu.memory_space<vmem>>, vector<2x128xf32>
    %c76 = arith.constant 76 : index
    %c0_208 = arith.constant 0 : index
    %276 = vector.load %arg10[%c76, %c0_208] : memref<136x128xf32, #tpu.memory_space<vmem>>, vector<2x128xf32>
    %277 = arith.maximumf %275, %276 : vector<2x128xf32>
    %cst_209 = arith.constant dense<0xFF800000> : vector<128xf32>
    %278 = vector.multi_reduction <maximumf>, %277, %cst_209 [0] : vector<2x128xf32> to vector<128xf32>
    %279 = vector.shape_cast %278 : vector<128xf32> to vector<1x128xf32>
    %280 = vector.extract_strided_slice %279 {offsets = [0, 0], sizes = [1, 16], strides = [1, 1]} : vector<1x128xf32> to vector<1x16xf32>
    %c208 = arith.constant 208 : index
    %c0_210 = arith.constant 0 : index
    %281 = vector.load %arg4[%c208, %c0_210] : memref<400x128xf32, #tpu.memory_space<vmem>>, vector<16x128xf32>
    %cst_211 = arith.constant dense<0.000000e+00> : vector<1x128xf32>
    %282 = tpu.matmul %280, %281, %cst_211 {dimension_numbers = #tpu.dot_dimension_numbers<[1], [0], [0], [1], [0, 0, 1, 1], [], []>} : vector<1x16xf32>, vector<16x128xf32>, vector<1x128xf32> -> vector<1x128xf32>
    %283 = arith.addf %274, %282 : vector<1x128xf32>
    %c64_212 = arith.constant 64 : index
    %c0_213 = arith.constant 0 : index
    %284 = vector.load %arg10[%c64_212, %c0_213] : memref<136x128xf32, #tpu.memory_space<vmem>>, vector<2x128xf32>
    %c78 = arith.constant 78 : index
    %c0_214 = arith.constant 0 : index
    %285 = vector.load %arg10[%c78, %c0_214] : memref<136x128xf32, #tpu.memory_space<vmem>>, vector<2x128xf32>
    %286 = arith.maximumf %284, %285 : vector<2x128xf32>
    %cst_215 = arith.constant dense<0xFF800000> : vector<128xf32>
    %287 = vector.multi_reduction <maximumf>, %286, %cst_215 [0] : vector<2x128xf32> to vector<128xf32>
    %288 = vector.shape_cast %287 : vector<128xf32> to vector<1x128xf32>
    %289 = vector.extract_strided_slice %288 {offsets = [0, 0], sizes = [1, 16], strides = [1, 1]} : vector<1x128xf32> to vector<1x16xf32>
    %c224 = arith.constant 224 : index
    %c0_216 = arith.constant 0 : index
    %290 = vector.load %arg4[%c224, %c0_216] : memref<400x128xf32, #tpu.memory_space<vmem>>, vector<16x128xf32>
    %cst_217 = arith.constant dense<0.000000e+00> : vector<1x128xf32>
    %291 = tpu.matmul %289, %290, %cst_217 {dimension_numbers = #tpu.dot_dimension_numbers<[1], [0], [0], [1], [0, 0, 1, 1], [], []>} : vector<1x16xf32>, vector<16x128xf32>, vector<1x128xf32> -> vector<1x128xf32>
    %292 = arith.addf %283, %291 : vector<1x128xf32>
    %c84 = arith.constant 84 : index
    %c0_218 = arith.constant 0 : index
    %293 = vector.load %arg10[%c84, %c0_218] : memref<136x128xf32, #tpu.memory_space<vmem>>, vector<2x128xf32>
    %c98 = arith.constant 98 : index
    %c0_219 = arith.constant 0 : index
    %294 = vector.load %arg10[%c98, %c0_219] : memref<136x128xf32, #tpu.memory_space<vmem>>, vector<2x128xf32>
    %295 = arith.maximumf %293, %294 : vector<2x128xf32>
    %cst_220 = arith.constant dense<0xFF800000> : vector<128xf32>
    %296 = vector.multi_reduction <maximumf>, %295, %cst_220 [0] : vector<2x128xf32> to vector<128xf32>
    %297 = vector.shape_cast %296 : vector<128xf32> to vector<1x128xf32>
    %298 = vector.extract_strided_slice %297 {offsets = [0, 0], sizes = [1, 16], strides = [1, 1]} : vector<1x128xf32> to vector<1x16xf32>
    %c240 = arith.constant 240 : index
    %c0_221 = arith.constant 0 : index
    %299 = vector.load %arg4[%c240, %c0_221] : memref<400x128xf32, #tpu.memory_space<vmem>>, vector<16x128xf32>
    %cst_222 = arith.constant dense<0.000000e+00> : vector<1x128xf32>
    %300 = tpu.matmul %298, %299, %cst_222 {dimension_numbers = #tpu.dot_dimension_numbers<[1], [0], [0], [1], [0, 0, 1, 1], [], []>} : vector<1x16xf32>, vector<16x128xf32>, vector<1x128xf32> -> vector<1x128xf32>
    %301 = arith.addf %292, %300 : vector<1x128xf32>
    %c86 = arith.constant 86 : index
    %c0_223 = arith.constant 0 : index
    %302 = vector.load %arg10[%c86, %c0_223] : memref<136x128xf32, #tpu.memory_space<vmem>>, vector<2x128xf32>
    %c100 = arith.constant 100 : index
    %c0_224 = arith.constant 0 : index
    %303 = vector.load %arg10[%c100, %c0_224] : memref<136x128xf32, #tpu.memory_space<vmem>>, vector<2x128xf32>
    %304 = arith.maximumf %302, %303 : vector<2x128xf32>
    %cst_225 = arith.constant dense<0xFF800000> : vector<128xf32>
    %305 = vector.multi_reduction <maximumf>, %304, %cst_225 [0] : vector<2x128xf32> to vector<128xf32>
    %306 = vector.shape_cast %305 : vector<128xf32> to vector<1x128xf32>
    %307 = vector.extract_strided_slice %306 {offsets = [0, 0], sizes = [1, 16], strides = [1, 1]} : vector<1x128xf32> to vector<1x16xf32>
    %c256 = arith.constant 256 : index
    %c0_226 = arith.constant 0 : index
    %308 = vector.load %arg4[%c256, %c0_226] : memref<400x128xf32, #tpu.memory_space<vmem>>, vector<16x128xf32>
    %cst_227 = arith.constant dense<0.000000e+00> : vector<1x128xf32>
    %309 = tpu.matmul %307, %308, %cst_227 {dimension_numbers = #tpu.dot_dimension_numbers<[1], [0], [0], [1], [0, 0, 1, 1], [], []>} : vector<1x16xf32>, vector<16x128xf32>, vector<1x128xf32> -> vector<1x128xf32>
    %310 = arith.addf %301, %309 : vector<1x128xf32>
    %c88_228 = arith.constant 88 : index
    %c0_229 = arith.constant 0 : index
    %311 = vector.load %arg10[%c88_228, %c0_229] : memref<136x128xf32, #tpu.memory_space<vmem>>, vector<2x128xf32>
    %c102 = arith.constant 102 : index
    %c0_230 = arith.constant 0 : index
    %312 = vector.load %arg10[%c102, %c0_230] : memref<136x128xf32, #tpu.memory_space<vmem>>, vector<2x128xf32>
    %313 = arith.maximumf %311, %312 : vector<2x128xf32>
    %cst_231 = arith.constant dense<0xFF800000> : vector<128xf32>
    %314 = vector.multi_reduction <maximumf>, %313, %cst_231 [0] : vector<2x128xf32> to vector<128xf32>
    %315 = vector.shape_cast %314 : vector<128xf32> to vector<1x128xf32>
    %316 = vector.extract_strided_slice %315 {offsets = [0, 0], sizes = [1, 16], strides = [1, 1]} : vector<1x128xf32> to vector<1x16xf32>
    %c272 = arith.constant 272 : index
    %c0_232 = arith.constant 0 : index
    %317 = vector.load %arg4[%c272, %c0_232] : memref<400x128xf32, #tpu.memory_space<vmem>>, vector<16x128xf32>
    %cst_233 = arith.constant dense<0.000000e+00> : vector<1x128xf32>
    %318 = tpu.matmul %316, %317, %cst_233 {dimension_numbers = #tpu.dot_dimension_numbers<[1], [0], [0], [1], [0, 0, 1, 1], [], []>} : vector<1x16xf32>, vector<16x128xf32>, vector<1x128xf32> -> vector<1x128xf32>
    %319 = arith.addf %310, %318 : vector<1x128xf32>
    %c90 = arith.constant 90 : index
    %c0_234 = arith.constant 0 : index
    %320 = vector.load %arg10[%c90, %c0_234] : memref<136x128xf32, #tpu.memory_space<vmem>>, vector<2x128xf32>
    %c104_235 = arith.constant 104 : index
    %c0_236 = arith.constant 0 : index
    %321 = vector.load %arg10[%c104_235, %c0_236] : memref<136x128xf32, #tpu.memory_space<vmem>>, vector<2x128xf32>
    %322 = arith.maximumf %320, %321 : vector<2x128xf32>
    %cst_237 = arith.constant dense<0xFF800000> : vector<128xf32>
    %323 = vector.multi_reduction <maximumf>, %322, %cst_237 [0] : vector<2x128xf32> to vector<128xf32>
    %324 = vector.shape_cast %323 : vector<128xf32> to vector<1x128xf32>
    %325 = vector.extract_strided_slice %324 {offsets = [0, 0], sizes = [1, 16], strides = [1, 1]} : vector<1x128xf32> to vector<1x16xf32>
    %c288 = arith.constant 288 : index
    %c0_238 = arith.constant 0 : index
    %326 = vector.load %arg4[%c288, %c0_238] : memref<400x128xf32, #tpu.memory_space<vmem>>, vector<16x128xf32>
    %cst_239 = arith.constant dense<0.000000e+00> : vector<1x128xf32>
    %327 = tpu.matmul %325, %326, %cst_239 {dimension_numbers = #tpu.dot_dimension_numbers<[1], [0], [0], [1], [0, 0, 1, 1], [], []>} : vector<1x16xf32>, vector<16x128xf32>, vector<1x128xf32> -> vector<1x128xf32>
    %328 = arith.addf %319, %327 : vector<1x128xf32>
    %c92 = arith.constant 92 : index
    %c0_240 = arith.constant 0 : index
    %329 = vector.load %arg10[%c92, %c0_240] : memref<136x128xf32, #tpu.memory_space<vmem>>, vector<2x128xf32>
    %c106 = arith.constant 106 : index
    %c0_241 = arith.constant 0 : index
    %330 = vector.load %arg10[%c106, %c0_241] : memref<136x128xf32, #tpu.memory_space<vmem>>, vector<2x128xf32>
    %331 = arith.maximumf %329, %330 : vector<2x128xf32>
    %cst_242 = arith.constant dense<0xFF800000> : vector<128xf32>
    %332 = vector.multi_reduction <maximumf>, %331, %cst_242 [0] : vector<2x128xf32> to vector<128xf32>
    %333 = vector.shape_cast %332 : vector<128xf32> to vector<1x128xf32>
    %334 = vector.extract_strided_slice %333 {offsets = [0, 0], sizes = [1, 16], strides = [1, 1]} : vector<1x128xf32> to vector<1x16xf32>
    %c304 = arith.constant 304 : index
    %c0_243 = arith.constant 0 : index
    %335 = vector.load %arg4[%c304, %c0_243] : memref<400x128xf32, #tpu.memory_space<vmem>>, vector<16x128xf32>
    %cst_244 = arith.constant dense<0.000000e+00> : vector<1x128xf32>
    %336 = tpu.matmul %334, %335, %cst_244 {dimension_numbers = #tpu.dot_dimension_numbers<[1], [0], [0], [1], [0, 0, 1, 1], [], []>} : vector<1x16xf32>, vector<16x128xf32>, vector<1x128xf32> -> vector<1x128xf32>
    %337 = arith.addf %328, %336 : vector<1x128xf32>
    %c112_245 = arith.constant 112 : index
    %c0_246 = arith.constant 0 : index
    %338 = vector.load %arg10[%c112_245, %c0_246] : memref<136x128xf32, #tpu.memory_space<vmem>>, vector<2x128xf32>
    %c126 = arith.constant 126 : index
    %c0_247 = arith.constant 0 : index
    %339 = vector.load %arg10[%c126, %c0_247] : memref<136x128xf32, #tpu.memory_space<vmem>>, vector<2x128xf32>
    %340 = arith.maximumf %338, %339 : vector<2x128xf32>
    %cst_248 = arith.constant dense<0xFF800000> : vector<128xf32>
    %341 = vector.multi_reduction <maximumf>, %340, %cst_248 [0] : vector<2x128xf32> to vector<128xf32>
    %342 = vector.shape_cast %341 : vector<128xf32> to vector<1x128xf32>
    %343 = vector.extract_strided_slice %342 {offsets = [0, 0], sizes = [1, 16], strides = [1, 1]} : vector<1x128xf32> to vector<1x16xf32>
    %c320 = arith.constant 320 : index
    %c0_249 = arith.constant 0 : index
    %344 = vector.load %arg4[%c320, %c0_249] : memref<400x128xf32, #tpu.memory_space<vmem>>, vector<16x128xf32>
    %cst_250 = arith.constant dense<0.000000e+00> : vector<1x128xf32>
    %345 = tpu.matmul %343, %344, %cst_250 {dimension_numbers = #tpu.dot_dimension_numbers<[1], [0], [0], [1], [0, 0, 1, 1], [], []>} : vector<1x16xf32>, vector<16x128xf32>, vector<1x128xf32> -> vector<1x128xf32>
    %346 = arith.addf %337, %345 : vector<1x128xf32>
    %c114 = arith.constant 114 : index
    %c0_251 = arith.constant 0 : index
    %347 = vector.load %arg10[%c114, %c0_251] : memref<136x128xf32, #tpu.memory_space<vmem>>, vector<2x128xf32>
    %c128_252 = arith.constant 128 : index
    %c0_253 = arith.constant 0 : index
    %348 = vector.load %arg10[%c128_252, %c0_253] : memref<136x128xf32, #tpu.memory_space<vmem>>, vector<2x128xf32>
    %349 = arith.maximumf %347, %348 : vector<2x128xf32>
    %cst_254 = arith.constant dense<0xFF800000> : vector<128xf32>
    %350 = vector.multi_reduction <maximumf>, %349, %cst_254 [0] : vector<2x128xf32> to vector<128xf32>
    %351 = vector.shape_cast %350 : vector<128xf32> to vector<1x128xf32>
    %352 = vector.extract_strided_slice %351 {offsets = [0, 0], sizes = [1, 16], strides = [1, 1]} : vector<1x128xf32> to vector<1x16xf32>
    %c336 = arith.constant 336 : index
    %c0_255 = arith.constant 0 : index
    %353 = vector.load %arg4[%c336, %c0_255] : memref<400x128xf32, #tpu.memory_space<vmem>>, vector<16x128xf32>
    %cst_256 = arith.constant dense<0.000000e+00> : vector<1x128xf32>
    %354 = tpu.matmul %352, %353, %cst_256 {dimension_numbers = #tpu.dot_dimension_numbers<[1], [0], [0], [1], [0, 0, 1, 1], [], []>} : vector<1x16xf32>, vector<16x128xf32>, vector<1x128xf32> -> vector<1x128xf32>
    %355 = arith.addf %346, %354 : vector<1x128xf32>
    %c116 = arith.constant 116 : index
    %c0_257 = arith.constant 0 : index
    %356 = vector.load %arg10[%c116, %c0_257] : memref<136x128xf32, #tpu.memory_space<vmem>>, vector<2x128xf32>
    %c130 = arith.constant 130 : index
    %c0_258 = arith.constant 0 : index
    %357 = vector.load %arg10[%c130, %c0_258] : memref<136x128xf32, #tpu.memory_space<vmem>>, vector<2x128xf32>
    %358 = arith.maximumf %356, %357 : vector<2x128xf32>
    %cst_259 = arith.constant dense<0xFF800000> : vector<128xf32>
    %359 = vector.multi_reduction <maximumf>, %358, %cst_259 [0] : vector<2x128xf32> to vector<128xf32>
    %360 = vector.shape_cast %359 : vector<128xf32> to vector<1x128xf32>
    %361 = vector.extract_strided_slice %360 {offsets = [0, 0], sizes = [1, 16], strides = [1, 1]} : vector<1x128xf32> to vector<1x16xf32>
    %c352 = arith.constant 352 : index
    %c0_260 = arith.constant 0 : index
    %362 = vector.load %arg4[%c352, %c0_260] : memref<400x128xf32, #tpu.memory_space<vmem>>, vector<16x128xf32>
    %cst_261 = arith.constant dense<0.000000e+00> : vector<1x128xf32>
    %363 = tpu.matmul %361, %362, %cst_261 {dimension_numbers = #tpu.dot_dimension_numbers<[1], [0], [0], [1], [0, 0, 1, 1], [], []>} : vector<1x16xf32>, vector<16x128xf32>, vector<1x128xf32> -> vector<1x128xf32>
    %364 = arith.addf %355, %363 : vector<1x128xf32>
    %c118 = arith.constant 118 : index
    %c0_262 = arith.constant 0 : index
    %365 = vector.load %arg10[%c118, %c0_262] : memref<136x128xf32, #tpu.memory_space<vmem>>, vector<2x128xf32>
    %c132 = arith.constant 132 : index
    %c0_263 = arith.constant 0 : index
    %366 = vector.load %arg10[%c132, %c0_263] : memref<136x128xf32, #tpu.memory_space<vmem>>, vector<2x128xf32>
    %367 = arith.maximumf %365, %366 : vector<2x128xf32>
    %cst_264 = arith.constant dense<0xFF800000> : vector<128xf32>
    %368 = vector.multi_reduction <maximumf>, %367, %cst_264 [0] : vector<2x128xf32> to vector<128xf32>
    %369 = vector.shape_cast %368 : vector<128xf32> to vector<1x128xf32>
    %370 = vector.extract_strided_slice %369 {offsets = [0, 0], sizes = [1, 16], strides = [1, 1]} : vector<1x128xf32> to vector<1x16xf32>
    %c368 = arith.constant 368 : index
    %c0_265 = arith.constant 0 : index
    %371 = vector.load %arg4[%c368, %c0_265] : memref<400x128xf32, #tpu.memory_space<vmem>>, vector<16x128xf32>
    %cst_266 = arith.constant dense<0.000000e+00> : vector<1x128xf32>
    %372 = tpu.matmul %370, %371, %cst_266 {dimension_numbers = #tpu.dot_dimension_numbers<[1], [0], [0], [1], [0, 0, 1, 1], [], []>} : vector<1x16xf32>, vector<16x128xf32>, vector<1x128xf32> -> vector<1x128xf32>
    %373 = arith.addf %364, %372 : vector<1x128xf32>
    %c120_267 = arith.constant 120 : index
    %c0_268 = arith.constant 0 : index
    %374 = vector.load %arg10[%c120_267, %c0_268] : memref<136x128xf32, #tpu.memory_space<vmem>>, vector<2x128xf32>
    %c134 = arith.constant 134 : index
    %c0_269 = arith.constant 0 : index
    %375 = vector.load %arg10[%c134, %c0_269] : memref<136x128xf32, #tpu.memory_space<vmem>>, vector<2x128xf32>
    %376 = arith.maximumf %374, %375 : vector<2x128xf32>
    %cst_270 = arith.constant dense<0xFF800000> : vector<128xf32>
    %377 = vector.multi_reduction <maximumf>, %376, %cst_270 [0] : vector<2x128xf32> to vector<128xf32>
    %378 = vector.shape_cast %377 : vector<128xf32> to vector<1x128xf32>
    %379 = vector.extract_strided_slice %378 {offsets = [0, 0], sizes = [1, 16], strides = [1, 1]} : vector<1x128xf32> to vector<1x16xf32>
    %c384 = arith.constant 384 : index
    %c0_271 = arith.constant 0 : index
    %380 = vector.load %arg4[%c384, %c0_271] : memref<400x128xf32, #tpu.memory_space<vmem>>, vector<16x128xf32>
    %cst_272 = arith.constant dense<0.000000e+00> : vector<1x128xf32>
    %381 = tpu.matmul %379, %380, %cst_272 {dimension_numbers = #tpu.dot_dimension_numbers<[1], [0], [0], [1], [0, 0, 1, 1], [], []>} : vector<1x16xf32>, vector<16x128xf32>, vector<1x128xf32> -> vector<1x128xf32>
    %382 = arith.addf %373, %381 : vector<1x128xf32>
    %c2_273 = arith.constant 2 : index
    %c0_274 = arith.constant 0 : index
    %383 = vector.load %arg7[%c2_273, %c0_274] : memref<8x128xf32, #tpu.memory_space<vmem>>, vector<1x128xf32>
    %384 = arith.addf %382, %383 : vector<1x128xf32>
    %cst_275 = arith.constant 0.000000e+00 : f32
    %385 = vector.broadcast %cst_275 : f32 to vector<1x128xf32>
    %386 = arith.maximumf %384, %385 : vector<1x128xf32>
    %c0_276 = arith.constant 0 : index
    %c0_277 = arith.constant 0 : index
    %387 = vector.load %arg5[%c0_276, %c0_277] : memref<128x128xf32, #tpu.memory_space<vmem>>, vector<128x128xf32>
    %cst_278 = arith.constant dense<0.000000e+00> : vector<1x128xf32>
    %388 = tpu.matmul %386, %387, %cst_278 {dimension_numbers = #tpu.dot_dimension_numbers<[1], [0], [0], [1], [0, 0, 1, 1], [], []>} : vector<1x128xf32>, vector<128x128xf32>, vector<1x128xf32> -> vector<1x128xf32>
    %c3_279 = arith.constant 3 : index
    %c0_280 = arith.constant 0 : index
    %389 = vector.load %arg7[%c3_279, %c0_280] : memref<8x128xf32, #tpu.memory_space<vmem>>, vector<1x128xf32>
    %390 = arith.addf %388, %389 : vector<1x128xf32>
    %cst_281 = arith.constant 0.000000e+00 : f32
    %391 = vector.broadcast %cst_281 : f32 to vector<1x128xf32>
    %392 = arith.maximumf %390, %391 : vector<1x128xf32>
    %c0_282 = arith.constant 0 : index
    %c0_283 = arith.constant 0 : index
    %393 = vector.load %arg6[%c0_282, %c0_283] : memref<128x128xf32, #tpu.memory_space<vmem>>, vector<128x128xf32>
    %cst_284 = arith.constant dense<0.000000e+00> : vector<1x128xf32>
    %394 = tpu.matmul %392, %393, %cst_284 {dimension_numbers = #tpu.dot_dimension_numbers<[1], [0], [0], [1], [0, 0, 1, 1], [], []>} : vector<1x128xf32>, vector<128x128xf32>, vector<1x128xf32> -> vector<1x128xf32>
    %c4_285 = arith.constant 4 : index
    %c0_286 = arith.constant 0 : index
    %395 = vector.load %arg7[%c4_285, %c0_286] : memref<8x128xf32, #tpu.memory_space<vmem>>, vector<1x128xf32>
    %396 = arith.addf %394, %395 : vector<1x128xf32>
    %397 = vector.shape_cast %396 : vector<1x128xf32> to vector<1x128xf32>
    %398 = vector.broadcast %397 : vector<1x128xf32> to vector<8x128xf32>
    %c0_287 = arith.constant 0 : index
    %c0_288 = arith.constant 0 : index
    %c0_289 = arith.constant 0 : index
    %399 = vector.load %arg8[%c0_287, %c0_288, %c0_289] : memref<1x8x128xf32, #tpu.memory_space<vmem>>, vector<1x8x128xf32>
    %400 = vector.shape_cast %399 : vector<1x8x128xf32> to vector<8x128xf32>
    %401 = vector.shape_cast %398 : vector<8x128xf32> to vector<1x8x128xf32>
    tpu.vector_store %arg8[%c0_287, %c0_288, %c0_289], %401 {strides = array<i32>} : memref<1x8x128xf32, #tpu.memory_space<vmem>>, vector<1x8x128xf32>,
    return
  }
  func.func @transform_0(%arg0: i32) -> (i32, i32, i32) {
    %c0_i32 = arith.constant 0 : i32
    %c0_i32_0 = arith.constant 0 : i32
    %c0_i32_1 = arith.constant 0 : i32
    return %arg0, %c0_i32, %c0_i32_0 : i32, i32, i32
  }
  func.func @transform_1(%arg0: i32) -> (i32, i32) {
    %c0_i32 = arith.constant 0 : i32
    %c0_i32_0 = arith.constant 0 : i32
    %c0_i32_1 = arith.constant 0 : i32
    return %c0_i32, %c0_i32_0 : i32, i32
  }
  func.func @transform_2(%arg0: i32) -> (i32, i32) {
    %c0_i32 = arith.constant 0 : i32
    %c0_i32_0 = arith.constant 0 : i32
    %c0_i32_1 = arith.constant 0 : i32
    return %c0_i32, %c0_i32_0 : i32, i32
  }
  func.func @transform_3(%arg0: i32) -> (i32, i32) {
    %c0_i32 = arith.constant 0 : i32
    %c0_i32_0 = arith.constant 0 : i32
    %c0_i32_1 = arith.constant 0 : i32
    return %c0_i32, %c0_i32_0 : i32, i32
  }
  func.func @transform_4(%arg0: i32) -> (i32, i32) {
    %c0_i32 = arith.constant 0 : i32
    %c0_i32_0 = arith.constant 0 : i32
    %c0_i32_1 = arith.constant 0 : i32
    return %c0_i32, %c0_i32_0 : i32, i32
  }
  func.func @transform_5(%arg0: i32) -> (i32, i32) {
    %c0_i32 = arith.constant 0 : i32
    %c0_i32_0 = arith.constant 0 : i32
    %c0_i32_1 = arith.constant 0 : i32
    return %c0_i32, %c0_i32_0 : i32, i32
  }
  func.func @transform_6(%arg0: i32) -> (i32, i32) {
    %c0_i32 = arith.constant 0 : i32
    %c0_i32_0 = arith.constant 0 : i32
    %c0_i32_1 = arith.constant 0 : i32
    return %c0_i32, %c0_i32_0 : i32, i32
  }
  func.func @transform_7(%arg0: i32) -> (i32, i32, i32) {
    %c0_i32 = arith.constant 0 : i32
    %c0_i32_0 = arith.constant 0 : i32
    %c0_i32_1 = arith.constant 0 : i32
    return %arg0, %c0_i32, %c0_i32_0 : i32, i32, i32
  }
}

</mosaic_0001>

<bundles_post_ra>
// kernel: net_forward.1
= control target key start
LH: loop header
LB: loop body
LE: loop exit
PB: predicated region body
PF: predicated region fallthrough
CT: control target
= control target key end

     0   :  { %s13368_s24 = smov 0   ;;  %s16677_s0 = inlined_call_operand.vmem [shape: f32[2,800,80], index: 0, kind: input, shape index: {}]   ;;  %s16678_s1 = inlined_call_operand.vmem [shape: f32[80,128], index: 1, kind: input, shape index: {}]   ;;  %s16679_s2 = inlined_call_operand.vmem [shape: f32[200,128], index: 2, kind: input, shape index: {}]   ;;  %s16680_s3 = inlined_call_operand.vmem [shape: f32[400,128], index: 3, kind: input, shape index: {}]   ;;  %s16681_s4 = inlined_call_operand.vmem [shape: f32[128,128], index: 4, kind: input, shape index: {}]   ;;  %s16682_s5 = inlined_call_operand.vmem [shape: f32[128,128], index: 5, kind: input, shape index: {}]   ;;  %s16683_s6 = inlined_call_operand.vmem [shape: f32[8,128], index: 6, kind: input, shape index: {}]   ;;  %s16684_s7 = inlined_call_operand.vmem [shape: f32[2,8,128], index: 7, kind: output, shape index: {}]  }
   0x1 LB: > { %s9912_s25 = sadd.s32 4294967295, %s13323_s24   ;;  %p9916_p0 = scmp.ge.s32.totalorder %s13323_s24, 1  ;;  %s13323_s24 = sphi %s13368_s24, %s17_s24  }
   0x2   : > { %p237_p1 = scmp.lt.s32.totalorder %s13323_s24, 3 }
   0x4   : > { %p238_p2 = pnand %p9916_p0, %p237_p1 }
   0x6   : > { %241 = sbr.rel (%p238_p2) target bundleno = 2163 (0x873), region = 48 }
   0xd   : > { %v302_v0 = vld [vmem:[%s16678_s1] sm:$0xff]  ;;  %v303_v1 = vld [vmem:[%s16678_s1 + $0x8] sm:$0xff]  ;;  %v304_v2 = vld [vmem:[%s16678_s1 + $0x10] sm:$0xff]  ;;  %v16685_v3 = vmov 0.0|0.0   ;;  %vm13326_vm0 = vmmov 0   ;;  %v16687_v6 = vmov 0.0  }
   0xe   : > { %13122 = vmatprep.subr.bf16.mxu0 %v16685_v3  ;;  %v13123_v4 = vpack.c.bf16 %v303_v1, %v302_v0  ;;  %13137 = vmatprep.subr.bf16.mxu1 %v16685_v3  ;;  %v305_v5 = vld [vmem:[%s16678_s1 + $0x18] sm:$0xff]  ;;  %v306_v8 = vld [vmem:[%s16678_s1 + $0x20] sm:$0xff]  ;;  %v307_v9 = vld [vmem:[%s16678_s1 + $0x28] sm:$0xff]  ;;  %p268_p3 = scmp.lt.s32.totalorder %s9912_s25, 1  ;;  %vm312_vm1 = vcmask 654336   ;;  %vm1639_vm2 = vcmask 64512  }
   0xf   : > { %11192 = vmatprep.mubr.msk.f32.mxu0 %vm13326_vm0, %v16687_v6  ;;  %11287 = vmatprep.mubr.msk.f32.mxu1 %vm13326_vm0, %v16687_v6  ;;  %v13126_v7 = vpack.c.bf16 %v305_v5, %v304_v2  ;;  %v13129_v10 = vpack.c.bf16 %v307_v9, %v306_v8  ;;  %v308_v11 = vld [vmem:[%s16678_s1 + $0x30] sm:$0xff]  ;;  %v309_v12 = vld [vmem:[%s16678_s1 + $0x38] sm:$0xff]  ;;  %v310_v14 = vld [vmem:[%s16678_s1 + $0x40] sm:$0xff]  ;;  %vm7529_vm3 = vcmask 1041408   ;;  %vm7551_vm4 = vcmask 130048  }
  0x10   : > { %13124 = vmatpush3.bf16.msra.mxu0 %v13123_v4  ;;  %13139 = vmatpush3.bf16.msra.mxu1 %v13123_v4  ;;  %s16718_s25 = smov (!%p268_p3, %s9912_s25), 1  ;;  %v13132_v13 = vpack.c.bf16 %v309_v12, %v308_v11  ;;  %v311_v15 = vld [vmem:[%s16678_s1 + $0x48] sm:$0xff] }
  0x11   : > { %13125 = vmatprep.subr.bf16.mxu0 %v16685_v3  ;;  %13140 = vmatprep.subr.bf16.mxu1 %v16685_v3  ;;  %s13305_s23 = smul.u32 800, %s16718_s25  ;;  %v13135_v16 = vpack.c.bf16 %v311_v15, %v310_v14  ;;  %v1638_v9 = vld [vmem:[%s16679_s2 + $0x8] sm:$0xff]  ;;  %s9918_s20 = sshll.u32 %s16718_s25, 3 }
  0x13   : > { %s13430_s28 = scalar_lea.vmem %s16677_s0, %s13305_s23  ;;  %s276_s23 = scalar_lea.vmem %s16684_s7, %s9918_s20 }
  0x14   : > { %13127 = vmatpush3.bf16.msra.mxu0 %v13126_v7  ;;  %13142 = vmatpush3.bf16.msra.mxu1 %v13126_v7  ;;  %v277_v17 = vld [vmem:[%s13430_s28] sm:$0xff]  ;;  %v578_v18 = vld [vmem:[%s13430_s28 + $0xc8] sm:$0xff]  ;;  %v579_v20 = vld [vmem:[%s13430_s28 + $0xd0] sm:$0xff] }
  0x15   : > { %13128 = vmatprep.subr.bf16.mxu0 %v16685_v3  ;;  %13143 = vmatprep.subr.bf16.mxu1 %v16685_v3  ;;  %v278_v19 = vld [vmem:[%s13430_s28 + $0x8] sm:$0xff]  ;;  %v279_v21 = vld [vmem:[%s13430_s28 + $0x10] sm:$0xff]  ;;  %v580_v22 = vld [vmem:[%s13430_s28 + $0xd8] sm:$0xff] }
  0x16   : > { %v280_v23 = vld [vmem:[%s13430_s28 + $0x18] sm:$0xff]  ;;  %v581_v24 = vld [vmem:[%s13430_s28 + $0xe0] sm:$0xff]  ;;  %v582_v26 = vld [vmem:[%s13430_s28 + $0xe8] sm:$0xff] }
  0x17   : > { %v281_v25 = vld [vmem:[%s13430_s28 + $0x20] sm:$0xff]  ;;  %v282_v27 = vld [vmem:[%s13430_s28 + $0x28] sm:$0xff]  ;;  %v583_v28 = vld [vmem:[%s13430_s28 + $0xf0] sm:$0xff] }
  0x18   : > { %13130 = vmatpush3.bf16.msra.mxu0 %v13129_v10  ;;  %13145 = vmatpush3.bf16.msra.mxu1 %v13129_v10  ;;  %v283_v29 = vld [vmem:[%s13430_s28 + $0x30] sm:$0xff]  ;;  %v584_v30 = vld [vmem:[%s13430_s28 + $0xf8] sm:$0xff]  ;;  %v585_v32 = vld [vmem:[%s13430_s28 + $0x100] sm:$0xff] }
  0x19   : > { %13131 = vmatprep.subr.bf16.mxu0 %v16685_v3  ;;  %13146 = vmatprep.subr.bf16.mxu1 %v16685_v3  ;;  %v284_v31 = vld [vmem:[%s13430_s28 + $0x38] sm:$0xff]  ;;  %v285_v33 = vld [vmem:[%s13430_s28 + $0x40] sm:$0xff]  ;;  %v586_v34 = vld [vmem:[%s13430_s28 + $0x108] sm:$0xff] }
  0x1a   : > { %v286_v35 = vld [vmem:[%s13430_s28 + $0x48] sm:$0xff]  ;;  %v587_v36 = vld [vmem:[%s13430_s28 + $0x110] sm:$0xff]  ;;  %v588_v38 = vld [vmem:[%s13430_s28 + $0x118] sm:$0xff] }
  0x1b   : > { %v287_v37 = vld [vmem:[%s13430_s28 + $0x50] sm:$0xff]  ;;  %v288_v39 = vld [vmem:[%s13430_s28 + $0x58] sm:$0xff]  ;;  %v589_v40 = vld [vmem:[%s13430_s28 + $0x120] sm:$0xff] }
  0x1c   : > { %13133 = vmatpush3.bf16.msra.mxu0 %v13132_v13  ;;  %13148 = vmatpush3.bf16.msra.mxu1 %v13132_v13  ;;  %v289_v41 = vld [vmem:[%s13430_s28 + $0x60] sm:$0xff]  ;;  %v590_v42 = vld [vmem:[%s13430_s28 + $0x128] sm:$0xff]  ;;  %v591_v44 = vld [vmem:[%s13430_s28 + $0x130] sm:$0xff] }
  0x1d   : > { %13134 = vmatprep.subr.bf16.mxu0 %v16685_v3  ;;  %13149 = vmatprep.subr.bf16.mxu1 %v16685_v3  ;;  %v290_v43 = vld [vmem:[%s13430_s28 + $0x68] sm:$0xff]  ;;  %v291_v45 = vld [vmem:[%s13430_s28 + $0x70] sm:$0xff]  ;;  %v592_v46 = vld [vmem:[%s13430_s28 + $0x138] sm:$0xff] }
  0x1e   : > { %v292_v47 = vld [vmem:[%s13430_s28 + $0x78] sm:$0xff]  ;;  %v593_v48 = vld [vmem:[%s13430_s28 + $0x140] sm:$0xff]  ;;  %v594_v50 = vld [vmem:[%s13430_s28 + $0x148] sm:$0xff] }
  0x1f   : > { %v293_v49 = vld [vmem:[%s13430_s28 + $0x80] sm:$0xff]  ;;  %v294_v51 = vld [vmem:[%s13430_s28 + $0x88] sm:$0xff]  ;;  %v595_v52 = vld [vmem:[%s13430_s28 + $0x150] sm:$0xff] }
  0x20   : > { %13136 = vmatpush3.bf16.msra.mxu0 %v13135_v16  ;;  %13151 = vmatpush3.bf16.msra.mxu1 %v13135_v16  ;;  %v295_v53 = vld [vmem:[%s13430_s28 + $0x90] sm:$0xff]  ;;  %v596_v54 = vld [vmem:[%s13430_s28 + $0x158] sm:$0xff]  ;;  %v597_v56 = vld [vmem:[%s13430_s28 + $0x160] sm:$0xff] }
  0x21   : > { %13152 = vmatprep.subr.bf16.mxu0 %v16685_v3  ;;  %13167 = vmatprep.subr.bf16.mxu1 %v16685_v3  ;;  %v296_v55 = vld [vmem:[%s13430_s28 + $0x98] sm:$0xff]  ;;  %v297_v57 = vld [vmem:[%s13430_s28 + $0xa0] sm:$0xff]  ;;  %v598_v58 = vld [vmem:[%s13430_s28 + $0x168] sm:$0xff] }
  0x22   : > { %v298_v59 = vld [vmem:[%s13430_s28 + $0xa8] sm:$0xff]  ;;  %v599_v60 = vld [vmem:[%s13430_s28 + $0x170] sm:$0xff]  ;;  %v600_v62 = vld [vmem:[%s13430_s28 + $0x178] sm:$0xff] }
  0x23   : > { %11193 = vmatmul.mubr.msk.f32.vlgmr.msra.gmra.mrb[0].mxu0 %vm312_vm1, %v277_v17  ;;  %11288 = vmatmul.mubr.msk.f32.vlgmr.msra.gmra.mrb[0].mxu1 %vm312_vm1, %v578_v18  ;;  %v299_v61 = vld [vmem:[%s13430_s28 + $0xb0] sm:$0xff]  ;;  %v300_v63 = vld [vmem:[%s13430_s28 + $0xb8] sm:$0xff]  ;;  %v601_v0 = vld [vmem:[%s13430_s28 + $0x180] sm:$0xff] }
  0x24   : > { %13154 = vmatpush3.bf16.msra.mxu0 %v13123_v4  ;;  %11195 = vmatprep.mubr.msk.f32.mxu0 %vm13326_vm0, %v16687_v6  ;;  %v301_v1 = vld [vmem:[%s13430_s28 + $0xc0] sm:$0xff]  ;;  %v602_v2 = vld [vmem:[%s13430_s28 + $0x188] sm:$0xff]  ;;  %v1208_v5 = vld [vmem:[%s13430_s28 + $0x258] sm:$0xff] }
  0x25   : > { %13169 = vmatpush3.bf16.msra.mxu1 %v13123_v4  ;;  %11290 = vmatprep.mubr.msk.f32.mxu1 %vm13326_vm0, %v16687_v6  ;;  %v893_v4 = vld [vmem:[%s13430_s28 + $0x190] sm:$0xff]  ;;  %v1209_v8 = vld [vmem:[%s13430_s28 + $0x260] sm:$0xff]  ;;  %v1210_v11 = vld [vmem:[%s13430_s28 + $0x268] sm:$0xff] }
  0x26   : > { %13155 = vmatprep.subr.bf16.mxu0 %v16685_v3  ;;  %13170 = vmatprep.subr.bf16.mxu1 %v16685_v3  ;;  %v896_v12 = vld [vmem:[%s13430_s28 + $0x1a8] sm:$0xff]  ;;  %v897_v14 = vld [vmem:[%s13430_s28 + $0x1b0] sm:$0xff]  ;;  %v1212_v15 = vld [vmem:[%s13430_s28 + $0x278] sm:$0xff] }
  0x27   : > { %11196 = vmatmul.mubr.msk.f32.gmra.mrb[2].mxu0 %vm312_vm1, %v278_v19  ;;  %11291 = vmatmul.mubr.msk.f32.gmra.mrb[2].mxu1 %vm312_vm1, %v579_v20  ;;  %v1213_v17 = vld [vmem:[%s13430_s28 + $0x280] sm:$0xff]  ;;  %v1214_v19 = vld [vmem:[%s13430_s28 + $0x288] sm:$0xff] }
  0x28   : > { %11198 = vmatprep.mubr.msk.f32.mxu0 %vm13326_vm0, %v16687_v6  ;;  %11293 = vmatprep.mubr.msk.f32.mxu1 %vm13326_vm0, %v16687_v6  ;;  %v899_v18 = vld [vmem:[%s13430_s28 + $0x1c0] sm:$0xff]  ;;  %v900_v20 = vld [vmem:[%s13430_s28 + $0x1c8] sm:$0xff] }
  0x29   : > { %13157 = vmatpush3.bf16.msra.mxu0 %v13126_v7  ;;  %13172 = vmatpush3.bf16.msra.mxu1 %v13126_v7  ;;  %v894_v7 = vld [vmem:[%s13430_s28 + $0x198] sm:$0xff] }
  0x2a   : > { %13158 = vmatprep.subr.bf16.mxu0 %v16685_v3  ;;  %13173 = vmatprep.subr.bf16.mxu1 %v16685_v3 }
  0x2b   : > { %11199 = vmatmul.mubr.msk.f32.gmra.mrb[4].mxu0 %vm312_vm1, %v279_v21  ;;  %11294 = vmatmul.mubr.msk.f32.gmra.mrb[4].mxu1 %vm312_vm1, %v580_v22  ;;  %v1215_v21 = vld [vmem:[%s13430_s28 + $0x290] sm:$0xff] }
  0x2c   : > { %11201 = vmatprep.mubr.msk.f32.mxu0 %vm13326_vm0, %v16687_v6  ;;  %11296 = vmatprep.mubr.msk.f32.mxu1 %vm13326_vm0, %v16687_v6  ;;  %v901_v22 = vld [vmem:[%s13430_s28 + $0x1d0] sm:$0xff] }
  0x2d   : > { %13160 = vmatpush3.bf16.msra.mxu0 %v13129_v10  ;;  %13175 = vmatpush3.bf16.msra.mxu1 %v13129_v10  ;;  %v895_v10 = vld [vmem:[%s13430_s28 + $0x1a0] sm:$0xff] }
  0x2e   : > { %13161 = vmatprep.subr.bf16.mxu0 %v16685_v3  ;;  %13176 = vmatprep.subr.bf16.mxu1 %v16685_v3 }
  0x2f   : > { %11202 = vmatmul.mubr.msk.f32.gmra.mrb[6].mxu0 %vm312_vm1, %v280_v23  ;;  %11297 = vmatmul.mubr.msk.f32.gmra.mrb[6].mxu1 %vm312_vm1, %v581_v24  ;;  %v1216_v23 = vld [vmem:[%s13430_s28 + $0x298] sm:$0xff] }
  0x30   : > { %11204 = vmatprep.mubr.msk.f32.mxu0 %vm13326_vm0, %v16687_v6  ;;  %11299 = vmatprep.mubr.msk.f32.mxu1 %vm13326_vm0, %v16687_v6  ;;  %v902_v24 = vld [vmem:[%s13430_s28 + $0x1d8] sm:$0xff] }
  0x31   : > { %13163 = vmatpush3.bf16.msra.mxu0 %v13132_v13  ;;  %13178 = vmatpush3.bf16.msra.mxu1 %v13132_v13  ;;  %v1211_v13 = vld [vmem:[%s13430_s28 + $0x270] sm:$0xff] }
  0x32   : > { %13164 = vmatprep.subr.bf16.mxu0 %v16685_v3  ;;  %13179 = vmatprep.subr.bf16.mxu1 %v16685_v3 }
  0x33   : > { %11205 = vmatmul.mubr.msk.f32.gmra.mrb[8].mxu0 %vm312_vm1, %v281_v25  ;;  %11300 = vmatmul.mubr.msk.f32.gmra.mrb[8].mxu1 %vm312_vm1, %v582_v26  ;;  %v1217_v25 = vld [vmem:[%s13430_s28 + $0x2a0] sm:$0xff] }
  0x34   : > { %11207 = vmatprep.mubr.msk.f32.mxu0 %vm13326_vm0, %v16687_v6  ;;  %11302 = vmatprep.mubr.msk.f32.mxu1 %vm13326_vm0, %v16687_v6  ;;  %v903_v26 = vld [vmem:[%s13430_s28 + $0x1e0] sm:$0xff] }
  0x35   : > { %13166 = vmatpush3.bf16.msra.mxu0 %v13135_v16  ;;  %13181 = vmatpush3.bf16.msra.mxu1 %v13135_v16  ;;  %v898_v16 = vld [vmem:[%s13430_s28 + $0x1b8] sm:$0xff] }
  0x36   : > { %11552 = vmatprep.subr.mxu0 %v16687_v6  ;;  %11605 = vmatprep.subr.mxu1 %v16687_v6 }
  0x37   : > { %11208 = vmatmul.mubr.msk.f32.gmra.mrb[10].mxu0 %vm312_vm1, %v282_v27  ;;  %11303 = vmatmul.mubr.msk.f32.gmra.mrb[10].mxu1 %vm312_vm1, %v583_v28  ;;  %v1218_v27 = vld [vmem:[%s13430_s28 + $0x2a8] sm:$0xff] }
  0x38   : > { %11210 = vmatprep.mubr.msk.f32.mxu0 %vm13326_vm0, %v16687_v6  ;;  %11305 = vmatprep.mubr.msk.f32.mxu1 %vm13326_vm0, %v16687_v6  ;;  %v904_v28 = vld [vmem:[%s13430_s28 + $0x1e8] sm:$0xff] }
  0x3b   : > { %11211 = vmatmul.mubr.msk.f32.gmra.mrb[12].mxu0 %vm312_vm1, %v283_v29  ;;  %11306 = vmatmul.mubr.msk.f32.gmra.mrb[12].mxu1 %vm312_vm1, %v584_v30  ;;  %v1219_v29 = vld [vmem:[%s13430_s28 + $0x2b0] sm:$0xff] }
  0x3c   : > { %11213 = vmatprep.mubr.msk.f32.mxu0 %vm13326_vm0, %v16687_v6  ;;  %11308 = vmatprep.mubr.msk.f32.mxu1 %vm13326_vm0, %v16687_v6  ;;  %v905_v30 = vld [vmem:[%s13430_s28 + $0x1f0] sm:$0xff] }
  0x3f   : > { %11214 = vmatmul.mubr.msk.f32.gmra.mrb[14].mxu0 %vm312_vm1, %v284_v31  ;;  %11309 = vmatmul.mubr.msk.f32.gmra.mrb[14].mxu1 %vm312_vm1, %v585_v32  ;;  %v1220_v31 = vld [vmem:[%s13430_s28 + $0x2b8] sm:$0xff] }
  0x40   : > { %11216 = vmatprep.mubr.msk.f32.mxu0 %vm13326_vm0, %v16687_v6  ;;  %11311 = vmatprep.mubr.msk.f32.mxu1 %vm13326_vm0, %v16687_v6  ;;  %v906_v32 = vld [vmem:[%s13430_s28 + $0x1f8] sm:$0xff] }
  0x43   : > { %11217 = vmatmul.mubr.msk.f32.gmra.mrb[16].mxu0 %vm312_vm1, %v285_v33  ;;  %11312 = vmatmul.mubr.msk.f32.gmra.mrb[16].mxu1 %vm312_vm1, %v586_v34  ;;  %v1221_v33 = vld [vmem:[%s13430_s28 + $0x2c0] sm:$0xff] }
  0x44   : > { %11219 = vmatprep.mubr.msk.f32.mxu0 %vm13326_vm0, %v16687_v6  ;;  %11314 = vmatprep.mubr.msk.f32.mxu1 %vm13326_vm0, %v16687_v6  ;;  %v907_v34 = vld [vmem:[%s13430_s28 + $0x200] sm:$0xff] }
  0x47   : > { %11220 = vmatmul.mubr.msk.f32.gmra.mrb[18].mxu0 %vm312_vm1, %v286_v35  ;;  %11315 = vmatmul.mubr.msk.f32.gmra.mrb[18].mxu1 %vm312_vm1, %v587_v36  ;;  %v1222_v35 = vld [vmem:[%s13430_s28 + $0x2c8] sm:$0xff] }
  0x48   : > { %11222 = vmatprep.mubr.msk.f32.mxu0 %vm13326_vm0, %v16687_v6  ;;  %11317 = vmatprep.mubr.msk.f32.mxu1 %vm13326_vm0, %v16687_v6  ;;  %v908_v36 = vld [vmem:[%s13430_s28 + $0x208] sm:$0xff] }
  0x4b   : > { %11223 = vmatmul.mubr.msk.f32.gmra.mrb[20].mxu0 %vm312_vm1, %v287_v37  ;;  %11318 = vmatmul.mubr.msk.f32.gmra.mrb[20].mxu1 %vm312_vm1, %v588_v38  ;;  %v1223_v37 = vld [vmem:[%s13430_s28 + $0x2d0] sm:$0xff] }
  0x4c   : > { %11225 = vmatprep.mubr.msk.f32.mxu0 %vm13326_vm0, %v16687_v6  ;;  %11320 = vmatprep.mubr.msk.f32.mxu1 %vm13326_vm0, %v16687_v6  ;;  %v909_v38 = vld [vmem:[%s13430_s28 + $0x210] sm:$0xff] }
  0x4f   : > { %11226 = vmatmul.mubr.msk.f32.gmra.mrb[22].mxu0 %vm312_vm1, %v288_v39  ;;  %11321 = vmatmul.mubr.msk.f32.gmra.mrb[22].mxu1 %vm312_vm1, %v589_v40  ;;  %v1224_v39 = vld [vmem:[%s13430_s28 + $0x2d8] sm:$0xff] }
  0x50   : > { %11228 = vmatprep.mubr.msk.f32.mxu0 %vm13326_vm0, %v16687_v6  ;;  %11323 = vmatprep.mubr.msk.f32.mxu1 %vm13326_vm0, %v16687_v6  ;;  %v910_v40 = vld [vmem:[%s13430_s28 + $0x218] sm:$0xff] }
  0x53   : > { %11229 = vmatmul.mubr.msk.f32.gmra.mrb[24].mxu0 %vm312_vm1, %v289_v41  ;;  %11324 = vmatmul.mubr.msk.f32.gmra.mrb[24].mxu1 %vm312_vm1, %v590_v42  ;;  %v1225_v41 = vld [vmem:[%s13430_s28 + $0x2e0] sm:$0xff] }
  0x54   : > { %11231 = vmatprep.mubr.msk.f32.mxu0 %vm13326_vm0, %v16687_v6  ;;  %11326 = vmatprep.mubr.msk.f32.mxu1 %vm13326_vm0, %v16687_v6  ;;  %v911_v42 = vld [vmem:[%s13430_s28 + $0x220] sm:$0xff] }
  0x57   : > { %11232 = vmatmul.mubr.msk.f32.gmra.mrb[26].mxu0 %vm312_vm1, %v290_v43  ;;  %11327 = vmatmul.mubr.msk.f32.gmra.mrb[26].mxu1 %vm312_vm1, %v591_v44  ;;  %v1226_v43 = vld [vmem:[%s13430_s28 + $0x2e8] sm:$0xff]  ;;  %v1620_v44 = vld [vmem:[%s16679_s2] sm:$0xff] }
  0x58   : > { %11234 = vmatprep.mubr.msk.f32.mxu0 %vm13326_vm0, %v16687_v6  ;;  %11329 = vmatprep.mubr.msk.f32.mxu1 %vm13326_vm0, %v16687_v6 }
  0x5b   : > { %11235 = vmatmul.mubr.msk.f32.gmra.mrb[28].mxu0 %vm312_vm1, %v291_v45  ;;  %11330 = vmatmul.mubr.msk.f32.gmra.mrb[28].mxu1 %vm312_vm1, %v592_v46  ;;  %v912_v45 = vld [vmem:[%s13430_s28 + $0x228] sm:$0xff]  ;;  %v1227_v46 = vld [vmem:[%s13430_s28 + $0x2f0] sm:$0xff] }
  0x5c   : > { %11237 = vmatprep.mubr.msk.f32.mxu0 %vm13326_vm0, %v16687_v6  ;;  %11332 = vmatprep.mubr.msk.f32.mxu1 %vm13326_vm0, %v16687_v6 }
  0x5f   : > { %11238 = vmatmul.mubr.msk.f32.gmra.mrb[30].mxu0 %vm312_vm1, %v292_v47  ;;  %11333 = vmatmul.mubr.msk.f32.gmra.mrb[30].mxu1 %vm312_vm1, %v593_v48  ;;  %v913_v47 = vld [vmem:[%s13430_s28 + $0x230] sm:$0xff]  ;;  %v1228_v48 = vld [vmem:[%s13430_s28 + $0x2f8] sm:$0xff] }
  0x60   : > { %11240 = vmatprep.mubr.msk.f32.mxu0 %vm13326_vm0, %v16687_v6  ;;  %11335 = vmatprep.mubr.msk.f32.mxu1 %vm13326_vm0, %v16687_v6 }
  0x63   : > { %11241 = vmatmul.mubr.msk.f32.gmra.mrb[32].mxu0 %vm312_vm1, %v293_v49  ;;  %11336 = vmatmul.mubr.msk.f32.gmra.mrb[32].mxu1 %vm312_vm1, %v594_v50  ;;  %v914_v49 = vld [vmem:[%s13430_s28 + $0x238] sm:$0xff]  ;;  %v1229_v50 = vld [vmem:[%s13430_s28 + $0x300] sm:$0xff] }
  0x64   : > { %11243 = vmatprep.mubr.msk.f32.mxu0 %vm13326_vm0, %v16687_v6  ;;  %11338 = vmatprep.mubr.msk.f32.mxu1 %vm13326_vm0, %v16687_v6 }
  0x67   : > { %11244 = vmatmul.mubr.msk.f32.gmra.mrb[34].mxu0 %vm312_vm1, %v294_v51  ;;  %11339 = vmatmul.mubr.msk.f32.gmra.mrb[34].mxu1 %vm312_vm1, %v595_v52  ;;  %v915_v51 = vld [vmem:[%s13430_s28 + $0x240] sm:$0xff]  ;;  %v1230_v52 = vld [vmem:[%s13430_s28 + $0x308] sm:$0xff] }
  0x68   : > { %11246 = vmatprep.mubr.msk.f32.mxu0 %vm13326_vm0, %v16687_v6  ;;  %11341 = vmatprep.mubr.msk.f32.mxu1 %vm13326_vm0, %v16687_v6 }
  0x6b   : > { %11247 = vmatmul.mubr.msk.f32.gmra.mrb[36].mxu0 %vm312_vm1, %v295_v53  ;;  %11342 = vmatmul.mubr.msk.f32.gmra.mrb[36].mxu1 %vm312_vm1, %v596_v54  ;;  %v916_v53 = vld [vmem:[%s13430_s28 + $0x248] sm:$0xff]  ;;  %v1231_v54 = vld [vmem:[%s13430_s28 + $0x310] sm:$0xff] }
  0x6c   : > { %11249 = vmatprep.mubr.msk.f32.mxu0 %vm13326_vm0, %v16687_v6  ;;  %11344 = vmatprep.mubr.msk.f32.mxu1 %vm13326_vm0, %v16687_v6 }
  0x6f   : > { %11250 = vmatmul.mubr.msk.f32.gmra.mrb[38].mxu0 %vm312_vm1, %v296_v55  ;;  %11345 = vmatmul.mubr.msk.f32.gmra.mrb[38].mxu1 %vm312_vm1, %v597_v56  ;;  %v917_v55 = vld [vmem:[%s13430_s28 + $0x250] sm:$0xff]  ;;  %v1232_v56 = vld [vmem:[%s13430_s28 + $0x318] sm:$0xff] }
  0x70   : > { %11252 = vmatprep.mubr.msk.f32.mxu0 %vm13326_vm0, %v16687_v6  ;;  %11347 = vmatprep.mubr.msk.f32.mxu1 %vm13326_vm0, %v16687_v6 }
  0x73   : > { %11253 = vmatmul.mubr.msk.f32.gmra.mrb[40].mxu0 %vm312_vm1, %v297_v57  ;;  %11348 = vmatmul.mubr.msk.f32.gmra.mrb[40].mxu1 %vm312_vm1, %v598_v58 }
  0x74   : > { %11255 = vmatprep.mubr.msk.f32.mxu0 %vm13326_vm0, %v16687_v6  ;;  %11350 = vmatprep.mubr.msk.f32.mxu1 %vm13326_vm0, %v16687_v6 }
  0x77   : > { %11256 = vmatmul.mubr.msk.f32.gmra.mrb[42].mxu0 %vm312_vm1, %v298_v59  ;;  %11351 = vmatmul.mubr.msk.f32.gmra.mrb[42].mxu1 %vm312_vm1, %v599_v60 }
  0x78   : > { %11258 = vmatprep.mubr.msk.f32.mxu0 %vm13326_vm0, %v16687_v6  ;;  %11353 = vmatprep.mubr.msk.f32.mxu1 %vm13326_vm0, %v16687_v6 }
  0x7b   : > { %11259 = vmatmul.mubr.msk.f32.gmra.mrb[44].mxu0 %vm312_vm1, %v299_v61  ;;  %11354 = vmatmul.mubr.msk.f32.gmra.mrb[44].mxu1 %vm312_vm1, %v600_v62 }
  0x7c   : > { %11261 = vmatprep.mubr.msk.f32.mxu0 %vm13326_vm0, %v16687_v6  ;;  %11356 = vmatprep.mubr.msk.f32.mxu1 %vm13326_vm0, %v16687_v6 }
  0x7f   : > { %11262 = vmatmul.mubr.msk.f32.gmra.mrb[46].mxu0 %vm312_vm1, %v300_v63  ;;  %11357 = vmatmul.mubr.msk.f32.gmra.mrb[46].mxu1 %vm312_vm1, %v601_v0 }
  0x80   : > { %11264 = vmatprep.mubr.msk.f32.mxu0 %vm13326_vm0, %v16687_v6  ;;  %11359 = vmatprep.mubr.msk.f32.mxu1 %vm13326_vm0, %v16687_v6 }
  0x83   : > { %11265 = vmatmul.mubr.msk.f32.gmra.mrb[48].mxu0 %vm312_vm1, %v301_v1  ;;  %11360 = vmatmul.mubr.msk.f32.gmra.mrb[48].mxu1 %vm312_vm1, %v602_v2 }
  0x84   : > { %11382 = vmatprep.mubr.msk.f32.mxu0 %vm13326_vm0, %v16687_v6  ;;  %11477 = vmatprep.mubr.msk.f32.mxu1 %vm13326_vm0, %v16687_v6 }
  0x87   : > { %11383 = vmatmul.mubr.msk.f32.vlgmr.msra.gmra.mrb[50].mxu0 %vm312_vm1, %v893_v4  ;;  %11478 = vmatmul.mubr.msk.f32.vlgmr.msra.gmra.mrb[50].mxu1 %vm312_vm1, %v1208_v5 }
  0x88   : > { %11385 = vmatprep.mubr.msk.f32.mxu0 %vm13326_vm0, %v16687_v6  ;;  %11480 = vmatprep.mubr.msk.f32.mxu1 %vm13326_vm0, %v16687_v6 }
  0x89   : > { %11553 = vmatpush3.msra.mxu0 %v1638_v9  ;;  %11606 = vmatpush3.msra.mxu1 %v1620_v44 }
  0x8a   : > { %11658 = vmatprep.subr.mxu0 %v16687_v6  ;;  %11711 = vmatprep.subr.mxu1 %v16687_v6 }
  0x8b   : > { %11386 = vmatmul.mubr.msk.f32.gmra.mrb[52].mxu0 %vm312_vm1, %v894_v7  ;;  %11481 = vmatmul.mubr.msk.f32.gmra.mrb[52].mxu1 %vm312_vm1, %v1209_v8 }
  0x8c   : > { %11388 = vmatprep.mubr.msk.f32.mxu0 %vm13326_vm0, %v16687_v6  ;;  %11483 = vmatprep.mubr.msk.f32.mxu1 %vm13326_vm0, %v16687_v6 }
  0x8f   : > { %11389 = vmatmul.mubr.msk.f32.gmra.mrb[54].mxu0 %vm312_vm1, %v895_v10  ;;  %11484 = vmatmul.mubr.msk.f32.gmra.mrb[54].mxu1 %vm312_vm1, %v1210_v11 }
  0x90   : > { %11391 = vmatprep.mubr.msk.f32.mxu0 %vm13326_vm0, %v16687_v6  ;;  %11486 = vmatprep.mubr.msk.f32.mxu1 %vm13326_vm0, %v16687_v6 }
  0x93   : > { %11392 = vmatmul.mubr.msk.f32.gmra.mrb[56].mxu0 %vm312_vm1, %v896_v12  ;;  %11487 = vmatmul.mubr.msk.f32.gmra.mrb[56].mxu1 %vm312_vm1, %v1211_v13 }
  0x94   : > { %11394 = vmatprep.mubr.msk.f32.mxu0 %vm13326_vm0, %v16687_v6  ;;  %11489 = vmatprep.mubr.msk.f32.mxu1 %vm13326_vm0, %v16687_v6 }
  0x97   : > { %11395 = vmatmul.mubr.msk.f32.gmra.mrb[58].mxu0 %vm312_vm1, %v897_v14  ;;  %11490 = vmatmul.mubr.msk.f32.gmra.mrb[58].mxu1 %vm312_vm1, %v1212_v15 }
  0x98   : > { %11397 = vmatprep.mubr.msk.f32.mxu0 %vm13326_vm0, %v16687_v6  ;;  %11492 = vmatprep.mubr.msk.f32.mxu1 %vm13326_vm0, %v16687_v6 }
  0x9b   : > { %11398 = vmatmul.mubr.msk.f32.gmra.mrb[60].mxu0 %vm312_vm1, %v898_v16  ;;  %11493 = vmatmul.mubr.msk.f32.gmra.mrb[60].mxu1 %vm312_vm1, %v1213_v17 }
  0x9c   : > { %11400 = vmatprep.mubr.msk.f32.mxu0 %vm13326_vm0, %v16687_v6  ;;  %11495 = vmatprep.mubr.msk.f32.mxu1 %vm13326_vm0, %v16687_v6 }
  0x9f   : > { %11401 = vmatmul.mubr.msk.f32.gmra.mrb[62].mxu0 %vm312_vm1, %v899_v18  ;;  %11496 = vmatmul.mubr.msk.f32.gmra.mrb[62].mxu1 %vm312_vm1, %v1214_v19 }
  0xa0   : > { %11403 = vmatprep.mubr.msk.f32.mxu0 %vm13326_vm0, %v16687_v6  ;;  %11498 = vmatprep.mubr.msk.f32.mxu1 %vm13326_vm0, %v16687_v6 }
  0xa3   : > { %11404 = vmatmul.mubr.msk.f32.gmra.mrb[64].mxu0 %vm312_vm1, %v900_v20  ;;  %11499 = vmatmul.mubr.msk.f32.gmra.mrb[64].mxu1 %vm312_vm1, %v1215_v21 }
  0xa4   : > { %11406 = vmatprep.mubr.msk.f32.mxu0 %vm13326_vm0, %v16687_v6  ;;  %11501 = vmatprep.mubr.msk.f32.mxu1 %vm13326_vm0, %v16687_v6 }
  0xa7   : > { %11407 = vmatmul.mubr.msk.f32.gmra.mrb[66].mxu0 %vm312_vm1, %v901_v22  ;;  %11502 = vmatmul.mubr.msk.f32.gmra.mrb[66].mxu1 %vm312_vm1, %v1216_v23 }
  0xa8   : > { %11409 = vmatprep.mubr.msk.f32.mxu0 %vm13326_vm0, %v16687_v6  ;;  %11504 = vmatprep.mubr.msk.f32.mxu1 %vm13326_vm0, %v16687_v6 }
  0xab   : > { %11410 = vmatmul.mubr.msk.f32.gmra.mrb[68].mxu0 %vm312_vm1, %v902_v24  ;;  %11505 = vmatmul.mubr.msk.f32.gmra.mrb[68].mxu1 %vm312_vm1, %v1217_v25 }
  0xac   : > { %11412 = vmatprep.mubr.msk.f32.mxu0 %vm13326_vm0, %v16687_v6  ;;  %11507 = vmatprep.mubr.msk.f32.mxu1 %vm13326_vm0, %v16687_v6 }
  0xaf   : > { %11413 = vmatmul.mubr.msk.f32.gmra.mrb[70].mxu0 %vm312_vm1, %v903_v26  ;;  %11508 = vmatmul.mubr.msk.f32.gmra.mrb[70].mxu1 %vm312_vm1, %v1218_v27 }
  0xb0   : > { %11415 = vmatprep.mubr.msk.f32.mxu0 %vm13326_vm0, %v16687_v6  ;;  %11510 = vmatprep.mubr.msk.f32.mxu1 %vm13326_vm0, %v16687_v6 }
  0xb3   : > { %11416 = vmatmul.mubr.msk.f32.gmra.mrb[72].mxu0 %vm312_vm1, %v904_v28  ;;  %11511 = vmatmul.mubr.msk.f32.gmra.mrb[72].mxu1 %vm312_vm1, %v1219_v29 }
  0xb4   : > { %11418 = vmatprep.mubr.msk.f32.mxu0 %vm13326_vm0, %v16687_v6  ;;  %11513 = vmatprep.mubr.msk.f32.mxu1 %vm13326_vm0, %v16687_v6 }
  0xb7   : > { %11419 = vmatmul.mubr.msk.f32.gmra.mrb[74].mxu0 %vm312_vm1, %v905_v30  ;;  %11514 = vmatmul.mubr.msk.f32.gmra.mrb[74].mxu1 %vm312_vm1, %v1220_v31 }
  0xb8   : > { %11421 = vmatprep.mubr.msk.f32.mxu0 %vm13326_vm0, %v16687_v6  ;;  %11516 = vmatprep.mubr.msk.f32.mxu1 %vm13326_vm0, %v16687_v6 }
  0xbb   : > { %11422 = vmatmul.mubr.msk.f32.gmra.mrb[76].mxu0 %vm312_vm1, %v906_v32  ;;  %11517 = vmatmul.mubr.msk.f32.gmra.mrb[76].mxu1 %vm312_vm1, %v1221_v33 }
  0xbc   : > { %11424 = vmatprep.mubr.msk.f32.mxu0 %vm13326_vm0, %v16687_v6  ;;  %11519 = vmatprep.mubr.msk.f32.mxu1 %vm13326_vm0, %v16687_v6 }
  0xbf   : > { %11425 = vmatmul.mubr.msk.f32.gmra.mrb[78].mxu0 %vm312_vm1, %v907_v34  ;;  %11520 = vmatmul.mubr.msk.f32.gmra.mrb[78].mxu1 %vm312_vm1, %v1222_v35 }
  0xc0   : > { %11427 = vmatprep.mubr.msk.f32.mxu0 %vm13326_vm0, %v16687_v6  ;;  %11522 = vmatprep.mubr.msk.f32.mxu1 %vm13326_vm0, %v16687_v6 }
  0xc3   : > { %11428 = vmatmul.mubr.msk.f32.gmra.mrb[80].mxu0 %vm312_vm1, %v908_v36  ;;  %11523 = vmatmul.mubr.msk.f32.gmra.mrb[80].mxu1 %vm312_vm1, %v1223_v37 }
  0xc4   : > { %11430 = vmatprep.mubr.msk.f32.mxu0 %vm13326_vm0, %v16687_v6  ;;  %11525 = vmatprep.mubr.msk.f32.mxu1 %vm13326_vm0, %v16687_v6 }
  0xc7   : > { %11431 = vmatmul.mubr.msk.f32.gmra.mrb[82].mxu0 %vm312_vm1, %v909_v38  ;;  %11526 = vmatmul.mubr.msk.f32.gmra.mrb[82].mxu1 %vm312_vm1, %v1224_v39 }
  0xc8   : > { %11433 = vmatprep.mubr.msk.f32.mxu0 %vm13326_vm0, %v16687_v6  ;;  %11528 = vmatprep.mubr.msk.f32.mxu1 %vm13326_vm0, %v16687_v6 }
  0xcb   : > { %11434 = vmatmul.mubr.msk.f32.gmra.mrb[84].mxu0 %vm312_vm1, %v910_v40  ;;  %11529 = vmatmul.mubr.msk.f32.gmra.mrb[84].mxu1 %vm312_vm1, %v1225_v41 }
  0xcc   : > { %11436 = vmatprep.mubr.msk.f32.mxu0 %vm13326_vm0, %v16687_v6  ;;  %11531 = vmatprep.mubr.msk.f32.mxu1 %vm13326_vm0, %v16687_v6 }
  0xcf   : > { %11437 = vmatmul.mubr.msk.f32.gmra.mrb[86].mxu0 %vm312_vm1, %v911_v42  ;;  %11532 = vmatmul.mubr.msk.f32.gmra.mrb[86].mxu1 %vm312_vm1, %v1226_v43 }
  0xd0   : > { %11439 = vmatprep.mubr.msk.f32.mxu0 %vm13326_vm0, %v16687_v6  ;;  %11534 = vmatprep.mubr.msk.f32.mxu1 %vm13326_vm0, %v16687_v6 }
  0xd3   : > { %11440 = vmatmul.mubr.msk.f32.gmra.mrb[88].mxu0 %vm312_vm1, %v912_v45  ;;  %11535 = vmatmul.mubr.msk.f32.gmra.mrb[88].mxu1 %vm312_vm1, %v1227_v46 }
  0xd4   : > { %11442 = vmatprep.mubr.msk.f32.mxu0 %vm13326_vm0, %v16687_v6  ;;  %11537 = vmatprep.mubr.msk.f32.mxu1 %vm13326_vm0, %v16687_v6 }
  0xd7   : > { %11443 = vmatmul.mubr.msk.f32.gmra.mrb[90].mxu0 %vm312_vm1, %v913_v47  ;;  %11538 = vmatmul.mubr.msk.f32.gmra.mrb[90].mxu1 %vm312_vm1, %v1228_v48 }
  0xd8   : > { %11445 = vmatprep.mubr.msk.f32.mxu0 %vm13326_vm0, %v16687_v6  ;;  %11540 = vmatprep.mubr.msk.f32.mxu1 %vm13326_vm0, %v16687_v6 }
  0xdb   : > { %11446 = vmatmul.mubr.msk.f32.gmra.mrb[92].mxu0 %vm312_vm1, %v914_v49  ;;  %11541 = vmatmul.mubr.msk.f32.gmra.mrb[92].mxu1 %vm312_vm1, %v1229_v50 }
  0xdc   : > { %11448 = vmatprep.mubr.msk.f32.mxu0 %vm13326_vm0, %v16687_v6  ;;  %11543 = vmatprep.mubr.msk.f32.mxu1 %vm13326_vm0, %v16687_v6 }
  0xdf   : > { %11449 = vmatmul.mubr.msk.f32.gmra.mrb[94].mxu0 %vm312_vm1, %v915_v51  ;;  %11544 = vmatmul.mubr.msk.f32.gmra.mrb[94].mxu1 %vm312_vm1, %v1230_v52 }
  0xe0   : > { %11451 = vmatprep.mubr.msk.f32.mxu0 %vm13326_vm0, %v16687_v6  ;;  %11546 = vmatprep.mubr.msk.f32.mxu1 %vm13326_vm0, %v16687_v6 }
  0xe3   : > { %11452 = vmatmul.mubr.msk.f32.gmra.mrb[96].mxu0 %vm312_vm1, %v916_v53  ;;  %11547 = vmatmul.mubr.msk.f32.gmra.mrb[96].mxu1 %vm312_vm1, %v1231_v54 }
  0xe4   : > { %11454 = vmatprep.mubr.msk.f32.mxu0 %vm13326_vm0, %v16687_v6  ;;  %11549 = vmatprep.mubr.msk.f32.mxu1 %vm13326_vm0, %v16687_v6 }
  0xe7   : > { %11455 = vmatmul.mubr.msk.f32.gmra.mrb[98].mxu0 %vm312_vm1, %v917_v55  ;;  %11550 = vmatmul.mubr.msk.f32.gmra.mrb[98].mxu1 %vm312_vm1, %v1232_v56 }
  0xe8   : > { %11607 = vmatprep.mubr.msk.f32.mxu1 %vm13326_vm0, %v16687_v6  ;;  %11554 = vmatprep.mubr.msk.f32.mxu0 %vm13326_vm0, %v16687_v6 }
  0xf6   : > { %v13852_v57 = vpop.f32.mrb[0].mxu0  ;;  %v13854_v58 = vpop.f32.mrb[0].mxu1 }
  0xf7   : > { %v11194_v59 = vpop.f32.mrb[1].mxu0  ;;  %v868_v60 = vmax.f32 %v13852_v57, %v13854_v58  ;;  %v11289_v61 = vpop.f32.mrb[1].mxu1 }
  0xfa   : > { %v13858_v62 = vpop.f32.mrb[2].mxu0  ;;  %v13860_v63 = vpop.f32.mrb[2].mxu1 }
  0xfb   : > { %v11197_v0 = vpop.f32.mrb[3].mxu0  ;;  %v869_v1 = vmax.f32 %v13858_v62, %v13860_v63  ;;  %v11292_v2 = vpop.f32.mrb[3].mxu1  ;;  %v16692_v63 = vmov 0.0  }
  0xfe   : > { %v13864_v4 = vpop.f32.mrb[4].mxu0  ;;  %v13866_v5 = vpop.f32.mrb[4].mxu1 }
  0xff   : > { %v11200_v7 = vpop.f32.mrb[5].mxu0  ;;  %v11295_v9 = vpop.f32.mrb[5].mxu1 }
 0x102   : > { %v13870_v10 = vpop.f32.mrb[6].mxu0  ;;  %v13872_v11 = vpop.f32.mrb[6].mxu1 }
 0x103   : > { %v11203_v12 = vpop.f32.mrb[7].mxu0  ;;  %v11298_v14 = vpop.f32.mrb[7].mxu1 }
 0x106   : > { %v13876_v15 = vpop.f32.mrb[8].mxu0  ;;  %v13878_v16 = vpop.f32.mrb[8].mxu1 }
 0x107   : > { %v11206_v17 = vpop.f32.mrb[9].mxu0  ;;  %v11301_v19 = vpop.f32.mrb[9].mxu1 }
 0x10a   : > { %v13882_v20 = vpop.f32.mrb[10].mxu0  ;;  %v13884_v21 = vpop.f32.mrb[10].mxu1 }
 0x10b   : > { %v11209_v22 = vpop.f32.mrb[11].mxu0  ;;  %v11304_v24 = vpop.f32.mrb[11].mxu1 }
 0x10e   : > { %v13888_v25 = vpop.f32.mrb[12].mxu0  ;;  %v13890_v26 = vpop.f32.mrb[12].mxu1 }
 0x10f   : > { %v11212_v27 = vpop.f32.mrb[13].mxu0  ;;  %v11307_v29 = vpop.f32.mrb[13].mxu1 }
 0x112   : > { %v13894_v30 = vpop.f32.mrb[14].mxu0  ;;  %v13896_v31 = vpop.f32.mrb[14].mxu1 }
 0x113   : > { %v11215_v32 = vpop.f32.mrb[15].mxu0  ;;  %v11310_v34 = vpop.f32.mrb[15].mxu1 }
 0x116   : > { %v13900_v35 = vpop.f32.mrb[16].mxu0  ;;  %v13902_v36 = vpop.f32.mrb[16].mxu1 }
 0x117   : > { %v11218_v37 = vpop.f32.mrb[17].mxu0  ;;  %v11313_v39 = vpop.f32.mrb[17].mxu1 }
 0x11a   : > { %v13906_v40 = vpop.f32.mrb[18].mxu0  ;;  %v13908_v41 = vpop.f32.mrb[18].mxu1 }
 0x11b   : > { %v11221_v42 = vpop.f32.mrb[19].mxu0  ;;  %v11316_v44 = vpop.f32.mrb[19].mxu1 }
 0x11e   : > { %v13912_v45 = vpop.f32.mrb[20].mxu0  ;;  %v13914_v46 = vpop.f32.mrb[20].mxu1 }
 0x11f   : > { %v11224_v47 = vpop.f32.mrb[21].mxu0  ;;  %v11319_v49 = vpop.f32.mrb[21].mxu1 }
 0x122   : > { %v13918_v50 = vpop.f32.mrb[22].mxu0  ;;  %v13920_v51 = vpop.f32.mrb[22].mxu1 }
 0x123   : > { %v11227_v52 = vpop.f32.mrb[23].mxu0  ;;  %v11322_v54 = vpop.f32.mrb[23].mxu1 }
 0x126   : > { %v13924_v55 = vpop.f32.mrb[24].mxu0  ;;  %v13926_v56 = vpop.f32.mrb[24].mxu1 }
 0x127   : > { %v11230_v59 = vpop.f32.mrb[25].mxu0  ;;  %v11325_v0 = vpop.f32.mrb[25].mxu1 }
 0x12a   : > { %v13930_v2 = vpop.f32.mrb[26].mxu0  ;;  %v13932_v7 = vpop.f32.mrb[26].mxu1 }
 0x12b   : > { %v11233_v9 = vpop.f32.mrb[27].mxu0  ;;  %v11328_v14 = vpop.f32.mrb[27].mxu1 }
 0x12e   : > { %v13936_v17 = vpop.f32.mrb[28].mxu0  ;;  %v13938_v19 = vpop.f32.mrb[28].mxu1 }
 0x12f   : > { %v11236_v22 = vpop.f32.mrb[29].mxu0  ;;  %v11331_v27 = vpop.f32.mrb[29].mxu1 }
 0x132   : > { %v13942_v29 = vpop.f32.mrb[30].mxu0  ;;  %v13944_v32 = vpop.f32.mrb[30].mxu1 }
 0x133   : > { %v11239_v34 = vpop.f32.mrb[31].mxu0  ;;  %v11334_v39 = vpop.f32.mrb[31].mxu1 }
 0x136   : > { %v13948_v42 = vpop.f32.mrb[32].mxu0  ;;  %v13950_v44 = vpop.f32.mrb[32].mxu1 }
 0x137   : > { %v11242_v47 = vpop.f32.mrb[33].mxu0  ;;  %v11337_v52 = vpop.f32.mrb[33].mxu1 }
 0x13a   : > { %v13954_v54 = vpop.f32.mrb[34].mxu0  ;;  %v13956_v59 = vpop.f32.mrb[34].mxu1 }
 0x13b   : > { %v11245_v0 = vpop.f32.mrb[35].mxu0  ;;  %v11340_v14 = vpop.f32.mrb[35].mxu1 }
 0x13e   : > { %v13960_v22 = vpop.f32.mrb[36].mxu0  ;;  %v13962_v27 = vpop.f32.mrb[36].mxu1 }
 0x13f   : > { %v11248_v34 = vpop.f32.mrb[37].mxu0  ;;  %v11343_v47 = vpop.f32.mrb[37].mxu1 }
 0x142   : > { %v13966_v3 = vpop.f32.mrb[38].mxu0  ;;  %v13968_v52 = vpop.f32.mrb[38].mxu1 }
 0x143   : > { %v11251_v49 = vpop.f32.mrb[39].mxu0  ;;  %v11346_v37 = vpop.f32.mrb[39].mxu1 }
 0x146   : > { %v13972_v9 = vpop.f32.mrb[40].mxu0  ;;  %v13974_v14 = vpop.f32.mrb[40].mxu1 }
 0x147   : > { %v11254_v24 = vpop.f32.mrb[41].mxu0  ;;  %v11349_v12 = vpop.f32.mrb[41].mxu1 }
 0x14a   : > { %v13978_v39 = vpop.f32.mrb[42].mxu0  ;;  %v13980_v47 = vpop.f32.mrb[42].mxu1 }
 0x14b   : > { %v11257_v61 = vpop.f32.mrb[43].mxu0  ;;  %v11352_v53 = vpop.f32.mrb[43].mxu1 }
 0x14e   : > { %v13984_v0 = vpop.f32.mrb[44].mxu0  ;;  %v13986_v37 = vpop.f32.mrb[44].mxu1 }
 0x14f   : > { %v11260_v48 = vpop.f32.mrb[45].mxu0  ;;  %v11355_v43 = vpop.f32.mrb[45].mxu1 }
 0x152   : > { %v13990_v34 = vpop.f32.mrb[46].mxu0  ;;  %v13992_v12 = vpop.f32.mrb[46].mxu1 }
 0x153   : > { %v11263_v38 = vpop.f32.mrb[47].mxu0  ;;  %v11358_v33 = vpop.f32.mrb[47].mxu1 }
 0x154   : > { %v14008_v33 = vld [vmem:[%s16683_s6] ss:$0 sm:$0xff] }
 0x156   : > { %v13996_v49 = vpop.f32.mrb[48].mxu0  ;;  %v13998_v53 = vpop.f32.mrb[48].mxu1 }
 0x157   : > { %16690 = vst [vmem:[#allocation4_spill] sm:$0xff] %v13998_v53  ;;  %v11266_v28 = vpop.f32.mrb[49].mxu0  ;;  %v11361_v23 = vpop.f32.mrb[49].mxu1 }
 0x15a   : > { %v1059_v24 = vpop.f32.mrb[50].mxu0  ;;  %v1374_v43 = vpop.f32.mrb[50].mxu1 }
 0x15b   : > { %v1183_v18 = vmax.f32 %v868_v60, %v1059_v24  ;;  %v11384_v38 = vpop.f32.mrb[51].mxu0  ;;  %v11479_v13 = vpop.f32.mrb[51].mxu1  ;;  %v2295_v60 = vld [vmem:[%s16679_s2 + $0x18] sm:$0xff] }
 0x15d   : > { %v1498_v61 = vmax.f32 %v1183_v18, %v1374_v43 }
 0x15e   : > { %v1064_v6 = vpop.f32.mrb[52].mxu0  ;;  %v1379_v28 = vpop.f32.mrb[52].mxu1 }
 0x15f   : > { %v1528_v8 = vadd.f32 %v14008_v33, %v1498_v61  ;;  %v1184_v23 = vmax.f32 %v869_v1, %v1064_v6  ;;  %v11387_v48 = vpop.f32.mrb[53].mxu0  ;;  %v11482_v53 = vpop.f32.mrb[53].mxu1  ;;  %v16691_v61 = vmax.f32 %v13864_v4, %v13866_v5  ;;  %v16693_v4 = vmax.f32 %v13870_v10, %v13872_v11 }
 0x161   : > { %v1553_v57 = vmax.f32 %v1528_v8, 0.0  ;;  %v1499_v58 = vmax.f32 %v1184_v23, %v1379_v28 }
 0x162   : > { %v1069_v13 = vpop.f32.mrb[54].mxu0  ;;  %v1384_v24 = vpop.f32.mrb[54].mxu1 }
 0x163   : > { %1578 = vst [vmem:[#allocation2] sm:$0xff] %v1553_v57  ;;  %v1529_v18 = vadd.f32 %v14008_v33, %v1499_v58  ;;  %v1185_v43 = vmax.f32 %v16691_v61, %v1069_v13  ;;  %v11390_v62 = vpop.f32.mrb[55].mxu0  ;;  %v11485_v6 = vpop.f32.mrb[55].mxu1  ;;  %11608 = vmatmul.mubr.msk.f32.vlgmr.msra.gmra.mrb[100].mxu1 %vm1639_vm2, %v1553_v57 }
 0x164   : > { %11610 = vmatprep.mubr.msk.f32.mxu1 %vm13326_vm0, %v16692_v63  ;;  %11712 = vmatpush3.msra.mxu1 %v2295_v60  ;;  %v2059_v6 = vld [vmem:[%s16679_s2 + $0x10] sm:$0xff] }
 0x165   : > { %v1554_v1 = vmax.f32 %v1529_v18, 0.0  ;;  %v1500_v8 = vmax.f32 %v1185_v43, %v1384_v24  ;;  %11817 = vmatprep.subr.mxu1 %v16692_v63  ;;  %v16694_v18 = vmax.f32 %v13876_v15, %v13878_v16  ;;  %v16695_v16 = vmax.f32 %v13882_v20, %v13884_v21 }
 0x166   : > { %v1074_v53 = vpop.f32.mrb[56].mxu0  ;;  %v1389_v48 = vpop.f32.mrb[56].mxu1 }
 0x167   : > { %1579 = vst [vmem:[#allocation2 + $0x8] sm:$0xff] %v1554_v1  ;;  %v1530_v38 = vadd.f32 %v14008_v33, %v1500_v8  ;;  %v1186_v5 = vmax.f32 %v16693_v4, %v1074_v53  ;;  %v11393_v28 = vpop.f32.mrb[57].mxu0  ;;  %v11488_v23 = vpop.f32.mrb[57].mxu1  ;;  %11611 = vmatmul.mubr.msk.f32.gmra.mrb[102].mxu1 %vm1639_vm2, %v1554_v1 }
 0x168   : > { %11613 = vmatprep.mubr.msk.f32.mxu1 %vm13326_vm0, %v16692_v63 }
 0x169   : > { %v1555_v57 = vmax.f32 %v1530_v38, 0.0  ;;  %v1501_v58 = vmax.f32 %v1186_v5, %v1389_v48 }
 0x16a   : > { %v1079_v60 = vpop.f32.mrb[58].mxu0  ;;  %v1394_v13 = vpop.f32.mrb[58].mxu1 }
 0x16b   : > { %1580 = vst [vmem:[#allocation2 + $0x10] sm:$0xff] %v1555_v57  ;;  %v1531_v24 = vadd.f32 %v14008_v33, %v1501_v58  ;;  %v1187_v61 = vmax.f32 %v16694_v18, %v1079_v60  ;;  %v11396_v10 = vpop.f32.mrb[59].mxu0  ;;  %v11491_v11 = vpop.f32.mrb[59].mxu1  ;;  %11614 = vmatmul.mubr.msk.f32.gmra.mrb[104].mxu1 %vm1639_vm2, %v1555_v57  ;;  %v16696_v58 = vmax.f32 %v13888_v25, %v13890_v26 }
 0x16c   : > { %11616 = vmatprep.mubr.msk.f32.mxu1 %vm13326_vm0, %v16692_v63  ;;  %v16697_v26 = vmax.f32 %v13894_v30, %v13896_v31  ;;  %v16698_v31 = vmax.f32 %v13900_v35, %v13902_v36 }
 0x16d   : > { %v1556_v43 = vmax.f32 %v1531_v24, 0.0  ;;  %v1502_v62 = vmax.f32 %v1187_v61, %v1394_v13 }
 0x16e   : > { %v1084_v1 = vpop.f32.mrb[60].mxu0  ;;  %v1621_v8 = vld [vmem:[#allocation2 + $0x1] sm:$0xff]  ;;  %v1399_v53 = vpop.f32.mrb[60].mxu1 }
 0x16f   : > { %1581 = vst [vmem:[#allocation2 + $0x18] sm:$0xff] %v1556_v43  ;;  %v1532_v15 = vadd.f32 %v14008_v33, %v1502_v62  ;;  %v1188_v48 = vmax.f32 %v16695_v16, %v1084_v1  ;;  %v11399_v38 = vpop.f32.mrb[61].mxu0  ;;  %11555 = vmatmul.mubr.msk.f32.vlgmr.msra.gmra.mrb[100].mxu0 %vm1639_vm2, %v1621_v8  ;;  %v11494_v4 = vpop.f32.mrb[61].mxu1  ;;  %11617 = vmatmul.mubr.msk.f32.gmra.mrb[106].mxu1 %vm1639_vm2, %v1556_v43 }
 0x170   : > { %11659 = vmatpush3.msra.mxu0 %v2059_v6  ;;  %11557 = vmatprep.mubr.msk.f32.mxu0 %vm13326_vm0, %v16692_v63 }
 0x171   : > { %v1557_v5 = vmax.f32 %v1532_v15, 0.0  ;;  %v1503_v28 = vmax.f32 %v1188_v48, %v1399_v53  ;;  %11619 = vmatprep.mubr.msk.f32.mxu1 %vm13326_vm0, %v16692_v63  ;;  %11764 = vmatprep.subr.mxu0 %v16692_v63 }
 0x172   : > { %v1089_v23 = vpop.f32.mrb[62].mxu0  ;;  %v1622_v20 = vld [vmem:[#allocation2 + $0x9] sm:$0xff]  ;;  %v1404_v21 = vpop.f32.mrb[62].mxu1 }
 0x173   : > { %1582 = vst [vmem:[#allocation2 + $0x20] sm:$0xff] %v1557_v5  ;;  %v1533_v57 = vadd.f32 %v14008_v33, %v1503_v28  ;;  %v1189_v60 = vmax.f32 %v16696_v58, %v1089_v23  ;;  %v11402_v13 = vpop.f32.mrb[63].mxu0  ;;  %11558 = vmatmul.mubr.msk.f32.gmra.mrb[102].mxu0 %vm1639_vm2, %v1622_v20  ;;  %v11497_v24 = vpop.f32.mrb[63].mxu1  ;;  %11620 = vmatmul.mubr.msk.f32.gmra.mrb[108].mxu1 %vm1639_vm2, %v1557_v5 }
 0x174   : > { %11560 = vmatprep.mubr.msk.f32.mxu0 %vm13326_vm0, %v16692_v63  ;;  %11622 = vmatprep.mubr.msk.f32.mxu1 %vm13326_vm0, %v16692_v63 }
 0x175   : > { %v1558_v18 = vmax.f32 %v1533_v57, 0.0  ;;  %v1504_v61 = vmax.f32 %v1189_v60, %v1404_v21  ;;  %v16699_v57 = vmax.f32 %v13906_v40, %v13908_v41 }
 0x176   : > { %v1094_v10 = vpop.f32.mrb[64].mxu0  ;;  %v1623_v11 = vld [vmem:[#allocation2 + $0x11] sm:$0xff]  ;;  %v1409_v43 = vpop.f32.mrb[64].mxu1 }
 0x177   : > { %1583 = vst [vmem:[#allocation2 + $0x28] sm:$0xff] %v1558_v18  ;;  %v1534_v25 = vadd.f32 %v14008_v33, %v1504_v61  ;;  %v1190_v62 = vmax.f32 %v16697_v26, %v1094_v10  ;;  %v11405_v6 = vpop.f32.mrb[65].mxu0  ;;  %11561 = vmatmul.mubr.msk.f32.gmra.mrb[104].mxu0 %vm1639_vm2, %v1623_v11  ;;  %v11500_v1 = vpop.f32.mrb[65].mxu1  ;;  %11623 = vmatmul.mubr.msk.f32.gmra.mrb[110].mxu1 %vm1639_vm2, %v1558_v18 }
 0x178   : > { %11563 = vmatprep.mubr.msk.f32.mxu0 %vm13326_vm0, %v16692_v63  ;;  %11625 = vmatprep.mubr.msk.f32.mxu1 %vm13326_vm0, %v16692_v63  ;;  %v16700_v11 = vmax.f32 %v13912_v45, %v13914_v46 }
 0x179   : > { %v14073_v8 = vmax.f32 %v1534_v25, 0.0  ;;  %v1505_v53 = vmax.f32 %v1190_v62, %v1409_v43 }
 0x17a   : > { %v1099_v15 = vpop.f32.mrb[66].mxu0  ;;  %v1624_v16 = vld [vmem:[#allocation2 + $0x19] sm:$0xff]  ;;  %v1414_v48 = vpop.f32.mrb[66].mxu1 }
 0x17b   : > { %1584 = vst [vmem:[#allocation2 + $0x30] sm:$0xff] %v14073_v8  ;;  %v1535_v30 = vadd.f32 %v14008_v33, %v1505_v53  ;;  %v1191_v38 = vmax.f32 %v16698_v31, %v1099_v15  ;;  %v11408_v4 = vpop.f32.mrb[67].mxu0  ;;  %11564 = vmatmul.mubr.msk.f32.gmra.mrb[106].mxu0 %vm1639_vm2, %v1624_v16  ;;  %v11503_v5 = vpop.f32.mrb[67].mxu1  ;;  %11626 = vmatmul.mubr.msk.f32.gmra.mrb[112].mxu1 %vm1639_vm2, %v14073_v8 }
 0x17c   : > { %11566 = vmatprep.mubr.msk.f32.mxu0 %vm13326_vm0, %v16692_v63  ;;  %11628 = vmatprep.mubr.msk.f32.mxu1 %vm13326_vm0, %v16692_v63  ;;  %v16701_v15 = vmax.f32 %v13918_v50, %v13920_v51 }
 0x17d   : > { %v14087_v28 = vmax.f32 %v1535_v30, 0.0  ;;  %v1506_v23 = vmax.f32 %v1191_v38, %v1414_v48 }
 0x17e   : > { %v1104_v20 = vpop.f32.mrb[68].mxu0  ;;  %v1625_v21 = vld [vmem:[#allocation2 + $0x21] sm:$0xff]  ;;  %v1419_v35 = vpop.f32.mrb[68].mxu1 }
 0x17f   : > { %1585 = vst [vmem:[#allocation2 + $0x38] sm:$0xff] %v14087_v28  ;;  %v1536_v36 = vadd.f32 %v14008_v33, %v1506_v23  ;;  %v1192_v58 = vmax.f32 %v16699_v57, %v1104_v20  ;;  %v11411_v60 = vpop.f32.mrb[69].mxu0  ;;  %11567 = vmatmul.mubr.msk.f32.gmra.mrb[108].mxu0 %vm1639_vm2, %v1625_v21  ;;  %v11506_v13 = vpop.f32.mrb[69].mxu1  ;;  %11629 = vmatmul.mubr.msk.f32.gmra.mrb[114].mxu1 %vm1639_vm2, %v14087_v28 }
 0x180   : > { %11569 = vmatprep.mubr.msk.f32.mxu0 %vm13326_vm0, %v16692_v63  ;;  %11631 = vmatprep.mubr.msk.f32.mxu1 %vm13326_vm0, %v16692_v63  ;;  %v16702_v23 = vmax.f32 %v13924_v55, %v13926_v56  ;;  %v16703_v13 = vmax.f32 %v13930_v2, %v13932_v7 }
 0x181   : > { %v14101_v24 = vmax.f32 %v1536_v36, 0.0  ;;  %v1507_v18 = vmax.f32 %v1192_v58, %v1419_v35 }
 0x182   : > { %v1109_v61 = vpop.f32.mrb[70].mxu0  ;;  %v1626_v10 = vld [vmem:[#allocation2 + $0x29] sm:$0xff]  ;;  %v1424_v40 = vpop.f32.mrb[70].mxu1 }
 0x183   : > { %1586 = vst [vmem:[#allocation2 + $0x40] sm:$0xff] %v14101_v24  ;;  %v1537_v41 = vadd.f32 %v14008_v33, %v1507_v18  ;;  %v1193_v43 = vmax.f32 %v16700_v11, %v1109_v61  ;;  %v11414_v25 = vpop.f32.mrb[71].mxu0  ;;  %11570 = vmatmul.mubr.msk.f32.gmra.mrb[110].mxu0 %vm1639_vm2, %v1626_v10  ;;  %v11509_v26 = vpop.f32.mrb[71].mxu1  ;;  %11632 = vmatmul.mubr.msk.f32.gmra.mrb[116].mxu1 %vm1639_vm2, %v14101_v24 }
 0x184   : > { %11572 = vmatprep.mubr.msk.f32.mxu0 %vm13326_vm0, %v16692_v63  ;;  %11634 = vmatprep.mubr.msk.f32.mxu1 %vm13326_vm0, %v16692_v63  ;;  %v16704_v25 = vmax.f32 %v13936_v17, %v13938_v19 }
 0x185   : > { %v14115_v62 = vmax.f32 %v1537_v41, 0.0  ;;  %v1508_v6 = vmax.f32 %v1193_v43, %v1424_v40 }
 0x186   : > { %v1114_v1 = vpop.f32.mrb[72].mxu0  ;;  %v1627_v53 = vld [vmem:[#allocation2 + $0x31] sm:$0xff]  ;;  %v1429_v45 = vpop.f32.mrb[72].mxu1 }
 0x187   : > { %1587 = vst [vmem:[#allocation2 + $0x48] sm:$0xff] %v14115_v62  ;;  %v1538_v46 = vadd.f32 %v14008_v33, %v1508_v6  ;;  %v1194_v16 = vmax.f32 %v16701_v15, %v1114_v1  ;;  %v11417_v48 = vpop.f32.mrb[73].mxu0  ;;  %11573 = vmatmul.mubr.msk.f32.gmra.mrb[112].mxu0 %vm1639_vm2, %v1627_v53  ;;  %v11512_v30 = vpop.f32.mrb[73].mxu1  ;;  %11635 = vmatmul.mubr.msk.f32.gmra.mrb[118].mxu1 %vm1639_vm2, %v14115_v62 }
 0x188   : > { %11575 = vmatprep.mubr.msk.f32.mxu0 %vm13326_vm0, %v16692_v63  ;;  %11637 = vmatprep.mubr.msk.f32.mxu1 %vm13326_vm0, %v16692_v63 }
 0x189   : > { %v14129_v31 = vmax.f32 %v1538_v46, 0.0  ;;  %v1509_v38 = vmax.f32 %v1194_v16, %v1429_v45  ;;  %v16705_v16 = vmax.f32 %v13942_v29, %v13944_v32 }
 0x18a   : > { %v1119_v4 = vpop.f32.mrb[74].mxu0  ;;  %v1628_v5 = vld [vmem:[#allocation2 + $0x39] sm:$0xff]  ;;  %v1434_v50 = vpop.f32.mrb[74].mxu1 }
 0x18b   : > { %1588 = vst [vmem:[#allocation2 + $0x50] sm:$0xff] %v14129_v31  ;;  %v1539_v51 = vadd.f32 %v14008_v33, %v1509_v38  ;;  %v1195_v20 = vmax.f32 %v16702_v23, %v1119_v4  ;;  %v11420_v21 = vpop.f32.mrb[75].mxu0  ;;  %11576 = vmatmul.mubr.msk.f32.gmra.mrb[114].mxu0 %vm1639_vm2, %v1628_v5  ;;  %v11515_v35 = vpop.f32.mrb[75].mxu1  ;;  %11638 = vmatmul.mubr.msk.f32.gmra.mrb[120].mxu1 %vm1639_vm2, %v14129_v31 }
 0x18c   : > { %11578 = vmatprep.mubr.msk.f32.mxu0 %vm13326_vm0, %v16692_v63  ;;  %11640 = vmatprep.mubr.msk.f32.mxu1 %vm13326_vm0, %v16692_v63  ;;  %v16706_v23 = vmax.f32 %v13948_v42, %v13950_v44 }
 0x18d   : > { %v14143_v36 = vmax.f32 %v1539_v51, 0.0  ;;  %v1510_v57 = vmax.f32 %v1195_v20, %v1434_v50 }
 0x18e   : > { %v1124_v58 = vpop.f32.mrb[76].mxu0  ;;  %v1629_v60 = vld [vmem:[#allocation2 + $0x41] sm:$0xff]  ;;  %v1439_v55 = vpop.f32.mrb[76].mxu1 }
 0x18f   : > { %1589 = vst [vmem:[#allocation2 + $0x58] sm:$0xff] %v14143_v36  ;;  %v1540_v56 = vadd.f32 %v14008_v33, %v1510_v57  ;;  %v1196_v18 = vmax.f32 %v16703_v13, %v1124_v58  ;;  %v11423_v61 = vpop.f32.mrb[77].mxu0  ;;  %11579 = vmatmul.mubr.msk.f32.gmra.mrb[116].mxu0 %vm1639_vm2, %v1629_v60  ;;  %v11518_v10 = vpop.f32.mrb[77].mxu1  ;;  %11641 = vmatmul.mubr.msk.f32.gmra.mrb[122].mxu1 %vm1639_vm2, %v14143_v36 }
 0x190   : > { %11581 = vmatprep.mubr.msk.f32.mxu0 %vm13326_vm0, %v16692_v63  ;;  %11643 = vmatprep.mubr.msk.f32.mxu1 %vm13326_vm0, %v16692_v63 }
 0x191   : > { %v14157_v40 = vmax.f32 %v1540_v56, 0.0  ;;  %v1511_v41 = vmax.f32 %v1196_v18, %v1439_v55  ;;  %v16707_v56 = vmax.f32 %v13954_v54, %v13956_v59 }
 0x192   : > { %v1129_v11 = vpop.f32.mrb[78].mxu0  ;;  %v1630_v43 = vld [vmem:[#allocation2 + $0x49] sm:$0xff]  ;;  %v1444_v2 = vpop.f32.mrb[78].mxu1 }
 0x193   : > { %1590 = vst [vmem:[#allocation2 + $0x60] sm:$0xff] %v14157_v40  ;;  %v1541_v7 = vadd.f32 %v14008_v33, %v1511_v41  ;;  %v1197_v26 = vmax.f32 %v16704_v25, %v1129_v11  ;;  %v11426_v6 = vpop.f32.mrb[79].mxu0  ;;  %11582 = vmatmul.mubr.msk.f32.gmra.mrb[118].mxu0 %vm1639_vm2, %v1630_v43  ;;  %v11521_v1 = vpop.f32.mrb[79].mxu1  ;;  %11644 = vmatmul.mubr.msk.f32.gmra.mrb[124].mxu1 %vm1639_vm2, %v14157_v40 }
 0x194   : > { %11584 = vmatprep.mubr.msk.f32.mxu0 %vm13326_vm0, %v16692_v63  ;;  %11646 = vmatprep.mubr.msk.f32.mxu1 %vm13326_vm0, %v16692_v63 }
 0x195   : > { %v14171_v53 = vmax.f32 %v1541_v7, 0.0  ;;  %v1512_v45 = vmax.f32 %v1197_v26, %v1444_v2  ;;  %v16708_v2 = vmax.f32 %v13960_v22, %v13962_v27  ;;  %v2278_v27 = vld [vmem:[#allocation2 + $0x3] sm:$0xff] }
 0x196   : > { %v1134_v46 = vpop.f32.mrb[80].mxu0  ;;  %v1631_v15 = vld [vmem:[#allocation2 + $0x51] sm:$0xff]  ;;  %v1449_v17 = vpop.f32.mrb[80].mxu1 }
 0x197   : > { %1591 = vst [vmem:[#allocation2 + $0x68] sm:$0xff] %v14171_v53  ;;  %v1542_v19 = vadd.f32 %v14008_v33, %v1512_v45  ;;  %v1198_v48 = vmax.f32 %v16705_v16, %v1134_v46  ;;  %v11429_v30 = vpop.f32.mrb[81].mxu0  ;;  %11585 = vmatmul.mubr.msk.f32.gmra.mrb[120].mxu0 %vm1639_vm2, %v1631_v15  ;;  %v11524_v38 = vpop.f32.mrb[81].mxu1  ;;  %11647 = vmatmul.mubr.msk.f32.gmra.mrb[126].mxu1 %vm1639_vm2, %v14171_v53  ;;  %v2767_v15 = vld [vmem:[%s16679_s2 + $0x28] sm:$0xff] }
 0x198   : > { %11587 = vmatprep.mubr.msk.f32.mxu0 %vm13326_vm0, %v16692_v63  ;;  %11649 = vmatprep.mubr.msk.f32.mxu1 %vm13326_vm0, %v16692_v63 }
 0x199   : > { %v14185_v4 = vmax.f32 %v1542_v19, 0.0  ;;  %v1513_v5 = vmax.f32 %v1198_v48, %v1449_v17  ;;  %v16709_v19 = vmax.f32 %v13966_v3, %v13968_v52  ;;  %v2279_v52 = vld [vmem:[#allocation2 + $0xb] sm:$0xff] }
 0x19a   : > { %v1139_v50 = vpop.f32.mrb[82].mxu0  ;;  %v1632_v51 = vld [vmem:[#allocation2 + $0x59] sm:$0xff]  ;;  %v1454_v29 = vpop.f32.mrb[82].mxu1 }
 0x19b   : > { %1592 = vst [vmem:[#allocation2 + $0x70] sm:$0xff] %v14185_v4  ;;  %v1543_v32 = vadd.f32 %v14008_v33, %v1513_v5  ;;  %v1199_v20 = vmax.f32 %v16706_v23, %v1139_v50  ;;  %v11432_v21 = vpop.f32.mrb[83].mxu0  ;;  %11588 = vmatmul.mubr.msk.f32.gmra.mrb[122].mxu0 %vm1639_vm2, %v1632_v51  ;;  %v11527_v35 = vpop.f32.mrb[83].mxu1  ;;  %11650 = vmatmul.mubr.msk.f32.gmra.mrb[128].mxu1 %vm1639_vm2, %v14185_v4 }
 0x19c   : > { %11590 = vmatprep.mubr.msk.f32.mxu0 %vm13326_vm0, %v16692_v63  ;;  %11652 = vmatprep.mubr.msk.f32.mxu1 %vm13326_vm0, %v16692_v63 }
 0x19d   : > { %v14199_v57 = vmax.f32 %v1543_v32, 0.0  ;;  %v1514_v58 = vmax.f32 %v1199_v20, %v1454_v29  ;;  %v16710_v32 = vmax.f32 %v13972_v9, %v13974_v14  ;;  %v16711_v14 = vmax.f32 %v13978_v39, %v13980_v47  ;;  %v2042_v47 = vld [vmem:[#allocation2 + $0x2] sm:$0xff] }
 0x19e   : > { %v1144_v60 = vpop.f32.mrb[84].mxu0  ;;  %v1633_v55 = vld [vmem:[#allocation2 + $0x61] sm:$0xff]  ;;  %v1459_v42 = vpop.f32.mrb[84].mxu1 }
 0x19f   : > { %1593 = vst [vmem:[#allocation2 + $0x78] sm:$0xff] %v14199_v57  ;;  %v1544_v44 = vadd.f32 %v14008_v33, %v1514_v58  ;;  %v1200_v13 = vmax.f32 %v16707_v56, %v1144_v60  ;;  %v11435_v18 = vpop.f32.mrb[85].mxu0  ;;  %11591 = vmatmul.mubr.msk.f32.gmra.mrb[124].mxu0 %vm1639_vm2, %v1633_v55  ;;  %v11530_v61 = vpop.f32.mrb[85].mxu1  ;;  %11653 = vmatmul.mubr.msk.f32.gmra.mrb[130].mxu1 %vm1639_vm2, %v14199_v57 }
 0x1a0   : > { %11593 = vmatprep.mubr.msk.f32.mxu0 %vm13326_vm0, %v16692_v63  ;;  %11655 = vmatprep.mubr.msk.f32.mxu1 %vm13326_vm0, %v16692_v63 }
 0x1a1   : > { %v14213_v10 = vmax.f32 %v1544_v44, 0.0  ;;  %v1515_v41 = vmax.f32 %v1200_v13, %v1459_v42  ;;  %v2280_v44 = vld [vmem:[#allocation2 + $0x13] sm:$0xff] }
 0x1a2   : > { %v1149_v11 = vpop.f32.mrb[86].mxu0  ;;  %v1634_v43 = vld [vmem:[#allocation2 + $0x69] sm:$0xff]  ;;  %v1464_v54 = vpop.f32.mrb[86].mxu1 }
 0x1a3   : > { %1594 = vst [vmem:[#allocation2 + $0x80] sm:$0xff] %v14213_v10  ;;  %v14217_v59 = vadd.f32 %v14008_v33, %v1515_v41  ;;  %v1201_v7 = vmax.f32 %v16708_v2, %v1149_v11  ;;  %11594 = vmatmul.mubr.msk.f32.gmra.mrb[126].mxu0 %vm1639_vm2, %v1634_v43  ;;  %v11438_v25 = vpop.f32.mrb[87].mxu0  ;;  %v11533_v26 = vpop.f32.mrb[87].mxu1  ;;  %11656 = vmatmul.mubr.msk.f32.gmra.mrb[132].mxu1 %vm1639_vm2, %v14213_v10  ;;  %v2531_v11 = vld [vmem:[%s16679_s2 + $0x20] sm:$0xff] }
 0x1a4   : > { %11596 = vmatprep.mubr.msk.f32.mxu0 %vm13326_vm0, %v16692_v63  ;;  %11713 = vmatprep.mubr.msk.f32.mxu1 %vm13326_vm0, %v16692_v63 }
 0x1a5   : > { %v1570_v6 = vmax.f32 %v14217_v59, 0.0  ;;  %v1516_v1 = vmax.f32 %v1201_v7, %v1464_v54  ;;  %v2281_v54 = vld [vmem:[#allocation2 + $0x1b] sm:$0xff]  ;;  %v16712_v7 = vmax.f32 %v13984_v0, %v13986_v37  ;;  %v2043_v0 = vld [vmem:[#allocation2 + $0xa] sm:$0xff] }
 0x1a6   : > { %v1154_v45 = vpop.f32.mrb[88].mxu0  ;;  %v1635_v46 = vld [vmem:[#allocation2 + $0x71] sm:$0xff]  ;;  %v1469_v22 = vpop.f32.mrb[88].mxu1 }
 0x1a7   : > { %1595 = vst [vmem:[#allocation2 + $0x88] sm:$0xff] %v1570_v6  ;;  %v14236_v17 = vadd.f32 %v14008_v33, %v1516_v1  ;;  %v1202_v16 = vmax.f32 %v16709_v19, %v1154_v45  ;;  %11597 = vmatmul.mubr.msk.f32.gmra.mrb[128].mxu0 %vm1639_vm2, %v1635_v46  ;;  %v11441_v48 = vpop.f32.mrb[89].mxu0  ;;  %v11536_v30 = vpop.f32.mrb[89].mxu1  ;;  %11714 = vmatmul.mubr.msk.f32.vlgmr.msra.gmra.mrb[134].mxu1 %vm1639_vm2, %v2278_v27  ;;  %v2282_v27 = vld [vmem:[#allocation2 + $0x23] sm:$0xff] }
 0x1a8   : > { %11599 = vmatprep.mubr.msk.f32.mxu0 %vm13326_vm0, %v16692_v63  ;;  %11716 = vmatprep.mubr.msk.f32.mxu1 %vm13326_vm0, %v16692_v63  ;;  %v16713_v19 = vmax.f32 %v13990_v34, %v13992_v12  ;;  %v2283_v34 = vld [vmem:[#allocation2 + $0x2b] sm:$0xff] }
 0x1a9   : > { %v1571_v38 = vmax.f32 %v14236_v17, 0.0  ;;  %v1517_v5 = vmax.f32 %v1202_v16, %v1469_v22  ;;  %11818 = vmatpush3.msra.mxu1 %v2767_v15 }
 0x1aa   : > { %v1159_v50 = vpop.f32.mrb[90].mxu0  ;;  %v1636_v51 = vld [vmem:[#allocation2 + $0x79] sm:$0xff]  ;;  %v1474_v3 = vpop.f32.mrb[90].mxu1  ;;  %11923 = vmatprep.subr.mxu1 %v16692_v63 }
 0x1ab   : > { %1596 = vst [vmem:[#allocation2 + $0x90] sm:$0xff] %v1571_v38  ;;  %v1547_v29 = vadd.f32 %v14008_v33, %v1517_v5  ;;  %v1203_v23 = vmax.f32 %v16710_v32, %v1159_v50  ;;  %11600 = vmatmul.mubr.msk.f32.gmra.mrb[130].mxu0 %vm1639_vm2, %v1636_v51  ;;  %v11444_v20 = vpop.f32.mrb[91].mxu0  ;;  %v11539_v21 = vpop.f32.mrb[91].mxu1  ;;  %11717 = vmatmul.mubr.msk.f32.gmra.mrb[136].mxu1 %vm1639_vm2, %v2279_v52 }
 0x1ac   : > { %11602 = vmatprep.mubr.msk.f32.mxu0 %vm13326_vm0, %v16692_v63  ;;  %11719 = vmatprep.mubr.msk.f32.mxu1 %vm13326_vm0, %v16692_v63 }
 0x1ad   : > { %v1572_v35 = vmax.f32 %v1547_v29, 0.0  ;;  %v1518_v58 = vmax.f32 %v1203_v23, %v1474_v3  ;;  %v14295_v3 = vld [vmem:[#allocation2 + $0x12] sm:$0xff] }
 0x1ae   : > { %v1164_v60 = vpop.f32.mrb[92].mxu0  ;;  %v1637_v55 = vld [vmem:[#allocation2 + $0x81] sm:$0xff]  ;;  %v1479_v42 = vpop.f32.mrb[92].mxu1  ;;  %v16714_v29 = vld [vmem:[#allocation4_spill] sm:$0xff] }
 0x1af   : > { %1597 = vst [vmem:[#allocation2 + $0x98] sm:$0xff] %v1572_v35  ;;  %v1548_v9 = vadd.f32 %v14008_v33, %v1518_v58  ;;  %v1204_v56 = vmax.f32 %v16711_v14, %v1164_v60  ;;  %11603 = vmatmul.mubr.msk.f32.gmra.mrb[132].mxu0 %vm1639_vm2, %v1637_v55  ;;  %v11447_v13 = vpop.f32.mrb[93].mxu0  ;;  %v11542_v18 = vpop.f32.mrb[93].mxu1  ;;  %11720 = vmatmul.mubr.msk.f32.gmra.mrb[138].mxu1 %vm1639_vm2, %v2280_v44  ;;  %v14308_v60 = vld [vmem:[#allocation2 + $0x1a] sm:$0xff]  ;;  %v14318_v44 = vld [vmem:[#allocation2 + $0x22] sm:$0xff] }
 0x1b0   : > { %11660 = vmatprep.mubr.msk.f32.mxu0 %vm13326_vm0, %v16692_v63  ;;  %11722 = vmatprep.mubr.msk.f32.mxu1 %vm13326_vm0, %v16692_v63  ;;  %v16715_v32 = vmax.f32 %v13996_v49, %v16714_v29  ;;  %v2284_v55 = vld [vmem:[#allocation2 + $0x33] sm:$0xff]  ;;  %v2286_v14 = vld [vmem:[#allocation2 + $0x43] sm:$0xff]  ;;  %v2287_v13 = vld [vmem:[#allocation2 + $0x4b] sm:$0xff] }
 0x1b1   : > { %v1573_v61 = vmax.f32 %v1548_v9, 0.0  ;;  %v1519_v41 = vmax.f32 %v1204_v56, %v1479_v42  ;;  %v2285_v9 = vld [vmem:[#allocation2 + $0x3b] sm:$0xff]  ;;  %v14336_v56 = vld [vmem:[#allocation2 + $0x32] sm:$0xff]  ;;  %v14470_v29 = vld [vmem:[#allocation2 + $0x24] sm:$0xff] }
 0x1b2   : > { %v1169_v39 = vpop.f32.mrb[94].mxu0  ;;  %v1484_v43 = vpop.f32.mrb[94].mxu1  ;;  %v14345_v18 = vld [vmem:[#allocation2 + $0x3a] sm:$0xff] }
 0x1b3   : > { %1598 = vst [vmem:[#allocation2 + $0xa0] sm:$0xff] %v1573_v61  ;;  %v1549_v2 = vadd.f32 %v14008_v33, %v1519_v41  ;;  %v1205_v25 = vmax.f32 %v16712_v7, %v1169_v39  ;;  %11661 = vmatmul.mubr.msk.f32.vlgmr.msra.gmra.mrb[134].mxu0 %vm1639_vm2, %v2042_v47  ;;  %v11450_v26 = vpop.f32.mrb[95].mxu0  ;;  %v11545_v1 = vpop.f32.mrb[95].mxu1  ;;  %11723 = vmatmul.mubr.msk.f32.gmra.mrb[140].mxu1 %vm1639_vm2, %v2281_v54  ;;  %v2288_v61 = vld [vmem:[#allocation2 + $0x53] sm:$0xff]  ;;  %v14354_v41 = vld [vmem:[#allocation2 + $0x42] sm:$0xff]  ;;  %v14363_v39 = vld [vmem:[#allocation2 + $0x4a] sm:$0xff] }
 0x1b4   : > { %11765 = vmatpush3.msra.mxu0 %v2531_v11  ;;  %11663 = vmatprep.mubr.msk.f32.mxu0 %vm13326_vm0, %v16692_v63  ;;  %v2289_v11 = vld [vmem:[#allocation2 + $0x5b] sm:$0xff]  ;;  %v2290_v47 = vld [vmem:[#allocation2 + $0x63] sm:$0xff]  ;;  %v2291_v54 = vld [vmem:[#allocation2 + $0x6b] sm:$0xff] }
 0x1b5   : > { %v1574_v45 = vmax.f32 %v1549_v2, 0.0  ;;  %v1520_v46 = vmax.f32 %v1205_v25, %v1484_v43  ;;  %11725 = vmatprep.mubr.msk.f32.mxu1 %vm13326_vm0, %v16692_v63  ;;  %11870 = vmatprep.subr.mxu0 %v16692_v63  ;;  %v14372_v43 = vld [vmem:[#allocation2 + $0x52] sm:$0xff]  ;;  %v14381_v2 = vld [vmem:[#allocation2 + $0x5a] sm:$0xff]  ;;  %v14390_v25 = vld [vmem:[#allocation2 + $0x62] sm:$0xff] }
 0x1b6   : > { %v1174_v22 = vpop.f32.mrb[96].mxu0  ;;  %v1489_v37 = vpop.f32.mrb[96].mxu1  ;;  %v2292_v7 = vld [vmem:[#allocation2 + $0x73] sm:$0xff]  ;;  %v2293_v26 = vld [vmem:[#allocation2 + $0x7b] sm:$0xff]  ;;  %v14399_v1 = vld [vmem:[#allocation2 + $0x6a] sm:$0xff] }
 0x1b7   : > { %1599 = vst [vmem:[#allocation2 + $0xa8] sm:$0xff] %v1574_v45  ;;  %v1550_v15 = vadd.f32 %v14008_v33, %v1520_v46  ;;  %v1206_v16 = vmax.f32 %v16713_v19, %v1174_v22  ;;  %11664 = vmatmul.mubr.msk.f32.gmra.mrb[136].mxu0 %vm1639_vm2, %v2043_v0  ;;  %v11453_v48 = vpop.f32.mrb[97].mxu0  ;;  %v11548_v30 = vpop.f32.mrb[97].mxu1  ;;  %11726 = vmatmul.mubr.msk.f32.gmra.mrb[142].mxu1 %vm1639_vm2, %v2282_v27  ;;  %v2294_v45 = vld [vmem:[#allocation2 + $0x83] sm:$0xff]  ;;  %v14408_v46 = vld [vmem:[#allocation2 + $0x72] sm:$0xff] }
 0x1b8   : > { %11666 = vmatprep.mubr.msk.f32.mxu0 %vm13326_vm0, %v16692_v63  ;;  %11728 = vmatprep.mubr.msk.f32.mxu1 %vm13326_vm0, %v16692_v63  ;;  %v2750_v22 = vld [vmem:[#allocation2 + $0xe] sm:$0xff]  ;;  %v3239_v0 = vld [vmem:[%s16679_s2 + $0x38] sm:$0xff]  ;;  %v2514_v48 = vld [vmem:[#allocation2 + $0x4] sm:$0xff] }
 0x1b9   : > { %v1575_v5 = vmax.f32 %v1550_v15, 0.0  ;;  %v1521_v50 = vmax.f32 %v1206_v16, %v1489_v37  ;;  %v14420_v37 = vld [vmem:[#allocation2 + $0x7a] sm:$0xff]  ;;  %v14430_v15 = vld [vmem:[#allocation2 + $0x82] sm:$0xff]  ;;  %v3003_v16 = vld [vmem:[%s16679_s2 + $0x30] sm:$0xff] }
 0x1ba   : > { %v1179_v51 = vpop.f32.mrb[98].mxu0  ;;  %v1494_v52 = vpop.f32.mrb[98].mxu1  ;;  %v2751_v27 = vld [vmem:[#allocation2 + $0x16] sm:$0xff]  ;;  %v2752_v19 = vld [vmem:[#allocation2 + $0x1e] sm:$0xff]  ;;  %v2753_v30 = vld [vmem:[#allocation2 + $0x26] sm:$0xff] }
 0x1bb   : > { %1600 = vst [vmem:[#allocation2 + $0xb0] sm:$0xff] %v1575_v5  ;;  %v1551_v12 = vadd.f32 %v14008_v33, %v1521_v50  ;;  %v1207_v23 = vmax.f32 %v16715_v32, %v1179_v51  ;;  %11667 = vmatmul.mubr.msk.f32.gmra.mrb[138].mxu0 %vm1639_vm2, %v14295_v3  ;;  %11729 = vmatmul.mubr.msk.f32.gmra.mrb[144].mxu1 %vm1639_vm2, %v2283_v34  ;;  %v11551_v20 = vpop.f32.mrb[99].mxu1  ;;  %v11456_v21 = vpop.f32.mrb[99].mxu0  ;;  %v2515_v5 = vld [vmem:[#allocation2 + $0xc] sm:$0xff]  ;;  %v2516_v51 = vld [vmem:[#allocation2 + $0x14] sm:$0xff]  ;;  %v14461_v34 = vld [vmem:[#allocation2 + $0x1c] sm:$0xff] }
 0x1bc   : > { %11669 = vmatprep.mubr.msk.f32.mxu0 %vm13326_vm0, %v16692_v63  ;;  %11731 = vmatprep.mubr.msk.f32.mxu1 %vm13326_vm0, %v16692_v63  ;;  %v2754_v50 = vld [vmem:[#allocation2 + $0x2e] sm:$0xff]  ;;  %v2757_v32 = vld [vmem:[#allocation2 + $0x46] sm:$0xff] }
 0x1bd   : > { %v1576_v35 = vmax.f32 %v1551_v12, 0.0  ;;  %v1522_v58 = vmax.f32 %v1207_v23, %v1494_v52  ;;  %v2755_v52 = vld [vmem:[#allocation2 + $0x36] sm:$0xff]  ;;  %v2756_v12 = vld [vmem:[#allocation2 + $0x3e] sm:$0xff]  ;;  %v14479_v23 = vld [vmem:[#allocation2 + $0x2c] sm:$0xff] }
 0x1be   : > { %v2758_v20 = vld [vmem:[#allocation2 + $0x4e] sm:$0xff] }
 0x1bf   : > { %1601 = vst [vmem:[#allocation2 + $0xb8] sm:$0xff] %v1576_v35  ;;  %v1552_v49 = vadd.f32 %v14008_v33, %v1522_v58  ;;  %11670 = vmatmul.mubr.msk.f32.gmra.mrb[140].mxu0 %vm1639_vm2, %v14308_v60  ;;  %11732 = vmatmul.mubr.msk.f32.gmra.mrb[146].mxu1 %vm1639_vm2, %v2284_v55  ;;  %v14327_v33 = vld [vmem:[#allocation2 + $0x2a] sm:$0xff]  ;;  %v14488_v21 = vld [vmem:[#allocation2 + $0x34] sm:$0xff]  ;;  %v14497_v58 = vld [vmem:[#allocation2 + $0x3c] sm:$0xff] }
 0x1c0   : > { %11672 = vmatprep.mubr.msk.f32.mxu0 %vm13326_vm0, %v16692_v63  ;;  %11734 = vmatprep.mubr.msk.f32.mxu1 %vm13326_vm0, %v16692_v63  ;;  %v2759_v35 = vld [vmem:[#allocation2 + $0x56] sm:$0xff]  ;;  %v2760_v55 = vld [vmem:[#allocation2 + $0x5e] sm:$0xff] }
 0x1c1   : > { %v1577_v42 = vmax.f32 %v1552_v49, 0.0  ;;  %v14506_v49 = vld [vmem:[#allocation2 + $0x44] sm:$0xff] }
 0x1c3   : > { %1602 = vst [vmem:[#allocation2 + $0xc0] sm:$0xff] %v1577_v42  ;;  %11673 = vmatmul.mubr.msk.f32.gmra.mrb[142].mxu0 %vm1639_vm2, %v14318_v44  ;;  %11735 = vmatmul.mubr.msk.f32.gmra.mrb[148].mxu1 %vm1639_vm2, %v2285_v9  ;;  %v2761_v42 = vld [vmem:[#allocation2 + $0x66] sm:$0xff] }
 0x1c4   : > { %11675 = vmatprep.mubr.msk.f32.mxu0 %vm13326_vm0, %v16692_v63  ;;  %11737 = vmatprep.mubr.msk.f32.mxu1 %vm13326_vm0, %v16692_v63  ;;  %v14515_v9 = vld [vmem:[#allocation2 + $0x4c] sm:$0xff] }
 0x1c7   : > { %11676 = vmatmul.mubr.msk.f32.gmra.mrb[144].mxu0 %vm1639_vm2, %v14327_v33  ;;  %11738 = vmatmul.mubr.msk.f32.gmra.mrb[150].mxu1 %vm1639_vm2, %v2286_v14  ;;  %v2762_v14 = vld [vmem:[#allocation2 + $0x6e] sm:$0xff] }
 0x1c8   : > { %11678 = vmatprep.mubr.msk.f32.mxu0 %vm13326_vm0, %v16692_v63  ;;  %11740 = vmatprep.mubr.msk.f32.mxu1 %vm13326_vm0, %v16692_v63 }
 0x1cb   : > { %11679 = vmatmul.mubr.msk.f32.gmra.mrb[146].mxu0 %vm1639_vm2, %v14336_v56  ;;  %11741 = vmatmul.mubr.msk.f32.gmra.mrb[152].mxu1 %vm1639_vm2, %v2287_v13  ;;  %v2524_v13 = vld [vmem:[#allocation2 + $0x54] sm:$0xff] }
 0x1cc   : > { %11681 = vmatprep.mubr.msk.f32.mxu0 %vm13326_vm0, %v16692_v63  ;;  %11743 = vmatprep.mubr.msk.f32.mxu1 %vm13326_vm0, %v16692_v63 }
 0x1cf   : > { %11682 = vmatmul.mubr.msk.f32.gmra.mrb[148].mxu0 %vm1639_vm2, %v14345_v18  ;;  %11744 = vmatmul.mubr.msk.f32.gmra.mrb[154].mxu1 %vm1639_vm2, %v2288_v61  ;;  %v2763_v61 = vld [vmem:[#allocation2 + $0x76] sm:$0xff] }
 0x1d0   : > { %11684 = vmatprep.mubr.msk.f32.mxu0 %vm13326_vm0, %v16692_v63  ;;  %11746 = vmatprep.mubr.msk.f32.mxu1 %vm13326_vm0, %v16692_v63 }
 0x1d3   : > { %11685 = vmatmul.mubr.msk.f32.gmra.mrb[150].mxu0 %vm1639_vm2, %v14354_v41  ;;  %11747 = vmatmul.mubr.msk.f32.gmra.mrb[156].mxu1 %vm1639_vm2, %v2289_v11  ;;  %v2525_v11 = vld [vmem:[#allocation2 + $0x5c] sm:$0xff] }
 0x1d4   : > { %11687 = vmatprep.mubr.msk.f32.mxu0 %vm13326_vm0, %v16692_v63  ;;  %11749 = vmatprep.mubr.msk.f32.mxu1 %vm13326_vm0, %v16692_v63 }
 0x1d7   : > { %11688 = vmatmul.mubr.msk.f32.gmra.mrb[152].mxu0 %vm1639_vm2, %v14363_v39  ;;  %11750 = vmatmul.mubr.msk.f32.gmra.mrb[158].mxu1 %vm1639_vm2, %v2290_v47  ;;  %v2764_v47 = vld [vmem:[#allocation2 + $0x7e] sm:$0xff] }
 0x1d8   : > { %11690 = vmatprep.mubr.msk.f32.mxu0 %vm13326_vm0, %v16692_v63  ;;  %11752 = vmatprep.mubr.msk.f32.mxu1 %vm13326_vm0, %v16692_v63 }
 0x1db   : > { %11691 = vmatmul.mubr.msk.f32.gmra.mrb[154].mxu0 %vm1639_vm2, %v14372_v43  ;;  %11753 = vmatmul.mubr.msk.f32.gmra.mrb[160].mxu1 %vm1639_vm2, %v2291_v54  ;;  %v2526_v54 = vld [vmem:[#allocation2 + $0x64] sm:$0xff] }
 0x1dc   : > { %11693 = vmatprep.mubr.msk.f32.mxu0 %vm13326_vm0, %v16692_v63  ;;  %11755 = vmatprep.mubr.msk.f32.mxu1 %vm13326_vm0, %v16692_v63 }
 0x1df   : > { %11694 = vmatmul.mubr.msk.f32.gmra.mrb[156].mxu0 %vm1639_vm2, %v14381_v2  ;;  %11756 = vmatmul.mubr.msk.f32.gmra.mrb[162].mxu1 %vm1639_vm2, %v2292_v7  ;;  %v2765_v7 = vld [vmem:[#allocation2 + $0x86] sm:$0xff] }
 0x1e0   : > { %11696 = vmatprep.mubr.msk.f32.mxu0 %vm13326_vm0, %v16692_v63  ;;  %11758 = vmatprep.mubr.msk.f32.mxu1 %vm13326_vm0, %v16692_v63 }
 0x1e3   : > { %11697 = vmatmul.mubr.msk.f32.gmra.mrb[158].mxu0 %vm1639_vm2, %v14390_v25  ;;  %11759 = vmatmul.mubr.msk.f32.gmra.mrb[164].mxu1 %vm1639_vm2, %v2293_v26  ;;  %v2527_v26 = vld [vmem:[#allocation2 + $0x6c] sm:$0xff] }
 0x1e4   : > { %11699 = vmatprep.mubr.msk.f32.mxu0 %vm13326_vm0, %v16692_v63  ;;  %11761 = vmatprep.mubr.msk.f32.mxu1 %vm13326_vm0, %v16692_v63 }
 0x1e7   : > { %11700 = vmatmul.mubr.msk.f32.gmra.mrb[160].mxu0 %vm1639_vm2, %v14399_v1  ;;  %11762 = vmatmul.mubr.msk.f32.gmra.mrb[166].mxu1 %vm1639_vm2, %v2294_v45  ;;  %v2766_v45 = vld [vmem:[#allocation2 + $0x8e] sm:$0xff] }
 0x1e8   : > { %11702 = vmatprep.mubr.msk.f32.mxu0 %vm13326_vm0, %v16692_v63  ;;  %11819 = vmatprep.mubr.msk.f32.mxu1 %vm13326_vm0, %v16692_v63 }
 0x1eb   : > { %11703 = vmatmul.mubr.msk.f32.gmra.mrb[162].mxu0 %vm1639_vm2, %v14408_v46  ;;  %11820 = vmatmul.mubr.msk.f32.vlgmr.msra.gmra.mrb[168].mxu1 %vm1639_vm2, %v2750_v22  ;;  %v2528_v22 = vld [vmem:[#allocation2 + $0x74] sm:$0xff] }
 0x1ec   : > { %11705 = vmatprep.mubr.msk.f32.mxu0 %vm13326_vm0, %v16692_v63  ;;  %11822 = vmatprep.mubr.msk.f32.mxu1 %vm13326_vm0, %v16692_v63 }
 0x1ed   : > { %11924 = vmatpush3.msra.mxu1 %v3239_v0  ;;  %v3222_v0 = vld [vmem:[#allocation2 + $0x10] sm:$0xff] }
 0x1ee   : > { %12029 = vmatprep.subr.mxu1 %v16692_v63 }
 0x1ef   : > { %11706 = vmatmul.mubr.msk.f32.gmra.mrb[164].mxu0 %vm1639_vm2, %v14420_v37  ;;  %11823 = vmatmul.mubr.msk.f32.gmra.mrb[170].mxu1 %vm1639_vm2, %v2751_v27  ;;  %v3711_v27 = vld [vmem:[%s16679_s2 + $0x48] sm:$0xff] }
 0x1f0   : > { %11708 = vmatprep.mubr.msk.f32.mxu0 %vm13326_vm0, %v16692_v63  ;;  %11825 = vmatprep.mubr.msk.f32.mxu1 %vm13326_vm0, %v16692_v63 }
 0x1f3   : > { %11709 = vmatmul.mubr.msk.f32.gmra.mrb[166].mxu0 %vm1639_vm2, %v14430_v15  ;;  %11826 = vmatmul.mubr.msk.f32.gmra.mrb[172].mxu1 %vm1639_vm2, %v2752_v19  ;;  %v2529_v19 = vld [vmem:[#allocation2 + $0x7c] sm:$0xff] }
 0x1f4   : > { %11766 = vmatprep.mubr.msk.f32.mxu0 %vm13326_vm0, %v16692_v63  ;;  %11828 = vmatprep.mubr.msk.f32.mxu1 %vm13326_vm0, %v16692_v63 }
 0x1f7   : > { %11767 = vmatmul.mubr.msk.f32.vlgmr.msra.gmra.mrb[168].mxu0 %vm1639_vm2, %v2514_v48  ;;  %11829 = vmatmul.mubr.msk.f32.gmra.mrb[174].mxu1 %vm1639_vm2, %v2753_v30  ;;  %v2530_v48 = vld [vmem:[#allocation2 + $0x84] sm:$0xff] }
 0x1f8   : > { %11871 = vmatpush3.msra.mxu0 %v3003_v16  ;;  %11769 = vmatprep.mubr.msk.f32.mxu0 %vm13326_vm0, %v16692_v63  ;;  %v3223_v16 = vld [vmem:[#allocation2 + $0x18] sm:$0xff] }
 0x1f9   : > { %11831 = vmatprep.mubr.msk.f32.mxu1 %vm13326_vm0, %v16692_v63  ;;  %11976 = vmatprep.subr.mxu0 %v16692_v63 }
 0x1fb   : > { %11770 = vmatmul.mubr.msk.f32.gmra.mrb[170].mxu0 %vm1639_vm2, %v2515_v5  ;;  %11832 = vmatmul.mubr.msk.f32.gmra.mrb[176].mxu1 %vm1639_vm2, %v2754_v50  ;;  %v3224_v5 = vld [vmem:[#allocation2 + $0x20] sm:$0xff] }
 0x1fc   : > { %11772 = vmatprep.mubr.msk.f32.mxu0 %vm13326_vm0, %v16692_v63  ;;  %11834 = vmatprep.mubr.msk.f32.mxu1 %vm13326_vm0, %v16692_v63 }
 0x1ff   : > { %11773 = vmatmul.mubr.msk.f32.gmra.mrb[172].mxu0 %vm1639_vm2, %v2516_v51  ;;  %11835 = vmatmul.mubr.msk.f32.gmra.mrb[178].mxu1 %vm1639_vm2, %v2755_v52  ;;  %v3475_v51 = vld [vmem:[%s16679_s2 + $0x40] sm:$0xff]  ;;  %v2986_v52 = vld [vmem:[#allocation2 + $0xf] sm:$0xff] }
 0x200   : > { %11775 = vmatprep.mubr.msk.f32.mxu0 %vm13326_vm0, %v16692_v63  ;;  %11837 = vmatprep.mubr.msk.f32.mxu1 %vm13326_vm0, %v16692_v63 }
 0x203   : > { %11776 = vmatmul.mubr.msk.f32.gmra.mrb[174].mxu0 %vm1639_vm2, %v14461_v34  ;;  %11838 = vmatmul.mubr.msk.f32.gmra.mrb[180].mxu1 %vm1639_vm2, %v2756_v12 }
 0x204   : > { %11778 = vmatprep.mubr.msk.f32.mxu0 %vm13326_vm0, %v16692_v63  ;;  %11840 = vmatprep.mubr.msk.f32.mxu1 %vm13326_vm0, %v16692_v63 }
 0x207   : > { %11779 = vmatmul.mubr.msk.f32.gmra.mrb[176].mxu0 %vm1639_vm2, %v14470_v29  ;;  %11841 = vmatmul.mubr.msk.f32.gmra.mrb[182].mxu1 %vm1639_vm2, %v2757_v32  ;;  %v3225_v32 = vld [vmem:[#allocation2 + $0x28] sm:$0xff] }
 0x208   : > { %11781 = vmatprep.mubr.msk.f32.mxu0 %vm13326_vm0, %v16692_v63  ;;  %11843 = vmatprep.mubr.msk.f32.mxu1 %vm13326_vm0, %v16692_v63 }
 0x20b   : > { %11782 = vmatmul.mubr.msk.f32.gmra.mrb[178].mxu0 %vm1639_vm2, %v14479_v23  ;;  %11844 = vmatmul.mubr.msk.f32.gmra.mrb[184].mxu1 %vm1639_vm2, %v2758_v20 }
 0x20c   : > { %11784 = vmatprep.mubr.msk.f32.mxu0 %vm13326_vm0, %v16692_v63  ;;  %11846 = vmatprep.mubr.msk.f32.mxu1 %vm13326_vm0, %v16692_v63 }
 0x20f   : > { %11785 = vmatmul.mubr.msk.f32.gmra.mrb[180].mxu0 %vm1639_vm2, %v14488_v21  ;;  %11847 = vmatmul.mubr.msk.f32.gmra.mrb[186].mxu1 %vm1639_vm2, %v2759_v35  ;;  %v2987_v35 = vld [vmem:[#allocation2 + $0x17] sm:$0xff] }
 0x210   : > { %11787 = vmatprep.mubr.msk.f32.mxu0 %vm13326_vm0, %v16692_v63  ;;  %11849 = vmatprep.mubr.msk.f32.mxu1 %vm13326_vm0, %v16692_v63 }
 0x213   : > { %11788 = vmatmul.mubr.msk.f32.gmra.mrb[182].mxu0 %vm1639_vm2, %v14497_v58  ;;  %11850 = vmatmul.mubr.msk.f32.gmra.mrb[188].mxu1 %vm1639_vm2, %v2760_v55 }
 0x214   : > { %11790 = vmatprep.mubr.msk.f32.mxu0 %vm13326_vm0, %v16692_v63  ;;  %11852 = vmatprep.mubr.msk.f32.mxu1 %vm13326_vm0, %v16692_v63 }
 0x217   : > { %11791 = vmatmul.mubr.msk.f32.gmra.mrb[184].mxu0 %vm1639_vm2, %v14506_v49  ;;  %11853 = vmatmul.mubr.msk.f32.gmra.mrb[190].mxu1 %vm1639_vm2, %v2761_v42 }
 0x218   : > { %11793 = vmatprep.mubr.msk.f32.mxu0 %vm13326_vm0, %v16692_v63  ;;  %11855 = vmatprep.mubr.msk.f32.mxu1 %vm13326_vm0, %v16692_v63 }
 0x21b   : > { %11794 = vmatmul.mubr.msk.f32.gmra.mrb[186].mxu0 %vm1639_vm2, %v14515_v9  ;;  %11856 = vmatmul.mubr.msk.f32.gmra.mrb[192].mxu1 %vm1639_vm2, %v2762_v14 }
 0x21c   : > { %11796 = vmatprep.mubr.msk.f32.mxu0 %vm13326_vm0, %v16692_v63  ;;  %11858 = vmatprep.mubr.msk.f32.mxu1 %vm13326_vm0, %v16692_v63 }
 0x21f   : > { %11797 = vmatmul.mubr.msk.f32.gmra.mrb[188].mxu0 %vm1639_vm2, %v2524_v13  ;;  %11859 = vmatmul.mubr.msk.f32.gmra.mrb[194].mxu1 %vm1639_vm2, %v2763_v61  ;;  %v2988_v13 = vld [vmem:[#allocation2 + $0x1f] sm:$0xff] }
 0x220   : > { %11799 = vmatprep.mubr.msk.f32.mxu0 %vm13326_vm0, %v16692_v63  ;;  %11861 = vmatprep.mubr.msk.f32.mxu1 %vm13326_vm0, %v16692_v63 }
 0x223   : > { %11800 = vmatmul.mubr.msk.f32.gmra.mrb[190].mxu0 %vm1639_vm2, %v2525_v11  ;;  %11862 = vmatmul.mubr.msk.f32.gmra.mrb[196].mxu1 %vm1639_vm2, %v2764_v47 }
 0x224   : > { %11802 = vmatprep.mubr.msk.f32.mxu0 %vm13326_vm0, %v16692_v63  ;;  %11864 = vmatprep.mubr.msk.f32.mxu1 %vm13326_vm0, %v16692_v63 }
 0x227   : > { %11803 = vmatmul.mubr.msk.f32.gmra.mrb[192].mxu0 %vm1639_vm2, %v2526_v54  ;;  %11865 = vmatmul.mubr.msk.f32.gmra.mrb[198].mxu1 %vm1639_vm2, %v2765_v7  ;;  %v2989_v7 = vld [vmem:[#allocation2 + $0x27] sm:$0xff] }
 0x228   : > { %11805 = vmatprep.mubr.msk.f32.mxu0 %vm13326_vm0, %v16692_v63  ;;  %11867 = vmatprep.mubr.msk.f32.mxu1 %vm13326_vm0, %v16692_v63 }
 0x22b   : > { %11806 = vmatmul.mubr.msk.f32.gmra.mrb[194].mxu0 %vm1639_vm2, %v2527_v26  ;;  %11868 = vmatmul.mubr.msk.f32.gmra.mrb[200].mxu1 %vm1639_vm2, %v2766_v45 }
 0x22c   : > { %11808 = vmatprep.mubr.msk.f32.mxu0 %vm13326_vm0, %v16692_v63  ;;  %11925 = vmatprep.mubr.msk.f32.mxu1 %vm13326_vm0, %v16692_v63 }
 0x22f   : > { %11809 = vmatmul.mubr.msk.f32.gmra.mrb[196].mxu0 %vm1639_vm2, %v2528_v22  ;;  %11926 = vmatmul.mubr.msk.f32.vlgmr.msra.gmra.mrb[202].mxu1 %vm1639_vm2, %v3222_v0 }
 0x230   : > { %11811 = vmatprep.mubr.msk.f32.mxu0 %vm13326_vm0, %v16692_v63  ;;  %11928 = vmatprep.mubr.msk.f32.mxu1 %vm13326_vm0, %v16692_v63 }
 0x231   : > { %12030 = vmatpush3.msra.mxu1 %v3711_v27  ;;  %v2990_v27 = vld [vmem:[#allocation2 + $0x2f] sm:$0xff] }
 0x232   : > { %12135 = vmatprep.subr.mxu1 %v16692_v63 }
 0x233   : > { %11812 = vmatmul.mubr.msk.f32.gmra.mrb[198].mxu0 %vm1639_vm2, %v2529_v19  ;;  %11929 = vmatmul.mubr.msk.f32.gmra.mrb[204].mxu1 %vm1639_vm2, %v3223_v16 }
 0x234   : > { %11814 = vmatprep.mubr.msk.f32.mxu0 %vm13326_vm0, %v16692_v63  ;;  %11931 = vmatprep.mubr.msk.f32.mxu1 %vm13326_vm0, %v16692_v63 }
 0x236   : > { %v1958_v30 = vpop.f32.mrb[100].mxu1 }
 0x237   : > { %11815 = vmatmul.mubr.msk.f32.gmra.mrb[200].mxu0 %vm1639_vm2, %v2530_v48  ;;  %v11609_v50 = vpop.f32.mrb[101].mxu1  ;;  %11932 = vmatmul.mubr.msk.f32.gmra.mrb[206].mxu1 %vm1639_vm2, %v3224_v5  ;;  %v2991_v5 = vld [vmem:[#allocation2 + $0x37] sm:$0xff] }
 0x238   : > { %11872 = vmatprep.mubr.msk.f32.mxu0 %vm13326_vm0, %v16692_v63  ;;  %11934 = vmatprep.mubr.msk.f32.mxu1 %vm13326_vm0, %v16692_v63 }
 0x23a   : > { %v1963_v12 = vpop.f32.mrb[102].mxu1 }
 0x23b   : > { %11873 = vmatmul.mubr.msk.f32.vlgmr.msra.gmra.mrb[202].mxu0 %vm1639_vm2, %v2986_v52  ;;  %v11612_v20 = vpop.f32.mrb[103].mxu1  ;;  %11935 = vmatmul.mubr.msk.f32.gmra.mrb[208].mxu1 %vm1639_vm2, %v3225_v32  ;;  %v2992_v32 = vld [vmem:[#allocation2 + $0x3f] sm:$0xff] }
 0x23c   : > { %11977 = vmatpush3.msra.mxu0 %v3475_v51  ;;  %11875 = vmatprep.mubr.msk.f32.mxu0 %vm13326_vm0, %v16692_v63 }
 0x23d   : > { %11937 = vmatprep.mubr.msk.f32.mxu1 %vm13326_vm0, %v16692_v63  ;;  %12082 = vmatprep.subr.mxu0 %v16692_v63 }
 0x23e   : > { %v1968_v55 = vpop.f32.mrb[104].mxu1 }
 0x23f   : > { %11876 = vmatmul.mubr.msk.f32.gmra.mrb[204].mxu0 %vm1639_vm2, %v2987_v35  ;;  %v11615_v42 = vpop.f32.mrb[105].mxu1  ;;  %11938 = vmatmul.mubr.msk.f32.gmra.mrb[210].mxu1 %vm1639_vm2, %v14073_v8 }
 0x240   : > { %11878 = vmatprep.mubr.msk.f32.mxu0 %vm13326_vm0, %v16692_v63  ;;  %11940 = vmatprep.mubr.msk.f32.mxu1 %vm13326_vm0, %v16692_v63 }
 0x242   : > { %v1757_v14 = vpop.f32.mrb[100].mxu0  ;;  %v1973_v61 = vpop.f32.mrb[106].mxu1 }
 0x243   : > { %v14587_v11 = vadd.f32 %v1958_v30, %v1757_v14  ;;  %v11556_v47 = vpop.f32.mrb[101].mxu0  ;;  %11879 = vmatmul.mubr.msk.f32.gmra.mrb[206].mxu0 %vm1639_vm2, %v2988_v13  ;;  %v11618_v54 = vpop.f32.mrb[107].mxu1  ;;  %11941 = vmatmul.mubr.msk.f32.gmra.mrb[212].mxu1 %vm1639_vm2, %v14087_v28  ;;  %v2993_v14 = vld [vmem:[#allocation2 + $0x47] sm:$0xff] }
 0x244   : > { %11881 = vmatprep.mubr.msk.f32.mxu0 %vm13326_vm0, %v16692_v63  ;;  %11943 = vmatprep.mubr.msk.f32.mxu1 %vm13326_vm0, %v16692_v63 }
 0x246   : > { %v1762_v8 = vpop.f32.mrb[102].mxu0  ;;  %v1978_v26 = vpop.f32.mrb[108].mxu1 }
 0x247   : > { %v14596_v45 = vadd.f32 %v1963_v12, %v1762_v8  ;;  %v11559_v22 = vpop.f32.mrb[103].mxu0  ;;  %11882 = vmatmul.mubr.msk.f32.gmra.mrb[208].mxu0 %vm1639_vm2, %v2989_v7  ;;  %v11621_v0 = vpop.f32.mrb[109].mxu1  ;;  %11944 = vmatmul.mubr.msk.f32.gmra.mrb[214].mxu1 %vm1639_vm2, %v14101_v24  ;;  %v2994_v8 = vld [vmem:[#allocation2 + $0x4f] sm:$0xff] }
 0x248   : > { %11884 = vmatprep.mubr.msk.f32.mxu0 %vm13326_vm0, %v16692_v63  ;;  %11946 = vmatprep.mubr.msk.f32.mxu1 %vm13326_vm0, %v16692_v63 }
 0x24a   : > { %v1767_v28 = vpop.f32.mrb[104].mxu0  ;;  %v1983_v19 = vpop.f32.mrb[110].mxu1 }
 0x24b   : > { %v14605_v16 = vadd.f32 %v1968_v55, %v1767_v28  ;;  %v11562_v48 = vpop.f32.mrb[105].mxu0  ;;  %11885 = vmatmul.mubr.msk.f32.gmra.mrb[210].mxu0 %vm1639_vm2, %v2990_v27  ;;  %v11624_v30 = vpop.f32.mrb[111].mxu1  ;;  %11947 = vmatmul.mubr.msk.f32.gmra.mrb[216].mxu1 %vm1639_vm2, %v14115_v62  ;;  %v2995_v28 = vld [vmem:[#allocation2 + $0x57] sm:$0xff] }
 0x24c   : > { %11887 = vmatprep.mubr.msk.f32.mxu0 %vm13326_vm0, %v16692_v63  ;;  %11949 = vmatprep.mubr.msk.f32.mxu1 %vm13326_vm0, %v16692_v63 }
 0x24e   : > { %v1772_v24 = vpop.f32.mrb[106].mxu0  ;;  %v1988_v50 = vpop.f32.mrb[112].mxu1 }
 0x24f   : > { %v14614_v51 = vadd.f32 %v1973_v61, %v1772_v24  ;;  %v11565_v52 = vpop.f32.mrb[107].mxu0  ;;  %11888 = vmatmul.mubr.msk.f32.gmra.mrb[212].mxu0 %vm1639_vm2, %v2991_v5  ;;  %v11627_v12 = vpop.f32.mrb[113].mxu1  ;;  %11950 = vmatmul.mubr.msk.f32.gmra.mrb[218].mxu1 %vm1639_vm2, %v14129_v31  ;;  %v2996_v24 = vld [vmem:[#allocation2 + $0x5f] sm:$0xff] }
 0x250   : > { %11890 = vmatprep.mubr.msk.f32.mxu0 %vm13326_vm0, %v16692_v63  ;;  %11952 = vmatprep.mubr.msk.f32.mxu1 %vm13326_vm0, %v16692_v63 }
 0x252   : > { %v1777_v62 = vpop.f32.mrb[108].mxu0  ;;  %v1993_v20 = vpop.f32.mrb[114].mxu1 }
 0x253   : > { %v14623_v35 = vadd.f32 %v1978_v26, %v1777_v62  ;;  %v11568_v55 = vpop.f32.mrb[109].mxu0  ;;  %11891 = vmatmul.mubr.msk.f32.gmra.mrb[214].mxu0 %vm1639_vm2, %v2992_v32  ;;  %v11630_v42 = vpop.f32.mrb[115].mxu1  ;;  %11953 = vmatmul.mubr.msk.f32.gmra.mrb[220].mxu1 %vm1639_vm2, %v14143_v36  ;;  %v2997_v62 = vld [vmem:[#allocation2 + $0x67] sm:$0xff] }
 0x254   : > { %11893 = vmatprep.mubr.msk.f32.mxu0 %vm13326_vm0, %v16692_v63  ;;  %11955 = vmatprep.mubr.msk.f32.mxu1 %vm13326_vm0, %v16692_v63 }
 0x256   : > { %v1782_v31 = vpop.f32.mrb[110].mxu0  ;;  %v1998_v13 = vpop.f32.mrb[116].mxu1 }
 0x257   : > { %v14632_v61 = vadd.f32 %v1983_v19, %v1782_v31  ;;  %v11571_v47 = vpop.f32.mrb[111].mxu0  ;;  %11894 = vmatmul.mubr.msk.f32.gmra.mrb[216].mxu0 %vm1639_vm2, %v2993_v14  ;;  %v11633_v54 = vpop.f32.mrb[117].mxu1  ;;  %11956 = vmatmul.mubr.msk.f32.gmra.mrb[222].mxu1 %vm1639_vm2, %v14157_v40  ;;  %v2998_v31 = vld [vmem:[#allocation2 + $0x6f] sm:$0xff] }
 0x258   : > { %11896 = vmatprep.mubr.msk.f32.mxu0 %vm13326_vm0, %v16692_v63  ;;  %11958 = vmatprep.mubr.msk.f32.mxu1 %vm13326_vm0, %v16692_v63 }
 0x25a   : > { %v1787_v36 = vpop.f32.mrb[112].mxu0  ;;  %v2003_v7 = vpop.f32.mrb[118].mxu1 }
 0x25b   : > { %v14641_v26 = vadd.f32 %v1988_v50, %v1787_v36  ;;  %v11574_v22 = vpop.f32.mrb[113].mxu0  ;;  %11897 = vmatmul.mubr.msk.f32.gmra.mrb[218].mxu0 %vm1639_vm2, %v2994_v8  ;;  %v11636_v0 = vpop.f32.mrb[119].mxu1  ;;  %11959 = vmatmul.mubr.msk.f32.gmra.mrb[224].mxu1 %vm1639_vm2, %v14171_v53  ;;  %v2999_v36 = vld [vmem:[#allocation2 + $0x77] sm:$0xff] }
 0x25c   : > { %11899 = vmatprep.mubr.msk.f32.mxu0 %vm13326_vm0, %v16692_v63  ;;  %11961 = vmatprep.mubr.msk.f32.mxu1 %vm13326_vm0, %v16692_v63 }
 0x25e   : > { %v1792_v40 = vpop.f32.mrb[114].mxu0  ;;  %v2008_v27 = vpop.f32.mrb[120].mxu1 }
 0x25f   : > { %v14650_v19 = vadd.f32 %v1993_v20, %v1792_v40  ;;  %v11577_v48 = vpop.f32.mrb[115].mxu0  ;;  %11900 = vmatmul.mubr.msk.f32.gmra.mrb[220].mxu0 %vm1639_vm2, %v2995_v28  ;;  %v11639_v30 = vpop.f32.mrb[121].mxu1  ;;  %11962 = vmatmul.mubr.msk.f32.gmra.mrb[226].mxu1 %vm1639_vm2, %v14185_v4  ;;  %v4183_v28 = vld [vmem:[%s16679_s2 + $0x58] sm:$0xff] }
 0x260   : > { %11902 = vmatprep.mubr.msk.f32.mxu0 %vm13326_vm0, %v16692_v63  ;;  %11964 = vmatprep.mubr.msk.f32.mxu1 %vm13326_vm0, %v16692_v63  ;;  %v3001_v30 = vld [vmem:[#allocation2 + $0x87] sm:$0xff] }
 0x262   : > { %v1797_v53 = vpop.f32.mrb[116].mxu0  ;;  %v2013_v5 = vpop.f32.mrb[122].mxu1 }
 0x263   : > { %v14659_v50 = vadd.f32 %v1998_v13, %v1797_v53  ;;  %v11580_v52 = vpop.f32.mrb[117].mxu0  ;;  %11903 = vmatmul.mubr.msk.f32.gmra.mrb[222].mxu0 %vm1639_vm2, %v2996_v24  ;;  %v11642_v12 = vpop.f32.mrb[123].mxu1  ;;  %11965 = vmatmul.mubr.msk.f32.gmra.mrb[228].mxu1 %vm1639_vm2, %v14199_v57 }
 0x264   : > { %11905 = vmatprep.mubr.msk.f32.mxu0 %vm13326_vm0, %v16692_v63  ;;  %11967 = vmatprep.mubr.msk.f32.mxu1 %vm13326_vm0, %v16692_v63  ;;  %v3002_v12 = vld [vmem:[#allocation2 + $0x8f] sm:$0xff] }
 0x266   : > { %v1802_v4 = vpop.f32.mrb[118].mxu0  ;;  %v2018_v32 = vpop.f32.mrb[124].mxu1 }
 0x267   : > { %v14668_v20 = vadd.f32 %v2003_v7, %v1802_v4  ;;  %v11583_v55 = vpop.f32.mrb[119].mxu0  ;;  %11906 = vmatmul.mubr.msk.f32.gmra.mrb[224].mxu0 %vm1639_vm2, %v2997_v62  ;;  %v11645_v42 = vpop.f32.mrb[125].mxu1  ;;  %11968 = vmatmul.mubr.msk.f32.gmra.mrb[230].mxu1 %vm1639_vm2, %v14213_v10 }
 0x268   : > { %11908 = vmatprep.mubr.msk.f32.mxu0 %vm13326_vm0, %v16692_v63  ;;  %11970 = vmatprep.mubr.msk.f32.mxu1 %vm13326_vm0, %v16692_v63 }
 0x26a   : > { %v1807_v57 = vpop.f32.mrb[120].mxu0  ;;  %v2023_v14 = vpop.f32.mrb[126].mxu1 }
 0x26b   : > { %v14677_v13 = vadd.f32 %v2008_v27, %v1807_v57  ;;  %v11586_v47 = vpop.f32.mrb[121].mxu0  ;;  %11909 = vmatmul.mubr.msk.f32.gmra.mrb[226].mxu0 %vm1639_vm2, %v2998_v31  ;;  %v11648_v54 = vpop.f32.mrb[127].mxu1  ;;  %11971 = vmatmul.mubr.msk.f32.gmra.mrb[232].mxu1 %vm1639_vm2, %v1570_v6  ;;  %v3000_v6 = vld [vmem:[#allocation2 + $0x7f] sm:$0xff]  ;;  %v3458_v57 = vld [vmem:[#allocation2 + $0x11] sm:$0xff] }
 0x26c   : > { %11911 = vmatprep.mubr.msk.f32.mxu0 %vm13326_vm0, %v16692_v63  ;;  %11973 = vmatprep.mubr.msk.f32.mxu1 %vm13326_vm0, %v16692_v63 }
 0x26e   : > { %v1812_v10 = vpop.f32.mrb[122].mxu0  ;;  %v2028_v8 = vpop.f32.mrb[128].mxu1 }
 0x26f   : > { %v14687_v7 = vadd.f32 %v2013_v5, %v1812_v10  ;;  %v11589_v22 = vpop.f32.mrb[123].mxu0  ;;  %11912 = vmatmul.mubr.msk.f32.gmra.mrb[228].mxu0 %vm1639_vm2, %v2999_v36  ;;  %v11651_v0 = vpop.f32.mrb[129].mxu1  ;;  %11974 = vmatmul.mubr.msk.f32.gmra.mrb[234].mxu1 %vm1639_vm2, %v1571_v38  ;;  %v3459_v10 = vld [vmem:[#allocation2 + $0x19] sm:$0xff] }
 0x270   : > { %11914 = vmatprep.mubr.msk.f32.mxu0 %vm13326_vm0, %v16692_v63  ;;  %12031 = vmatprep.mubr.msk.f32.mxu1 %vm13326_vm0, %v16692_v63 }
 0x272   : > { %v1817_v59 = vpop.f32.mrb[124].mxu0  ;;  %v2033_v40 = vpop.f32.mrb[130].mxu1 }
 0x273   : > { %v14700_v27 = vadd.f32 %v2018_v32, %v1817_v59  ;;  %v11592_v48 = vpop.f32.mrb[125].mxu0  ;;  %11915 = vmatmul.mubr.msk.f32.gmra.mrb[230].mxu0 %vm1639_vm2, %v3000_v6  ;;  %v11654_v17 = vpop.f32.mrb[131].mxu1  ;;  %12032 = vmatmul.mubr.msk.f32.vlgmr.msra.gmra.mrb[236].mxu1 %vm1639_vm2, %v14295_v3  ;;  %v3460_v59 = vld [vmem:[#allocation2 + $0x21] sm:$0xff] }
 0x274   : > { %11917 = vmatprep.mubr.msk.f32.mxu0 %vm13326_vm0, %v16692_v63  ;;  %12034 = vmatprep.mubr.msk.f32.mxu1 %vm13326_vm0, %v16692_v63 }
 0x275   : > { %12136 = vmatpush3.msra.mxu1 %v4183_v28 }
 0x276   : > { %v1822_v38 = vpop.f32.mrb[126].mxu0  ;;  %v2038_v53 = vpop.f32.mrb[132].mxu1  ;;  %12241 = vmatprep.subr.mxu1 %v16692_v63 }
 0x277   : > { %v14710_v24 = vadd.f32 %v2023_v14, %v1822_v38  ;;  %v11595_v5 = vpop.f32.mrb[127].mxu0  ;;  %11918 = vmatmul.mubr.msk.f32.gmra.mrb[232].mxu0 %vm1639_vm2, %v3001_v30  ;;  %v11657_v52 = vpop.f32.mrb[133].mxu1  ;;  %12035 = vmatmul.mubr.msk.f32.gmra.mrb[238].mxu1 %vm1639_vm2, %v14308_v60  ;;  %v3947_v60 = vld [vmem:[%s16679_s2 + $0x50] sm:$0xff] }
 0x278   : > { %11920 = vmatprep.mubr.msk.f32.mxu0 %vm13326_vm0, %v16692_v63  ;;  %12037 = vmatprep.mubr.msk.f32.mxu1 %vm13326_vm0, %v16692_v63  ;;  %v3461_v38 = vld [vmem:[#allocation2 + $0x29] sm:$0xff] }
 0x27a   : > { %v1827_v3 = vpop.f32.mrb[128].mxu0  ;;  %v2413_v4 = vpop.f32.mrb[134].mxu1 }
 0x27b   : > { %v14719_v62 = vadd.f32 %v2028_v8, %v1827_v3  ;;  %v11598_v32 = vpop.f32.mrb[129].mxu0  ;;  %11921 = vmatmul.mubr.msk.f32.gmra.mrb[234].mxu0 %vm1639_vm2, %v3002_v12  ;;  %v11715_v55 = vpop.f32.mrb[135].mxu1  ;;  %12038 = vmatmul.mubr.msk.f32.gmra.mrb[240].mxu1 %vm1639_vm2, %v14318_v44  ;;  %v3462_v3 = vld [vmem:[#allocation2 + $0x31] sm:$0xff] }
 0x27c   : > { %11978 = vmatprep.mubr.msk.f32.mxu0 %vm13326_vm0, %v16692_v63  ;;  %12040 = vmatprep.mubr.msk.f32.mxu1 %vm13326_vm0, %v16692_v63 }
 0x27e   : > { %v1832_v42 = vpop.f32.mrb[130].mxu0  ;;  %v2418_v31 = vpop.f32.mrb[136].mxu1 }
 0x27f   : > { %v14731_v14 = vadd.f32 %v2033_v40, %v1832_v42  ;;  %v11601_v47 = vpop.f32.mrb[131].mxu0  ;;  %11979 = vmatmul.mubr.msk.f32.vlgmr.msra.gmra.mrb[236].mxu0 %vm1639_vm2, %v3458_v57  ;;  %v11718_v54 = vpop.f32.mrb[137].mxu1  ;;  %12041 = vmatmul.mubr.msk.f32.gmra.mrb[242].mxu1 %vm1639_vm2, %v14327_v33 }
 0x280   : > { %12083 = vmatpush3.msra.mxu0 %v3947_v60  ;;  %11981 = vmatprep.mubr.msk.f32.mxu0 %vm13326_vm0, %v16692_v63  ;;  %v3463_v60 = vld [vmem:[#allocation2 + $0x39] sm:$0xff]  ;;  %v3464_v54 = vld [vmem:[#allocation2 + $0x41] sm:$0xff] }
 0x281   : > { %12043 = vmatprep.mubr.msk.f32.mxu1 %vm13326_vm0, %v16692_v63  ;;  %12188 = vmatprep.subr.mxu0 %v16692_v63 }
 0x282   : > { %v1837_v44 = vpop.f32.mrb[132].mxu0  ;;  %v2423_v36 = vpop.f32.mrb[138].mxu1 }
 0x283   : > { %v14741_v8 = vadd.f32 %v2038_v53, %v1837_v44  ;;  %v11604_v22 = vpop.f32.mrb[133].mxu0  ;;  %11982 = vmatmul.mubr.msk.f32.gmra.mrb[238].mxu0 %vm1639_vm2, %v3459_v10  ;;  %v11721_v0 = vpop.f32.mrb[139].mxu1  ;;  %12044 = vmatmul.mubr.msk.f32.gmra.mrb[244].mxu1 %vm1639_vm2, %v14336_v56 }
 0x284   : > { %11984 = vmatprep.mubr.msk.f32.mxu0 %vm13326_vm0, %v16692_v63  ;;  %12046 = vmatprep.mubr.msk.f32.mxu1 %vm13326_vm0, %v16692_v63  ;;  %v3465_v0 = vld [vmem:[#allocation2 + $0x49] sm:$0xff] }
 0x286   : > { %v2177_v33 = vpop.f32.mrb[134].mxu0  ;;  %v2428_v6 = vpop.f32.mrb[140].mxu1 }
 0x287   : > { %v2261_v40 = vadd.f32 %v2177_v33, %v14587_v11  ;;  %v11662_v28 = vpop.f32.mrb[135].mxu0  ;;  %11985 = vmatmul.mubr.msk.f32.gmra.mrb[240].mxu0 %vm1639_vm2, %v3460_v59  ;;  %v11724_v48 = vpop.f32.mrb[141].mxu1  ;;  %12047 = vmatmul.mubr.msk.f32.gmra.mrb[246].mxu1 %vm1639_vm2, %v14345_v18 }
 0x288   : > { %11987 = vmatprep.mubr.msk.f32.mxu0 %vm13326_vm0, %v16692_v63  ;;  %12049 = vmatprep.mubr.msk.f32.mxu1 %vm13326_vm0, %v16692_v63  ;;  %v3466_v28 = vld [vmem:[#allocation2 + $0x51] sm:$0xff] }
 0x289   : > { %v14758_v56 = vadd.f32 %v2413_v4, %v2261_v40 }
 0x28a   : > { %v2182_v17 = vpop.f32.mrb[136].mxu0  ;;  %v2433_v30 = vpop.f32.mrb[142].mxu1 }
 0x28b   : > { %v2262_v11 = vadd.f32 %v2182_v17, %v14596_v45  ;;  %v11665_v53 = vpop.f32.mrb[137].mxu0  ;;  %11988 = vmatmul.mubr.msk.f32.gmra.mrb[242].mxu0 %vm1639_vm2, %v3461_v38  ;;  %v11727_v5 = vpop.f32.mrb[143].mxu1  ;;  %12050 = vmatmul.mubr.msk.f32.gmra.mrb[248].mxu1 %vm1639_vm2, %v14354_v41 }
 0x28c   : > { %11990 = vmatprep.mubr.msk.f32.mxu0 %vm13326_vm0, %v16692_v63  ;;  %12052 = vmatprep.mubr.msk.f32.mxu1 %vm13326_vm0, %v16692_v63 }
 0x28d   : > { %v14768_v18 = vadd.f32 %v2418_v31, %v2262_v11  ;;  %v3467_v11 = vld [vmem:[#allocation2 + $0x59] sm:$0xff] }
 0x28e   : > { %v2187_v52 = vpop.f32.mrb[138].mxu0  ;;  %v2438_v12 = vpop.f32.mrb[144].mxu1 }
 0x28f   : > { %v2263_v45 = vadd.f32 %v2187_v52, %v14605_v16  ;;  %v11668_v4 = vpop.f32.mrb[139].mxu0  ;;  %11991 = vmatmul.mubr.msk.f32.gmra.mrb[244].mxu0 %vm1639_vm2, %v3462_v3  ;;  %v11730_v32 = vpop.f32.mrb[145].mxu1  ;;  %12053 = vmatmul.mubr.msk.f32.gmra.mrb[250].mxu1 %vm1639_vm2, %v14363_v39 }
 0x290   : > { %11993 = vmatprep.mubr.msk.f32.mxu0 %vm13326_vm0, %v16692_v63  ;;  %12055 = vmatprep.mubr.msk.f32.mxu1 %vm13326_vm0, %v16692_v63 }
 0x291   : > { %v14778_v41 = vadd.f32 %v2423_v36, %v2263_v45 }
 0x292   : > { %v2192_v55 = vpop.f32.mrb[140].mxu0  ;;  %v2443_v42 = vpop.f32.mrb[146].mxu1 }
 0x293   : > { %v2264_v16 = vadd.f32 %v2192_v55, %v14614_v51  ;;  %v11671_v57 = vpop.f32.mrb[141].mxu0  ;;  %11994 = vmatmul.mubr.msk.f32.gmra.mrb[246].mxu0 %vm1639_vm2, %v3463_v60  ;;  %v11733_v31 = vpop.f32.mrb[147].mxu1  ;;  %12056 = vmatmul.mubr.msk.f32.gmra.mrb[252].mxu1 %vm1639_vm2, %v14372_v43  ;;  %v3469_v60 = vld [vmem:[#allocation2 + $0x69] sm:$0xff] }
 0x294   : > { %11996 = vmatprep.mubr.msk.f32.mxu0 %vm13326_vm0, %v16692_v63  ;;  %12058 = vmatprep.mubr.msk.f32.mxu1 %vm13326_vm0, %v16692_v63 }
 0x295   : > { %v14788_v39 = vadd.f32 %v2428_v6, %v2264_v16 }
 0x296   : > { %v2197_v47 = vpop.f32.mrb[142].mxu0  ;;  %v2448_v44 = vpop.f32.mrb[148].mxu1 }
 0x297   : > { %v2265_v51 = vadd.f32 %v2197_v47, %v14623_v35  ;;  %v11674_v10 = vpop.f32.mrb[143].mxu0  ;;  %11997 = vmatmul.mubr.msk.f32.gmra.mrb[248].mxu0 %vm1639_vm2, %v3464_v54  ;;  %v11736_v36 = vpop.f32.mrb[149].mxu1  ;;  %12059 = vmatmul.mubr.msk.f32.gmra.mrb[254].mxu1 %vm1639_vm2, %v14381_v2  ;;  %v3470_v47 = vld [vmem:[#allocation2 + $0x71] sm:$0xff] }
 0x298   : > { %11999 = vmatprep.mubr.msk.f32.mxu0 %vm13326_vm0, %v16692_v63  ;;  %12061 = vmatprep.mubr.msk.f32.mxu1 %vm13326_vm0, %v16692_v63 }
 0x299   : > { %v14798_v43 = vadd.f32 %v2433_v30, %v2265_v51 }
 0x29a   : > { %v2202_v22 = vpop.f32.mrb[144].mxu0  ;;  %v2453_v33 = vpop.f32.mrb[150].mxu1 }
 0x29b   : > { %v2266_v35 = vadd.f32 %v2202_v22, %v14632_v61  ;;  %v11677_v59 = vpop.f32.mrb[145].mxu0  ;;  %12000 = vmatmul.mubr.msk.f32.gmra.mrb[250].mxu0 %vm1639_vm2, %v3465_v0  ;;  %v11739_v6 = vpop.f32.mrb[151].mxu1  ;;  %12062 = vmatmul.mubr.msk.f32.gmra.mrb[0].mxu1 %vm1639_vm2, %v14390_v25  ;;  %v3471_v22 = vld [vmem:[#allocation2 + $0x79] sm:$0xff] }
 0x29c   : > { %12002 = vmatprep.mubr.msk.f32.mxu0 %vm13326_vm0, %v16692_v63  ;;  %12064 = vmatprep.mubr.msk.f32.mxu1 %vm13326_vm0, %v16692_v63 }
 0x29d   : > { %v14808_v2 = vadd.f32 %v2438_v12, %v2266_v35  ;;  %v3468_v12 = vld [vmem:[#allocation2 + $0x61] sm:$0xff] }
 0x29e   : > { %v2207_v40 = vpop.f32.mrb[146].mxu0  ;;  %v2458_v48 = vpop.f32.mrb[152].mxu1 }
 0x29f   : > { %v2267_v61 = vadd.f32 %v2207_v40, %v14641_v26  ;;  %v11680_v17 = vpop.f32.mrb[147].mxu0  ;;  %12003 = vmatmul.mubr.msk.f32.gmra.mrb[252].mxu0 %vm1639_vm2, %v3466_v28  ;;  %v11742_v38 = vpop.f32.mrb[153].mxu1  ;;  %12065 = vmatmul.mubr.msk.f32.gmra.mrb[2].mxu1 %vm1639_vm2, %v14399_v1  ;;  %v3472_v28 = vld [vmem:[#allocation2 + $0x81] sm:$0xff] }
 0x2a0   : > { %12005 = vmatprep.mubr.msk.f32.mxu0 %vm13326_vm0, %v16692_v63  ;;  %12067 = vmatprep.mubr.msk.f32.mxu1 %vm13326_vm0, %v16692_v63 }
 0x2a1   : > { %v14818_v25 = vadd.f32 %v2443_v42, %v2267_v61  ;;  %v4166_v61 = vld [vmem:[#allocation2 + $0x1d] sm:$0xff] }
 0x2a2   : > { %v2212_v30 = vpop.f32.mrb[148].mxu0  ;;  %v2463_v53 = vpop.f32.mrb[154].mxu1 }
 0x2a3   : > { %v2268_v26 = vadd.f32 %v2212_v30, %v14650_v19  ;;  %v11683_v5 = vpop.f32.mrb[149].mxu0  ;;  %12006 = vmatmul.mubr.msk.f32.gmra.mrb[254].mxu0 %vm1639_vm2, %v3467_v11  ;;  %v11745_v52 = vpop.f32.mrb[155].mxu1  ;;  %12068 = vmatmul.mubr.msk.f32.gmra.mrb[4].mxu1 %vm1639_vm2, %v14408_v46 }
 0x2a4   : > { %12008 = vmatprep.mubr.msk.f32.mxu0 %vm13326_vm0, %v16692_v63  ;;  %12070 = vmatprep.mubr.msk.f32.mxu1 %vm13326_vm0, %v16692_v63  ;;  %v4167_v52 = vld [vmem:[#allocation2 + $0x25] sm:$0xff] }
 0x2a5   : > { %v14828_v1 = vadd.f32 %v2448_v44, %v2268_v26  ;;  %v3709_v44 = vld [vmem:[#allocation2 + $0x8a] sm:$0xff] }
 0x2a6   : > { %v2217_v3 = vpop.f32.mrb[150].mxu0  ;;  %v2468_v45 = vpop.f32.mrb[156].mxu1  ;;  %v3473_v26 = vld [vmem:[#allocation2 + $0x89] sm:$0xff] }
 0x2a7   : > { %v2269_v19 = vadd.f32 %v2217_v3, %v14659_v50  ;;  %v11686_v4 = vpop.f32.mrb[151].mxu0  ;;  %12009 = vmatmul.mubr.msk.f32.gmra.mrb[0].mxu0 %vm1639_vm2, %v3468_v12  ;;  %v11748_v32 = vpop.f32.mrb[157].mxu1  ;;  %12071 = vmatmul.mubr.msk.f32.gmra.mrb[6].mxu1 %vm1639_vm2, %v14420_v37 }
 0x2a8   : > { %12011 = vmatprep.mubr.msk.f32.mxu0 %vm13326_vm0, %v16692_v63  ;;  %12073 = vmatprep.mubr.msk.f32.mxu1 %vm13326_vm0, %v16692_v63  ;;  %v3474_v4 = vld [vmem:[#allocation2 + $0x91] sm:$0xff] }
 0x2a9   : > { %v14838_v46 = vadd.f32 %v2453_v33, %v2269_v19  ;;  %v3710_v33 = vld [vmem:[#allocation2 + $0x92] sm:$0xff] }
 0x2aa   : > { %v2222_v55 = vpop.f32.mrb[152].mxu0  ;;  %v2473_v42 = vpop.f32.mrb[158].mxu1 }
 0x2ab   : > { %v2270_v50 = vadd.f32 %v2222_v55, %v14668_v20  ;;  %v11689_v16 = vpop.f32.mrb[153].mxu0  ;;  %12012 = vmatmul.mubr.msk.f32.gmra.mrb[2].mxu0 %vm1639_vm2, %v3469_v60  ;;  %v11751_v57 = vpop.f32.mrb[159].mxu1  ;;  %12074 = vmatmul.mubr.msk.f32.gmra.mrb[8].mxu1 %vm1639_vm2, %v14430_v15  ;;  %v4168_v55 = vld [vmem:[#allocation2 + $0x2d] sm:$0xff] }
 0x2ac   : > { %12014 = vmatprep.mubr.msk.f32.mxu0 %vm13326_vm0, %v16692_v63  ;;  %12076 = vmatprep.mubr.msk.f32.mxu1 %vm13326_vm0, %v16692_v63 }
 0x2ad   : > { %v14848_v37 = vadd.f32 %v2458_v48, %v2270_v50  ;;  %v4419_v50 = vld [vmem:[%s16679_s2 + $0x60] sm:$0xff] }
 0x2ae   : > { %v2227_v31 = vpop.f32.mrb[154].mxu0  ;;  %v2478_v54 = vpop.f32.mrb[160].mxu1 }
 0x2af   : > { %v2271_v20 = vadd.f32 %v2227_v31, %v14677_v13  ;;  %v11692_v51 = vpop.f32.mrb[155].mxu0  ;;  %12015 = vmatmul.mubr.msk.f32.gmra.mrb[4].mxu0 %vm1639_vm2, %v3470_v47  ;;  %v11754_v10 = vpop.f32.mrb[161].mxu1  ;;  %12077 = vmatmul.mubr.msk.f32.gmra.mrb[10].mxu1 %vm1639_vm2, %v3709_v44  ;;  %v4169_v31 = vld [vmem:[#allocation2 + $0x35] sm:$0xff] }
 0x2b0   : > { %12017 = vmatprep.mubr.msk.f32.mxu0 %vm13326_vm0, %v16692_v63  ;;  %12079 = vmatprep.mubr.msk.f32.mxu1 %vm13326_vm0, %v16692_v63  ;;  %v4170_v10 = vld [vmem:[#allocation2 + $0x3d] sm:$0xff] }
 0x2b1   : > { %v14857_v15 = vadd.f32 %v2463_v53, %v2271_v20 }
 0x2b2   : > { %v2232_v36 = vpop.f32.mrb[156].mxu0  ;;  %v2483_v0 = vpop.f32.mrb[162].mxu1 }
 0x2b3   : > { %v2272_v13 = vadd.f32 %v2232_v36, %v14687_v7  ;;  %v11695_v35 = vpop.f32.mrb[157].mxu0  ;;  %12018 = vmatmul.mubr.msk.f32.gmra.mrb[6].mxu0 %vm1639_vm2, %v3471_v22  ;;  %v11757_v59 = vpop.f32.mrb[163].mxu1  ;;  %12080 = vmatmul.mubr.msk.f32.gmra.mrb[12].mxu1 %vm1639_vm2, %v3710_v33  ;;  %v4655_v7 = vld [vmem:[%s16679_s2 + $0x68] sm:$0xff] }
 0x2b4   : > { %12020 = vmatprep.mubr.msk.f32.mxu0 %vm13326_vm0, %v16692_v63  ;;  %12137 = vmatprep.mubr.msk.f32.mxu1 %vm13326_vm0, %v16692_v63  ;;  %v4171_v35 = vld [vmem:[#allocation2 + $0x45] sm:$0xff] }
 0x2b5   : > { %v14866_v6 = vadd.f32 %v2468_v45, %v2272_v13 }
 0x2b6   : > { %v2237_v40 = vpop.f32.mrb[158].mxu0  ;;  %v2488_v48 = vpop.f32.mrb[164].mxu1 }
 0x2b7   : > { %v2273_v17 = vadd.f32 %v2237_v40, %v14700_v27  ;;  %v11698_v38 = vpop.f32.mrb[159].mxu0  ;;  %12021 = vmatmul.mubr.msk.f32.gmra.mrb[8].mxu0 %vm1639_vm2, %v3472_v28  ;;  %v11760_v30 = vpop.f32.mrb[165].mxu1  ;;  %12138 = vmatmul.mubr.msk.f32.vlgmr.msra.gmra.mrb[14].mxu1 %vm1639_vm2, %v4166_v61  ;;  %v4172_v61 = vld [vmem:[#allocation2 + $0x4d] sm:$0xff] }
 0x2b8   : > { %12023 = vmatprep.mubr.msk.f32.mxu0 %vm13326_vm0, %v16692_v63  ;;  %12140 = vmatprep.mubr.msk.f32.mxu1 %vm13326_vm0, %v16692_v63 }
 0x2b9   : > { %v14878_v11 = vadd.f32 %v2473_v42, %v2273_v17  ;;  %12242 = vmatpush3.msra.mxu1 %v4655_v7 }
 0x2ba   : > { %v2242_v53 = vpop.f32.mrb[160].mxu0  ;;  %v2493_v5 = vpop.f32.mrb[166].mxu1  ;;  %12347 = vmatprep.subr.mxu1 %v16692_v63 }
 0x2bb   : > { %v2274_v27 = vadd.f32 %v2242_v53, %v14710_v24  ;;  %v11701_v3 = vpop.f32.mrb[161].mxu0  ;;  %12024 = vmatmul.mubr.msk.f32.gmra.mrb[10].mxu0 %vm1639_vm2, %v3473_v26  ;;  %v11763_v12 = vpop.f32.mrb[167].mxu1  ;;  %12141 = vmatmul.mubr.msk.f32.gmra.mrb[16].mxu1 %vm1639_vm2, %v4167_v52  ;;  %v4173_v53 = vld [vmem:[#allocation2 + $0x55] sm:$0xff] }
 0x2bc   : > { %12026 = vmatprep.mubr.msk.f32.mxu0 %vm13326_vm0, %v16692_v63  ;;  %12143 = vmatprep.mubr.msk.f32.mxu1 %vm13326_vm0, %v16692_v63  ;;  %v4174_v3 = vld [vmem:[#allocation2 + $0x5d] sm:$0xff] }
 0x2bd   : > { %v14888_v45 = vadd.f32 %v2478_v54, %v2274_v27 }
 0x2be   : > { %v2247_v19 = vpop.f32.mrb[162].mxu0  ;;  %v2885_v32 = vpop.f32.mrb[168].mxu1 }
 0x2bf   : > { %v2275_v24 = vadd.f32 %v2247_v19, %v14719_v62  ;;  %v11704_v60 = vpop.f32.mrb[163].mxu0  ;;  %12027 = vmatmul.mubr.msk.f32.gmra.mrb[12].mxu0 %vm1639_vm2, %v3474_v4  ;;  %v11821_v42 = vpop.f32.mrb[169].mxu1  ;;  %12144 = vmatmul.mubr.msk.f32.gmra.mrb[18].mxu1 %vm1639_vm2, %v4168_v55  ;;  %v4175_v55 = vld [vmem:[#allocation2 + $0x65] sm:$0xff] }
 0x2c0   : > { %12084 = vmatprep.mubr.msk.f32.mxu0 %vm13326_vm0, %v16692_v63  ;;  %12146 = vmatprep.mubr.msk.f32.mxu1 %vm13326_vm0, %v16692_v63 }
 0x2c1   : > { %v14900_v16 = vadd.f32 %v2483_v0, %v2275_v24 }
 0x2c2   : > { %v2252_v57 = vpop.f32.mrb[164].mxu0  ;;  %v2890_v62 = vpop.f32.mrb[170].mxu1 }
 0x2c3   : > { %v2276_v47 = vadd.f32 %v2252_v57, %v14731_v14  ;;  %v11707_v54 = vpop.f32.mrb[165].mxu0  ;;  %12085 = vmatmul.mubr.msk.f32.vlgmr.msra.gmra.mrb[14].mxu0 %vm1639_vm2, %v14461_v34  ;;  %v11824_v44 = vpop.f32.mrb[171].mxu1  ;;  %12147 = vmatmul.mubr.msk.f32.gmra.mrb[20].mxu1 %vm1639_vm2, %v4169_v31 }
 0x2c4   : > { %12189 = vmatpush3.msra.mxu0 %v4419_v50  ;;  %12087 = vmatprep.mubr.msk.f32.mxu0 %vm13326_vm0, %v16692_v63  ;;  %v3937_v50 = vld [vmem:[#allocation2 + $0x54] sm:$0xff]  ;;  %v3938_v44 = vld [vmem:[#allocation2 + $0x5c] sm:$0xff] }
 0x2c5   : > { %12149 = vmatprep.mubr.msk.f32.mxu1 %vm13326_vm0, %v16692_v63  ;;  %v14910_v20 = vadd.f32 %v2488_v48, %v2276_v47  ;;  %12294 = vmatprep.subr.mxu0 %v16692_v63 }
 0x2c6   : > { %v2257_v51 = vpop.f32.mrb[166].mxu0  ;;  %v2895_v14 = vpop.f32.mrb[172].mxu1 }
 0x2c7   : > { %v2277_v36 = vadd.f32 %v2257_v51, %v14741_v8  ;;  %v11710_v34 = vpop.f32.mrb[167].mxu0  ;;  %12088 = vmatmul.mubr.msk.f32.gmra.mrb[16].mxu0 %vm1639_vm2, %v14470_v29  ;;  %v11827_v22 = vpop.f32.mrb[173].mxu1  ;;  %12150 = vmatmul.mubr.msk.f32.gmra.mrb[22].mxu1 %vm1639_vm2, %v4170_v10 }
 0x2c8   : > { %12090 = vmatprep.mubr.msk.f32.mxu0 %vm13326_vm0, %v16692_v63  ;;  %12152 = vmatprep.mubr.msk.f32.mxu1 %vm13326_vm0, %v16692_v63 }
 0x2c9   : > { %v14921_v0 = vadd.f32 %v2493_v5, %v2277_v36 }
 0x2ca   : > { %v2649_v33 = vpop.f32.mrb[168].mxu0  ;;  %v2900_v13 = vpop.f32.mrb[174].mxu1 }
 0x2cb   : > { %v2733_v8 = vadd.f32 %v2649_v33, %v14758_v56  ;;  %v11768_v59 = vpop.f32.mrb[169].mxu0  ;;  %12091 = vmatmul.mubr.msk.f32.gmra.mrb[18].mxu0 %vm1639_vm2, %v14479_v23  ;;  %v11830_v29 = vpop.f32.mrb[175].mxu1  ;;  %12153 = vmatmul.mubr.msk.f32.gmra.mrb[24].mxu1 %vm1639_vm2, %v4171_v35  ;;  %v3939_v33 = vld [vmem:[#allocation2 + $0x64] sm:$0xff] }
 0x2cc   : > { %12093 = vmatprep.mubr.msk.f32.mxu0 %vm13326_vm0, %v16692_v63  ;;  %12155 = vmatprep.mubr.msk.f32.mxu1 %vm13326_vm0, %v16692_v63  ;;  %v4178_v35 = vld [vmem:[#allocation2 + $0x7d] sm:$0xff] }
 0x2cd   : > { %v14931_v40 = vadd.f32 %v2885_v32, %v2733_v8 }
 0x2ce   : > { %v2654_v28 = vpop.f32.mrb[170].mxu0  ;;  %v2905_v48 = vpop.f32.mrb[176].mxu1 }
 0x2cf   : > { %v2734_v56 = vadd.f32 %v2654_v28, %v14768_v18  ;;  %v11771_v7 = vpop.f32.mrb[171].mxu0  ;;  %12094 = vmatmul.mubr.msk.f32.gmra.mrb[20].mxu0 %vm1639_vm2, %v14488_v21  ;;  %v11833_v23 = vpop.f32.mrb[177].mxu1  ;;  %12156 = vmatmul.mubr.msk.f32.gmra.mrb[26].mxu1 %vm1639_vm2, %v4172_v61 }
 0x2d0   : > { %12096 = vmatprep.mubr.msk.f32.mxu0 %vm13326_vm0, %v16692_v63  ;;  %12158 = vmatprep.mubr.msk.f32.mxu1 %vm13326_vm0, %v16692_v63 }
 0x2d1   : > { %v14941_v17 = vadd.f32 %v2890_v62, %v2734_v56  ;;  %v4176_v62 = vld [vmem:[#allocation2 + $0x6d] sm:$0xff]  ;;  %v4179_v56 = vld [vmem:[#allocation2 + $0x85] sm:$0xff] }
 0x2d2   : > { %v2659_v38 = vpop.f32.mrb[172].mxu0  ;;  %v2910_v30 = vpop.f32.mrb[178].mxu1 }
 0x2d3   : > { %v2735_v18 = vadd.f32 %v2659_v38, %v14778_v41  ;;  %v11774_v26 = vpop.f32.mrb[173].mxu0  ;;  %12097 = vmatmul.mubr.msk.f32.gmra.mrb[22].mxu0 %vm1639_vm2, %v14497_v58  ;;  %v11836_v21 = vpop.f32.mrb[179].mxu1  ;;  %12159 = vmatmul.mubr.msk.f32.gmra.mrb[28].mxu1 %vm1639_vm2, %v4173_v53  ;;  %v3941_v53 = vld [vmem:[#allocation2 + $0x74] sm:$0xff] }
 0x2d4   : > { %12099 = vmatprep.mubr.msk.f32.mxu0 %vm13326_vm0, %v16692_v63  ;;  %12161 = vmatprep.mubr.msk.f32.mxu1 %vm13326_vm0, %v16692_v63  ;;  %v4180_v26 = vld [vmem:[#allocation2 + $0x8d] sm:$0xff] }
 0x2d5   : > { %v14951_v5 = vadd.f32 %v2895_v14, %v2735_v18  ;;  %v4177_v14 = vld [vmem:[#allocation2 + $0x75] sm:$0xff] }
 0x2d6   : > { %v2664_v52 = vpop.f32.mrb[174].mxu0  ;;  %v2915_v27 = vpop.f32.mrb[180].mxu1 }
 0x2d7   : > { %v2736_v41 = vadd.f32 %v2664_v52, %v14788_v39  ;;  %v11777_v12 = vpop.f32.mrb[175].mxu0  ;;  %12100 = vmatmul.mubr.msk.f32.gmra.mrb[24].mxu0 %vm1639_vm2, %v14506_v49  ;;  %v11839_v58 = vpop.f32.mrb[181].mxu1  ;;  %12162 = vmatmul.mubr.msk.f32.gmra.mrb[30].mxu1 %vm1639_vm2, %v4174_v3 }
 0x2d8   : > { %12102 = vmatprep.mubr.msk.f32.mxu0 %vm13326_vm0, %v16692_v63  ;;  %12164 = vmatprep.mubr.msk.f32.mxu1 %vm13326_vm0, %v16692_v63  ;;  %v4181_v58 = vld [vmem:[#allocation2 + $0x95] sm:$0xff] }
 0x2d9   : > { %v14961_v19 = vadd.f32 %v2900_v13, %v2736_v41  ;;  %v3942_v41 = vld [vmem:[#allocation2 + $0x7c] sm:$0xff] }
 0x2da   : > { %v2669_v4 = vpop.f32.mrb[176].mxu0  ;;  %v2920_v32 = vpop.f32.mrb[182].mxu1 }
 0x2db   : > { %v2737_v39 = vadd.f32 %v2669_v4, %v14798_v43  ;;  %v11780_v24 = vpop.f32.mrb[177].mxu0  ;;  %12103 = vmatmul.mubr.msk.f32.gmra.mrb[26].mxu0 %vm1639_vm2, %v14515_v9  ;;  %v11842_v49 = vpop.f32.mrb[183].mxu1  ;;  %12165 = vmatmul.mubr.msk.f32.gmra.mrb[32].mxu1 %vm1639_vm2, %v4175_v55 }
 0x2dc   : > { %12105 = vmatprep.mubr.msk.f32.mxu0 %vm13326_vm0, %v16692_v63  ;;  %12167 = vmatprep.mubr.msk.f32.mxu1 %vm13326_vm0, %v16692_v63  ;;  %v3943_v24 = vld [vmem:[#allocation2 + $0x84] sm:$0xff] }
 0x2dd   : > { %v14971_v60 = vadd.f32 %v2905_v48, %v2737_v39  ;;  %v3940_v48 = vld [vmem:[#allocation2 + $0x6c] sm:$0xff] }
 0x2de   : > { %v2674_v42 = vpop.f32.mrb[178].mxu0  ;;  %v2925_v57 = vpop.f32.mrb[184].mxu1 }
 0x2df   : > { %v2738_v43 = vadd.f32 %v2674_v42, %v14808_v2  ;;  %v11783_v31 = vpop.f32.mrb[179].mxu0  ;;  %12106 = vmatmul.mubr.msk.f32.gmra.mrb[28].mxu0 %vm1639_vm2, %v3937_v50  ;;  %v11845_v9 = vpop.f32.mrb[185].mxu1  ;;  %12168 = vmatmul.mubr.msk.f32.gmra.mrb[34].mxu1 %vm1639_vm2, %v4176_v62  ;;  %v4182_v42 = vld [vmem:[#allocation2 + $0x9d] sm:$0xff] }
 0x2e0   : > { %12108 = vmatprep.mubr.msk.f32.mxu0 %vm13326_vm0, %v16692_v63  ;;  %12170 = vmatprep.mubr.msk.f32.mxu1 %vm13326_vm0, %v16692_v63  ;;  %v3944_v31 = vld [vmem:[#allocation2 + $0x8c] sm:$0xff] }
 0x2e1   : > { %v14980_v47 = vadd.f32 %v2910_v30, %v2738_v43 }
 0x2e2   : > { %v2679_v54 = vpop.f32.mrb[180].mxu0  ;;  %v2930_v51 = vpop.f32.mrb[186].mxu1 }
 0x2e3   : > { %v2739_v2 = vadd.f32 %v2679_v54, %v14818_v25  ;;  %v11786_v10 = vpop.f32.mrb[181].mxu0  ;;  %12109 = vmatmul.mubr.msk.f32.gmra.mrb[30].mxu0 %vm1639_vm2, %v3938_v44  ;;  %v11848_v36 = vpop.f32.mrb[187].mxu1  ;;  %12171 = vmatmul.mubr.msk.f32.gmra.mrb[36].mxu1 %vm1639_vm2, %v4177_v14  ;;  %v4638_v54 = vld [vmem:[#allocation2 + $0x1f] sm:$0xff] }
 0x2e4   : > { %12111 = vmatprep.mubr.msk.f32.mxu0 %vm13326_vm0, %v16692_v63  ;;  %12173 = vmatprep.mubr.msk.f32.mxu1 %vm13326_vm0, %v16692_v63  ;;  %v3945_v36 = vld [vmem:[#allocation2 + $0x94] sm:$0xff] }
 0x2e5   : > { %v14989_v34 = vadd.f32 %v2915_v27, %v2739_v2 }
 0x2e6   : > { %v2684_v22 = vpop.f32.mrb[182].mxu0  ;;  %v2935_v13 = vpop.f32.mrb[188].mxu1 }
 0x2e7   : > { %v2740_v25 = vadd.f32 %v2684_v22, %v14828_v1  ;;  %v11789_v8 = vpop.f32.mrb[183].mxu0  ;;  %12112 = vmatmul.mubr.msk.f32.gmra.mrb[32].mxu0 %vm1639_vm2, %v3939_v33  ;;  %v11851_v59 = vpop.f32.mrb[189].mxu1  ;;  %12174 = vmatmul.mubr.msk.f32.gmra.mrb[38].mxu1 %vm1639_vm2, %v4178_v35  ;;  %v4639_v33 = vld [vmem:[#allocation2 + $0x27] sm:$0xff] }
 0x2e8   : > { %12114 = vmatprep.mubr.msk.f32.mxu0 %vm13326_vm0, %v16692_v63  ;;  %12176 = vmatprep.mubr.msk.f32.mxu1 %vm13326_vm0, %v16692_v63  ;;  %v3946_v59 = vld [vmem:[#allocation2 + $0x9c] sm:$0xff] }
 0x2e9   : > { %v14998_v29 = vadd.f32 %v2920_v32, %v2740_v25 }
 0x2ea   : > { %v2689_v28 = vpop.f32.mrb[184].mxu0  ;;  %v2940_v61 = vpop.f32.mrb[190].mxu1 }
 0x2eb   : > { %v2741_v1 = vadd.f32 %v2689_v28, %v14838_v46  ;;  %v11792_v7 = vpop.f32.mrb[185].mxu0  ;;  %12115 = vmatmul.mubr.msk.f32.gmra.mrb[34].mxu0 %vm1639_vm2, %v3940_v48  ;;  %v11854_v23 = vpop.f32.mrb[191].mxu1  ;;  %12177 = vmatmul.mubr.msk.f32.gmra.mrb[40].mxu1 %vm1639_vm2, %v4179_v56  ;;  %v4640_v48 = vld [vmem:[#allocation2 + $0x2f] sm:$0xff] }
 0x2ec   : > { %12117 = vmatprep.mubr.msk.f32.mxu0 %vm13326_vm0, %v16692_v63  ;;  %12179 = vmatprep.mubr.msk.f32.mxu1 %vm13326_vm0, %v16692_v63 }
 0x2ed   : > { %v15007_v38 = vadd.f32 %v2925_v57, %v2741_v1  ;;  %v4891_v1 = vld [vmem:[%s16679_s2 + $0x70] sm:$0xff] }
 0x2ee   : > { %v2694_v30 = vpop.f32.mrb[186].mxu0  ;;  %v2945_v18 = vpop.f32.mrb[192].mxu1 }
 0x2ef   : > { %v2742_v46 = vadd.f32 %v2694_v30, %v14848_v37  ;;  %v11795_v21 = vpop.f32.mrb[187].mxu0  ;;  %12118 = vmatmul.mubr.msk.f32.gmra.mrb[36].mxu0 %vm1639_vm2, %v3941_v53  ;;  %v11857_v52 = vpop.f32.mrb[193].mxu1  ;;  %12180 = vmatmul.mubr.msk.f32.gmra.mrb[42].mxu1 %vm1639_vm2, %v4180_v26  ;;  %v4641_v53 = vld [vmem:[#allocation2 + $0x37] sm:$0xff] }
 0x2f0   : > { %12120 = vmatprep.mubr.msk.f32.mxu0 %vm13326_vm0, %v16692_v63  ;;  %12182 = vmatprep.mubr.msk.f32.mxu1 %vm13326_vm0, %v16692_v63 }
 0x2f1   : > { %v15016_v27 = vadd.f32 %v2930_v51, %v2742_v46 }
 0x2f2   : > { %v2699_v3 = vpop.f32.mrb[188].mxu0  ;;  %v2950_v12 = vpop.f32.mrb[194].mxu1 }
 0x2f3   : > { %v2743_v37 = vadd.f32 %v2699_v3, %v14857_v15  ;;  %v11798_v4 = vpop.f32.mrb[189].mxu0  ;;  %12121 = vmatmul.mubr.msk.f32.gmra.mrb[38].mxu0 %vm1639_vm2, %v3942_v41  ;;  %v11860_v32 = vpop.f32.mrb[195].mxu1  ;;  %12183 = vmatmul.mubr.msk.f32.gmra.mrb[44].mxu1 %vm1639_vm2, %v4181_v58  ;;  %v4403_v3 = vld [vmem:[#allocation2 + $0x26] sm:$0xff] }
 0x2f4   : > { %12123 = vmatprep.mubr.msk.f32.mxu0 %vm13326_vm0, %v16692_v63  ;;  %12185 = vmatprep.mubr.msk.f32.mxu1 %vm13326_vm0, %v16692_v63  ;;  %v4642_v41 = vld [vmem:[#allocation2 + $0x3f] sm:$0xff] }
 0x2f5   : > { %v15025_v55 = vadd.f32 %v2935_v13, %v2743_v37 }
 0x2f6   : > { %v2704_v39 = vpop.f32.mrb[190].mxu0  ;;  %v2955_v49 = vpop.f32.mrb[196].mxu1 }
 0x2f7   : > { %v2744_v15 = vadd.f32 %v2704_v39, %v14866_v6  ;;  %v11801_v50 = vpop.f32.mrb[191].mxu0  ;;  %12124 = vmatmul.mubr.msk.f32.gmra.mrb[40].mxu0 %vm1639_vm2, %v3943_v24  ;;  %v11863_v57 = vpop.f32.mrb[197].mxu1  ;;  %12186 = vmatmul.mubr.msk.f32.gmra.mrb[46].mxu1 %vm1639_vm2, %v4182_v42  ;;  %v5127_v6 = vld [vmem:[%s16679_s2 + $0x78] sm:$0xff]  ;;  %v4404_v39 = vld [vmem:[#allocation2 + $0x2e] sm:$0xff] }
 0x2f8   : > { %12126 = vmatprep.mubr.msk.f32.mxu0 %vm13326_vm0, %v16692_v63  ;;  %12243 = vmatprep.mubr.msk.f32.mxu1 %vm13326_vm0, %v16692_v63 }
 0x2f9   : > { %v15034_v62 = vadd.f32 %v2940_v61, %v2744_v15 }
 0x2fa   : > { %v2709_v43 = vpop.f32.mrb[192].mxu0  ;;  %v2960_v9 = vpop.f32.mrb[198].mxu1 }
 0x2fb   : > { %v2745_v44 = vadd.f32 %v2709_v43, %v14878_v11  ;;  %v11804_v51 = vpop.f32.mrb[193].mxu0  ;;  %12127 = vmatmul.mubr.msk.f32.gmra.mrb[42].mxu0 %vm1639_vm2, %v3944_v31  ;;  %v11866_v14 = vpop.f32.mrb[199].mxu1  ;;  %12244 = vmatmul.mubr.msk.f32.vlgmr.msra.gmra.mrb[48].mxu1 %vm1639_vm2, %v4638_v54  ;;  %v4405_v43 = vld [vmem:[#allocation2 + $0x36] sm:$0xff] }
 0x2fc   : > { %12129 = vmatprep.mubr.msk.f32.mxu0 %vm13326_vm0, %v16692_v63  ;;  %12246 = vmatprep.mubr.msk.f32.mxu1 %vm13326_vm0, %v16692_v63  ;;  %v4406_v14 = vld [vmem:[#allocation2 + $0x3e] sm:$0xff] }
 0x2fd   : > { %v15046_v2 = vadd.f32 %v2945_v18, %v2745_v44  ;;  %12348 = vmatpush3.msra.mxu1 %v5127_v6 }
 0x2fe   : > { %v2714_v10 = vpop.f32.mrb[194].mxu0  ;;  %v2965_v22 = vpop.f32.mrb[200].mxu1  ;;  %12453 = vmatprep.subr.mxu1 %v16692_v63 }
 0x2ff   : > { %v2746_v11 = vadd.f32 %v2714_v10, %v14888_v45  ;;  %v11807_v13 = vpop.f32.mrb[195].mxu0  ;;  %12130 = vmatmul.mubr.msk.f32.gmra.mrb[44].mxu0 %vm1639_vm2, %v3945_v36  ;;  %v11869_v35 = vpop.f32.mrb[201].mxu1  ;;  %12247 = vmatmul.mubr.msk.f32.gmra.mrb[50].mxu1 %vm1639_vm2, %v4639_v33  ;;  %v4645_v36 = vld [vmem:[#allocation2 + $0x57] sm:$0xff] }
 0x300   : > { %12132 = vmatprep.mubr.msk.f32.mxu0 %vm13326_vm0, %v16692_v63  ;;  %12249 = vmatprep.mubr.msk.f32.mxu1 %vm13326_vm0, %v16692_v63  ;;  %v4407_v35 = vld [vmem:[#allocation2 + $0x46] sm:$0xff] }
 0x301   : > { %v15056_v25 = vadd.f32 %v2950_v12, %v2746_v11 }
 0x302   : > { %v2719_v8 = vpop.f32.mrb[196].mxu0  ;;  %v3357_v28 = vpop.f32.mrb[202].mxu1 }
 0x303   : > { %v2747_v45 = vadd.f32 %v2719_v8, %v14900_v16  ;;  %v11810_v61 = vpop.f32.mrb[197].mxu0  ;;  %12133 = vmatmul.mubr.msk.f32.gmra.mrb[46].mxu0 %vm1639_vm2, %v3946_v59  ;;  %v11927_v56 = vpop.f32.mrb[203].mxu1  ;;  %12250 = vmatmul.mubr.msk.f32.gmra.mrb[52].mxu1 %vm1639_vm2, %v4640_v48  ;;  %v4402_v16 = vld [vmem:[#allocation2 + $0x1e] sm:$0xff] }
 0x304   : > { %12190 = vmatprep.mubr.msk.f32.mxu0 %vm13326_vm0, %v16692_v63  ;;  %12252 = vmatprep.mubr.msk.f32.mxu1 %vm13326_vm0, %v16692_v63  ;;  %v4646_v59 = vld [vmem:[#allocation2 + $0x5f] sm:$0xff]  ;;  %v4408_v56 = vld [vmem:[#allocation2 + $0x4e] sm:$0xff] }
 0x305   : > { %v15068_v7 = vadd.f32 %v2955_v49, %v2747_v45  ;;  %v4643_v49 = vld [vmem:[#allocation2 + $0x47] sm:$0xff] }
 0x306   : > { %v2724_v23 = vpop.f32.mrb[198].mxu0  ;;  %v3362_v30 = vpop.f32.mrb[204].mxu1 }
 0x307   : > { %v2748_v18 = vadd.f32 %v2724_v23, %v14910_v20  ;;  %v11813_v26 = vpop.f32.mrb[199].mxu0  ;;  %12191 = vmatmul.mubr.msk.f32.vlgmr.msra.gmra.mrb[48].mxu0 %vm1639_vm2, %v4402_v16  ;;  %v11930_v46 = vpop.f32.mrb[205].mxu1  ;;  %12253 = vmatmul.mubr.msk.f32.gmra.mrb[54].mxu1 %vm1639_vm2, %v4641_v53  ;;  %v4647_v23 = vld [vmem:[#allocation2 + $0x67] sm:$0xff] }
 0x308   : > { %12295 = vmatpush3.msra.mxu0 %v4891_v1  ;;  %12193 = vmatprep.mubr.msk.f32.mxu0 %vm13326_vm0, %v16692_v63  ;;  %v4409_v26 = vld [vmem:[#allocation2 + $0x56] sm:$0xff] }
 0x309   : > { %12255 = vmatprep.mubr.msk.f32.mxu1 %vm13326_vm0, %v16692_v63  ;;  %v15077_v21 = vadd.f32 %v2960_v9, %v2748_v18  ;;  %12400 = vmatprep.subr.mxu0 %v16692_v63  ;;  %v4644_v9 = vld [vmem:[#allocation2 + $0x4f] sm:$0xff] }
 0x30a   : > { %v2729_v52 = vpop.f32.mrb[200].mxu0  ;;  %v3367_v20 = vpop.f32.mrb[206].mxu1 }
 0x30b   : > { %v2749_v12 = vadd.f32 %v2729_v52, %v14921_v0  ;;  %v11816_v58 = vpop.f32.mrb[201].mxu0  ;;  %12194 = vmatmul.mubr.msk.f32.gmra.mrb[50].mxu0 %vm1639_vm2, %v4403_v3  ;;  %v11933_v37 = vpop.f32.mrb[207].mxu1  ;;  %12256 = vmatmul.mubr.msk.f32.gmra.mrb[56].mxu1 %vm1639_vm2, %v4642_v41  ;;  %v4648_v52 = vld [vmem:[#allocation2 + $0x6f] sm:$0xff] }
 0x30c   : > { %12196 = vmatprep.mubr.msk.f32.mxu0 %vm13326_vm0, %v16692_v63  ;;  %12258 = vmatprep.mubr.msk.f32.mxu1 %vm13326_vm0, %v16692_v63  ;;  %v4410_v58 = vld [vmem:[#allocation2 + $0x5e] sm:$0xff] }
 0x30d   : > { %v15087_v4 = vadd.f32 %v2965_v22, %v2749_v12 }
 0x30e   : > { %v3121_v32 = vpop.f32.mrb[202].mxu0  ;;  %v3372_v24 = vpop.f32.mrb[208].mxu1 }
 0x30f   : > { %v3205_v0 = vadd.f32 %v3121_v32, %v14931_v40  ;;  %v11874_v42 = vpop.f32.mrb[203].mxu0  ;;  %12197 = vmatmul.mubr.msk.f32.gmra.mrb[52].mxu0 %vm1639_vm2, %v4404_v39  ;;  %v11936_v15 = vpop.f32.mrb[209].mxu1  ;;  %12259 = vmatmul.mubr.msk.f32.gmra.mrb[58].mxu1 %vm1639_vm2, %v4643_v49  ;;  %v4649_v32 = vld [vmem:[#allocation2 + $0x77] sm:$0xff] }
 0x310   : > { %12199 = vmatprep.mubr.msk.f32.mxu0 %vm13326_vm0, %v16692_v63  ;;  %12261 = vmatprep.mubr.msk.f32.mxu1 %vm13326_vm0, %v16692_v63  ;;  %v4411_v42 = vld [vmem:[#allocation2 + $0x66] sm:$0xff] }
 0x311   : > { %v15096_v50 = vadd.f32 %v3357_v28, %v3205_v0 }
 0x312   : > { %v3126_v57 = vpop.f32.mrb[204].mxu0  ;;  %v3377_v31 = vpop.f32.mrb[210].mxu1 }
 0x313   : > { %v3206_v40 = vadd.f32 %v3126_v57, %v14941_v17  ;;  %v11877_v54 = vpop.f32.mrb[205].mxu0  ;;  %12200 = vmatmul.mubr.msk.f32.gmra.mrb[54].mxu0 %vm1639_vm2, %v4405_v43  ;;  %v11939_v6 = vpop.f32.mrb[211].mxu1  ;;  %12262 = vmatmul.mubr.msk.f32.gmra.mrb[60].mxu1 %vm1639_vm2, %v4644_v9  ;;  %v4650_v57 = vld [vmem:[#allocation2 + $0x7f] sm:$0xff] }
 0x314   : > { %12202 = vmatprep.mubr.msk.f32.mxu0 %vm13326_vm0, %v16692_v63  ;;  %12264 = vmatprep.mubr.msk.f32.mxu1 %vm13326_vm0, %v16692_v63  ;;  %v4412_v54 = vld [vmem:[#allocation2 + $0x6e] sm:$0xff] }
 0x315   : > { %v15105_v44 = vadd.f32 %v3362_v30, %v3206_v40 }
 0x316   : > { %v3131_v51 = vpop.f32.mrb[206].mxu0  ;;  %v3382_v10 = vpop.f32.mrb[212].mxu1 }
 0x317   : > { %v3207_v17 = vadd.f32 %v3131_v51, %v14951_v5  ;;  %v11880_v22 = vpop.f32.mrb[207].mxu0  ;;  %12203 = vmatmul.mubr.msk.f32.gmra.mrb[56].mxu0 %vm1639_vm2, %v4406_v14  ;;  %v11942_v33 = vpop.f32.mrb[213].mxu1  ;;  %12265 = vmatmul.mubr.msk.f32.gmra.mrb[62].mxu1 %vm1639_vm2, %v4645_v36  ;;  %v4651_v51 = vld [vmem:[#allocation2 + $0x87] sm:$0xff] }
 0x318   : > { %12205 = vmatprep.mubr.msk.f32.mxu0 %vm13326_vm0, %v16692_v63  ;;  %12267 = vmatprep.mubr.msk.f32.mxu1 %vm13326_vm0, %v16692_v63  ;;  %v4413_v22 = vld [vmem:[#allocation2 + $0x76] sm:$0xff] }
 0x319   : > { %v15114_v11 = vadd.f32 %v3367_v20, %v3207_v17 }
 0x31a   : > { %v3136_v13 = vpop.f32.mrb[208].mxu0  ;;  %v3387_v8 = vpop.f32.mrb[214].mxu1 }
 0x31b   : > { %v3208_v5 = vadd.f32 %v3136_v13, %v14961_v19  ;;  %v11883_v28 = vpop.f32.mrb[209].mxu0  ;;  %12206 = vmatmul.mubr.msk.f32.gmra.mrb[58].mxu0 %vm1639_vm2, %v4407_v35  ;;  %v11945_v48 = vpop.f32.mrb[215].mxu1  ;;  %12268 = vmatmul.mubr.msk.f32.gmra.mrb[64].mxu1 %vm1639_vm2, %v4646_v59  ;;  %v4652_v13 = vld [vmem:[#allocation2 + $0x8f] sm:$0xff] }
 0x31c   : > { %12208 = vmatprep.mubr.msk.f32.mxu0 %vm13326_vm0, %v16692_v63  ;;  %12270 = vmatprep.mubr.msk.f32.mxu1 %vm13326_vm0, %v16692_v63  ;;  %v4414_v28 = vld [vmem:[#allocation2 + $0x7e] sm:$0xff] }
 0x31d   : > { %v15123_v45 = vadd.f32 %v3372_v24, %v3208_v5 }
 0x31e   : > { %v3141_v61 = vpop.f32.mrb[210].mxu0  ;;  %v3392_v1 = vpop.f32.mrb[216].mxu1 }
 0x31f   : > { %v3209_v19 = vadd.f32 %v3141_v61, %v14971_v60  ;;  %v11886_v16 = vpop.f32.mrb[211].mxu0  ;;  %12209 = vmatmul.mubr.msk.f32.gmra.mrb[60].mxu0 %vm1639_vm2, %v4408_v56  ;;  %v11948_v30 = vpop.f32.mrb[217].mxu1  ;;  %12271 = vmatmul.mubr.msk.f32.gmra.mrb[66].mxu1 %vm1639_vm2, %v4647_v23  ;;  %v4653_v61 = vld [vmem:[#allocation2 + $0x97] sm:$0xff] }
 0x320   : > { %12211 = vmatprep.mubr.msk.f32.mxu0 %vm13326_vm0, %v16692_v63  ;;  %12273 = vmatprep.mubr.msk.f32.mxu1 %vm13326_vm0, %v16692_v63  ;;  %v4415_v16 = vld [vmem:[#allocation2 + $0x86] sm:$0xff] }
 0x321   : > { %v15132_v53 = vadd.f32 %v3377_v31, %v3209_v19 }
 0x322   : > { %v3146_v18 = vpop.f32.mrb[212].mxu0  ;;  %v3397_v46 = vpop.f32.mrb[218].mxu1 }
 0x323   : > { %v3210_v60 = vadd.f32 %v3146_v18, %v14980_v47  ;;  %v11889_v3 = vpop.f32.mrb[213].mxu0  ;;  %12212 = vmatmul.mubr.msk.f32.gmra.mrb[62].mxu0 %vm1639_vm2, %v4409_v26  ;;  %v11951_v20 = vpop.f32.mrb[219].mxu1  ;;  %12274 = vmatmul.mubr.msk.f32.gmra.mrb[68].mxu1 %vm1639_vm2, %v4648_v52  ;;  %v4654_v18 = vld [vmem:[#allocation2 + $0x9f] sm:$0xff] }
 0x324   : > { %12214 = vmatprep.mubr.msk.f32.mxu0 %vm13326_vm0, %v16692_v63  ;;  %12276 = vmatprep.mubr.msk.f32.mxu1 %vm13326_vm0, %v16692_v63  ;;  %v4416_v3 = vld [vmem:[#allocation2 + $0x8e] sm:$0xff] }
 0x325   : > { %v15141_v41 = vadd.f32 %v3382_v10, %v3210_v60 }
 0x326   : > { %v3151_v12 = vpop.f32.mrb[214].mxu0  ;;  %v3402_v37 = vpop.f32.mrb[220].mxu1 }
 0x327   : > { %v3211_v47 = vadd.f32 %v3151_v12, %v14989_v34  ;;  %v11892_v39 = vpop.f32.mrb[215].mxu0  ;;  %12215 = vmatmul.mubr.msk.f32.gmra.mrb[64].mxu0 %vm1639_vm2, %v4410_v58  ;;  %v11954_v24 = vpop.f32.mrb[221].mxu1  ;;  %12277 = vmatmul.mubr.msk.f32.gmra.mrb[70].mxu1 %vm1639_vm2, %v4649_v32  ;;  %v5110_v12 = vld [vmem:[#allocation2 + $0x2a] sm:$0xff] }
 0x328   : > { %12217 = vmatprep.mubr.msk.f32.mxu0 %vm13326_vm0, %v16692_v63  ;;  %12279 = vmatprep.mubr.msk.f32.mxu1 %vm13326_vm0, %v16692_v63  ;;  %v4417_v24 = vld [vmem:[#allocation2 + $0x96] sm:$0xff] }
 0x329   : > { %v15150_v49 = vadd.f32 %v3387_v8, %v3211_v47 }
 0x32a   : > { %v3156_v0 = vpop.f32.mrb[216].mxu0  ;;  %v3407_v15 = vpop.f32.mrb[222].mxu1 }
 0x32b   : > { %v3212_v34 = vadd.f32 %v3156_v0, %v14998_v29  ;;  %v11895_v43 = vpop.f32.mrb[217].mxu0  ;;  %12218 = vmatmul.mubr.msk.f32.gmra.mrb[66].mxu0 %vm1639_vm2, %v4411_v42  ;;  %v11957_v31 = vpop.f32.mrb[223].mxu1  ;;  %12280 = vmatmul.mubr.msk.f32.gmra.mrb[72].mxu1 %vm1639_vm2, %v4650_v57  ;;  %v5111_v42 = vld [vmem:[#allocation2 + $0x32] sm:$0xff] }
 0x32c   : > { %12220 = vmatprep.mubr.msk.f32.mxu0 %vm13326_vm0, %v16692_v63  ;;  %12282 = vmatprep.mubr.msk.f32.mxu1 %vm13326_vm0, %v16692_v63  ;;  %v4418_v31 = vld [vmem:[#allocation2 + $0x9e] sm:$0xff] }
 0x32d   : > { %v15159_v9 = vadd.f32 %v3392_v1, %v3212_v34 }
 0x32e   : > { %v3161_v40 = vpop.f32.mrb[218].mxu0  ;;  %v3412_v6 = vpop.f32.mrb[224].mxu1 }
 0x32f   : > { %v3213_v29 = vadd.f32 %v3161_v40, %v15007_v38  ;;  %v11898_v14 = vpop.f32.mrb[219].mxu0  ;;  %12221 = vmatmul.mubr.msk.f32.gmra.mrb[68].mxu0 %vm1639_vm2, %v4412_v54  ;;  %v11960_v10 = vpop.f32.mrb[225].mxu1  ;;  %12283 = vmatmul.mubr.msk.f32.gmra.mrb[74].mxu1 %vm1639_vm2, %v4651_v51  ;;  %v5112_v54 = vld [vmem:[#allocation2 + $0x3a] sm:$0xff] }
 0x330   : > { %12223 = vmatprep.mubr.msk.f32.mxu0 %vm13326_vm0, %v16692_v63  ;;  %12285 = vmatprep.mubr.msk.f32.mxu1 %vm13326_vm0, %v16692_v63 }
 0x331   : > { %v15168_v36 = vadd.f32 %v3397_v46, %v3213_v29  ;;  %v5363_v29 = vld [vmem:[%s16679_s2 + $0x80] sm:$0xff] }
 0x332   : > { %v3166_v17 = vpop.f32.mrb[220].mxu0  ;;  %v3417_v33 = vpop.f32.mrb[226].mxu1 }
 0x333   : > { %v3214_v38 = vadd.f32 %v3166_v17, %v15016_v27  ;;  %v11901_v35 = vpop.f32.mrb[221].mxu0  ;;  %12224 = vmatmul.mubr.msk.f32.gmra.mrb[70].mxu0 %vm1639_vm2, %v4413_v22  ;;  %v11963_v8 = vpop.f32.mrb[227].mxu1  ;;  %12286 = vmatmul.mubr.msk.f32.gmra.mrb[76].mxu1 %vm1639_vm2, %v4652_v13  ;;  %v5113_v22 = vld [vmem:[#allocation2 + $0x42] sm:$0xff] }
 0x334   : > { %12226 = vmatprep.mubr.msk.f32.mxu0 %vm13326_vm0, %v16692_v63  ;;  %12288 = vmatprep.mubr.msk.f32.mxu1 %vm13326_vm0, %v16692_v63 }
 0x335   : > { %v15177_v59 = vadd.f32 %v3402_v37, %v3214_v38 }
 0x336   : > { %v3171_v5 = vpop.f32.mrb[222].mxu0  ;;  %v3422_v48 = vpop.f32.mrb[228].mxu1 }
 0x337   : > { %v3215_v27 = vadd.f32 %v3171_v5, %v15025_v55  ;;  %v11904_v56 = vpop.f32.mrb[223].mxu0  ;;  %12227 = vmatmul.mubr.msk.f32.gmra.mrb[72].mxu0 %vm1639_vm2, %v4414_v28  ;;  %v11966_v1 = vpop.f32.mrb[229].mxu1  ;;  %12289 = vmatmul.mubr.msk.f32.gmra.mrb[78].mxu1 %vm1639_vm2, %v4653_v61  ;;  %v4875_v5 = vld [vmem:[#allocation2 + $0x28] sm:$0xff] }
 0x338   : > { %12229 = vmatprep.mubr.msk.f32.mxu0 %vm13326_vm0, %v16692_v63  ;;  %12291 = vmatprep.mubr.msk.f32.mxu1 %vm13326_vm0, %v16692_v63  ;;  %v5114_v28 = vld [vmem:[#allocation2 + $0x4a] sm:$0xff] }
 0x339   : > { %v15186_v23 = vadd.f32 %v3407_v15, %v3215_v27 }
 0x33a   : > { %v3176_v19 = vpop.f32.mrb[224].mxu0  ;;  %v3427_v30 = vpop.f32.mrb[230].mxu1 }
 0x33b   : > { %v3216_v55 = vadd.f32 %v3176_v19, %v15034_v62  ;;  %v11907_v26 = vpop.f32.mrb[225].mxu0  ;;  %12230 = vmatmul.mubr.msk.f32.gmra.mrb[74].mxu0 %vm1639_vm2, %v4415_v16  ;;  %v11969_v46 = vpop.f32.mrb[231].mxu1  ;;  %12292 = vmatmul.mubr.msk.f32.gmra.mrb[80].mxu1 %vm1639_vm2, %v4654_v18  ;;  %v5599_v62 = vld [vmem:[%s16679_s2 + $0x88] sm:$0xff]  ;;  %v4876_v19 = vld [vmem:[#allocation2 + $0x30] sm:$0xff] }
 0x33c   : > { %12232 = vmatprep.mubr.msk.f32.mxu0 %vm13326_vm0, %v16692_v63  ;;  %12349 = vmatprep.mubr.msk.f32.mxu1 %vm13326_vm0, %v16692_v63 }
 0x33d   : > { %v15195_v52 = vadd.f32 %v3412_v6, %v3216_v55 }
 0x33e   : > { %v3181_v60 = vpop.f32.mrb[226].mxu0  ;;  %v3432_v20 = vpop.f32.mrb[232].mxu1 }
 0x33f   : > { %v3217_v58 = vadd.f32 %v3181_v60, %v15046_v2  ;;  %v11910_v37 = vpop.f32.mrb[227].mxu0  ;;  %12233 = vmatmul.mubr.msk.f32.gmra.mrb[76].mxu0 %vm1639_vm2, %v4416_v3  ;;  %v11972_v32 = vpop.f32.mrb[233].mxu1  ;;  %12350 = vmatmul.mubr.msk.f32.vlgmr.msra.gmra.mrb[82].mxu1 %vm1639_vm2, %v5110_v12  ;;  %v4877_v60 = vld [vmem:[#allocation2 + $0x38] sm:$0xff] }
 0x340   : > { %12235 = vmatprep.mubr.msk.f32.mxu0 %vm13326_vm0, %v16692_v63  ;;  %12352 = vmatprep.mubr.msk.f32.mxu1 %vm13326_vm0, %v16692_v63  ;;  %v4878_v32 = vld [vmem:[#allocation2 + $0x40] sm:$0xff] }
 0x341   : > { %v15207_v47 = vadd.f32 %v3417_v33, %v3217_v58  ;;  %12454 = vmatpush3.msra.mxu1 %v5599_v62 }
 0x342   : > { %v3186_v39 = vpop.f32.mrb[228].mxu0  ;;  %v3437_v0 = vpop.f32.mrb[234].mxu1  ;;  %12559 = vmatprep.subr.mxu1 %v16692_v63 }
 0x343   : > { %v3218_v2 = vadd.f32 %v3186_v39, %v15056_v25  ;;  %v11913_v15 = vpop.f32.mrb[229].mxu0  ;;  %12236 = vmatmul.mubr.msk.f32.gmra.mrb[78].mxu0 %vm1639_vm2, %v4417_v24  ;;  %v11975_v57 = vpop.f32.mrb[235].mxu1  ;;  %12353 = vmatmul.mubr.msk.f32.gmra.mrb[84].mxu1 %vm1639_vm2, %v5111_v42  ;;  %v5117_v24 = vld [vmem:[#allocation2 + $0x62] sm:$0xff] }
 0x344   : > { %12238 = vmatprep.mubr.msk.f32.mxu0 %vm13326_vm0, %v16692_v63  ;;  %12355 = vmatprep.mubr.msk.f32.mxu1 %vm13326_vm0, %v16692_v63  ;;  %v4879_v57 = vld [vmem:[#allocation2 + $0x48] sm:$0xff] }
 0x345   : > { %v15217_v34 = vadd.f32 %v3422_v48, %v3218_v2 }
 0x346   : > { %v3191_v43 = vpop.f32.mrb[230].mxu0  ;;  %v3829_v40 = vpop.f32.mrb[236].mxu1 }
 0x347   : > { %v3219_v25 = vadd.f32 %v3191_v43, %v15068_v7  ;;  %v11916_v6 = vpop.f32.mrb[231].mxu0  ;;  %12239 = vmatmul.mubr.msk.f32.gmra.mrb[80].mxu0 %vm1639_vm2, %v4418_v31  ;;  %v12033_v51 = vpop.f32.mrb[237].mxu1  ;;  %12356 = vmatmul.mubr.msk.f32.gmra.mrb[86].mxu1 %vm1639_vm2, %v5112_v54  ;;  %v4874_v7 = vld [vmem:[#allocation2 + $0x20] sm:$0xff]  ;;  %v5118_v31 = vld [vmem:[#allocation2 + $0x6a] sm:$0xff] }
 0x348   : > { %12296 = vmatprep.mubr.msk.f32.mxu0 %vm13326_vm0, %v16692_v63  ;;  %12358 = vmatprep.mubr.msk.f32.mxu1 %vm13326_vm0, %v16692_v63  ;;  %v4880_v51 = vld [vmem:[#allocation2 + $0x50] sm:$0xff] }
 0x349   : > { %v15229_v14 = vadd.f32 %v3427_v30, %v3219_v25  ;;  %v5115_v30 = vld [vmem:[#allocation2 + $0x52] sm:$0xff] }
 0x34a   : > { %v3196_v10 = vpop.f32.mrb[232].mxu0  ;;  %v3834_v17 = vpop.f32.mrb[238].mxu1 }
 0x34b   : > { %v3220_v33 = vadd.f32 %v3196_v10, %v15077_v21  ;;  %v11919_v13 = vpop.f32.mrb[233].mxu0  ;;  %12297 = vmatmul.mubr.msk.f32.vlgmr.msra.gmra.mrb[82].mxu0 %vm1639_vm2, %v4874_v7  ;;  %v12036_v38 = vpop.f32.mrb[239].mxu1  ;;  %12359 = vmatmul.mubr.msk.f32.gmra.mrb[88].mxu1 %vm1639_vm2, %v5113_v22  ;;  %v5119_v10 = vld [vmem:[#allocation2 + $0x72] sm:$0xff] }
 0x34c   : > { %12401 = vmatpush3.msra.mxu0 %v5363_v29  ;;  %12299 = vmatprep.mubr.msk.f32.mxu0 %vm13326_vm0, %v16692_v63  ;;  %v4881_v13 = vld [vmem:[#allocation2 + $0x58] sm:$0xff] }
 0x34d   : > { %12361 = vmatprep.mubr.msk.f32.mxu1 %vm13326_vm0, %v16692_v63  ;;  %v15238_v35 = vadd.f32 %v3432_v20, %v3220_v33  ;;  %12506 = vmatprep.subr.mxu0 %v16692_v63  ;;  %v5116_v20 = vld [vmem:[#allocation2 + $0x5a] sm:$0xff] }
 0x34e   : > { %v3201_v8 = vpop.f32.mrb[234].mxu0  ;;  %v3839_v21 = vpop.f32.mrb[240].mxu1 }
 0x34f   : > { %v3221_v48 = vadd.f32 %v3201_v8, %v15087_v4  ;;  %v11922_v61 = vpop.f32.mrb[235].mxu0  ;;  %12300 = vmatmul.mubr.msk.f32.gmra.mrb[84].mxu0 %vm1639_vm2, %v4875_v5  ;;  %v12039_v27 = vpop.f32.mrb[241].mxu1  ;;  %12362 = vmatmul.mubr.msk.f32.gmra.mrb[90].mxu1 %vm1639_vm2, %v5114_v28  ;;  %v5120_v8 = vld [vmem:[#allocation2 + $0x7a] sm:$0xff] }
 0x350   : > { %12302 = vmatprep.mubr.msk.f32.mxu0 %vm13326_vm0, %v16692_v63  ;;  %12364 = vmatprep.mubr.msk.f32.mxu1 %vm13326_vm0, %v16692_v63  ;;  %v4882_v61 = vld [vmem:[#allocation2 + $0x60] sm:$0xff] }
 0x351   : > { %v15248_v56 = vadd.f32 %v3437_v0, %v3221_v48 }
 0x352   : > { %v3593_v1 = vpop.f32.mrb[236].mxu0  ;;  %v3844_v16 = vpop.f32.mrb[242].mxu1 }
 0x353   : > { %v3677_v4 = vadd.f32 %v3593_v1, %v15096_v50  ;;  %v11980_v18 = vpop.f32.mrb[237].mxu0  ;;  %12303 = vmatmul.mubr.msk.f32.gmra.mrb[86].mxu0 %vm1639_vm2, %v4876_v19  ;;  %v12042_v55 = vpop.f32.mrb[243].mxu1  ;;  %12365 = vmatmul.mubr.msk.f32.gmra.mrb[92].mxu1 %vm1639_vm2, %v5115_v30  ;;  %v5121_v1 = vld [vmem:[#allocation2 + $0x82] sm:$0xff] }
 0x354   : > { %12305 = vmatprep.mubr.msk.f32.mxu0 %vm13326_vm0, %v16692_v63  ;;  %12367 = vmatprep.mubr.msk.f32.mxu1 %vm13326_vm0, %v16692_v63  ;;  %v4883_v18 = vld [vmem:[#allocation2 + $0x68] sm:$0xff] }
 0x355   : > { %v15257_v26 = vadd.f32 %v3829_v40, %v3677_v4 }
 0x356   : > { %v3598_v46 = vpop.f32.mrb[238].mxu0  ;;  %v3849_v3 = vpop.f32.mrb[244].mxu1 }
 0x357   : > { %v3678_v50 = vadd.f32 %v3598_v46, %v15105_v44  ;;  %v11983_v12 = vpop.f32.mrb[239].mxu0  ;;  %12306 = vmatmul.mubr.msk.f32.gmra.mrb[88].mxu0 %vm1639_vm2, %v4877_v60  ;;  %v12045_v62 = vpop.f32.mrb[245].mxu1  ;;  %12368 = vmatmul.mubr.msk.f32.gmra.mrb[94].mxu1 %vm1639_vm2, %v5116_v20  ;;  %v5122_v46 = vld [vmem:[#allocation2 + $0x8a] sm:$0xff] }
 0x358   : > { %12308 = vmatprep.mubr.msk.f32.mxu0 %vm13326_vm0, %v16692_v63  ;;  %12370 = vmatprep.mubr.msk.f32.mxu1 %vm13326_vm0, %v16692_v63  ;;  %v4884_v12 = vld [vmem:[#allocation2 + $0x70] sm:$0xff] }
 0x359   : > { %v15266_v58 = vadd.f32 %v3834_v17, %v3678_v50 }
 0x35a   : > { %v3603_v37 = vpop.f32.mrb[240].mxu0  ;;  %v3854_v39 = vpop.f32.mrb[246].mxu1 }
 0x35b   : > { %v3679_v44 = vadd.f32 %v3603_v37, %v15114_v11  ;;  %v11986_v0 = vpop.f32.mrb[241].mxu0  ;;  %12309 = vmatmul.mubr.msk.f32.gmra.mrb[90].mxu0 %vm1639_vm2, %v4878_v32  ;;  %v12048_v42 = vpop.f32.mrb[247].mxu1  ;;  %12371 = vmatmul.mubr.msk.f32.gmra.mrb[96].mxu1 %vm1639_vm2, %v5117_v24  ;;  %v5123_v37 = vld [vmem:[#allocation2 + $0x92] sm:$0xff] }
 0x35c   : > { %12311 = vmatprep.mubr.msk.f32.mxu0 %vm13326_vm0, %v16692_v63  ;;  %12373 = vmatprep.mubr.msk.f32.mxu1 %vm13326_vm0, %v16692_v63  ;;  %v4885_v0 = vld [vmem:[#allocation2 + $0x78] sm:$0xff] }
 0x35d   : > { %v15275_v2 = vadd.f32 %v3839_v21, %v3679_v44 }
 0x35e   : > { %v3608_v15 = vpop.f32.mrb[242].mxu0  ;;  %v3859_v43 = vpop.f32.mrb[248].mxu1 }
 0x35f   : > { %v3680_v11 = vadd.f32 %v3608_v15, %v15123_v45  ;;  %v11989_v40 = vpop.f32.mrb[243].mxu0  ;;  %12312 = vmatmul.mubr.msk.f32.gmra.mrb[92].mxu0 %vm1639_vm2, %v4879_v57  ;;  %v12051_v54 = vpop.f32.mrb[249].mxu1  ;;  %12374 = vmatmul.mubr.msk.f32.gmra.mrb[98].mxu1 %vm1639_vm2, %v5118_v31  ;;  %v5124_v15 = vld [vmem:[#allocation2 + $0x9a] sm:$0xff] }
 0x360   : > { %12314 = vmatprep.mubr.msk.f32.mxu0 %vm13326_vm0, %v16692_v63  ;;  %12376 = vmatprep.mubr.msk.f32.mxu1 %vm13326_vm0, %v16692_v63  ;;  %v4886_v40 = vld [vmem:[#allocation2 + $0x80] sm:$0xff] }
 0x361   : > { %v15284_v25 = vadd.f32 %v3844_v16, %v3680_v11 }
 0x362   : > { %v3613_v6 = vpop.f32.mrb[244].mxu0  ;;  %v3864_v29 = vpop.f32.mrb[250].mxu1 }
 0x363   : > { %v3681_v45 = vadd.f32 %v3613_v6, %v15132_v53  ;;  %v11992_v7 = vpop.f32.mrb[245].mxu0  ;;  %12315 = vmatmul.mubr.msk.f32.gmra.mrb[94].mxu0 %vm1639_vm2, %v4880_v51  ;;  %v12054_v17 = vpop.f32.mrb[251].mxu1  ;;  %12377 = vmatmul.mubr.msk.f32.gmra.mrb[100].mxu1 %vm1639_vm2, %v5119_v10  ;;  %v5125_v6 = vld [vmem:[#allocation2 + $0xa2] sm:$0xff] }
 0x364   : > { %12317 = vmatprep.mubr.msk.f32.mxu0 %vm13326_vm0, %v16692_v63  ;;  %12379 = vmatprep.mubr.msk.f32.mxu1 %vm13326_vm0, %v16692_v63  ;;  %v4887_v7 = vld [vmem:[#allocation2 + $0x88] sm:$0xff] }
 0x365   : > { %v15293_v22 = vadd.f32 %v3849_v3, %v3681_v45 }
 0x366   : > { %v3618_v33 = vpop.f32.mrb[246].mxu0  ;;  %v3869_v38 = vpop.f32.mrb[252].mxu1 }
 0x367   : > { %v3682_v53 = vadd.f32 %v3618_v33, %v15141_v41  ;;  %v11995_v5 = vpop.f32.mrb[247].mxu0  ;;  %12318 = vmatmul.mubr.msk.f32.gmra.mrb[96].mxu0 %vm1639_vm2, %v4881_v13  ;;  %v12057_v21 = vpop.f32.mrb[253].mxu1  ;;  %12380 = vmatmul.mubr.msk.f32.gmra.mrb[102].mxu1 %vm1639_vm2, %v5120_v8  ;;  %v5126_v33 = vld [vmem:[#allocation2 + $0xaa] sm:$0xff] }
 0x368   : > { %12320 = vmatprep.mubr.msk.f32.mxu0 %vm13326_vm0, %v16692_v63  ;;  %12382 = vmatprep.mubr.msk.f32.mxu1 %vm13326_vm0, %v16692_v63  ;;  %v4888_v5 = vld [vmem:[#allocation2 + $0x90] sm:$0xff] }
 0x369   : > { %v15302_v28 = vadd.f32 %v3854_v39, %v3682_v53 }
 0x36a   : > { %v3623_v48 = vpop.f32.mrb[248].mxu0  ;;  %v3874_v27 = vpop.f32.mrb[254].mxu1 }
 0x36b   : > { %v3683_v41 = vadd.f32 %v3623_v48, %v15150_v49  ;;  %v11998_v19 = vpop.f32.mrb[249].mxu0  ;;  %12321 = vmatmul.mubr.msk.f32.gmra.mrb[98].mxu0 %vm1639_vm2, %v4882_v61  ;;  %v12060_v16 = vpop.f32.mrb[255].mxu1  ;;  %12383 = vmatmul.mubr.msk.f32.gmra.mrb[104].mxu1 %vm1639_vm2, %v5121_v1  ;;  %v5582_v48 = vld [vmem:[#allocation2 + $0x2c] sm:$0xff] }
 0x36c   : > { %12323 = vmatprep.mubr.msk.f32.mxu0 %vm13326_vm0, %v16692_v63  ;;  %12385 = vmatprep.mubr.msk.f32.mxu1 %vm13326_vm0, %v16692_v63  ;;  %v4889_v16 = vld [vmem:[#allocation2 + $0x98] sm:$0xff] }
 0x36d   : > { %v15311_v30 = vadd.f32 %v3859_v43, %v3683_v41 }
 0x36e   : > { %v3628_v4 = vpop.f32.mrb[250].mxu0  ;;  %v3879_v55 = vpop.f32.mrb[0].mxu1 }
 0x36f   : > { %v3684_v49 = vadd.f32 %v3628_v4, %v15159_v9  ;;  %v12001_v60 = vpop.f32.mrb[251].mxu0  ;;  %12324 = vmatmul.mubr.msk.f32.gmra.mrb[100].mxu0 %vm1639_vm2, %v4883_v18  ;;  %v12063_v3 = vpop.f32.mrb[1].mxu1  ;;  %12386 = vmatmul.mubr.msk.f32.gmra.mrb[106].mxu1 %vm1639_vm2, %v5122_v46  ;;  %v5583_v18 = vld [vmem:[#allocation2 + $0x34] sm:$0xff] }
 0x370   : > { %12326 = vmatprep.mubr.msk.f32.mxu0 %vm13326_vm0, %v16692_v63  ;;  %12388 = vmatprep.mubr.msk.f32.mxu1 %vm13326_vm0, %v16692_v63  ;;  %v4890_v3 = vld [vmem:[#allocation2 + $0xa0] sm:$0xff] }
 0x371   : > { %v15320_v20 = vadd.f32 %v3864_v29, %v3684_v49 }
 0x372   : > { %v3633_v50 = vpop.f32.mrb[252].mxu0  ;;  %v3884_v62 = vpop.f32.mrb[2].mxu1 }
 0x373   : > { %v3685_v9 = vadd.f32 %v3633_v50, %v15168_v36  ;;  %v12004_v32 = vpop.f32.mrb[253].mxu0  ;;  %12327 = vmatmul.mubr.msk.f32.gmra.mrb[102].mxu0 %vm1639_vm2, %v4884_v12  ;;  %v12066_v39 = vpop.f32.mrb[3].mxu1  ;;  %12389 = vmatmul.mubr.msk.f32.gmra.mrb[108].mxu1 %vm1639_vm2, %v5123_v37  ;;  %v5584_v12 = vld [vmem:[#allocation2 + $0x3c] sm:$0xff] }
 0x374   : > { %12329 = vmatprep.mubr.msk.f32.mxu0 %vm13326_vm0, %v16692_v63  ;;  %12391 = vmatprep.mubr.msk.f32.mxu1 %vm13326_vm0, %v16692_v63 }
 0x375   : > { %v15329_v24 = vadd.f32 %v3869_v38, %v3685_v9  ;;  %v5835_v9 = vld [vmem:[%s16679_s2 + $0x90] sm:$0xff] }
 0x376   : > { %v3638_v44 = vpop.f32.mrb[254].mxu0  ;;  %v3889_v42 = vpop.f32.mrb[4].mxu1 }
 0x377   : > { %v3686_v36 = vadd.f32 %v3638_v44, %v15177_v59  ;;  %v12007_v57 = vpop.f32.mrb[255].mxu0  ;;  %12330 = vmatmul.mubr.msk.f32.gmra.mrb[104].mxu0 %vm1639_vm2, %v4885_v0  ;;  %v12069_v43 = vpop.f32.mrb[5].mxu1  ;;  %12392 = vmatmul.mubr.msk.f32.gmra.mrb[110].mxu1 %vm1639_vm2, %v5124_v15  ;;  %v5585_v0 = vld [vmem:[#allocation2 + $0x44] sm:$0xff] }
 0x378   : > { %12332 = vmatprep.mubr.msk.f32.mxu0 %vm13326_vm0, %v16692_v63  ;;  %12394 = vmatprep.mubr.msk.f32.mxu1 %vm13326_vm0, %v16692_v63 }
 0x379   : > { %v15338_v31 = vadd.f32 %v3874_v27, %v3686_v36 }
 0x37a   : > { %v3643_v11 = vpop.f32.mrb[0].mxu0  ;;  %v3894_v54 = vpop.f32.mrb[6].mxu1 }
 0x37b   : > { %v3687_v59 = vadd.f32 %v3643_v11, %v15186_v23  ;;  %v12010_v51 = vpop.f32.mrb[1].mxu0  ;;  %12333 = vmatmul.mubr.msk.f32.gmra.mrb[106].mxu0 %vm1639_vm2, %v4886_v40  ;;  %v12072_v29 = vpop.f32.mrb[7].mxu1  ;;  %12395 = vmatmul.mubr.msk.f32.gmra.mrb[112].mxu1 %vm1639_vm2, %v5125_v6  ;;  %v5347_v11 = vld [vmem:[#allocation2 + $0x33] sm:$0xff] }
 0x37c   : > { %12335 = vmatprep.mubr.msk.f32.mxu0 %vm13326_vm0, %v16692_v63  ;;  %12397 = vmatprep.mubr.msk.f32.mxu1 %vm13326_vm0, %v16692_v63  ;;  %v5586_v40 = vld [vmem:[#allocation2 + $0x4c] sm:$0xff] }
 0x37d   : > { %v15347_v10 = vadd.f32 %v3879_v55, %v3687_v59 }
 0x37e   : > { %v3648_v45 = vpop.f32.mrb[2].mxu0  ;;  %v3899_v17 = vpop.f32.mrb[8].mxu1 }
 0x37f   : > { %v3688_v23 = vadd.f32 %v3648_v45, %v15195_v52  ;;  %v12013_v13 = vpop.f32.mrb[3].mxu0  ;;  %12336 = vmatmul.mubr.msk.f32.gmra.mrb[108].mxu0 %vm1639_vm2, %v4887_v7  ;;  %v12075_v38 = vpop.f32.mrb[9].mxu1  ;;  %12398 = vmatmul.mubr.msk.f32.gmra.mrb[114].mxu1 %vm1639_vm2, %v5126_v33  ;;  %v6071_v52 = vld [vmem:[%s16679_s2 + $0x98] sm:$0xff] }
 0x380   : > { %12338 = vmatprep.mubr.msk.f32.mxu0 %vm13326_vm0, %v16692_v63  ;;  %12455 = vmatprep.mubr.msk.f32.mxu1 %vm13326_vm0, %v16692_v63  ;;  %v5348_v45 = vld [vmem:[#allocation2 + $0x3b] sm:$0xff] }
 0x381   : > { %v15356_v8 = vadd.f32 %v3884_v62, %v3688_v23 }
 0x382   : > { %v3653_v53 = vpop.f32.mrb[4].mxu0  ;;  %v3904_v21 = vpop.f32.mrb[10].mxu1 }
 0x383   : > { %v3689_v61 = vadd.f32 %v3653_v53, %v15207_v47  ;;  %v12016_v27 = vpop.f32.mrb[5].mxu0  ;;  %12339 = vmatmul.mubr.msk.f32.gmra.mrb[110].mxu0 %vm1639_vm2, %v4888_v5  ;;  %v12078_v1 = vpop.f32.mrb[11].mxu1  ;;  %12456 = vmatmul.mubr.msk.f32.vlgmr.msra.gmra.mrb[116].mxu1 %vm1639_vm2, %v5582_v48  ;;  %v5349_v53 = vld [vmem:[#allocation2 + $0x43] sm:$0xff] }
 0x384   : > { %12341 = vmatprep.mubr.msk.f32.mxu0 %vm13326_vm0, %v16692_v63  ;;  %12458 = vmatprep.mubr.msk.f32.mxu1 %vm13326_vm0, %v16692_v63  ;;  %v5350_v1 = vld [vmem:[#allocation2 + $0x4b] sm:$0xff] }
 0x385   : > { %v15368_v41 = vadd.f32 %v3889_v42, %v3689_v61  ;;  %12560 = vmatpush3.msra.mxu1 %v6071_v52 }
 0x386   : > { %v3658_v19 = vpop.f32.mrb[6].mxu0  ;;  %v3909_v4 = vpop.f32.mrb[12].mxu1  ;;  %12665 = vmatprep.subr.mxu1 %v16692_v63 }
 0x387   : > { %v3690_v47 = vadd.f32 %v3658_v19, %v15217_v34  ;;  %v12019_v55 = vpop.f32.mrb[7].mxu0  ;;  %12342 = vmatmul.mubr.msk.f32.gmra.mrb[112].mxu0 %vm1639_vm2, %v4889_v16  ;;  %v12081_v46 = vpop.f32.mrb[13].mxu1  ;;  %12459 = vmatmul.mubr.msk.f32.gmra.mrb[118].mxu1 %vm1639_vm2, %v5583_v18  ;;  %v5589_v16 = vld [vmem:[#allocation2 + $0x64] sm:$0xff] }
 0x388   : > { %12344 = vmatprep.mubr.msk.f32.mxu0 %vm13326_vm0, %v16692_v63  ;;  %12461 = vmatprep.mubr.msk.f32.mxu1 %vm13326_vm0, %v16692_v63  ;;  %v5351_v46 = vld [vmem:[#allocation2 + $0x53] sm:$0xff] }
 0x389   : > { %v15378_v49 = vadd.f32 %v3894_v54, %v3690_v47 }
 0x38a   : > { %v3663_v60 = vpop.f32.mrb[8].mxu0  ;;  %v4301_v50 = vpop.f32.mrb[14].mxu1 }
 0x38b   : > { %v3691_v34 = vadd.f32 %v3663_v60, %v15229_v14  ;;  %v12022_v62 = vpop.f32.mrb[9].mxu0  ;;  %12345 = vmatmul.mubr.msk.f32.gmra.mrb[114].mxu0 %vm1639_vm2, %v4890_v3  ;;  %v12139_v37 = vpop.f32.mrb[15].mxu1  ;;  %12462 = vmatmul.mubr.msk.f32.gmra.mrb[120].mxu1 %vm1639_vm2, %v5584_v12  ;;  %v5346_v14 = vld [vmem:[#allocation2 + $0x2b] sm:$0xff] }
 0x38c   : > { %12402 = vmatprep.mubr.msk.f32.mxu0 %vm13326_vm0, %v16692_v63  ;;  %12464 = vmatprep.mubr.msk.f32.mxu1 %vm13326_vm0, %v16692_v63  ;;  %v5590_v3 = vld [vmem:[#allocation2 + $0x6c] sm:$0xff]  ;;  %v5352_v37 = vld [vmem:[#allocation2 + $0x5b] sm:$0xff] }
 0x38d   : > { %v15390_v32 = vadd.f32 %v3899_v17, %v3691_v34  ;;  %v5587_v17 = vld [vmem:[#allocation2 + $0x54] sm:$0xff] }
 0x38e   : > { %v3668_v39 = vpop.f32.mrb[10].mxu0  ;;  %v4306_v44 = vpop.f32.mrb[16].mxu1 }
 0x38f   : > { %v3692_v42 = vadd.f32 %v3668_v39, %v15238_v35  ;;  %v12025_v15 = vpop.f32.mrb[11].mxu0  ;;  %12403 = vmatmul.mubr.msk.f32.vlgmr.msra.gmra.mrb[116].mxu0 %vm1639_vm2, %v5346_v14  ;;  %v12142_v36 = vpop.f32.mrb[17].mxu1  ;;  %12465 = vmatmul.mubr.msk.f32.gmra.mrb[122].mxu1 %vm1639_vm2, %v5585_v0  ;;  %v5591_v39 = vld [vmem:[#allocation2 + $0x74] sm:$0xff] }
 0x390   : > { %12507 = vmatpush3.msra.mxu0 %v5835_v9  ;;  %12405 = vmatprep.mubr.msk.f32.mxu0 %vm13326_vm0, %v16692_v63  ;;  %v5353_v15 = vld [vmem:[#allocation2 + $0x63] sm:$0xff] }
 0x391   : > { %12467 = vmatprep.mubr.msk.f32.mxu1 %vm13326_vm0, %v16692_v63  ;;  %v15399_v57 = vadd.f32 %v3904_v21, %v3692_v42  ;;  %12612 = vmatprep.subr.mxu0 %v16692_v63  ;;  %v5588_v21 = vld [vmem:[#allocation2 + $0x5c] sm:$0xff] }
 0x392   : > { %v3673_v43 = vpop.f32.mrb[12].mxu0  ;;  %v4311_v35 = vpop.f32.mrb[18].mxu1 }
 0x393   : > { %v3693_v54 = vadd.f32 %v3673_v43, %v15248_v56  ;;  %v12028_v6 = vpop.f32.mrb[13].mxu0  ;;  %12406 = vmatmul.mubr.msk.f32.gmra.mrb[118].mxu0 %vm1639_vm2, %v5347_v11  ;;  %v12145_v59 = vpop.f32.mrb[19].mxu1  ;;  %12468 = vmatmul.mubr.msk.f32.gmra.mrb[124].mxu1 %vm1639_vm2, %v5586_v40  ;;  %v5592_v43 = vld [vmem:[#allocation2 + $0x7c] sm:$0xff] }
 0x394   : > { %12408 = vmatprep.mubr.msk.f32.mxu0 %vm13326_vm0, %v16692_v63  ;;  %12470 = vmatprep.mubr.msk.f32.mxu1 %vm13326_vm0, %v16692_v63  ;;  %v5354_v6 = vld [vmem:[#allocation2 + $0x6b] sm:$0xff] }
 0x395   : > { %v15409_v51 = vadd.f32 %v3909_v4, %v3693_v54 }
 0x396   : > { %v4065_v29 = vpop.f32.mrb[14].mxu0  ;;  %v4316_v7 = vpop.f32.mrb[20].mxu1 }
 0x397   : > { %v4149_v56 = vadd.f32 %v4065_v29, %v15257_v26  ;;  %v12086_v33 = vpop.f32.mrb[15].mxu0  ;;  %12409 = vmatmul.mubr.msk.f32.gmra.mrb[120].mxu0 %vm1639_vm2, %v5348_v45  ;;  %v12148_v23 = vpop.f32.mrb[21].mxu1  ;;  %12471 = vmatmul.mubr.msk.f32.gmra.mrb[126].mxu1 %vm1639_vm2, %v5587_v17  ;;  %v5593_v29 = vld [vmem:[#allocation2 + $0x84] sm:$0xff] }
 0x398   : > { %12411 = vmatprep.mubr.msk.f32.mxu0 %vm13326_vm0, %v16692_v63  ;;  %12473 = vmatprep.mubr.msk.f32.mxu1 %vm13326_vm0, %v16692_v63  ;;  %v5355_v33 = vld [vmem:[#allocation2 + $0x73] sm:$0xff] }
 0x399   : > { %v15418_v13 = vadd.f32 %v4301_v50, %v4149_v56 }
 0x39a   : > { %v4070_v38 = vpop.f32.mrb[16].mxu0  ;;  %v4321_v5 = vpop.f32.mrb[22].mxu1 }
 0x39b   : > { %v4150_v26 = vadd.f32 %v4070_v38, %v15266_v58  ;;  %v12089_v48 = vpop.f32.mrb[17].mxu0  ;;  %12412 = vmatmul.mubr.msk.f32.gmra.mrb[122].mxu0 %vm1639_vm2, %v5349_v53  ;;  %v12151_v52 = vpop.f32.mrb[23].mxu1  ;;  %12474 = vmatmul.mubr.msk.f32.gmra.mrb[128].mxu1 %vm1639_vm2, %v5588_v21  ;;  %v5594_v38 = vld [vmem:[#allocation2 + $0x8c] sm:$0xff] }
 0x39c   : > { %12414 = vmatprep.mubr.msk.f32.mxu0 %vm13326_vm0, %v16692_v63  ;;  %12476 = vmatprep.mubr.msk.f32.mxu1 %vm13326_vm0, %v16692_v63  ;;  %v5356_v48 = vld [vmem:[#allocation2 + $0x7b] sm:$0xff] }
 0x39d   : > { %v15427_v61 = vadd.f32 %v4306_v44, %v4150_v26 }
 0x39e   : > { %v4075_v27 = vpop.f32.mrb[18].mxu0  ;;  %v4326_v19 = vpop.f32.mrb[24].mxu1 }
 0x39f   : > { %v4151_v58 = vadd.f32 %v4075_v27, %v15275_v2  ;;  %v12092_v4 = vpop.f32.mrb[19].mxu0  ;;  %12415 = vmatmul.mubr.msk.f32.gmra.mrb[124].mxu0 %vm1639_vm2, %v5350_v1  ;;  %v12154_v18 = vpop.f32.mrb[25].mxu1  ;;  %12477 = vmatmul.mubr.msk.f32.gmra.mrb[130].mxu1 %vm1639_vm2, %v5589_v16  ;;  %v5595_v27 = vld [vmem:[#allocation2 + $0x94] sm:$0xff] }
 0x3a0   : > { %12417 = vmatprep.mubr.msk.f32.mxu0 %vm13326_vm0, %v16692_v63  ;;  %12479 = vmatprep.mubr.msk.f32.mxu1 %vm13326_vm0, %v16692_v63  ;;  %v5357_v4 = vld [vmem:[#allocation2 + $0x83] sm:$0xff] }
 0x3a1   : > { %v15436_v47 = vadd.f32 %v4311_v35, %v4151_v58 }
 0x3a2   : > { %v4080_v55 = vpop.f32.mrb[20].mxu0  ;;  %v4331_v60 = vpop.f32.mrb[26].mxu1 }
 0x3a3   : > { %v4152_v2 = vadd.f32 %v4080_v55, %v15284_v25  ;;  %v12095_v50 = vpop.f32.mrb[21].mxu0  ;;  %12418 = vmatmul.mubr.msk.f32.gmra.mrb[126].mxu0 %vm1639_vm2, %v5351_v46  ;;  %v12157_v12 = vpop.f32.mrb[27].mxu1  ;;  %12480 = vmatmul.mubr.msk.f32.gmra.mrb[132].mxu1 %vm1639_vm2, %v5590_v3  ;;  %v5596_v55 = vld [vmem:[#allocation2 + $0x9c] sm:$0xff] }
 0x3a4   : > { %12420 = vmatprep.mubr.msk.f32.mxu0 %vm13326_vm0, %v16692_v63  ;;  %12482 = vmatprep.mubr.msk.f32.mxu1 %vm13326_vm0, %v16692_v63  ;;  %v5358_v50 = vld [vmem:[#allocation2 + $0x8b] sm:$0xff] }
 0x3a5   : > { %v15445_v34 = vadd.f32 %v4316_v7, %v4152_v2 }
 0x3a6   : > { %v4085_v62 = vpop.f32.mrb[22].mxu0  ;;  %v4336_v9 = vpop.f32.mrb[28].mxu1 }
 0x3a7   : > { %v4153_v25 = vadd.f32 %v4085_v62, %v15293_v22  ;;  %v12098_v14 = vpop.f32.mrb[23].mxu0  ;;  %12421 = vmatmul.mubr.msk.f32.gmra.mrb[128].mxu0 %vm1639_vm2, %v5352_v37  ;;  %v12160_v44 = vpop.f32.mrb[29].mxu1  ;;  %12483 = vmatmul.mubr.msk.f32.gmra.mrb[134].mxu1 %vm1639_vm2, %v5591_v39  ;;  %v5597_v62 = vld [vmem:[#allocation2 + $0xa4] sm:$0xff] }
 0x3a8   : > { %12423 = vmatprep.mubr.msk.f32.mxu0 %vm13326_vm0, %v16692_v63  ;;  %12485 = vmatprep.mubr.msk.f32.mxu1 %vm13326_vm0, %v16692_v63  ;;  %v5359_v14 = vld [vmem:[#allocation2 + $0x93] sm:$0xff] }
 0x3a9   : > { %v15454_v0 = vadd.f32 %v4321_v5, %v4153_v25 }
 0x3aa   : > { %v4090_v42 = vpop.f32.mrb[24].mxu0  ;;  %v4341_v36 = vpop.f32.mrb[30].mxu1 }
 0x3ab   : > { %v4154_v22 = vadd.f32 %v4090_v42, %v15302_v28  ;;  %v12101_v11 = vpop.f32.mrb[25].mxu0  ;;  %12424 = vmatmul.mubr.msk.f32.gmra.mrb[130].mxu0 %vm1639_vm2, %v5353_v15  ;;  %v12163_v35 = vpop.f32.mrb[31].mxu1  ;;  %12486 = vmatmul.mubr.msk.f32.gmra.mrb[136].mxu1 %vm1639_vm2, %v5592_v43  ;;  %v5598_v42 = vld [vmem:[#allocation2 + $0xac] sm:$0xff] }
 0x3ac   : > { %12426 = vmatprep.mubr.msk.f32.mxu0 %vm13326_vm0, %v16692_v63  ;;  %12488 = vmatprep.mubr.msk.f32.mxu1 %vm13326_vm0, %v16692_v63  ;;  %v5360_v11 = vld [vmem:[#allocation2 + $0x9b] sm:$0xff] }
 0x3ad   : > { %v15463_v40 = vadd.f32 %v4326_v19, %v4154_v22 }
 0x3ae   : > { %v4095_v54 = vpop.f32.mrb[26].mxu0  ;;  %v4346_v59 = vpop.f32.mrb[32].mxu1 }
 0x3af   : > { %v4155_v28 = vadd.f32 %v4095_v54, %v15311_v30  ;;  %v12104_v45 = vpop.f32.mrb[27].mxu0  ;;  %12427 = vmatmul.mubr.msk.f32.gmra.mrb[132].mxu0 %vm1639_vm2, %v5354_v6  ;;  %v12166_v7 = vpop.f32.mrb[33].mxu1  ;;  %12489 = vmatmul.mubr.msk.f32.gmra.mrb[138].mxu1 %vm1639_vm2, %v5593_v29  ;;  %v6054_v54 = vld [vmem:[#allocation2 + $0x2e] sm:$0xff] }
 0x3b0   : > { %12429 = vmatprep.mubr.msk.f32.mxu0 %vm13326_vm0, %v16692_v63  ;;  %12491 = vmatprep.mubr.msk.f32.mxu1 %vm13326_vm0, %v16692_v63  ;;  %v5361_v7 = vld [vmem:[#allocation2 + $0xa3] sm:$0xff] }
 0x3b1   : > { %v15472_v17 = vadd.f32 %v4331_v60, %v4155_v28 }
 0x3b2   : > { %v4100_v56 = vpop.f32.mrb[28].mxu0  ;;  %v4351_v23 = vpop.f32.mrb[34].mxu1 }
 0x3b3   : > { %v4156_v30 = vadd.f32 %v4100_v56, %v15320_v20  ;;  %v12107_v53 = vpop.f32.mrb[29].mxu0  ;;  %12430 = vmatmul.mubr.msk.f32.gmra.mrb[134].mxu0 %vm1639_vm2, %v5355_v33  ;;  %v12169_v5 = vpop.f32.mrb[35].mxu1  ;;  %12492 = vmatmul.mubr.msk.f32.gmra.mrb[140].mxu1 %vm1639_vm2, %v5594_v38  ;;  %v6055_v33 = vld [vmem:[#allocation2 + $0x36] sm:$0xff] }
 0x3b4   : > { %12432 = vmatprep.mubr.msk.f32.mxu0 %vm13326_vm0, %v16692_v63  ;;  %12494 = vmatprep.mubr.msk.f32.mxu1 %vm13326_vm0, %v16692_v63  ;;  %v5362_v5 = vld [vmem:[#allocation2 + $0xab] sm:$0xff] }
 0x3b5   : > { %v15481_v21 = vadd.f32 %v4336_v9, %v4156_v30 }
 0x3b6   : > { %v4105_v26 = vpop.f32.mrb[30].mxu0  ;;  %v4356_v52 = vpop.f32.mrb[36].mxu1 }
 0x3b7   : > { %v4157_v20 = vadd.f32 %v4105_v26, %v15329_v24  ;;  %v12110_v1 = vpop.f32.mrb[31].mxu0  ;;  %12433 = vmatmul.mubr.msk.f32.gmra.mrb[136].mxu0 %vm1639_vm2, %v5356_v48  ;;  %v12172_v19 = vpop.f32.mrb[37].mxu1  ;;  %12495 = vmatmul.mubr.msk.f32.gmra.mrb[142].mxu1 %vm1639_vm2, %v5595_v27  ;;  %v6056_v48 = vld [vmem:[#allocation2 + $0x3e] sm:$0xff] }
 0x3b8   : > { %12435 = vmatprep.mubr.msk.f32.mxu0 %vm13326_vm0, %v16692_v63  ;;  %12497 = vmatprep.mubr.msk.f32.mxu1 %vm13326_vm0, %v16692_v63 }
 0x3b9   : > { %v15490_v16 = vadd.f32 %v4341_v36, %v4157_v20  ;;  %v6307_v20 = vld [vmem:[%s16679_s2 + $0xa0] sm:$0xff] }
 0x3ba   : > { %v4110_v58 = vpop.f32.mrb[32].mxu0  ;;  %v4361_v18 = vpop.f32.mrb[38].mxu1 }
 0x3bb   : > { %v4158_v24 = vadd.f32 %v4110_v58, %v15338_v31  ;;  %v12113_v46 = vpop.f32.mrb[33].mxu0  ;;  %12436 = vmatmul.mubr.msk.f32.gmra.mrb[138].mxu0 %vm1639_vm2, %v5357_v4  ;;  %v12175_v60 = vpop.f32.mrb[39].mxu1  ;;  %12498 = vmatmul.mubr.msk.f32.gmra.mrb[144].mxu1 %vm1639_vm2, %v5596_v55  ;;  %v6057_v4 = vld [vmem:[#allocation2 + $0x46] sm:$0xff] }
 0x3bc   : > { %12438 = vmatprep.mubr.msk.f32.mxu0 %vm13326_vm0, %v16692_v63  ;;  %12500 = vmatprep.mubr.msk.f32.mxu1 %vm13326_vm0, %v16692_v63 }
 0x3bd   : > { %v15499_v3 = vadd.f32 %v4346_v59, %v4158_v24 }
 0x3be   : > { %v4115_v2 = vpop.f32.mrb[34].mxu0  ;;  %v4366_v12 = vpop.f32.mrb[40].mxu1 }
 0x3bf   : > { %v4159_v31 = vadd.f32 %v4115_v2, %v15347_v10  ;;  %v12116_v37 = vpop.f32.mrb[35].mxu0  ;;  %12439 = vmatmul.mubr.msk.f32.gmra.mrb[140].mxu0 %vm1639_vm2, %v5358_v50  ;;  %v12178_v9 = vpop.f32.mrb[41].mxu1  ;;  %12501 = vmatmul.mubr.msk.f32.gmra.mrb[146].mxu1 %vm1639_vm2, %v5597_v62  ;;  %v5819_v2 = vld [vmem:[#allocation2 + $0x35] sm:$0xff] }
 0x3c0   : > { %12441 = vmatprep.mubr.msk.f32.mxu0 %vm13326_vm0, %v16692_v63  ;;  %12503 = vmatprep.mubr.msk.f32.mxu1 %vm13326_vm0, %v16692_v63  ;;  %v6058_v50 = vld [vmem:[#allocation2 + $0x4e] sm:$0xff] }
 0x3c1   : > { %v15508_v39 = vadd.f32 %v4351_v23, %v4159_v31 }
 0x3c2   : > { %v4120_v25 = vpop.f32.mrb[36].mxu0  ;;  %v4371_v44 = vpop.f32.mrb[42].mxu1 }
 0x3c3   : > { %v4160_v10 = vadd.f32 %v4120_v25, %v15356_v8  ;;  %v12119_v15 = vpop.f32.mrb[37].mxu0  ;;  %12442 = vmatmul.mubr.msk.f32.gmra.mrb[142].mxu0 %vm1639_vm2, %v5359_v14  ;;  %v12181_v36 = vpop.f32.mrb[43].mxu1  ;;  %12504 = vmatmul.mubr.msk.f32.gmra.mrb[148].mxu1 %vm1639_vm2, %v5598_v42  ;;  %v6543_v8 = vld [vmem:[%s16679_s2 + $0xa8] sm:$0xff]  ;;  %v5820_v25 = vld [vmem:[#allocation2 + $0x3d] sm:$0xff] }
 0x3c4   : > { %12444 = vmatprep.mubr.msk.f32.mxu0 %vm13326_vm0, %v16692_v63  ;;  %12561 = vmatprep.mubr.msk.f32.mxu1 %vm13326_vm0, %v16692_v63 }
 0x3c5   : > { %v15517_v43 = vadd.f32 %v4356_v52, %v4160_v10 }
 0x3c6   : > { %v4125_v22 = vpop.f32.mrb[38].mxu0  ;;  %v4376_v35 = vpop.f32.mrb[44].mxu1 }
 0x3c7   : > { %v4161_v6 = vadd.f32 %v4125_v22, %v15368_v41  ;;  %v12122_v59 = vpop.f32.mrb[39].mxu0  ;;  %12445 = vmatmul.mubr.msk.f32.gmra.mrb[144].mxu0 %vm1639_vm2, %v5360_v11  ;;  %v12184_v29 = vpop.f32.mrb[45].mxu1  ;;  %12562 = vmatmul.mubr.msk.f32.vlgmr.msra.gmra.mrb[150].mxu1 %vm1639_vm2, %v6054_v54  ;;  %v5821_v22 = vld [vmem:[#allocation2 + $0x45] sm:$0xff] }
 0x3c8   : > { %12447 = vmatprep.mubr.msk.f32.mxu0 %vm13326_vm0, %v16692_v63  ;;  %12564 = vmatprep.mubr.msk.f32.mxu1 %vm13326_vm0, %v16692_v63  ;;  %v5822_v29 = vld [vmem:[#allocation2 + $0x4d] sm:$0xff] }
 0x3c9   : > { %v15529_v28 = vadd.f32 %v4361_v18, %v4161_v6  ;;  %12666 = vmatpush3.msra.mxu1 %v6543_v8 }
 0x3ca   : > { %v4130_v45 = vpop.f32.mrb[40].mxu0  ;;  %v4381_v56 = vpop.f32.mrb[46].mxu1  ;;  %12771 = vmatprep.subr.mxu1 %v16692_v63 }
 0x3cb   : > { %v4162_v41 = vadd.f32 %v4130_v45, %v15378_v49  ;;  %v12125_v23 = vpop.f32.mrb[41].mxu0  ;;  %12448 = vmatmul.mubr.msk.f32.gmra.mrb[146].mxu0 %vm1639_vm2, %v5361_v7  ;;  %v12187_v38 = vpop.f32.mrb[47].mxu1  ;;  %12565 = vmatmul.mubr.msk.f32.gmra.mrb[152].mxu1 %vm1639_vm2, %v6055_v33  ;;  %v6061_v7 = vld [vmem:[#allocation2 + $0x66] sm:$0xff] }
 0x3cc   : > { %12450 = vmatprep.mubr.msk.f32.mxu0 %vm13326_vm0, %v16692_v63  ;;  %12567 = vmatprep.mubr.msk.f32.mxu1 %vm13326_vm0, %v16692_v63  ;;  %v5823_v38 = vld [vmem:[#allocation2 + $0x55] sm:$0xff] }
 0x3cd   : > { %v15539_v30 = vadd.f32 %v4366_v12, %v4162_v41 }
 0x3ce   : > { %v4135_v53 = vpop.f32.mrb[42].mxu0  ;;  %v4773_v26 = vpop.f32.mrb[48].mxu1 }
 0x3cf   : > { %v4163_v49 = vadd.f32 %v4135_v53, %v15390_v32  ;;  %v12128_v52 = vpop.f32.mrb[43].mxu0  ;;  %12451 = vmatmul.mubr.msk.f32.gmra.mrb[148].mxu0 %vm1639_vm2, %v5362_v5  ;;  %v12245_v27 = vpop.f32.mrb[49].mxu1  ;;  %12568 = vmatmul.mubr.msk.f32.gmra.mrb[154].mxu1 %vm1639_vm2, %v6056_v48  ;;  %v5818_v32 = vld [vmem:[#allocation2 + $0x2d] sm:$0xff] }
 0x3d0   : > { %12508 = vmatprep.mubr.msk.f32.mxu0 %vm13326_vm0, %v16692_v63  ;;  %12570 = vmatprep.mubr.msk.f32.mxu1 %vm13326_vm0, %v16692_v63  ;;  %v6062_v5 = vld [vmem:[#allocation2 + $0x6e] sm:$0xff]  ;;  %v5824_v27 = vld [vmem:[#allocation2 + $0x5d] sm:$0xff] }
 0x3d1   : > { %v15551_v1 = vadd.f32 %v4371_v44, %v4163_v49  ;;  %v6059_v44 = vld [vmem:[#allocation2 + $0x56] sm:$0xff] }
 0x3d2   : > { %v4140_v19 = vpop.f32.mrb[44].mxu0  ;;  %v4778_v58 = vpop.f32.mrb[50].mxu1 }
 0x3d3   : > { %v4164_v18 = vadd.f32 %v4140_v19, %v15399_v57  ;;  %v12131_v55 = vpop.f32.mrb[45].mxu0  ;;  %12509 = vmatmul.mubr.msk.f32.vlgmr.msra.gmra.mrb[150].mxu0 %vm1639_vm2, %v5818_v32  ;;  %v12248_v24 = vpop.f32.mrb[51].mxu1  ;;  %12571 = vmatmul.mubr.msk.f32.gmra.mrb[156].mxu1 %vm1639_vm2, %v6057_v4  ;;  %v6063_v19 = vld [vmem:[#allocation2 + $0x76] sm:$0xff] }
 0x3d4   : > { %12613 = vmatpush3.msra.mxu0 %v6307_v20  ;;  %12511 = vmatprep.mubr.msk.f32.mxu0 %vm13326_vm0, %v16692_v63  ;;  %v5825_v55 = vld [vmem:[#allocation2 + $0x65] sm:$0xff] }
 0x3d5   : > { %12573 = vmatprep.mubr.msk.f32.mxu1 %vm13326_vm0, %v16692_v63  ;;  %v15560_v46 = vadd.f32 %v4376_v35, %v4164_v18  ;;  %12718 = vmatprep.subr.mxu0 %v16692_v63  ;;  %v6060_v35 = vld [vmem:[#allocation2 + $0x5e] sm:$0xff] }
 0x3d6   : > { %v4145_v60 = vpop.f32.mrb[46].mxu0  ;;  %v4783_v57 = vpop.f32.mrb[52].mxu1 }
 0x3d7   : > { %v4165_v12 = vadd.f32 %v4145_v60, %v15409_v51  ;;  %v12134_v62 = vpop.f32.mrb[47].mxu0  ;;  %12512 = vmatmul.mubr.msk.f32.gmra.mrb[152].mxu0 %vm1639_vm2, %v5819_v2  ;;  %v12251_v31 = vpop.f32.mrb[53].mxu1  ;;  %12574 = vmatmul.mubr.msk.f32.gmra.mrb[158].mxu1 %vm1639_vm2, %v6058_v50  ;;  %v6064_v60 = vld [vmem:[#allocation2 + $0x7e] sm:$0xff] }
 0x3d8   : > { %12514 = vmatprep.mubr.msk.f32.mxu0 %vm13326_vm0, %v16692_v63  ;;  %12576 = vmatprep.mubr.msk.f32.mxu1 %vm13326_vm0, %v16692_v63  ;;  %v5826_v62 = vld [vmem:[#allocation2 + $0x6d] sm:$0xff] }
 0x3d9   : > { %v15570_v37 = vadd.f32 %v4381_v56, %v4165_v12 }
 0x3da   : > { %v4537_v9 = vpop.f32.mrb[48].mxu0  ;;  %v4788_v14 = vpop.f32.mrb[54].mxu1 }
 0x3db   : > { %v4621_v51 = vadd.f32 %v4537_v9, %v15418_v13  ;;  %v12192_v42 = vpop.f32.mrb[49].mxu0  ;;  %12515 = vmatmul.mubr.msk.f32.gmra.mrb[154].mxu0 %vm1639_vm2, %v5820_v25  ;;  %v12254_v10 = vpop.f32.mrb[55].mxu1  ;;  %12577 = vmatmul.mubr.msk.f32.gmra.mrb[160].mxu1 %vm1639_vm2, %v6059_v44  ;;  %v6065_v9 = vld [vmem:[#allocation2 + $0x86] sm:$0xff] }
 0x3dc   : > { %12517 = vmatprep.mubr.msk.f32.mxu0 %vm13326_vm0, %v16692_v63  ;;  %12579 = vmatprep.mubr.msk.f32.mxu1 %vm13326_vm0, %v16692_v63  ;;  %v5827_v42 = vld [vmem:[#allocation2 + $0x75] sm:$0xff] }
 0x3dd   : > { %v15579_v15 = vadd.f32 %v4773_v26, %v4621_v51 }
 0x3de   : > { %v4542_v36 = vpop.f32.mrb[50].mxu0  ;;  %v4793_v11 = vpop.f32.mrb[56].mxu1 }
 0x3df   : > { %v4622_v13 = vadd.f32 %v4542_v36, %v15427_v61  ;;  %v12195_v54 = vpop.f32.mrb[51].mxu0  ;;  %12518 = vmatmul.mubr.msk.f32.gmra.mrb[156].mxu0 %vm1639_vm2, %v5821_v22  ;;  %v12257_v8 = vpop.f32.mrb[57].mxu1  ;;  %12580 = vmatmul.mubr.msk.f32.gmra.mrb[162].mxu1 %vm1639_vm2, %v6060_v35  ;;  %v6066_v36 = vld [vmem:[#allocation2 + $0x8e] sm:$0xff] }
 0x3e0   : > { %12520 = vmatprep.mubr.msk.f32.mxu0 %vm13326_vm0, %v16692_v63  ;;  %12582 = vmatprep.mubr.msk.f32.mxu1 %vm13326_vm0, %v16692_v63  ;;  %v5828_v54 = vld [vmem:[#allocation2 + $0x7d] sm:$0xff] }
 0x3e1   : > { %v15588_v6 = vadd.f32 %v4778_v58, %v4622_v13 }
 0x3e2   : > { %v4547_v59 = vpop.f32.mrb[52].mxu0  ;;  %v4798_v45 = vpop.f32.mrb[58].mxu1 }
 0x3e3   : > { %v4623_v61 = vadd.f32 %v4547_v59, %v15436_v47  ;;  %v12198_v56 = vpop.f32.mrb[53].mxu0  ;;  %12521 = vmatmul.mubr.msk.f32.gmra.mrb[158].mxu0 %vm1639_vm2, %v5822_v29  ;;  %v12260_v33 = vpop.f32.mrb[59].mxu1  ;;  %12583 = vmatmul.mubr.msk.f32.gmra.mrb[164].mxu1 %vm1639_vm2, %v6061_v7  ;;  %v6067_v59 = vld [vmem:[#allocation2 + $0x96] sm:$0xff] }
 0x3e4   : > { %12523 = vmatprep.mubr.msk.f32.mxu0 %vm13326_vm0, %v16692_v63  ;;  %12585 = vmatprep.mubr.msk.f32.mxu1 %vm13326_vm0, %v16692_v63  ;;  %v5829_v56 = vld [vmem:[#allocation2 + $0x85] sm:$0xff] }
 0x3e5   : > { %v15597_v41 = vadd.f32 %v4783_v57, %v4623_v61 }
 0x3e6   : > { %v4552_v23 = vpop.f32.mrb[54].mxu0  ;;  %v4803_v53 = vpop.f32.mrb[60].mxu1 }
 0x3e7   : > { %v4624_v47 = vadd.f32 %v4552_v23, %v15445_v34  ;;  %v12201_v26 = vpop.f32.mrb[55].mxu0  ;;  %12524 = vmatmul.mubr.msk.f32.gmra.mrb[160].mxu0 %vm1639_vm2, %v5823_v38  ;;  %v12263_v48 = vpop.f32.mrb[61].mxu1  ;;  %12586 = vmatmul.mubr.msk.f32.gmra.mrb[166].mxu1 %vm1639_vm2, %v6062_v5  ;;  %v6068_v23 = vld [vmem:[#allocation2 + $0x9e] sm:$0xff] }
 0x3e8   : > { %12526 = vmatprep.mubr.msk.f32.mxu0 %vm13326_vm0, %v16692_v63  ;;  %12588 = vmatprep.mubr.msk.f32.mxu1 %vm13326_vm0, %v16692_v63  ;;  %v5830_v26 = vld [vmem:[#allocation2 + $0x8d] sm:$0xff] }
 0x3e9   : > { %v15606_v49 = vadd.f32 %v4788_v14, %v4624_v47 }
 0x3ea   : > { %v4557_v52 = vpop.f32.mrb[56].mxu0  ;;  %v4808_v20 = vpop.f32.mrb[62].mxu1 }
 0x3eb   : > { %v4625_v34 = vadd.f32 %v4557_v52, %v15454_v0  ;;  %v12204_v32 = vpop.f32.mrb[57].mxu0  ;;  %12527 = vmatmul.mubr.msk.f32.gmra.mrb[162].mxu0 %vm1639_vm2, %v5824_v27  ;;  %v12266_v58 = vpop.f32.mrb[63].mxu1  ;;  %12589 = vmatmul.mubr.msk.f32.gmra.mrb[168].mxu1 %vm1639_vm2, %v6063_v19  ;;  %v6069_v52 = vld [vmem:[#allocation2 + $0xa6] sm:$0xff] }
 0x3ec   : > { %12529 = vmatprep.mubr.msk.f32.mxu0 %vm13326_vm0, %v16692_v63  ;;  %12591 = vmatprep.mubr.msk.f32.mxu1 %vm13326_vm0, %v16692_v63  ;;  %v5831_v32 = vld [vmem:[#allocation2 + $0x95] sm:$0xff] }
 0x3ed   : > { %v15615_v4 = vadd.f32 %v4793_v11, %v4625_v34 }
 0x3ee   : > { %v4562_v18 = vpop.f32.mrb[58].mxu0  ;;  %v4813_v24 = vpop.f32.mrb[64].mxu1 }
 0x3ef   : > { %v4626_v0 = vadd.f32 %v4562_v18, %v15463_v40  ;;  %v12207_v2 = vpop.f32.mrb[59].mxu0  ;;  %12530 = vmatmul.mubr.msk.f32.gmra.mrb[164].mxu0 %vm1639_vm2, %v5825_v55  ;;  %v12269_v57 = vpop.f32.mrb[65].mxu1  ;;  %12592 = vmatmul.mubr.msk.f32.gmra.mrb[170].mxu1 %vm1639_vm2, %v6064_v60  ;;  %v6070_v18 = vld [vmem:[#allocation2 + $0xae] sm:$0xff] }
 0x3f0   : > { %12532 = vmatprep.mubr.msk.f32.mxu0 %vm13326_vm0, %v16692_v63  ;;  %12594 = vmatprep.mubr.msk.f32.mxu1 %vm13326_vm0, %v16692_v63  ;;  %v5832_v2 = vld [vmem:[#allocation2 + $0x9d] sm:$0xff] }
 0x3f1   : > { %v15624_v50 = vadd.f32 %v4798_v45, %v4626_v0 }
 0x3f2   : > { %v4567_v12 = vpop.f32.mrb[60].mxu0  ;;  %v4818_v31 = vpop.f32.mrb[66].mxu1 }
 0x3f3   : > { %v4627_v40 = vadd.f32 %v4567_v12, %v15472_v17  ;;  %v12210_v25 = vpop.f32.mrb[61].mxu0  ;;  %12533 = vmatmul.mubr.msk.f32.gmra.mrb[166].mxu0 %vm1639_vm2, %v5826_v62  ;;  %v12272_v14 = vpop.f32.mrb[67].mxu1  ;;  %12595 = vmatmul.mubr.msk.f32.gmra.mrb[172].mxu1 %vm1639_vm2, %v6065_v9  ;;  %v6526_v12 = vld [vmem:[#allocation2 + $0x39] sm:$0xff] }
 0x3f4   : > { %12535 = vmatprep.mubr.msk.f32.mxu0 %vm13326_vm0, %v16692_v63  ;;  %12597 = vmatprep.mubr.msk.f32.mxu1 %vm13326_vm0, %v16692_v63  ;;  %v5833_v14 = vld [vmem:[#allocation2 + $0xa5] sm:$0xff] }
 0x3f5   : > { %v15633_v44 = vadd.f32 %v4803_v53, %v4627_v40 }
 0x3f6   : > { %v4572_v51 = vpop.f32.mrb[62].mxu0  ;;  %v4823_v10 = vpop.f32.mrb[68].mxu1 }
 0x3f7   : > { %v4628_v17 = vadd.f32 %v4572_v51, %v15481_v21  ;;  %v12213_v22 = vpop.f32.mrb[63].mxu0  ;;  %12536 = vmatmul.mubr.msk.f32.gmra.mrb[168].mxu0 %vm1639_vm2, %v5827_v42  ;;  %v12275_v11 = vpop.f32.mrb[69].mxu1  ;;  %12598 = vmatmul.mubr.msk.f32.gmra.mrb[174].mxu1 %vm1639_vm2, %v6066_v36  ;;  %v6527_v42 = vld [vmem:[#allocation2 + $0x41] sm:$0xff] }
 0x3f8   : > { %12538 = vmatprep.mubr.msk.f32.mxu0 %vm13326_vm0, %v16692_v63  ;;  %12600 = vmatprep.mubr.msk.f32.mxu1 %vm13326_vm0, %v16692_v63 }
 0x3f9   : > { %v15642_v35 = vadd.f32 %v4808_v20, %v4628_v17 }
 0x3fa   : > { %v4577_v13 = vpop.f32.mrb[64].mxu0  ;;  %v4828_v8 = vpop.f32.mrb[70].mxu1 }
 0x3fb   : > { %v4629_v21 = vadd.f32 %v4577_v13, %v15490_v16  ;;  %v12216_v29 = vpop.f32.mrb[65].mxu0  ;;  %12539 = vmatmul.mubr.msk.f32.gmra.mrb[170].mxu0 %vm1639_vm2, %v5828_v54  ;;  %v12278_v45 = vpop.f32.mrb[71].mxu1  ;;  %12601 = vmatmul.mubr.msk.f32.gmra.mrb[176].mxu1 %vm1639_vm2, %v6067_v59  ;;  %v5834_v13 = vld [vmem:[#allocation2 + $0xad] sm:$0xff] }
 0x3fc   : > { %12541 = vmatprep.mubr.msk.f32.mxu0 %vm13326_vm0, %v16692_v63  ;;  %12603 = vmatprep.mubr.msk.f32.mxu1 %vm13326_vm0, %v16692_v63  ;;  %v6779_v29 = vld [vmem:[%s16679_s2 + $0xb0] sm:$0xff] }
 0x3fd   : > { %v15651_v7 = vadd.f32 %v4813_v24, %v4629_v21 }
 0x3fe   : > { %v4582_v61 = vpop.f32.mrb[66].mxu0  ;;  %v4833_v33 = vpop.f32.mrb[72].mxu1 }
 0x3ff   : > { %v4630_v16 = vadd.f32 %v4582_v61, %v15499_v3  ;;  %v12219_v38 = vpop.f32.mrb[67].mxu0  ;;  %12542 = vmatmul.mubr.msk.f32.gmra.mrb[172].mxu0 %vm1639_vm2, %v5829_v56  ;;  %v12281_v53 = vpop.f32.mrb[73].mxu1  ;;  %12604 = vmatmul.mubr.msk.f32.gmra.mrb[178].mxu1 %vm1639_vm2, %v6068_v23 }
 0x400   : > { %12544 = vmatprep.mubr.msk.f32.mxu0 %vm13326_vm0, %v16692_v63  ;;  %12606 = vmatprep.mubr.msk.f32.mxu1 %vm13326_vm0, %v16692_v63 }
 0x401   : > { %v15660_v5 = vadd.f32 %v4818_v31, %v4630_v16 }
 0x402   : > { %v4587_v47 = vpop.f32.mrb[68].mxu0  ;;  %v4838_v48 = vpop.f32.mrb[74].mxu1 }
 0x403   : > { %v4631_v3 = vadd.f32 %v4587_v47, %v15508_v39  ;;  %v12222_v27 = vpop.f32.mrb[69].mxu0  ;;  %12545 = vmatmul.mubr.msk.f32.gmra.mrb[174].mxu0 %vm1639_vm2, %v5830_v26  ;;  %v12284_v20 = vpop.f32.mrb[75].mxu1  ;;  %12607 = vmatmul.mubr.msk.f32.gmra.mrb[180].mxu1 %vm1639_vm2, %v6069_v52  ;;  %v6291_v26 = vld [vmem:[#allocation2 + $0x40] sm:$0xff] }
 0x404   : > { %12547 = vmatprep.mubr.msk.f32.mxu0 %vm13326_vm0, %v16692_v63  ;;  %12609 = vmatprep.mubr.msk.f32.mxu1 %vm13326_vm0, %v16692_v63 }
 0x405   : > { %v15669_v19 = vadd.f32 %v4823_v10, %v4631_v3 }
 0x406   : > { %v4592_v34 = vpop.f32.mrb[70].mxu0  ;;  %v4843_v58 = vpop.f32.mrb[76].mxu1 }
 0x407   : > { %v4632_v39 = vadd.f32 %v4592_v34, %v15517_v43  ;;  %v12225_v55 = vpop.f32.mrb[71].mxu0  ;;  %12548 = vmatmul.mubr.msk.f32.gmra.mrb[176].mxu0 %vm1639_vm2, %v5831_v32  ;;  %v12287_v24 = vpop.f32.mrb[77].mxu1  ;;  %12610 = vmatmul.mubr.msk.f32.gmra.mrb[182].mxu1 %vm1639_vm2, %v6070_v18  ;;  %v7015_v43 = vld [vmem:[%s16679_s2 + $0xb8] sm:$0xff]  ;;  %v6292_v32 = vld [vmem:[#allocation2 + $0x48] sm:$0xff] }
 0x408   : > { %12550 = vmatprep.mubr.msk.f32.mxu0 %vm13326_vm0, %v16692_v63  ;;  %12667 = vmatprep.mubr.msk.f32.mxu1 %vm13326_vm0, %v16692_v63  ;;  %v6531_v18 = vld [vmem:[#allocation2 + $0x61] sm:$0xff] }
 0x409   : > { %v15678_v60 = vadd.f32 %v4828_v8, %v4632_v39  ;;  %v6528_v8 = vld [vmem:[#allocation2 + $0x49] sm:$0xff] }
 0x40a   : > { %v4597_v0 = vpop.f32.mrb[72].mxu0  ;;  %v4848_v57 = vpop.f32.mrb[78].mxu1 }
 0x40b   : > { %v4633_v62 = vadd.f32 %v4597_v0, %v15529_v28  ;;  %v12228_v31 = vpop.f32.mrb[73].mxu0  ;;  %12551 = vmatmul.mubr.msk.f32.gmra.mrb[178].mxu0 %vm1639_vm2, %v5832_v2  ;;  %v12290_v9 = vpop.f32.mrb[79].mxu1  ;;  %12668 = vmatmul.mubr.msk.f32.vlgmr.msra.gmra.mrb[184].mxu1 %vm1639_vm2, %v6526_v12  ;;  %v16716_v28 = vmov 0.0|0.0   ;;  %v6293_v2 = vld [vmem:[#allocation2 + $0x50] sm:$0xff] }
 0x40c   : > { %12553 = vmatprep.mubr.msk.f32.mxu0 %vm13326_vm0, %v16692_v63  ;;  %12670 = vmatprep.mubr.msk.f32.mxu1 %vm13326_vm0, %v16692_v63  ;;  %v6532_v12 = vld [vmem:[#allocation2 + $0x69] sm:$0xff] }
 0x40d   : > { %v15690_v40 = vadd.f32 %v4833_v33, %v4633_v62  ;;  %12772 = vmatpush3.msra.mxu1 %v7015_v43  ;;  %v6529_v33 = vld [vmem:[#allocation2 + $0x51] sm:$0xff] }
 0x40e   : > { %v4602_v25 = vpop.f32.mrb[74].mxu0  ;;  %v4853_v51 = vpop.f32.mrb[80].mxu1  ;;  %13182 = vmatprep.subr.bf16.mxu1 %v16716_v28 }
 0x40f   : > { %v4634_v10 = vadd.f32 %v4602_v25, %v15539_v30  ;;  %v12231_v36 = vpop.f32.mrb[75].mxu0  ;;  %12554 = vmatmul.mubr.msk.f32.gmra.mrb[180].mxu0 %vm1639_vm2, %v5833_v14  ;;  %v12293_v17 = vpop.f32.mrb[81].mxu1  ;;  %12671 = vmatmul.mubr.msk.f32.gmra.mrb[186].mxu1 %vm1639_vm2, %v6527_v42  ;;  %v6294_v25 = vld [vmem:[#allocation2 + $0x58] sm:$0xff] }
 0x410   : > { %12556 = vmatprep.mubr.msk.f32.mxu0 %vm13326_vm0, %v16692_v63  ;;  %12673 = vmatprep.mubr.msk.f32.mxu1 %vm13326_vm0, %v16692_v63 }
 0x411   : > { %v15700_v22 = vadd.f32 %v4838_v48, %v4634_v10  ;;  %v6530_v48 = vld [vmem:[#allocation2 + $0x59] sm:$0xff] }
 0x412   : > { %v4607_v11 = vpop.f32.mrb[76].mxu0  ;;  %v5245_v54 = vpop.f32.mrb[82].mxu1 }
 0x413   : > { %v4635_v30 = vadd.f32 %v4607_v11, %v15551_v1  ;;  %v12234_v59 = vpop.f32.mrb[77].mxu0  ;;  %12557 = vmatmul.mubr.msk.f32.gmra.mrb[182].mxu0 %vm1639_vm2, %v5834_v13  ;;  %v12351_v21 = vpop.f32.mrb[83].mxu1  ;;  %12674 = vmatmul.mubr.msk.f32.gmra.mrb[188].mxu1 %vm1639_vm2, %v6528_v8  ;;  %v6290_v1 = vld [vmem:[#allocation2 + $0x38] sm:$0xff]  ;;  %v6295_v11 = vld [vmem:[#allocation2 + $0x60] sm:$0xff] }
 0x414   : > { %12614 = vmatprep.mubr.msk.f32.mxu0 %vm13326_vm0, %v16692_v63  ;;  %12676 = vmatprep.mubr.msk.f32.mxu1 %vm13326_vm0, %v16692_v63 }
 0x415   : > { %v15712_v45 = vadd.f32 %v4843_v58, %v4635_v30 }
 0x416   : > { %v4612_v61 = vpop.f32.mrb[78].mxu0  ;;  %v5250_v56 = vpop.f32.mrb[84].mxu1 }
 0x417   : > { %v4636_v23 = vadd.f32 %v4612_v61, %v15560_v46  ;;  %v12237_v16 = vpop.f32.mrb[79].mxu0  ;;  %12615 = vmatmul.mubr.msk.f32.vlgmr.msra.gmra.mrb[184].mxu0 %vm1639_vm2, %v6290_v1  ;;  %v12354_v38 = vpop.f32.mrb[85].mxu1  ;;  %12677 = vmatmul.mubr.msk.f32.gmra.mrb[190].mxu1 %vm1639_vm2, %v6529_v33  ;;  %v6535_v1 = vld [vmem:[#allocation2 + $0x81] sm:$0xff] }
 0x418   : > { %12719 = vmatpush3.msra.mxu0 %v6779_v29  ;;  %12617 = vmatprep.mubr.msk.f32.mxu0 %vm13326_vm0, %v16692_v63  ;;  %v6296_v29 = vld [vmem:[#allocation2 + $0x68] sm:$0xff]  ;;  %v6297_v38 = vld [vmem:[#allocation2 + $0x70] sm:$0xff] }
 0x419   : > { %12679 = vmatprep.mubr.msk.f32.mxu1 %vm13326_vm0, %v16692_v63  ;;  %v15721_v53 = vadd.f32 %v4848_v57, %v4636_v23  ;;  %12824 = vmatprep.subr.mxu0 %v16692_v63 }
 0x41a   : > { %v4617_v47 = vpop.f32.mrb[80].mxu0  ;;  %v5255_v46 = vpop.f32.mrb[86].mxu1 }
 0x41b   : > { %v4637_v52 = vadd.f32 %v4617_v47, %v15570_v37  ;;  %v12240_v3 = vpop.f32.mrb[81].mxu0  ;;  %12618 = vmatmul.mubr.msk.f32.gmra.mrb[186].mxu0 %vm1639_vm2, %v6291_v26  ;;  %v12357_v27 = vpop.f32.mrb[87].mxu1  ;;  %12680 = vmatmul.mubr.msk.f32.gmra.mrb[192].mxu1 %vm1639_vm2, %v6530_v48  ;;  %v6536_v26 = vld [vmem:[#allocation2 + $0x89] sm:$0xff] }
 0x41c   : > { %12620 = vmatprep.mubr.msk.f32.mxu0 %vm13326_vm0, %v16692_v63  ;;  %12682 = vmatprep.mubr.msk.f32.mxu1 %vm13326_vm0, %v16692_v63  ;;  %v6298_v27 = vld [vmem:[#allocation2 + $0x78] sm:$0xff] }
 0x41d   : > { %v15731_v20 = vadd.f32 %v4853_v51, %v4637_v52  ;;  %v6533_v51 = vld [vmem:[#allocation2 + $0x71] sm:$0xff] }
 0x41e   : > { %v5009_v34 = vpop.f32.mrb[82].mxu0  ;;  %v5260_v58 = vpop.f32.mrb[88].mxu1 }
 0x41f   : > { %v5093_v37 = vadd.f32 %v5009_v34, %v15579_v15  ;;  %v12298_v39 = vpop.f32.mrb[83].mxu0  ;;  %12621 = vmatmul.mubr.msk.f32.gmra.mrb[188].mxu0 %vm1639_vm2, %v6292_v32  ;;  %v12360_v55 = vpop.f32.mrb[89].mxu1  ;;  %12683 = vmatmul.mubr.msk.f32.gmra.mrb[194].mxu1 %vm1639_vm2, %v6531_v18  ;;  %v6537_v32 = vld [vmem:[#allocation2 + $0x91] sm:$0xff] }
 0x420   : > { %12623 = vmatprep.mubr.msk.f32.mxu0 %vm13326_vm0, %v16692_v63  ;;  %12685 = vmatprep.mubr.msk.f32.mxu1 %vm13326_vm0, %v16692_v63  ;;  %v6299_v55 = vld [vmem:[#allocation2 + $0x80] sm:$0xff] }
 0x421   : > { %v15740_v24 = vadd.f32 %v5245_v54, %v5093_v37  ;;  %v6534_v54 = vld [vmem:[#allocation2 + $0x79] sm:$0xff] }
 0x422   : > { %v5014_v0 = vpop.f32.mrb[84].mxu0  ;;  %v5265_v57 = vpop.f32.mrb[90].mxu1 }
 0x423   : > { %v5094_v15 = vadd.f32 %v5014_v0, %v15588_v6  ;;  %v12301_v43 = vpop.f32.mrb[85].mxu0  ;;  %12624 = vmatmul.mubr.msk.f32.gmra.mrb[190].mxu0 %vm1639_vm2, %v6293_v2  ;;  %v12363_v62 = vpop.f32.mrb[91].mxu1  ;;  %12686 = vmatmul.mubr.msk.f32.gmra.mrb[196].mxu1 %vm1639_vm2, %v6532_v12  ;;  %v6538_v2 = vld [vmem:[#allocation2 + $0x99] sm:$0xff] }
 0x424   : > { %12626 = vmatprep.mubr.msk.f32.mxu0 %vm13326_vm0, %v16692_v63  ;;  %12688 = vmatprep.mubr.msk.f32.mxu1 %vm13326_vm0, %v16692_v63  ;;  %v6300_v62 = vld [vmem:[#allocation2 + $0x88] sm:$0xff] }
 0x425   : > { %v15749_v31 = vadd.f32 %v5250_v56, %v5094_v15 }
 0x426   : > { %v5019_v9 = vpop.f32.mrb[86].mxu0  ;;  %v5270_v14 = vpop.f32.mrb[92].mxu1 }
 0x427   : > { %v5095_v6 = vadd.f32 %v5019_v9, %v15597_v41  ;;  %v12304_v42 = vpop.f32.mrb[87].mxu0  ;;  %12627 = vmatmul.mubr.msk.f32.gmra.mrb[192].mxu0 %vm1639_vm2, %v6294_v25  ;;  %v12366_v10 = vpop.f32.mrb[93].mxu1  ;;  %12689 = vmatmul.mubr.msk.f32.gmra.mrb[198].mxu1 %vm1639_vm2, %v6533_v51  ;;  %v6539_v25 = vld [vmem:[#allocation2 + $0xa1] sm:$0xff] }
 0x428   : > { %12629 = vmatprep.mubr.msk.f32.mxu0 %vm13326_vm0, %v16692_v63  ;;  %12691 = vmatprep.mubr.msk.f32.mxu1 %vm13326_vm0, %v16692_v63  ;;  %v6301_v10 = vld [vmem:[#allocation2 + $0x90] sm:$0xff] }
 0x429   : > { %v15758_v36 = vadd.f32 %v5255_v46, %v5095_v6 }
 0x42a   : > { %v5024_v17 = vpop.f32.mrb[88].mxu0  ;;  %v5275_v13 = vpop.f32.mrb[94].mxu1 }
 0x42b   : > { %v5096_v41 = vadd.f32 %v5024_v17, %v15606_v49  ;;  %v12307_v8 = vpop.f32.mrb[89].mxu0  ;;  %12630 = vmatmul.mubr.msk.f32.gmra.mrb[194].mxu0 %vm1639_vm2, %v6295_v11  ;;  %v12369_v30 = vpop.f32.mrb[95].mxu1  ;;  %12692 = vmatmul.mubr.msk.f32.gmra.mrb[200].mxu1 %vm1639_vm2, %v6534_v54  ;;  %v6540_v11 = vld [vmem:[#allocation2 + $0xa9] sm:$0xff] }
 0x42c   : > { %12632 = vmatprep.mubr.msk.f32.mxu0 %vm13326_vm0, %v16692_v63  ;;  %12694 = vmatprep.mubr.msk.f32.mxu1 %vm13326_vm0, %v16692_v63  ;;  %v6302_v30 = vld [vmem:[#allocation2 + $0x98] sm:$0xff] }
 0x42d   : > { %v15767_v59 = vadd.f32 %v5260_v58, %v5096_v41 }
 0x42e   : > { %v5029_v21 = vpop.f32.mrb[90].mxu0  ;;  %v5280_v61 = vpop.f32.mrb[96].mxu1 }
 0x42f   : > { %v5097_v49 = vadd.f32 %v5029_v21, %v15615_v4  ;;  %v12310_v56 = vpop.f32.mrb[91].mxu0  ;;  %12633 = vmatmul.mubr.msk.f32.gmra.mrb[196].mxu0 %vm1639_vm2, %v6296_v29  ;;  %v12372_v33 = vpop.f32.mrb[97].mxu1  ;;  %12695 = vmatmul.mubr.msk.f32.gmra.mrb[202].mxu1 %vm1639_vm2, %v6535_v1  ;;  %v6541_v29 = vld [vmem:[#allocation2 + $0xb1] sm:$0xff] }
 0x430   : > { %12635 = vmatprep.mubr.msk.f32.mxu0 %vm13326_vm0, %v16692_v63  ;;  %12697 = vmatprep.mubr.msk.f32.mxu1 %vm13326_vm0, %v16692_v63  ;;  %v6303_v33 = vld [vmem:[#allocation2 + $0xa0] sm:$0xff] }
 0x431   : > { %v15776_v23 = vadd.f32 %v5265_v57, %v5097_v49 }
 0x432   : > { %v5034_v16 = vpop.f32.mrb[92].mxu0  ;;  %v5285_v47 = vpop.f32.mrb[98].mxu1 }
 0x433   : > { %v5098_v4 = vadd.f32 %v5034_v16, %v15624_v50  ;;  %v12313_v46 = vpop.f32.mrb[93].mxu0  ;;  %12636 = vmatmul.mubr.msk.f32.gmra.mrb[198].mxu0 %vm1639_vm2, %v6297_v38  ;;  %v12375_v48 = vpop.f32.mrb[99].mxu1  ;;  %12698 = vmatmul.mubr.msk.f32.gmra.mrb[204].mxu1 %vm1639_vm2, %v6536_v26  ;;  %v6542_v38 = vld [vmem:[#allocation2 + $0xb9] sm:$0xff] }
 0x434   : > { %12638 = vmatprep.mubr.msk.f32.mxu0 %vm13326_vm0, %v16692_v63  ;;  %12700 = vmatprep.mubr.msk.f32.mxu1 %vm13326_vm0, %v16692_v63  ;;  %v6304_v48 = vld [vmem:[#allocation2 + $0xa8] sm:$0xff] }
 0x435   : > { %v15785_v52 = vadd.f32 %v5270_v14, %v5098_v4 }
 0x436   : > { %v5039_v3 = vpop.f32.mrb[94].mxu0  ;;  %v5290_v34 = vpop.f32.mrb[100].mxu1 }
 0x437   : > { %v5099_v50 = vadd.f32 %v5039_v3, %v15633_v44  ;;  %v12316_v58 = vpop.f32.mrb[95].mxu0  ;;  %12639 = vmatmul.mubr.msk.f32.gmra.mrb[200].mxu0 %vm1639_vm2, %v6298_v27  ;;  %v12378_v18 = vpop.f32.mrb[101].mxu1  ;;  %12701 = vmatmul.mubr.msk.f32.gmra.mrb[206].mxu1 %vm1639_vm2, %v6537_v32  ;;  %v6998_v27 = vld [vmem:[#allocation2 + $0x3b] sm:$0xff] }
 0x438   : > { %12641 = vmatprep.mubr.msk.f32.mxu0 %vm13326_vm0, %v16692_v63  ;;  %12703 = vmatprep.mubr.msk.f32.mxu1 %vm13326_vm0, %v16692_v63  ;;  %v6305_v18 = vld [vmem:[#allocation2 + $0xb0] sm:$0xff] }
 0x439   : > { %v15794_v37 = vadd.f32 %v5275_v13, %v5099_v50 }
 0x43a   : > { %v5044_v39 = vpop.f32.mrb[96].mxu0  ;;  %v5295_v0 = vpop.f32.mrb[102].mxu1 }
 0x43b   : > { %v5100_v44 = vadd.f32 %v5044_v39, %v15642_v35  ;;  %v12319_v57 = vpop.f32.mrb[97].mxu0  ;;  %12642 = vmatmul.mubr.msk.f32.gmra.mrb[202].mxu0 %vm1639_vm2, %v6299_v55  ;;  %v12381_v12 = vpop.f32.mrb[103].mxu1  ;;  %12704 = vmatmul.mubr.msk.f32.gmra.mrb[208].mxu1 %vm1639_vm2, %v6538_v2  ;;  %v6999_v55 = vld [vmem:[#allocation2 + $0x43] sm:$0xff] }
 0x43c   : > { %12644 = vmatprep.mubr.msk.f32.mxu0 %vm13326_vm0, %v16692_v63  ;;  %12706 = vmatprep.mubr.msk.f32.mxu1 %vm13326_vm0, %v16692_v63  ;;  %v6306_v12 = vld [vmem:[#allocation2 + $0xb8] sm:$0xff] }
 0x43d   : > { %v15803_v15 = vadd.f32 %v5280_v61, %v5100_v44 }
 0x43e   : > { %v5049_v43 = vpop.f32.mrb[98].mxu0  ;;  %v5300_v9 = vpop.f32.mrb[104].mxu1 }
 0x43f   : > { %v5101_v35 = vadd.f32 %v5049_v43, %v15651_v7  ;;  %v12322_v14 = vpop.f32.mrb[99].mxu0  ;;  %12645 = vmatmul.mubr.msk.f32.gmra.mrb[204].mxu0 %vm1639_vm2, %v6300_v62  ;;  %v12384_v51 = vpop.f32.mrb[105].mxu1  ;;  %12707 = vmatmul.mubr.msk.f32.gmra.mrb[210].mxu1 %vm1639_vm2, %v6539_v25  ;;  %v7000_v62 = vld [vmem:[#allocation2 + $0x4b] sm:$0xff] }
 0x440   : > { %12647 = vmatprep.mubr.msk.f32.mxu0 %vm13326_vm0, %v16692_v63  ;;  %12709 = vmatprep.mubr.msk.f32.mxu1 %vm13326_vm0, %v16692_v63 }
 0x441   : > { %v15812_v6 = vadd.f32 %v5285_v47, %v5101_v35  ;;  %v7251_v35 = vld [vmem:[%s16679_s2 + $0xc0] sm:$0xff] }
 0x442   : > { %v5054_v42 = vpop.f32.mrb[100].mxu0  ;;  %v5305_v17 = vpop.f32.mrb[106].mxu1 }
 0x443   : > { %v5102_v7 = vadd.f32 %v5054_v42, %v15660_v5  ;;  %v12325_v13 = vpop.f32.mrb[101].mxu0  ;;  %12648 = vmatmul.mubr.msk.f32.gmra.mrb[206].mxu0 %vm1639_vm2, %v6301_v10  ;;  %v12387_v54 = vpop.f32.mrb[107].mxu1  ;;  %12710 = vmatmul.mubr.msk.f32.gmra.mrb[212].mxu1 %vm1639_vm2, %v6540_v11  ;;  %v7001_v10 = vld [vmem:[#allocation2 + $0x53] sm:$0xff] }
 0x444   : > { %12650 = vmatprep.mubr.msk.f32.mxu0 %vm13326_vm0, %v16692_v63  ;;  %12712 = vmatprep.mubr.msk.f32.mxu1 %vm13326_vm0, %v16692_v63 }
 0x445   : > { %v15821_v41 = vadd.f32 %v5290_v34, %v5102_v7 }
 0x446   : > { %v5059_v8 = vpop.f32.mrb[102].mxu0  ;;  %v5310_v21 = vpop.f32.mrb[108].mxu1 }
 0x447   : > { %v5103_v5 = vadd.f32 %v5059_v8, %v15669_v19  ;;  %v12328_v61 = vpop.f32.mrb[103].mxu0  ;;  %12651 = vmatmul.mubr.msk.f32.gmra.mrb[208].mxu0 %vm1639_vm2, %v6302_v30  ;;  %v12390_v1 = vpop.f32.mrb[109].mxu1  ;;  %12713 = vmatmul.mubr.msk.f32.gmra.mrb[214].mxu1 %vm1639_vm2, %v6541_v29  ;;  %v6763_v8 = vld [vmem:[#allocation2 + $0x42] sm:$0xff] }
 0x448   : > { %12653 = vmatprep.mubr.msk.f32.mxu0 %vm13326_vm0, %v16692_v63  ;;  %12715 = vmatprep.mubr.msk.f32.mxu1 %vm13326_vm0, %v16692_v63  ;;  %v7002_v30 = vld [vmem:[#allocation2 + $0x5b] sm:$0xff] }
 0x449   : > { %v15830_v49 = vadd.f32 %v5295_v0, %v5103_v5 }
 0x44a   : > { %v5064_v56 = vpop.f32.mrb[104].mxu0  ;;  %v5315_v16 = vpop.f32.mrb[110].mxu1 }
 0x44b   : > { %v5104_v19 = vadd.f32 %v5064_v56, %v15678_v60  ;;  %v12331_v47 = vpop.f32.mrb[105].mxu0  ;;  %12654 = vmatmul.mubr.msk.f32.gmra.mrb[210].mxu0 %vm1639_vm2, %v6303_v33  ;;  %v12393_v26 = vpop.f32.mrb[111].mxu1  ;;  %12716 = vmatmul.mubr.msk.f32.gmra.mrb[216].mxu1 %vm1639_vm2, %v6542_v38  ;;  %v6764_v56 = vld [vmem:[#allocation2 + $0x4a] sm:$0xff] }
 0x44c   : > { %12656 = vmatprep.mubr.msk.f32.mxu0 %vm13326_vm0, %v16692_v63  ;;  %12773 = vmatprep.mubr.msk.f32.mxu1 %vm13326_vm0, %v16692_v63 }
 0x44d   : > { %v15839_v4 = vadd.f32 %v5300_v9, %v5104_v19 }
 0x44e   : > { %v5069_v46 = vpop.f32.mrb[106].mxu0  ;;  %v5320_v3 = vpop.f32.mrb[112].mxu1 }
 0x44f   : > { %v5105_v60 = vadd.f32 %v5069_v46, %v15690_v40  ;;  %v12334_v34 = vpop.f32.mrb[107].mxu0  ;;  %12657 = vmatmul.mubr.msk.f32.gmra.mrb[212].mxu0 %vm1639_vm2, %v6304_v48  ;;  %v12396_v32 = vpop.f32.mrb[113].mxu1  ;;  %12774 = vmatmul.mubr.msk.f32.vlgmr.msra.gmra.mrb[218].mxu1 %vm1639_vm2, %v6998_v27  ;;  %v6765_v46 = vld [vmem:[#allocation2 + $0x52] sm:$0xff] }
 0x450   : > { %12659 = vmatprep.mubr.msk.f32.mxu0 %vm13326_vm0, %v16692_v63  ;;  %12776 = vmatprep.mubr.msk.f32.mxu1 %vm13326_vm0, %v16692_v63 }
 0x451   : > { %v15848_v50 = vadd.f32 %v5305_v17, %v5105_v60 }
 0x452   : > { %v5074_v58 = vpop.f32.mrb[108].mxu0  ;;  %v5325_v39 = vpop.f32.mrb[114].mxu1 }
 0x453   : > { %v5106_v40 = vadd.f32 %v5074_v58, %v15700_v22  ;;  %v12337_v0 = vpop.f32.mrb[109].mxu0  ;;  %12660 = vmatmul.mubr.msk.f32.gmra.mrb[214].mxu0 %vm1639_vm2, %v6305_v18  ;;  %v12399_v2 = vpop.f32.mrb[115].mxu1  ;;  %12777 = vmatmul.mubr.msk.f32.gmra.mrb[220].mxu1 %vm1639_vm2, %v6999_v55  ;;  %v6766_v58 = vld [vmem:[#allocation2 + $0x5a] sm:$0xff] }
 0x454   : > { %12662 = vmatprep.mubr.msk.f32.mxu0 %vm13326_vm0, %v16692_v63  ;;  %12779 = vmatprep.mubr.msk.f32.mxu1 %vm13326_vm0, %v16692_v63 }
 0x455   : > { %v15857_v44 = vadd.f32 %v5310_v21, %v5106_v40 }
 0x456   : > { %v5079_v57 = vpop.f32.mrb[110].mxu0  ;;  %v5717_v43 = vpop.f32.mrb[116].mxu1 }
 0x457   : > { %v5107_v22 = vadd.f32 %v5079_v57, %v15712_v45  ;;  %v12340_v9 = vpop.f32.mrb[111].mxu0  ;;  %12663 = vmatmul.mubr.msk.f32.gmra.mrb[216].mxu0 %vm1639_vm2, %v6306_v12  ;;  %v12457_v25 = vpop.f32.mrb[117].mxu1  ;;  %12780 = vmatmul.mubr.msk.f32.gmra.mrb[222].mxu1 %vm1639_vm2, %v7000_v62  ;;  %v6762_v45 = vld [vmem:[#allocation2 + $0x3a] sm:$0xff]  ;;  %v6767_v57 = vld [vmem:[#allocation2 + $0x62] sm:$0xff] }
 0x458   : > { %12720 = vmatprep.mubr.msk.f32.mxu0 %vm13326_vm0, %v16692_v63  ;;  %12782 = vmatprep.mubr.msk.f32.mxu1 %vm13326_vm0, %v16692_v63 }
 0x459   : > { %v15869_v14 = vadd.f32 %v5315_v16, %v5107_v22  ;;  %v7003_v16 = vld [vmem:[#allocation2 + $0x63] sm:$0xff] }
 0x45a   : > { %v5084_v51 = vpop.f32.mrb[112].mxu0  ;;  %v5722_v42 = vpop.f32.mrb[118].mxu1 }
 0x45b   : > { %v5108_v17 = vadd.f32 %v5084_v51, %v15721_v53  ;;  %v12343_v11 = vpop.f32.mrb[113].mxu0  ;;  %12721 = vmatmul.mubr.msk.f32.vlgmr.msra.gmra.mrb[218].mxu0 %vm1639_vm2, %v6762_v45  ;;  %v12460_v7 = vpop.f32.mrb[119].mxu1  ;;  %12783 = vmatmul.mubr.msk.f32.gmra.mrb[224].mxu1 %vm1639_vm2, %v7001_v10  ;;  %v7007_v45 = vld [vmem:[#allocation2 + $0x83] sm:$0xff] }
 0x45c   : > { %12825 = vmatpush3.msra.mxu0 %v7251_v35  ;;  %12723 = vmatprep.mubr.msk.f32.mxu0 %vm13326_vm0, %v16692_v63  ;;  %v6768_v35 = vld [vmem:[#allocation2 + $0x6a] sm:$0xff]  ;;  %v6769_v7 = vld [vmem:[#allocation2 + $0x72] sm:$0xff] }
 0x45d   : > { %12785 = vmatprep.mubr.msk.f32.mxu1 %vm13326_vm0, %v16692_v63  ;;  %v15878_v13 = vadd.f32 %v5320_v3, %v5108_v17  ;;  %13233 = vmatprep.subr.bf16.mxu0 %v16716_v28  ;;  %v7004_v3 = vld [vmem:[#allocation2 + $0x6b] sm:$0xff] }
 0x45e   : > { %v5089_v54 = vpop.f32.mrb[114].mxu0  ;;  %v5727_v53 = vpop.f32.mrb[120].mxu1 }
 0x45f   : > { %v5109_v21 = vadd.f32 %v5089_v54, %v15731_v20  ;;  %v12346_v29 = vpop.f32.mrb[115].mxu0  ;;  %12724 = vmatmul.mubr.msk.f32.gmra.mrb[220].mxu0 %vm1639_vm2, %v6763_v8  ;;  %v12463_v5 = vpop.f32.mrb[121].mxu1  ;;  %12786 = vmatmul.mubr.msk.f32.gmra.mrb[226].mxu1 %vm1639_vm2, %v7002_v30  ;;  %v7008_v8 = vld [vmem:[#allocation2 + $0x8b] sm:$0xff] }
 0x460   : > { %12726 = vmatprep.mubr.msk.f32.mxu0 %vm13326_vm0, %v16692_v63  ;;  %12788 = vmatprep.mubr.msk.f32.mxu1 %vm13326_vm0, %v16692_v63  ;;  %v6770_v5 = vld [vmem:[#allocation2 + $0x7a] sm:$0xff] }
 0x461   : > { %v15888_v61 = vadd.f32 %v5325_v39, %v5109_v21  ;;  %v7005_v39 = vld [vmem:[#allocation2 + $0x73] sm:$0xff] }
 0x462   : > { %v5481_v1 = vpop.f32.mrb[116].mxu0  ;;  %v5732_v33 = vpop.f32.mrb[122].mxu1 }
 0x463   : > { %v5565_v20 = vadd.f32 %v5481_v1, %v15740_v24  ;;  %v12404_v38 = vpop.f32.mrb[117].mxu0  ;;  %12727 = vmatmul.mubr.msk.f32.gmra.mrb[222].mxu0 %vm1639_vm2, %v6764_v56  ;;  %v12466_v19 = vpop.f32.mrb[123].mxu1  ;;  %12789 = vmatmul.mubr.msk.f32.gmra.mrb[228].mxu1 %vm1639_vm2, %v7003_v16  ;;  %v7009_v56 = vld [vmem:[#allocation2 + $0x93] sm:$0xff] }
 0x464   : > { %12729 = vmatprep.mubr.msk.f32.mxu0 %vm13326_vm0, %v16692_v63  ;;  %12791 = vmatprep.mubr.msk.f32.mxu1 %vm13326_vm0, %v16692_v63  ;;  %v6771_v19 = vld [vmem:[#allocation2 + $0x82] sm:$0xff] }
 0x465   : > { %v15897_v47 = vadd.f32 %v5717_v43, %v5565_v20  ;;  %v7006_v43 = vld [vmem:[#allocation2 + $0x7b] sm:$0xff] }
 0x466   : > { %v5486_v26 = vpop.f32.mrb[118].mxu0  ;;  %v5737_v48 = vpop.f32.mrb[124].mxu1 }
 0x467   : > { %v5566_v24 = vadd.f32 %v5486_v26, %v15749_v31  ;;  %v12407_v27 = vpop.f32.mrb[119].mxu0  ;;  %12730 = vmatmul.mubr.msk.f32.gmra.mrb[224].mxu0 %vm1639_vm2, %v6765_v46  ;;  %v12469_v60 = vpop.f32.mrb[125].mxu1  ;;  %12792 = vmatmul.mubr.msk.f32.gmra.mrb[230].mxu1 %vm1639_vm2, %v7004_v3  ;;  %v7010_v46 = vld [vmem:[#allocation2 + $0x9b] sm:$0xff] }
 0x468   : > { %12732 = vmatprep.mubr.msk.f32.mxu0 %vm13326_vm0, %v16692_v63  ;;  %12794 = vmatprep.mubr.msk.f32.mxu1 %vm13326_vm0, %v16692_v63  ;;  %v6772_v60 = vld [vmem:[#allocation2 + $0x8a] sm:$0xff] }
 0x469   : > { %v15906_v34 = vadd.f32 %v5722_v42, %v5566_v24 }
 0x46a   : > { %v5491_v32 = vpop.f32.mrb[120].mxu0  ;;  %v5742_v18 = vpop.f32.mrb[126].mxu1 }
 0x46b   : > { %v5567_v31 = vadd.f32 %v5491_v32, %v15758_v36  ;;  %v12410_v55 = vpop.f32.mrb[121].mxu0  ;;  %12733 = vmatmul.mubr.msk.f32.gmra.mrb[226].mxu0 %vm1639_vm2, %v6766_v58  ;;  %v12472_v40 = vpop.f32.mrb[127].mxu1  ;;  %12795 = vmatmul.mubr.msk.f32.gmra.mrb[232].mxu1 %vm1639_vm2, %v7005_v39  ;;  %v7011_v58 = vld [vmem:[#allocation2 + $0xa3] sm:$0xff] }
 0x46c   : > { %12735 = vmatprep.mubr.msk.f32.mxu0 %vm13326_vm0, %v16692_v63  ;;  %12797 = vmatprep.mubr.msk.f32.mxu1 %vm13326_vm0, %v16692_v63  ;;  %v6773_v40 = vld [vmem:[#allocation2 + $0x92] sm:$0xff] }
 0x46d   : > { %v15915_v0 = vadd.f32 %v5727_v53, %v5567_v31 }
 0x46e   : > { %v5496_v2 = vpop.f32.mrb[122].mxu0  ;;  %v5747_v12 = vpop.f32.mrb[128].mxu1 }
 0x46f   : > { %v5568_v36 = vadd.f32 %v5496_v2, %v15767_v59  ;;  %v12413_v62 = vpop.f32.mrb[123].mxu0  ;;  %12736 = vmatmul.mubr.msk.f32.gmra.mrb[228].mxu0 %vm1639_vm2, %v6767_v57  ;;  %v12475_v22 = vpop.f32.mrb[129].mxu1  ;;  %12798 = vmatmul.mubr.msk.f32.gmra.mrb[234].mxu1 %vm1639_vm2, %v7006_v43  ;;  %v7012_v57 = vld [vmem:[#allocation2 + $0xab] sm:$0xff] }
 0x470   : > { %12738 = vmatprep.mubr.msk.f32.mxu0 %vm13326_vm0, %v16692_v63  ;;  %12800 = vmatprep.mubr.msk.f32.mxu1 %vm13326_vm0, %v16692_v63  ;;  %v6774_v22 = vld [vmem:[#allocation2 + $0x9a] sm:$0xff] }
 0x471   : > { %v15924_v9 = vadd.f32 %v5732_v33, %v5568_v36 }
 0x472   : > { %v5501_v25 = vpop.f32.mrb[124].mxu0  ;;  %v5752_v51 = vpop.f32.mrb[130].mxu1 }
 0x473   : > { %v5569_v59 = vadd.f32 %v5501_v25, %v15776_v23  ;;  %v12416_v42 = vpop.f32.mrb[125].mxu0  ;;  %12739 = vmatmul.mubr.msk.f32.gmra.mrb[230].mxu0 %vm1639_vm2, %v6768_v35  ;;  %v12478_v10 = vpop.f32.mrb[131].mxu1  ;;  %12801 = vmatmul.mubr.msk.f32.gmra.mrb[236].mxu1 %vm1639_vm2, %v7007_v45  ;;  %v7013_v35 = vld [vmem:[#allocation2 + $0xb3] sm:$0xff] }
 0x474   : > { %12741 = vmatprep.mubr.msk.f32.mxu0 %vm13326_vm0, %v16692_v63  ;;  %12803 = vmatprep.mubr.msk.f32.mxu1 %vm13326_vm0, %v16692_v63  ;;  %v6775_v10 = vld [vmem:[#allocation2 + $0xa2] sm:$0xff] }
 0x475   : > { %v15933_v17 = vadd.f32 %v5737_v48, %v5569_v59 }
 0x476   : > { %v5506_v11 = vpop.f32.mrb[126].mxu0  ;;  %v5757_v54 = vpop.f32.mrb[132].mxu1 }
 0x477   : > { %v5570_v23 = vadd.f32 %v5506_v11, %v15785_v52  ;;  %v12419_v53 = vpop.f32.mrb[127].mxu0  ;;  %12742 = vmatmul.mubr.msk.f32.gmra.mrb[232].mxu0 %vm1639_vm2, %v6769_v7  ;;  %v12481_v30 = vpop.f32.mrb[133].mxu1  ;;  %12804 = vmatmul.mubr.msk.f32.gmra.mrb[238].mxu1 %vm1639_vm2, %v7008_v8  ;;  %v7014_v7 = vld [vmem:[#allocation2 + $0xbb] sm:$0xff] }
 0x478   : > { %12744 = vmatprep.mubr.msk.f32.mxu0 %vm13326_vm0, %v16692_v63  ;;  %12806 = vmatprep.mubr.msk.f32.mxu1 %vm13326_vm0, %v16692_v63  ;;  %v6776_v30 = vld [vmem:[#allocation2 + $0xaa] sm:$0xff] }
 0x479   : > { %v15942_v21 = vadd.f32 %v5742_v18, %v5570_v23 }
 0x47a   : > { %v5511_v29 = vpop.f32.mrb[128].mxu0  ;;  %v5762_v1 = vpop.f32.mrb[134].mxu1 }
 0x47b   : > { %v5571_v52 = vadd.f32 %v5511_v29, %v15794_v37  ;;  %v12422_v33 = vpop.f32.mrb[129].mxu0  ;;  %12745 = vmatmul.mubr.msk.f32.gmra.mrb[234].mxu0 %vm1639_vm2, %v6770_v5  ;;  %v12484_v16 = vpop.f32.mrb[135].mxu1  ;;  %12807 = vmatmul.mubr.msk.f32.gmra.mrb[240].mxu1 %vm1639_vm2, %v7009_v56 }
 0x47c   : > { %12747 = vmatprep.mubr.msk.f32.mxu0 %vm13326_vm0, %v16692_v63  ;;  %12809 = vmatprep.mubr.msk.f32.mxu1 %vm13326_vm0, %v16692_v63  ;;  %v6777_v33 = vld [vmem:[#allocation2 + $0xb2] sm:$0xff] }
 0x47d   : > { %v15951_v20 = vadd.f32 %v5747_v12, %v5571_v52 }
 0x47e   : > { %v5516_v38 = vpop.f32.mrb[130].mxu0  ;;  %v5767_v26 = vpop.f32.mrb[136].mxu1 }
 0x47f   : > { %v5572_v37 = vadd.f32 %v5516_v38, %v15803_v15  ;;  %v12425_v48 = vpop.f32.mrb[131].mxu0  ;;  %12748 = vmatmul.mubr.msk.f32.gmra.mrb[236].mxu0 %vm1639_vm2, %v6771_v19  ;;  %v12487_v3 = vpop.f32.mrb[137].mxu1  ;;  %12810 = vmatmul.mubr.msk.f32.gmra.mrb[242].mxu1 %vm1639_vm2, %v7010_v46 }
 0x480   : > { %12750 = vmatprep.mubr.msk.f32.mxu0 %vm13326_vm0, %v16692_v63  ;;  %12812 = vmatprep.mubr.msk.f32.mxu1 %vm13326_vm0, %v16692_v63 }
 0x481   : > { %v15960_v24 = vadd.f32 %v5752_v51, %v5572_v37  ;;  %v6778_v37 = vld [vmem:[#allocation2 + $0xba] sm:$0xff] }
 0x482   : > { %v5521_v27 = vpop.f32.mrb[132].mxu0  ;;  %v5772_v32 = vpop.f32.mrb[138].mxu1 }
 0x483   : > { %v5573_v15 = vadd.f32 %v5521_v27, %v15812_v6  ;;  %v12428_v18 = vpop.f32.mrb[133].mxu0  ;;  %12751 = vmatmul.mubr.msk.f32.gmra.mrb[238].mxu0 %vm1639_vm2, %v6772_v60  ;;  %v12490_v39 = vpop.f32.mrb[139].mxu1  ;;  %12813 = vmatmul.mubr.msk.f32.gmra.mrb[244].mxu1 %vm1639_vm2, %v7011_v58  ;;  %v7234_v58 = vld [vmem:[#allocation2 + $0x3c] sm:$0xff] }
 0x484   : > { %12753 = vmatprep.mubr.msk.f32.mxu0 %vm13326_vm0, %v16692_v63  ;;  %12815 = vmatprep.mubr.msk.f32.mxu1 %vm13326_vm0, %v16692_v63 }
 0x485   : > { %v15969_v31 = vadd.f32 %v5757_v54, %v5573_v15 }
 0x486   : > { %v5526_v55 = vpop.f32.mrb[134].mxu0  ;;  %v5777_v2 = vpop.f32.mrb[140].mxu1 }
 0x487   : > { %v5574_v6 = vadd.f32 %v5526_v55, %v15821_v41  ;;  %v12431_v12 = vpop.f32.mrb[135].mxu0  ;;  %12754 = vmatmul.mubr.msk.f32.gmra.mrb[240].mxu0 %vm1639_vm2, %v6773_v40  ;;  %v12493_v43 = vpop.f32.mrb[141].mxu1  ;;  %12816 = vmatmul.mubr.msk.f32.gmra.mrb[246].mxu1 %vm1639_vm2, %v7012_v57 }
 0x488   : > { %12756 = vmatprep.mubr.msk.f32.mxu0 %vm13326_vm0, %v16692_v63  ;;  %12818 = vmatprep.mubr.msk.f32.mxu1 %vm13326_vm0, %v16692_v63 }
 0x489   : > { %v15978_v36 = vadd.f32 %v5762_v1, %v5574_v6 }
 0x48a   : > { %v5531_v62 = vpop.f32.mrb[136].mxu0  ;;  %v5782_v25 = vpop.f32.mrb[142].mxu1 }
 0x48b   : > { %v5575_v41 = vadd.f32 %v5531_v62, %v15830_v49  ;;  %v12434_v51 = vpop.f32.mrb[137].mxu0  ;;  %12757 = vmatmul.mubr.msk.f32.gmra.mrb[242].mxu0 %vm1639_vm2, %v6774_v22  ;;  %v12496_v45 = vpop.f32.mrb[143].mxu1  ;;  %12819 = vmatmul.mubr.msk.f32.gmra.mrb[248].mxu1 %vm1639_vm2, %v7013_v35  ;;  %v7236_v22 = vld [vmem:[#allocation2 + $0x4c] sm:$0xff] }
 0x48c   : > { %12759 = vmatprep.mubr.msk.f32.mxu0 %vm13326_vm0, %v16692_v63  ;;  %12821 = vmatprep.mubr.msk.f32.mxu1 %vm13326_vm0, %v16692_v63 }
 0x48d   : > { %v15987_v59 = vadd.f32 %v5767_v26, %v5575_v41 }
 0x48e   : > { %v5536_v42 = vpop.f32.mrb[138].mxu0  ;;  %v5787_v11 = vpop.f32.mrb[144].mxu1 }
 0x48f   : > { %v5576_v49 = vadd.f32 %v5536_v42, %v15839_v4  ;;  %v12437_v54 = vpop.f32.mrb[139].mxu0  ;;  %12760 = vmatmul.mubr.msk.f32.gmra.mrb[244].mxu0 %vm1639_vm2, %v6775_v10  ;;  %v12499_v8 = vpop.f32.mrb[145].mxu1  ;;  %12822 = vmatmul.mubr.msk.f32.gmra.mrb[250].mxu1 %vm1639_vm2, %v7014_v7  ;;  %v7237_v42 = vld [vmem:[#allocation2 + $0x54] sm:$0xff] }
 0x490   : > { %12762 = vmatprep.mubr.msk.f32.mxu0 %vm13326_vm0, %v16692_v63  ;;  %12881 = vmatprep.mubr.msk.f32.mxu1 %vm13326_vm0, %v16692_v63  ;;  %v7238_v8 = vld [vmem:[#allocation2 + $0x5c] sm:$0xff] }
 0x491   : > { %v15996_v23 = vadd.f32 %v5772_v32, %v5576_v49 }
 0x492   : > { %v5541_v53 = vpop.f32.mrb[140].mxu0  ;;  %v5792_v29 = vpop.f32.mrb[146].mxu1 }
 0x493   : > { %v5577_v5 = vadd.f32 %v5541_v53, %v15848_v50  ;;  %v12440_v4 = vpop.f32.mrb[141].mxu0  ;;  %12763 = vmatmul.mubr.msk.f32.gmra.mrb[246].mxu0 %vm1639_vm2, %v6776_v30  ;;  %v12502_v1 = vpop.f32.mrb[147].mxu1 }
 0x494   : > { %12765 = vmatprep.mubr.msk.f32.mxu0 %vm13326_vm0, %v16692_v63  ;;  %v7239_v1 = vld [vmem:[#allocation2 + $0x64] sm:$0xff] }
 0x495   : > { %v16002_v56 = vadd.f32 %v5777_v2, %v5577_v5  ;;  %v7235_v2 = vld [vmem:[#allocation2 + $0x44] sm:$0xff] }
 0x496   : > { %v5546_v52 = vpop.f32.mrb[142].mxu0  ;;  %v5797_v16 = vpop.f32.mrb[148].mxu1 }
 0x497   : > { %v5578_v38 = vadd.f32 %v5546_v52, %v15857_v44  ;;  %v12443_v19 = vpop.f32.mrb[143].mxu0  ;;  %12766 = vmatmul.mubr.msk.f32.gmra.mrb[248].mxu0 %vm1639_vm2, %v6777_v33  ;;  %v12505_v26 = vpop.f32.mrb[149].mxu1 }
 0x498   : > { %12768 = vmatprep.mubr.msk.f32.mxu0 %vm13326_vm0, %v16692_v63  ;;  %v7240_v26 = vld [vmem:[#allocation2 + $0x6c] sm:$0xff] }
 0x499   : > { %v16008_v50 = vadd.f32 %v5782_v25, %v5578_v38 }
 0x49a   : > { %v5551_v46 = vpop.f32.mrb[144].mxu0  ;;  %v6189_v48 = vpop.f32.mrb[150].mxu1 }
 0x49b   : > { %v5579_v3 = vadd.f32 %v5551_v46, %v15869_v14  ;;  %v12446_v27 = vpop.f32.mrb[145].mxu0  ;;  %12769 = vmatmul.mubr.msk.f32.gmra.mrb[250].mxu0 %vm1639_vm2, %v6778_v37  ;;  %v12563_v60 = vpop.f32.mrb[151].mxu1 }
 0x49c   : > { %12826 = vmatprep.mubr.msk.f32.mxu0 %vm13326_vm0, %v16692_v63  ;;  %v7241_v60 = vld [vmem:[#allocation2 + $0x74] sm:$0xff] }
 0x49d   : > { %v16014_v44 = vadd.f32 %v5787_v11, %v5579_v3 }
 0x49e   : > { %v5556_v32 = vpop.f32.mrb[146].mxu0  ;;  %v6194_v15 = vpop.f32.mrb[152].mxu1 }
 0x49f   : > { %v5580_v18 = vadd.f32 %v5556_v32, %v15878_v13  ;;  %v12449_v39 = vpop.f32.mrb[147].mxu0  ;;  %12827 = vmatmul.mubr.msk.f32.vlgmr.msra.gmra.mrb[252].mxu0 %vm1639_vm2, %v7234_v58  ;;  %v12566_v55 = vpop.f32.mrb[153].mxu1 }
 0x4a0   : > { %12829 = vmatprep.mubr.msk.f32.mxu0 %vm13326_vm0, %v16692_v63  ;;  %v7242_v55 = vld [vmem:[#allocation2 + $0x7c] sm:$0xff] }
 0x4a1   : > { %v16020_v14 = vadd.f32 %v5792_v29, %v5580_v18 }
 0x4a2   : > { %v5561_v40 = vpop.f32.mrb[148].mxu0  ;;  %v6199_v57 = vpop.f32.mrb[154].mxu1 }
 0x4a3   : > { %v5581_v6 = vadd.f32 %v5561_v40, %v15888_v61  ;;  %v12452_v12 = vpop.f32.mrb[149].mxu0  ;;  %12830 = vmatmul.mubr.msk.f32.gmra.mrb[254].mxu0 %vm1639_vm2, %v7235_v2  ;;  %v12569_v43 = vpop.f32.mrb[155].mxu1 }
 0x4a4   : > { %12832 = vmatprep.mubr.msk.f32.mxu0 %vm13326_vm0, %v16692_v63  ;;  %v7243_v43 = vld [vmem:[#allocation2 + $0x84] sm:$0xff] }
 0x4a5   : > { %v16026_v13 = vadd.f32 %v5797_v16, %v5581_v6 }
 0x4a6   : > { %v5953_v62 = vpop.f32.mrb[150].mxu0  ;;  %v6204_v25 = vpop.f32.mrb[156].mxu1 }
 0x4a7   : > { %v6037_v35 = vadd.f32 %v5953_v62, %v15897_v47  ;;  %v12510_v41 = vpop.f32.mrb[151].mxu0  ;;  %12833 = vmatmul.mubr.msk.f32.gmra.mrb[0].mxu0 %vm1639_vm2, %v7236_v22  ;;  %v12572_v51 = vpop.f32.mrb[157].mxu1 }
 0x4a8   : > { %12835 = vmatprep.mubr.msk.f32.mxu0 %vm13326_vm0, %v16692_v63  ;;  %v7244_v51 = vld [vmem:[#allocation2 + $0x8c] sm:$0xff] }
 0x4a9   : > { %v16032_v61 = vadd.f32 %v6189_v48, %v6037_v35 }
 0x4aa   : > { %v5958_v45 = vpop.f32.mrb[152].mxu0  ;;  %v6209_v10 = vpop.f32.mrb[158].mxu1 }
 0x4ab   : > { %v6038_v11 = vadd.f32 %v5958_v45, %v15906_v34  ;;  %v12513_v7 = vpop.f32.mrb[153].mxu0  ;;  %12836 = vmatmul.mubr.msk.f32.gmra.mrb[2].mxu0 %vm1639_vm2, %v7237_v42  ;;  %v12575_v49 = vpop.f32.mrb[159].mxu1 }
 0x4ac   : > { %12838 = vmatprep.mubr.msk.f32.mxu0 %vm13326_vm0, %v16692_v63  ;;  %v7245_v49 = vld [vmem:[#allocation2 + $0x94] sm:$0xff] }
 0x4ad   : > { %v16038_v47 = vadd.f32 %v6194_v15, %v6038_v11 }
 0x4ae   : > { %v5963_v54 = vpop.f32.mrb[154].mxu0  ;;  %v6214_v53 = vpop.f32.mrb[160].mxu1 }
 0x4af   : > { %v6039_v30 = vadd.f32 %v5963_v54, %v15915_v0  ;;  %v12516_v29 = vpop.f32.mrb[155].mxu0  ;;  %12839 = vmatmul.mubr.msk.f32.gmra.mrb[4].mxu0 %vm1639_vm2, %v7238_v8  ;;  %v12578_v5 = vpop.f32.mrb[161].mxu1 }
 0x4b0   : > { %12841 = vmatprep.mubr.msk.f32.mxu0 %vm13326_vm0, %v16692_v63  ;;  %v7246_v5 = vld [vmem:[#allocation2 + $0x9c] sm:$0xff] }
 0x4b1   : > { %v16044_v34 = vadd.f32 %v6199_v57, %v6039_v30 }
 0x4b2   : > { %v5968_v4 = vpop.f32.mrb[156].mxu0  ;;  %v6219_v52 = vpop.f32.mrb[162].mxu1 }
 0x4b3   : > { %v6040_v33 = vadd.f32 %v5968_v4, %v15924_v9  ;;  %v12519_v16 = vpop.f32.mrb[157].mxu0  ;;  %12842 = vmatmul.mubr.msk.f32.gmra.mrb[6].mxu0 %vm1639_vm2, %v7239_v1  ;;  %v12581_v38 = vpop.f32.mrb[163].mxu1 }
 0x4b4   : > { %12844 = vmatprep.mubr.msk.f32.mxu0 %vm13326_vm0, %v16692_v63  ;;  %v7247_v38 = vld [vmem:[#allocation2 + $0xa4] sm:$0xff] }
 0x4b5   : > { %v16050_v0 = vadd.f32 %v6204_v25, %v6040_v33 }
 0x4b6   : > { %v5973_v19 = vpop.f32.mrb[158].mxu0  ;;  %v6224_v46 = vpop.f32.mrb[164].mxu1 }
 0x4b7   : > { %v6041_v37 = vadd.f32 %v5973_v19, %v15933_v17  ;;  %v12522_v48 = vpop.f32.mrb[159].mxu0  ;;  %12845 = vmatmul.mubr.msk.f32.gmra.mrb[8].mxu0 %vm1639_vm2, %v7240_v26  ;;  %v12584_v3 = vpop.f32.mrb[165].mxu1 }
 0x4b8   : > { %12847 = vmatprep.mubr.msk.f32.mxu0 %vm13326_vm0, %v16692_v63  ;;  %v7550_v48 = vld [vmem:[%s16680_s3 + $0x18] sm:$0xff] }
 0x4b9   : > { %v16056_v9 = vadd.f32 %v6209_v10, %v6041_v37 }
 0x4ba   : > { %v5978_v27 = vpop.f32.mrb[160].mxu0  ;;  %v6229_v32 = vpop.f32.mrb[166].mxu1 }
 0x4bb   : > { %v6042_v58 = vadd.f32 %v5978_v27, %v15942_v21  ;;  %v12525_v15 = vpop.f32.mrb[161].mxu0  ;;  %12848 = vmatmul.mubr.msk.f32.gmra.mrb[10].mxu0 %vm1639_vm2, %v7241_v60  ;;  %v12587_v18 = vpop.f32.mrb[167].mxu1 }
 0x4bc   : > { %12850 = vmatprep.mubr.msk.f32.mxu0 %vm13326_vm0, %v16692_v63 }
 0x4bd   : > { %v16062_v17 = vadd.f32 %v6214_v53, %v6042_v58 }
 0x4be   : > { %v5983_v39 = vpop.f32.mrb[162].mxu0  ;;  %v6234_v40 = vpop.f32.mrb[168].mxu1 }
 0x4bf   : > { %v6043_v2 = vadd.f32 %v5983_v39, %v15951_v20  ;;  %v12528_v57 = vpop.f32.mrb[163].mxu0  ;;  %12851 = vmatmul.mubr.msk.f32.gmra.mrb[12].mxu0 %vm1639_vm2, %v7242_v55  ;;  %v12590_v6 = vpop.f32.mrb[169].mxu1 }
 0x4c0   : > { %12853 = vmatprep.mubr.msk.f32.mxu0 %vm13326_vm0, %v16692_v63 }
 0x4c1   : > { %v16068_v21 = vadd.f32 %v6219_v52, %v6043_v2 }
 0x4c2   : > { %v5988_v12 = vpop.f32.mrb[164].mxu0  ;;  %v6239_v62 = vpop.f32.mrb[170].mxu1 }
 0x4c3   : > { %v6044_v22 = vadd.f32 %v5988_v12, %v15960_v24  ;;  %v12531_v25 = vpop.f32.mrb[165].mxu0  ;;  %12854 = vmatmul.mubr.msk.f32.gmra.mrb[14].mxu0 %vm1639_vm2, %v7243_v43  ;;  %v12593_v35 = vpop.f32.mrb[171].mxu1 }
 0x4c4   : > { %12856 = vmatprep.mubr.msk.f32.mxu0 %vm13326_vm0, %v16692_v63 }
 0x4c5   : > { %v16074_v20 = vadd.f32 %v6224_v46, %v6044_v22 }
 0x4c6   : > { %v5993_v41 = vpop.f32.mrb[166].mxu0  ;;  %v6244_v45 = vpop.f32.mrb[172].mxu1 }
 0x4c7   : > { %v6045_v42 = vadd.f32 %v5993_v41, %v15969_v31  ;;  %v12534_v10 = vpop.f32.mrb[167].mxu0  ;;  %12857 = vmatmul.mubr.msk.f32.gmra.mrb[16].mxu0 %vm1639_vm2, %v7244_v51  ;;  %v12596_v11 = vpop.f32.mrb[173].mxu1 }
 0x4c8   : > { %12859 = vmatprep.mubr.msk.f32.mxu0 %vm13326_vm0, %v16692_v63 }
 0x4c9   : > { %v16080_v24 = vadd.f32 %v6229_v32, %v6045_v42 }
 0x4ca   : > { %v5998_v7 = vpop.f32.mrb[168].mxu0  ;;  %v6249_v54 = vpop.f32.mrb[174].mxu1 }
 0x4cb   : > { %v6046_v8 = vadd.f32 %v5998_v7, %v15978_v36  ;;  %v12537_v53 = vpop.f32.mrb[169].mxu0  ;;  %12860 = vmatmul.mubr.msk.f32.gmra.mrb[18].mxu0 %vm1639_vm2, %v7245_v49  ;;  %v12599_v30 = vpop.f32.mrb[175].mxu1 }
 0x4cc   : > { %12862 = vmatprep.mubr.msk.f32.mxu0 %vm13326_vm0, %v16692_v63 }
 0x4cd   : > { %v16086_v31 = vadd.f32 %v6234_v40, %v6046_v8  ;;  %v7249_v40 = vld [vmem:[#allocation2 + $0xb4] sm:$0xff] }
 0x4ce   : > { %v6003_v29 = vpop.f32.mrb[170].mxu0  ;;  %v6254_v4 = vpop.f32.mrb[176].mxu1 }
 0x4cf   : > { %v6047_v1 = vadd.f32 %v6003_v29, %v15987_v59  ;;  %v12540_v52 = vpop.f32.mrb[171].mxu0  ;;  %12863 = vmatmul.mubr.msk.f32.gmra.mrb[20].mxu0 %vm1639_vm2, %v7246_v5  ;;  %v12602_v33 = vpop.f32.mrb[177].mxu1  ;;  %v7549_v59 = vld [vmem:[%s16680_s3 + $0x10] sm:$0xff] }
 0x4d0   : > { %12865 = vmatprep.mubr.msk.f32.mxu0 %vm13326_vm0, %v16692_v63  ;;  %v13183_v3 = vpack.c.bf16 %v7550_v48, %v7549_v59 }
 0x4d1   : > { %v16092_v36 = vadd.f32 %v6239_v62, %v6047_v1  ;;  %v7250_v62 = vld [vmem:[#allocation2 + $0xbc] sm:$0xff] }
 0x4d2   : > { %v6008_v16 = vpop.f32.mrb[172].mxu0  ;;  %v6259_v19 = vpop.f32.mrb[178].mxu1  ;;  %13184 = vmatpush3.bf16.msra.mxu1 %v13183_v3 }
 0x4d3   : > { %v6048_v26 = vadd.f32 %v6008_v16, %v15996_v23  ;;  %v12543_v46 = vpop.f32.mrb[173].mxu0  ;;  %12866 = vmatmul.mubr.msk.f32.gmra.mrb[22].mxu0 %vm1639_vm2, %v7247_v38  ;;  %v12605_v37 = vpop.f32.mrb[179].mxu1  ;;  %v7248_v23 = vld [vmem:[#allocation2 + $0xac] sm:$0xff]  ;;  %13185 = vmatprep.subr.bf16.mxu1 %v16716_v28 }
 0x4d4   : > { %12868 = vmatprep.mubr.msk.f32.mxu0 %vm13326_vm0, %v16692_v63 }
 0x4d5   : > { %v16104_v27 = vadd.f32 %v6244_v45, %v6048_v26 }
 0x4d6   : > { %v6013_v60 = vpop.f32.mrb[174].mxu0  ;;  %v6264_v32 = vpop.f32.mrb[180].mxu1 }
 0x4d7   : > { %v6049_v58 = vadd.f32 %v6013_v60, %v16002_v56  ;;  %v12546_v15 = vpop.f32.mrb[175].mxu0  ;;  %12869 = vmatmul.mubr.msk.f32.gmra.mrb[24].mxu0 %vm1639_vm2, %v7248_v23  ;;  %v12608_v18 = vpop.f32.mrb[181].mxu1 }
 0x4d8   : > { %12871 = vmatprep.mubr.msk.f32.mxu0 %vm13326_vm0, %v16692_v63 }
 0x4d9   : > { %v16111_v39 = vadd.f32 %v6249_v54, %v6049_v58 }
 0x4da   : > { %v6018_v55 = vpop.f32.mrb[176].mxu0  ;;  %v6269_v2 = vpop.f32.mrb[182].mxu1 }
 0x4db   : > { %v6050_v57 = vadd.f32 %v6018_v55, %v16008_v50  ;;  %v12549_v6 = vpop.f32.mrb[177].mxu0  ;;  %12872 = vmatmul.mubr.msk.f32.gmra.mrb[26].mxu0 %vm1639_vm2, %v7249_v40  ;;  %v12611_v56 = vpop.f32.mrb[183].mxu1 }
 0x4dc   : > { %12874 = vmatprep.mubr.msk.f32.mxu0 %vm13326_vm0, %v16692_v63 }
 0x4dd   : > { %v16117_v12 = vadd.f32 %v6254_v4, %v6050_v57 }
 0x4de   : > { %v6023_v43 = vpop.f32.mrb[178].mxu0  ;;  %v6661_v22 = vpop.f32.mrb[184].mxu1 }
 0x4df   : > { %v6051_v25 = vadd.f32 %v6023_v43, %v16014_v44  ;;  %v12552_v35 = vpop.f32.mrb[179].mxu0  ;;  %12875 = vmatmul.mubr.msk.f32.gmra.mrb[28].mxu0 %vm1639_vm2, %v7250_v62  ;;  %v12669_v41 = vpop.f32.mrb[185].mxu1 }
 0x4e0   : > { %13000 = vmatprep.mubr.msk.f32.mxu0 %vm13326_vm0, %v16692_v63 }
 0x4e1   : > { %v16123_v50 = vadd.f32 %v6259_v19, %v6051_v25 }
 0x4e2   : > { %v6028_v51 = vpop.f32.mrb[180].mxu0  ;;  %v6666_v45 = vpop.f32.mrb[186].mxu1 }
 0x4e3   : > { %v6052_v42 = vadd.f32 %v6028_v51, %v16020_v14  ;;  %v12555_v10 = vpop.f32.mrb[181].mxu0  ;;  %v12672_v11 = vpop.f32.mrb[187].mxu1 }
 0x4e5   : > { %v16126_v7 = vadd.f32 %v6264_v32, %v6052_v42 }
 0x4e6   : > { %v6033_v49 = vpop.f32.mrb[182].mxu0  ;;  %v6671_v54 = vpop.f32.mrb[188].mxu1 }
 0x4e7   : > { %v6053_v44 = vadd.f32 %v6033_v49, %v16026_v13  ;;  %v12558_v8 = vpop.f32.mrb[183].mxu0  ;;  %v12675_v53 = vpop.f32.mrb[189].mxu1 }
 0x4e9   : > { %v16129_v30 = vadd.f32 %v6269_v2, %v6053_v44 }
 0x4ea   : > { %v6425_v29 = vpop.f32.mrb[184].mxu0  ;;  %v6676_v5 = vpop.f32.mrb[190].mxu1 }
 0x4eb   : > { %v6509_v4 = vadd.f32 %v6425_v29, %v16032_v61  ;;  %v12616_v1 = vpop.f32.mrb[185].mxu0  ;;  %v12678_v52 = vpop.f32.mrb[191].mxu1 }
 0x4ed   : > { %v16132_v33 = vadd.f32 %v6661_v22, %v6509_v4 }
 0x4ee   : > { %v6430_v14 = vpop.f32.mrb[186].mxu0  ;;  %v6681_v16 = vpop.f32.mrb[192].mxu1 }
 0x4ef   : > { %v6510_v38 = vadd.f32 %v6430_v14, %v16038_v47  ;;  %v12619_v19 = vpop.f32.mrb[187].mxu0  ;;  %v12681_v26 = vpop.f32.mrb[193].mxu1 }
 0x4f1   : > { %v16135_v46 = vadd.f32 %v6666_v45, %v6510_v38 }
 0x4f2   : > { %v6435_v13 = vpop.f32.mrb[188].mxu0  ;;  %v6686_v37 = vpop.f32.mrb[194].mxu1 }
 0x4f3   : > { %v6511_v59 = vadd.f32 %v6435_v13, %v16044_v34  ;;  %v12622_v48 = vpop.f32.mrb[189].mxu0  ;;  %v12684_v3 = vpop.f32.mrb[195].mxu1 }
 0x4f5   : > { %v16138_v60 = vadd.f32 %v6671_v54, %v6511_v59 }
 0x4f6   : > { %v6440_v61 = vpop.f32.mrb[190].mxu0  ;;  %v6691_v23 = vpop.f32.mrb[196].mxu1 }
 0x4f7   : > { %v6512_v32 = vadd.f32 %v6440_v61, %v16050_v0  ;;  %v12625_v58 = vpop.f32.mrb[191].mxu0  ;;  %v12687_v15 = vpop.f32.mrb[197].mxu1 }
 0x4f9   : > { %v16141_v18 = vadd.f32 %v6676_v5, %v6512_v32 }
 0x4fa   : > { %v6445_v47 = vpop.f32.mrb[192].mxu0  ;;  %v6696_v55 = vpop.f32.mrb[198].mxu1 }
 0x4fb   : > { %v6513_v40 = vadd.f32 %v6445_v47, %v16056_v9  ;;  %v12628_v2 = vpop.f32.mrb[193].mxu0  ;;  %v12690_v57 = vpop.f32.mrb[199].mxu1 }
 0x4fd   : > { %v16144_v6 = vadd.f32 %v6681_v16, %v6513_v40 }
 0x4fe   : > { %v6450_v34 = vpop.f32.mrb[194].mxu0  ;;  %v6701_v56 = vpop.f32.mrb[200].mxu1 }
 0x4ff   : > { %v6514_v43 = vadd.f32 %v6450_v34, %v16062_v17  ;;  %v12631_v62 = vpop.f32.mrb[195].mxu0  ;;  %v12693_v22 = vpop.f32.mrb[201].mxu1 }
 0x501   : > { %v16147_v25 = vadd.f32 %v6686_v37, %v6514_v43 }
 0x502   : > { %v6455_v0 = vpop.f32.mrb[196].mxu0  ;;  %v6706_v35 = vpop.f32.mrb[202].mxu1 }
 0x503   : > { %v6515_v41 = vadd.f32 %v6455_v0, %v16068_v21  ;;  %v12634_v51 = vpop.f32.mrb[197].mxu0  ;;  %v12696_v45 = vpop.f32.mrb[203].mxu1 }
 0x505   : > { %v16150_v42 = vadd.f32 %v6691_v23, %v6515_v41 }
 0x506   : > { %v6460_v9 = vpop.f32.mrb[198].mxu0  ;;  %v6711_v10 = vpop.f32.mrb[204].mxu1 }
 0x507   : > { %v6516_v11 = vadd.f32 %v6460_v9, %v16074_v20  ;;  %v12637_v49 = vpop.f32.mrb[199].mxu0  ;;  %v12699_v54 = vpop.f32.mrb[205].mxu1 }
 0x509   : > { %v16153_v44 = vadd.f32 %v6696_v55, %v6516_v11 }
 0x50a   : > { %v6465_v17 = vpop.f32.mrb[200].mxu0  ;;  %v6716_v8 = vpop.f32.mrb[206].mxu1 }
 0x50b   : > { %v6517_v53 = vadd.f32 %v6465_v17, %v16080_v24  ;;  %v12640_v29 = vpop.f32.mrb[201].mxu0  ;;  %v12702_v5 = vpop.f32.mrb[207].mxu1 }
 0x50d   : > { %v16156_v4 = vadd.f32 %v6701_v56, %v6517_v53 }
 0x50e   : > { %v6470_v21 = vpop.f32.mrb[202].mxu0  ;;  %v6721_v1 = vpop.f32.mrb[208].mxu1 }
 0x50f   : > { %v6518_v52 = vadd.f32 %v6470_v21, %v16086_v31  ;;  %v12643_v14 = vpop.f32.mrb[203].mxu0  ;;  %v12705_v16 = vpop.f32.mrb[209].mxu1 }
 0x511   : > { %v16159_v38 = vadd.f32 %v6706_v35, %v6518_v52 }
 0x512   : > { %v6475_v20 = vpop.f32.mrb[204].mxu0  ;;  %v6726_v19 = vpop.f32.mrb[210].mxu1 }
 0x513   : > { %v6519_v26 = vadd.f32 %v6475_v20, %v16092_v36  ;;  %v12646_v13 = vpop.f32.mrb[205].mxu0  ;;  %v12708_v37 = vpop.f32.mrb[211].mxu1  ;;  %v8998_v36 = vld [vmem:[%s16680_s3 + $0x110] sm:$0xff] }
 0x515   : > { %v16162_v59 = vadd.f32 %v6711_v10, %v6519_v26 }
 0x516   : > { %v6480_v24 = vpop.f32.mrb[206].mxu0  ;;  %v6731_v48 = vpop.f32.mrb[212].mxu1 }
 0x517   : > { %v6520_v3 = vadd.f32 %v6480_v24, %v16104_v27  ;;  %v12649_v61 = vpop.f32.mrb[207].mxu0  ;;  %v12711_v23 = vpop.f32.mrb[213].mxu1  ;;  %v8999_v27 = vld [vmem:[%s16680_s3 + $0x118] sm:$0xff] }
 0x518   : > { %v13234_v34 = vpack.c.bf16 %v8999_v27, %v8998_v36 }
 0x519   : > { %v16165_v32 = vadd.f32 %v6716_v8, %v6520_v3 }
 0x51a   : > { %v6485_v31 = vpop.f32.mrb[208].mxu0  ;;  %v6736_v58 = vpop.f32.mrb[214].mxu1  ;;  %13235 = vmatpush3.bf16.msra.mxu0 %v13234_v34 }
 0x51b   : > { %v6521_v15 = vadd.f32 %v6485_v31, %v16111_v39  ;;  %v12652_v47 = vpop.f32.mrb[209].mxu0  ;;  %v12714_v55 = vpop.f32.mrb[215].mxu1  ;;  %13239 = vmatprep.subr.bf16.mxu0 %v16716_v28 }
 0x51d   : > { %v16168_v40 = vadd.f32 %v6721_v1, %v6521_v15 }
 0x51e   : > { %v6490_v2 = vpop.f32.mrb[210].mxu0  ;;  %v6741_v57 = vpop.f32.mrb[216].mxu1 }
 0x51f   : > { %v6522_v56 = vadd.f32 %v6490_v2, %v16117_v12  ;;  %v12655_v43 = vpop.f32.mrb[211].mxu0  ;;  %v12717_v62 = vpop.f32.mrb[217].mxu1 }
 0x521   : > { %v16177_v39 = vadd.f32 %v6726_v19, %v6522_v56 }
 0x522   : > { %v6495_v22 = vpop.f32.mrb[212].mxu0  ;;  %v7133_v0 = vpop.f32.mrb[218].mxu1 }
 0x523   : > { %v6523_v35 = vadd.f32 %v6495_v22, %v16123_v50  ;;  %v12658_v41 = vpop.f32.mrb[213].mxu0  ;;  %v12775_v51 = vpop.f32.mrb[219].mxu1 }
 0x525   : > { %v16181_v45 = vadd.f32 %v6731_v48, %v6523_v35 }
 0x526   : > { %v6500_v9 = vpop.f32.mrb[214].mxu0  ;;  %v7138_v10 = vpop.f32.mrb[220].mxu1 }
 0x527   : > { %v6524_v11 = vadd.f32 %v6500_v9, %v16126_v7  ;;  %v12661_v12 = vpop.f32.mrb[215].mxu0  ;;  %v12778_v49 = vpop.f32.mrb[221].mxu1 }
 0x529   : > { %v16184_v54 = vadd.f32 %v6736_v58, %v6524_v11 }
 0x52a   : > { %v6505_v17 = vpop.f32.mrb[216].mxu0  ;;  %v7143_v8 = vpop.f32.mrb[222].mxu1 }
 0x52b   : > { %v6525_v53 = vadd.f32 %v6505_v17, %v16129_v30  ;;  %v12664_v29 = vpop.f32.mrb[217].mxu0  ;;  %v12781_v5 = vpop.f32.mrb[223].mxu1 }
 0x52d   : > { %v16187_v21 = vadd.f32 %v6741_v57, %v6525_v53 }
 0x52e   : > { %v6897_v50 = vpop.f32.mrb[218].mxu0  ;;  %v7148_v1 = vpop.f32.mrb[224].mxu1 }
 0x52f   : > { %v6981_v52 = vadd.f32 %v6897_v50, %v16132_v33  ;;  %v12722_v14 = vpop.f32.mrb[219].mxu0  ;;  %v12784_v16 = vpop.f32.mrb[225].mxu1 }
 0x531   : > { %v16190_v20 = vadd.f32 %v7133_v0, %v6981_v52 }
 0x532   : > { %v6902_v7 = vpop.f32.mrb[220].mxu0  ;;  %v7153_v19 = vpop.f32.mrb[226].mxu1 }
 0x533   : > { %v6982_v26 = vadd.f32 %v6902_v7, %v16135_v46  ;;  %v12725_v13 = vpop.f32.mrb[221].mxu0  ;;  %v12787_v37 = vpop.f32.mrb[227].mxu1 }
 0x535   : > { %v16193_v24 = vadd.f32 %v7138_v10, %v6982_v26 }
 0x536   : > { %v6907_v30 = vpop.f32.mrb[222].mxu0  ;;  %v7158_v48 = vpop.f32.mrb[228].mxu1 }
 0x537   : > { %v6983_v3 = vadd.f32 %v6907_v30, %v16138_v60  ;;  %v12728_v61 = vpop.f32.mrb[223].mxu0  ;;  %v12790_v23 = vpop.f32.mrb[229].mxu1 }
 0x539   : > { %v16196_v31 = vadd.f32 %v7143_v8, %v6983_v3 }
 0x53a   : > { %v6912_v33 = vpop.f32.mrb[224].mxu0  ;;  %v7163_v58 = vpop.f32.mrb[230].mxu1 }
 0x53b   : > { %v6984_v15 = vadd.f32 %v6912_v33, %v16141_v18  ;;  %v12731_v47 = vpop.f32.mrb[225].mxu0  ;;  %v12793_v55 = vpop.f32.mrb[231].mxu1 }
 0x53d   : > { %v16199_v36 = vadd.f32 %v7148_v1, %v6984_v15 }
 0x53e   : > { %v6917_v46 = vpop.f32.mrb[226].mxu0  ;;  %v7168_v27 = vpop.f32.mrb[232].mxu1 }
 0x53f   : > { %v6985_v2 = vadd.f32 %v6917_v46, %v16144_v6  ;;  %v12734_v57 = vpop.f32.mrb[227].mxu0  ;;  %v12796_v34 = vpop.f32.mrb[233].mxu1 }
 0x541   : > { %v16202_v56 = vadd.f32 %v7153_v19, %v6985_v2 }
 0x542   : > { %v6922_v60 = vpop.f32.mrb[228].mxu0  ;;  %v7173_v43 = vpop.f32.mrb[234].mxu1 }
 0x543   : > { %v6986_v62 = vadd.f32 %v6922_v60, %v16147_v25  ;;  %v12737_v22 = vpop.f32.mrb[229].mxu0  ;;  %v12799_v0 = vpop.f32.mrb[235].mxu1 }
 0x545   : > { %v16205_v35 = vadd.f32 %v7158_v48, %v6986_v62 }
 0x546   : > { %v6927_v18 = vpop.f32.mrb[230].mxu0  ;;  %v7178_v41 = vpop.f32.mrb[236].mxu1 }
 0x547   : > { %v6987_v51 = vadd.f32 %v6927_v18, %v16150_v42  ;;  %v12740_v9 = vpop.f32.mrb[231].mxu0  ;;  %v12802_v10 = vpop.f32.mrb[237].mxu1 }
 0x549   : > { %v16208_v11 = vadd.f32 %v7163_v58, %v6987_v51 }
 0x54a   : > { %v6932_v6 = vpop.f32.mrb[232].mxu0  ;;  %v7183_v12 = vpop.f32.mrb[238].mxu1 }
 0x54b   : > { %v6988_v49 = vadd.f32 %v6932_v6, %v16153_v44  ;;  %v12743_v17 = vpop.f32.mrb[233].mxu0  ;;  %v12805_v8 = vpop.f32.mrb[239].mxu1 }
 0x54d   : > { %v16211_v53 = vadd.f32 %v7168_v27, %v6988_v49 }
 0x54e   : > { %v6937_v25 = vpop.f32.mrb[234].mxu0  ;;  %v7188_v29 = vpop.f32.mrb[240].mxu1 }
 0x54f   : > { %v6989_v5 = vadd.f32 %v6937_v25, %v16156_v4  ;;  %v12746_v50 = vpop.f32.mrb[235].mxu0  ;;  %v12808_v1 = vpop.f32.mrb[241].mxu1 }
 0x551   : > { %v16214_v52 = vadd.f32 %v7173_v43, %v6989_v5 }
 0x552   : > { %v6942_v42 = vpop.f32.mrb[236].mxu0  ;;  %v7193_v14 = vpop.f32.mrb[242].mxu1 }
 0x553   : > { %v6990_v16 = vadd.f32 %v6942_v42, %v16159_v38  ;;  %v12749_v7 = vpop.f32.mrb[237].mxu0  ;;  %v12811_v19 = vpop.f32.mrb[243].mxu1 }
 0x555   : > { %v16217_v26 = vadd.f32 %v7178_v41, %v6990_v16 }
 0x556   : > { %v6947_v44 = vpop.f32.mrb[238].mxu0  ;;  %v7198_v13 = vpop.f32.mrb[244].mxu1 }
 0x557   : > { %v6991_v37 = vadd.f32 %v6947_v44, %v16162_v59  ;;  %v12752_v30 = vpop.f32.mrb[239].mxu0  ;;  %v12814_v48 = vpop.f32.mrb[245].mxu1 }
 0x559   : > { %v16220_v3 = vadd.f32 %v7183_v12, %v6991_v37 }
 0x55a   : > { %v6952_v4 = vpop.f32.mrb[240].mxu0  ;;  %v7203_v61 = vpop.f32.mrb[246].mxu1 }
 0x55b   : > { %v6992_v23 = vadd.f32 %v6952_v4, %v16165_v32  ;;  %v12755_v33 = vpop.f32.mrb[241].mxu0  ;;  %v12817_v58 = vpop.f32.mrb[247].mxu1 }
 0x55d   : > { %v16223_v15 = vadd.f32 %v7188_v29, %v6992_v23 }
 0x55e   : > { %v6957_v38 = vpop.f32.mrb[242].mxu0  ;;  %v7208_v47 = vpop.f32.mrb[248].mxu1 }
 0x55f   : > { %v6993_v55 = vadd.f32 %v6957_v38, %v16168_v40  ;;  %v12758_v46 = vpop.f32.mrb[243].mxu0  ;;  %v12820_v27 = vpop.f32.mrb[249].mxu1 }
 0x561   : > { %v16226_v2 = vadd.f32 %v7193_v14, %v6993_v55 }
 0x562   : > { %v6962_v59 = vpop.f32.mrb[244].mxu0  ;;  %v7213_v57 = vpop.f32.mrb[250].mxu1 }
 0x563   : > { %v6994_v34 = vadd.f32 %v6962_v59, %v16177_v39  ;;  %v12761_v60 = vpop.f32.mrb[245].mxu0  ;;  %v12823_v43 = vpop.f32.mrb[251].mxu1 }
 0x565   : > { %v16229_v62 = vadd.f32 %v7198_v13, %v6994_v34 }
 0x566   : > { %v6967_v32 = vpop.f32.mrb[246].mxu0 }
 0x567   : > { %v6995_v22 = vadd.f32 %v6967_v32, %v16181_v45  ;;  %v12764_v0 = vpop.f32.mrb[247].mxu0  ;;  %v16243_v45 = vld [vmem:[%s16683_s6 + $0x1] ss:$0 sm:$0xff] }
 0x569   : > { %v16232_v18 = vadd.f32 %v7203_v61, %v6995_v22 }
 0x56a   : > { %v6972_v41 = vpop.f32.mrb[248].mxu0 }
 0x56b   : > { %v6996_v40 = vadd.f32 %v6972_v41, %v16184_v54  ;;  %v12767_v51 = vpop.f32.mrb[249].mxu0 }
 0x56d   : > { %v16235_v9 = vadd.f32 %v7208_v47, %v6996_v40 }
 0x56e   : > { %v6977_v10 = vpop.f32.mrb[250].mxu0 }
 0x56f   : > { %v6997_v6 = vadd.f32 %v6977_v10, %v16187_v21  ;;  %v12770_v39 = vpop.f32.mrb[251].mxu0 }
 0x571   : > { %v16238_v12 = vadd.f32 %v7213_v57, %v6997_v6 }
 0x572   : > { %v7369_v49 = vpop.f32.mrb[252].mxu0 }
 0x573   : > { %v7453_v17 = vadd.f32 %v7369_v49, %v16190_v20  ;;  %v12828_v8 = vpop.f32.mrb[253].mxu0 }
 0x575   : > { %v7475_v54 = vadd.f32 %v16243_v45, %v7453_v17 }
 0x576   : > { %v7374_v25 = vpop.f32.mrb[254].mxu0 }
 0x577   : > { %v7492_v29 = vmax.f32 %v7475_v54, 0.0  ;;  %v7454_v5 = vadd.f32 %v7374_v25, %v16193_v24  ;;  %v12831_v50 = vpop.f32.mrb[255].mxu0 }
 0x579   : > { %7509 = vst [vmem:[#allocation3] sm:$0xff] %v7492_v29  ;;  %v7476_v21 = vadd.f32 %v16243_v45, %v7454_v5 }
 0x57a   : > { %v7379_v1 = vpop.f32.mrb[0].mxu0 }
 0x57b   : > { %v7493_v42 = vmax.f32 %v7476_v21, 0.0  ;;  %v7455_v14 = vadd.f32 %v7379_v1, %v16196_v31  ;;  %v12834_v16 = vpop.f32.mrb[1].mxu0 }
 0x57d   : > { %7510 = vst [vmem:[#allocation3 + $0x8] sm:$0xff] %v7493_v42  ;;  %v7477_v7 = vadd.f32 %v16243_v45, %v7455_v14 }
 0x57e   : > { %v7384_v20 = vpop.f32.mrb[2].mxu0 }
 0x57f   : > { %v7494_v19 = vmax.f32 %v7477_v7, 0.0  ;;  %v7456_v44 = vadd.f32 %v7384_v20, %v16199_v36  ;;  %v12837_v13 = vpop.f32.mrb[3].mxu0 }
 0x580   : > { %v7526_v61 = vld [vmem:[#allocation3] sm:$0x3]  ;;  %v7539_v58 = vld [vmem:[#allocation3 + $0x2] sm:$0x3]  ;;  %v7698_v47 = vld [vmem:[#allocation3 + $0x4] sm:$0x3] }
 0x581   : > { %7511 = vst [vmem:[#allocation3 + $0x10] sm:$0xff] %v7494_v19  ;;  %v7478_v24 = vadd.f32 %v16243_v45, %v7456_v44  ;;  %v7784_v59 = vld [vmem:[#allocation3 + $0x6] sm:$0x3] }
 0x582   : > { %v7389_v37 = vpop.f32.mrb[4].mxu0 }
 0x583   : > { %v7495_v30 = vmax.f32 %v7478_v24, 0.0  ;;  %v7457_v48 = vadd.f32 %v7389_v37, %v16202_v56  ;;  %v12840_v4 = vpop.f32.mrb[5].mxu0  ;;  %v7537_v24 = vld [vmem:[%s16680_s3] sm:$0xff]  ;;  %v7538_v37 = vld [vmem:[%s16680_s3 + $0x8] sm:$0xff] }
 0x584   : > { %v7527_v31 = vld [vmem:[#allocation3 + $0xe] sm:$0x3]  ;;  %v7870_v0 = vld [vmem:[#allocation3 + $0x8] sm:$0x3] }
 0x585   : > { %7512 = vst [vmem:[#allocation3 + $0x18] sm:$0xff] %v7495_v30  ;;  %v7479_v23 = vadd.f32 %v16243_v45, %v7457_v48  ;;  %v7528_v33 = vmax.f32 %v7526_v61, %v7527_v31 }
 0x586   : > { %v7394_v38 = vpop.f32.mrb[6].mxu0 }
 0x587   : > { %v7496_v36 = vmax.f32 %v7479_v23, 0.0  ;;  %v7458_v55 = vadd.f32 %v7394_v38, %v16205_v35  ;;  %v12843_v46 = vpop.f32.mrb[7].mxu0  ;;  %v7530_v27 = vsel %vm7529_vm3, %v7528_v33, -inf }
 0x588   : > { %v7540_v57 = vld [vmem:[#allocation3 + $0x10] sm:$0x3]  ;;  %v7531_v56 = vrot.slane %v7530_v27, 4  ;;  %v7699_v34 = vld [vmem:[#allocation3 + $0x12] sm:$0x3] }
 0x589   : > { %v7541_v60 = vmax.f32 %v7539_v58, %v7540_v57  ;;  %7513 = vst [vmem:[#allocation3 + $0x20] sm:$0xff] %v7496_v36  ;;  %v7480_v43 = vadd.f32 %v16243_v45, %v7458_v55  ;;  %v7700_v32 = vmax.f32 %v7698_v47, %v7699_v34  ;;  %v7785_v22 = vld [vmem:[#allocation3 + $0x14] sm:$0x3]  ;;  %v7871_v41 = vld [vmem:[#allocation3 + $0x16] sm:$0x3]  ;;  %v7708_v58 = vld [vmem:[%s16680_s3 + $0x20] sm:$0xff]  ;;  %v13186_v55 = vpack.c.bf16 %v7538_v37, %v7537_v24 }
 0x58a   : > { %v7399_v40 = vpop.f32.mrb[8].mxu0  ;;  %v7532_v51 = vmax.f32 %v7530_v27, %v7531_v56  ;;  %v7786_v10 = vmax.f32 %v7784_v59, %v7785_v22  ;;  %v7872_v6 = vmax.f32 %v7870_v0, %v7871_v41  ;;  %v7709_v56 = vld [vmem:[%s16680_s3 + $0x28] sm:$0xff] }
 0x58b   : > { %v7497_v35 = vmax.f32 %v7480_v43, 0.0  ;;  %v7459_v39 = vadd.f32 %v7399_v40, %v16208_v11  ;;  %v12846_v49 = vpop.f32.mrb[9].mxu0  ;;  %v7542_v17 = vsel %vm7529_vm3, %v7541_v60, -inf  ;;  %v7701_v8 = vsel %vm7529_vm3, %v7700_v32, -inf }
 0x58c   : > { %v7543_v54 = vrot.slane %v7542_v17, 4  ;;  %v7533_v25 = vrot.slane %v7532_v51, 2  ;;  %v7702_v29 = vrot.slane %v7701_v8, 4  ;;  %v7787_v5 = vsel %vm7529_vm3, %v7786_v10, -inf  ;;  %v7956_v38 = vld [vmem:[#allocation3 + $0x1c] sm:$0x3] }
 0x58d   : > { %7514 = vst [vmem:[#allocation3 + $0x28] sm:$0xff] %v7497_v35  ;;  %v7481_v50 = vadd.f32 %v16243_v45, %v7459_v39  ;;  %v7788_v14 = vrot.slane %v7787_v5, 4  ;;  %v7873_v16 = vsel %vm7529_vm3, %v7872_v6, -inf  ;;  %v8042_v47 = vld [vmem:[#allocation3 + $0x1e] sm:$0x3]  ;;  %v13189_v49 = vpack.c.bf16 %v7709_v56, %v7708_v58 }
 0x58e   : > { %v7404_v21 = vpop.f32.mrb[10].mxu0  ;;  %v7544_v1 = vmax.f32 %v7542_v17, %v7543_v54  ;;  %v7703_v42 = vmax.f32 %v7701_v8, %v7702_v29  ;;  %v7534_v44 = vmax.f32 %v7532_v51, %v7533_v25  ;;  %v7874_v30 = vrot.slane %v7873_v16, 4  ;;  %v7794_v17 = vld [vmem:[%s16680_s3 + $0x30] sm:$0xff] }
 0x58f   : > { %v7498_v11 = vmax.f32 %v7481_v50, 0.0  ;;  %v7460_v7 = vadd.f32 %v7404_v21, %v16211_v53  ;;  %v12849_v20 = vpop.f32.mrb[11].mxu0  ;;  %v7789_v53 = vmax.f32 %v7787_v5, %v7788_v14 }
 0x590   : > { %v7545_v19 = vrot.slane %v7544_v1, 2  ;;  %v7704_v61 = vrot.slane %v7703_v42, 2  ;;  %v7535_v46 = vrot.slane %v7534_v44, 1  ;;  %v8128_v43 = vld [vmem:[#allocation3 + $0x20] sm:$0x3] }
 0x591   : > { %7515 = vst [vmem:[#allocation3 + $0x30] sm:$0xff] %v7498_v11  ;;  %v7482_v13 = vadd.f32 %v16243_v45, %v7460_v7  ;;  %v7790_v40 = vrot.slane %v7789_v53, 2  ;;  %v8214_v21 = vld [vmem:[#allocation3 + $0x22] sm:$0x3] }
 0x592   : > { %v7409_v48 = vpop.f32.mrb[12].mxu0  ;;  %v7546_v4 = vmax.f32 %v7544_v1, %v7545_v19  ;;  %v7705_v41 = vmax.f32 %v7703_v42, %v7704_v61  ;;  %v8300_v19 = vld [vmem:[#allocation3 + $0x24] sm:$0x3] }
 0x593   : > { %v7499_v31 = vmax.f32 %v7482_v13, 0.0  ;;  %v7461_v23 = vadd.f32 %v7409_v48, %v16214_v52  ;;  %v12852_v33 = vpop.f32.mrb[13].mxu0  ;;  %v7875_v52 = vmax.f32 %v7873_v16, %v7874_v30  ;;  %v7795_v16 = vld [vmem:[%s16680_s3 + $0x38] sm:$0xff]  ;;  %v7791_v11 = vmax.f32 %v7789_v53, %v7790_v40  ;;  %v7880_v53 = vld [vmem:[%s16680_s3 + $0x40] sm:$0xff] }
 0x594   : > { %v7547_v36 = vrot.slane %v7546_v4, 1  ;;  %v7957_v27 = vld [vmem:[#allocation3 + $0x2a] sm:$0x3]  ;;  %v8043_v59 = vld [vmem:[#allocation3 + $0x2c] sm:$0x3]  ;;  %v7706_v14 = vrot.slane %v7705_v41, 1  ;;  %v13192_v61 = vpack.c.bf16 %v7795_v16, %v7794_v17 }
 0x595   : > { %7516 = vst [vmem:[#allocation3 + $0x38] sm:$0xff] %v7499_v31  ;;  %v7483_v57 = vadd.f32 %v16243_v45, %v7461_v23  ;;  %v7958_v34 = vmax.f32 %v7956_v38, %v7957_v27  ;;  %v8044_v60 = vmax.f32 %v8042_v47, %v8043_v59  ;;  %v8129_v32 = vld [vmem:[#allocation3 + $0x2e] sm:$0x3]  ;;  %v7876_v7 = vrot.slane %v7875_v52, 2 }
 0x596   : > { %v7414_v22 = vpop.f32.mrb[14].mxu0  ;;  %v7548_v0 = vmax.f32 %v7546_v4, %v7547_v36  ;;  %v8130_v51 = vmax.f32 %v8128_v43, %v8129_v32  ;;  %v7707_v58 = vmax.f32 %v7705_v41, %v7706_v14  ;;  %v7792_v38 = vrot.slane %v7791_v11, 1 }
 0x597   : > { %v7500_v10 = vmax.f32 %v7483_v57, 0.0  ;;  %v7462_v6 = vadd.f32 %v7414_v22, %v16217_v26  ;;  %v12855_v35 = vpop.f32.mrb[15].mxu0  ;;  %v7959_v39 = vsel %vm7529_vm3, %v7958_v34, -inf  ;;  %v8045_v54 = vsel %vm7529_vm3, %v8044_v60, -inf }
 0x598   : > { %12882 = vmatmul.mubr.msk.f32.vlgmr.msra.gmra.mrb[252].mxu1 %vm7551_vm4, %v7548_v0  ;;  %v7960_v8 = vrot.slane %v7959_v39, 4  ;;  %v8215_v25 = vld [vmem:[#allocation3 + $0x30] sm:$0x3]  ;;  %v7536_v26 = vmax.f32 %v7534_v44, %v7535_v46  ;;  %v8046_v5 = vrot.slane %v8045_v54, 4  ;;  %v8131_v50 = vsel %vm7529_vm3, %v8130_v51, -inf }
 0x599   : > { %7517 = vst [vmem:[#allocation3 + $0x40] sm:$0xff] %v7500_v10  ;;  %v7484_v29 = vadd.f32 %v16243_v45, %v7462_v6  ;;  %13187 = vmatpush3.bf16.msra.mxu1 %v13186_v55  ;;  %12888 = vmatprep.mubr.msk.f32.mxu1 %vm13326_vm0, %v16692_v63  ;;  %v8301_v1 = vld [vmem:[#allocation3 + $0x32] sm:$0x3]  ;;  %v8216_v37 = vmax.f32 %v8214_v21, %v8215_v25  ;;  %v8132_v48 = vrot.slane %v8131_v50, 4 }
 0x59a   : > { %v7419_v42 = vpop.f32.mrb[16].mxu0  ;;  %13188 = vmatprep.subr.bf16.mxu1 %v16716_v28  ;;  %v7961_v20 = vmax.f32 %v7959_v39, %v7960_v8  ;;  %v8302_v30 = vmax.f32 %v8300_v19, %v8301_v1  ;;  %v8047_v23 = vmax.f32 %v8045_v54, %v8046_v5  ;;  %v7877_v47 = vmax.f32 %v7875_v52, %v7876_v7  ;;  %v7967_v52 = vld [vmem:[%s16680_s3 + $0x58] sm:$0xff] }
 0x59b   : > { %v7501_v13 = vmax.f32 %v7484_v29, 0.0  ;;  %v7463_v44 = vadd.f32 %v7419_v42, %v16220_v3  ;;  %v12858_v24 = vpop.f32.mrb[17].mxu0  ;;  %v7881_v3 = vld [vmem:[%s16680_s3 + $0x48] sm:$0xff]  ;;  %v8217_v27 = vsel %vm7529_vm3, %v8216_v37, -inf  ;;  %v8133_v56 = vmax.f32 %v8131_v50, %v8132_v48 }
 0x59c   : > { %12889 = vmatmul.mubr.msk.f32.vlgmr.msra.gmra.mrb[254].mxu1 %vm7551_vm4, %v7536_v26  ;;  %v7962_v31 = vrot.slane %v7961_v20, 2  ;;  %v8303_v59 = vsel %vm7529_vm3, %v8302_v30, -inf  ;;  %v13195_v57 = vpack.c.bf16 %v7881_v3, %v7880_v53  ;;  %v8386_v34 = vld [vmem:[#allocation3 + $0x38] sm:$0x3]  ;;  %v8048_v22 = vrot.slane %v8047_v23, 2 }
 0x59d   : > { %7518 = vst [vmem:[#allocation3 + $0x48] sm:$0xff] %v7501_v13  ;;  %v7485_v4 = vadd.f32 %v16243_v45, %v7463_v44  ;;  %13190 = vmatpush3.bf16.msra.mxu1 %v13189_v49  ;;  %12895 = vmatprep.mubr.msk.f32.mxu1 %vm13326_vm0, %v16692_v63  ;;  %v7793_v40 = vmax.f32 %v7791_v11, %v7792_v38  ;;  %v7878_v51 = vrot.slane %v7877_v47, 1  ;;  %v8218_v10 = vrot.slane %v8217_v27, 4  ;;  %v8052_v26 = vld [vmem:[%s16680_s3 + $0x60] sm:$0xff] }
 0x59e   : > { %v7424_v33 = vpop.f32.mrb[18].mxu0  ;;  %13191 = vmatprep.subr.bf16.mxu1 %v16716_v28  ;;  %v7963_v32 = vmax.f32 %v7961_v20, %v7962_v31  ;;  %v8304_v6 = vrot.slane %v8303_v59, 4  ;;  %v8134_v8 = vrot.slane %v8133_v56, 2  ;;  %v8049_v5 = vmax.f32 %v8047_v23, %v8048_v22  ;;  %v8472_v21 = vld [vmem:[#allocation3 + $0x3a] sm:$0x3]  ;;  %v8139_v31 = vld [vmem:[%s16680_s3 + $0x78] sm:$0xff] }
 0x59f   : > { %v7502_v36 = vmax.f32 %v7485_v4, 0.0  ;;  %v7464_v55 = vadd.f32 %v7424_v33, %v16223_v15  ;;  %v12861_v46 = vpop.f32.mrb[19].mxu0  ;;  %v7966_v15 = vld [vmem:[%s16680_s3 + $0x50] sm:$0xff]  ;;  %v7879_v42 = vmax.f32 %v7877_v47, %v7878_v51  ;;  %v8219_v14 = vmax.f32 %v8217_v27, %v8218_v10 }
 0x5a0   : > { %12896 = vmatmul.mubr.msk.f32.vlgmr.msra.gmra.mrb[0].mxu1 %vm7551_vm4, %v7707_v58  ;;  %v8387_v60 = vld [vmem:[#allocation3 + $0x46] sm:$0x3]  ;;  %v13198_v17 = vpack.c.bf16 %v7967_v52, %v7966_v15  ;;  %v7964_v29 = vrot.slane %v7963_v32, 1  ;;  %v8305_v16 = vmax.f32 %v8303_v59, %v8304_v6  ;;  %v8050_v48 = vrot.slane %v8049_v5, 1  ;;  %v8644_v46 = vld [vmem:[#allocation3 + $0x3e] sm:$0x3] }
 0x5a1   : > { %7519 = vst [vmem:[#allocation3 + $0x50] sm:$0xff] %v7502_v36  ;;  %v7486_v43 = vadd.f32 %v16243_v45, %v7464_v55  ;;  %13193 = vmatpush3.bf16.msra.mxu1 %v13192_v61  ;;  %12902 = vmatprep.mubr.msk.f32.mxu1 %vm13326_vm0, %v16692_v63  ;;  %v8388_v0 = vmax.f32 %v8386_v34, %v8387_v60  ;;  %v8558_v61 = vld [vmem:[#allocation3 + $0x3c] sm:$0x3]  ;;  %v8220_v23 = vrot.slane %v8219_v14, 2  ;;  %v8730_v6 = vld [vmem:[#allocation3 + $0x40] sm:$0x3] }
 0x5a2   : > { %v7429_v41 = vpop.f32.mrb[20].mxu0  ;;  %13194 = vmatprep.subr.bf16.mxu1 %v16716_v28  ;;  %v7965_v30 = vmax.f32 %v7963_v32, %v7964_v29  ;;  %v8135_v4 = vmax.f32 %v8133_v56, %v8134_v8  ;;  %v8306_v33 = vrot.slane %v8305_v16, 2  ;;  %v8224_v60 = vld [vmem:[%s16680_s3 + $0x80] sm:$0xff]  ;;  %v8051_v32 = vmax.f32 %v8049_v5, %v8050_v48 }
 0x5a3   : > { %v7503_v35 = vmax.f32 %v7486_v43, 0.0  ;;  %v7465_v39 = vadd.f32 %v7429_v41, %v16226_v2  ;;  %v12864_v49 = vpop.f32.mrb[21].mxu0  ;;  %v8053_v2 = vld [vmem:[%s16680_s3 + $0x68] sm:$0xff]  ;;  %v8389_v50 = vsel %vm7529_vm3, %v8388_v0, -inf  ;;  %v8221_v22 = vmax.f32 %v8219_v14, %v8220_v23  ;;  %v16379_v14 = vld [vmem:[%s16680_s3 + $0xa0] sm:$0xff] }
 0x5a4   : > { %12903 = vmatmul.mubr.msk.f32.vlgmr.msra.gmra.mrb[2].mxu1 %vm7551_vm4, %v7793_v40  ;;  %v8473_v54 = vld [vmem:[#allocation3 + $0x48] sm:$0x3]  ;;  %v8559_v13 = vld [vmem:[#allocation3 + $0x4a] sm:$0x3]  ;;  %v13201_v44 = vpack.c.bf16 %v8053_v2, %v8052_v26  ;;  %v8390_v24 = vrot.slane %v8389_v50, 4  ;;  %v8136_v34 = vrot.slane %v8135_v4, 1  ;;  %v16359_v0 = vmax.f32 %v8305_v16, %v8306_v33 }
 0x5a5   : > { %7520 = vst [vmem:[#allocation3 + $0x58] sm:$0xff] %v7503_v35  ;;  %v7487_v25 = vadd.f32 %v16243_v45, %v7465_v39  ;;  %13196 = vmatpush3.bf16.msra.mxu1 %v13195_v57  ;;  %12909 = vmatprep.mubr.msk.f32.mxu1 %vm13326_vm0, %v16692_v63  ;;  %v8474_v11 = vmax.f32 %v8472_v21, %v8473_v54  ;;  %v8645_v53 = vld [vmem:[#allocation3 + $0x4c] sm:$0x3]  ;;  %v8731_v15 = vld [vmem:[#allocation3 + $0x4e] sm:$0x3]  ;;  %v8311_v26 = vld [vmem:[%s16680_s3 + $0x98] sm:$0xff] }
 0x5a6   : > { %v7434_v1 = vpop.f32.mrb[22].mxu0  ;;  %13197 = vmatprep.subr.bf16.mxu1 %v16716_v28  ;;  %v8560_v38 = vmax.f32 %v8558_v61, %v8559_v13  ;;  %v8391_v27 = vmax.f32 %v8389_v50, %v8390_v24  ;;  %v8646_v59 = vmax.f32 %v8644_v46, %v8645_v53  ;;  %v8732_v54 = vmax.f32 %v8730_v6, %v8731_v15  ;;  %v8397_v16 = vld [vmem:[%s16680_s3 + $0xa8] sm:$0xff] }
 0x5a7   : > { %v7504_v7 = vmax.f32 %v7487_v25, 0.0  ;;  %v7466_v20 = vadd.f32 %v7434_v1, %v16229_v62  ;;  %v12867_v19 = vpop.f32.mrb[23].mxu0  ;;  %v8138_v62 = vld [vmem:[%s16680_s3 + $0x70] sm:$0xff]  ;;  %v8475_v58 = vsel %vm7529_vm3, %v8474_v11, -inf  ;;  %v8137_v21 = vmax.f32 %v8135_v4, %v8136_v34 }
 0x5a8   : > { %12910 = vmatmul.mubr.msk.f32.vlgmr.msra.gmra.mrb[4].mxu1 %vm7551_vm4, %v7879_v42  ;;  %v13204_v56 = vpack.c.bf16 %v8139_v31, %v8138_v62  ;;  %v8476_v43 = vrot.slane %v8475_v58, 4  ;;  %v8561_v41 = vsel %vm7529_vm3, %v8560_v38, -inf  ;;  %v8647_v8 = vsel %vm7529_vm3, %v8646_v59, -inf  ;;  %v8816_v31 = vld [vmem:[#allocation3 + $0x54] sm:$0x3]  ;;  %v9170_v59 = vld [vmem:[%s16680_s3 + $0x130] sm:$0xff] }
 0x5a9   : > { %7521 = vst [vmem:[#allocation3 + $0x60] sm:$0xff] %v7504_v7  ;;  %v7488_v37 = vadd.f32 %v16243_v45, %v7466_v20  ;;  %13199 = vmatpush3.bf16.msra.mxu1 %v13198_v17  ;;  %12916 = vmatprep.mubr.msk.f32.mxu1 %vm13326_vm0, %v16692_v63  ;;  %v8392_v17 = vrot.slane %v8391_v27, 2  ;;  %v8562_v5 = vrot.slane %v8561_v41, 4  ;;  %v8222_v1 = vrot.slane %v8221_v22, 1 }
 0x5aa   : > { %v7439_v3 = vpop.f32.mrb[24].mxu0  ;;  %13200 = vmatprep.subr.bf16.mxu1 %v16716_v28  ;;  %v8477_v2 = vmax.f32 %v8475_v58, %v8476_v43  ;;  %v8308_v42 = vrot.slane %v16359_v0, 1  ;;  %v8648_v13 = vrot.slane %v8647_v8, 4  ;;  %v8733_v61 = vsel %vm7529_vm3, %v8732_v54, -inf }
 0x5ab   : > { %v7505_v47 = vmax.f32 %v7488_v37, 0.0  ;;  %v7467_v36 = vadd.f32 %v7439_v3, %v16232_v18  ;;  %v12870_v55 = vpop.f32.mrb[25].mxu0  ;;  %v8225_v18 = vld [vmem:[%s16680_s3 + $0x88] sm:$0xff]  ;;  %v8393_v37 = vmax.f32 %v8391_v27, %v8392_v17  ;;  %v8563_v62 = vmax.f32 %v8561_v41, %v8562_v5  ;;  %v8483_v27 = vld [vmem:[%s16680_s3 + $0xb8] sm:$0xff] }
 0x5ac   : > { %12917 = vmatmul.mubr.msk.f32.vlgmr.msra.gmra.mrb[6].mxu1 %vm7551_vm4, %v7965_v30  ;;  %v8988_v35 = vld [vmem:[#allocation3 + $0x58] sm:$0x3]  ;;  %v13207_v49 = vpack.c.bf16 %v8225_v18, %v8224_v60  ;;  %v9160_v48 = vld [vmem:[#allocation3 + $0x5c] sm:$0x3]  ;;  %v8223_v23 = vmax.f32 %v8221_v22, %v8222_v1  ;;  %v8649_v34 = vmax.f32 %v8647_v8, %v8648_v13  ;;  %v8734_v60 = vrot.slane %v8733_v61, 4  ;;  %v8569_v17 = vld [vmem:[%s16680_s3 + $0xc8] sm:$0xff] }
 0x5ad   : > { %7522 = vst [vmem:[#allocation3 + $0x68] sm:$0xff] %v7505_v47  ;;  %v7489_v57 = vadd.f32 %v16243_v45, %v7467_v36  ;;  %13202 = vmatpush3.bf16.msra.mxu1 %v13201_v44  ;;  %12923 = vmatprep.mubr.msk.f32.mxu1 %vm13326_vm0, %v16692_v63  ;;  %v13213_v47 = vpack.c.bf16 %v8397_v16, %v16379_v14  ;;  %v8394_v43 = vrot.slane %v8393_v37, 1 }
 0x5ae   : > { %v7444_v52 = vpop.f32.mrb[26].mxu0  ;;  %13203 = vmatprep.subr.bf16.mxu1 %v16716_v28  ;;  %v8309_v18 = vmax.f32 %v16359_v0, %v8308_v42  ;;  %v8568_v0 = vld [vmem:[%s16680_s3 + $0xc0] sm:$0xff]  ;;  %v8650_v8 = vrot.slane %v8649_v34, 2  ;;  %v8735_v54 = vmax.f32 %v8733_v61, %v8734_v60 }
 0x5af   : > { %v7506_v40 = vmax.f32 %v7489_v57, 0.0  ;;  %v7468_v51 = vadd.f32 %v7444_v52, %v16235_v9  ;;  %v12873_v10 = vpop.f32.mrb[27].mxu0  ;;  %v8310_v9 = vld [vmem:[%s16680_s3 + $0x90] sm:$0xff]  ;;  %v9171_v57 = vld [vmem:[%s16680_s3 + $0x138] sm:$0xff]  ;;  %v8564_v52 = vrot.slane %v8563_v62, 2  ;;  %v13219_v16 = vpack.c.bf16 %v8569_v17, %v8568_v0 }
 0x5b0   : > { %v8989_v39 = vld [vmem:[#allocation3 + $0x66] sm:$0x3]  ;;  %12924 = vmatmul.mubr.msk.f32.vlgmr.msra.gmra.mrb[8].mxu1 %vm7551_vm4, %v8051_v32  ;;  %v8817_v44 = vld [vmem:[#allocation3 + $0x62] sm:$0x3]  ;;  %v13210_v24 = vpack.c.bf16 %v8311_v26, %v8310_v9  ;;  %v8903_v55 = vld [vmem:[#allocation3 + $0x64] sm:$0x3]  ;;  %v13240_v6 = vpack.c.bf16 %v9171_v57, %v9170_v59  ;;  %v16431_v13 = vmax.f32 %v8649_v34, %v8650_v8 }
 0x5b1   : > { %v8990_v25 = vmax.f32 %v8988_v35, %v8989_v39  ;;  %7523 = vst [vmem:[#allocation3 + $0x70] sm:$0xff] %v7506_v40  ;;  %v7490_v29 = vadd.f32 %v16243_v45, %v7468_v51  ;;  %13205 = vmatpush3.bf16.msra.mxu1 %v13204_v56  ;;  %12930 = vmatprep.mubr.msk.f32.mxu1 %vm13326_vm0, %v16692_v63  ;;  %v8902_v32 = vld [vmem:[#allocation3 + $0x56] sm:$0x3]  ;;  %v9342_v26 = vld [vmem:[%s16680_s3 + $0x150] sm:$0xff]  ;;  %v8740_v59 = vld [vmem:[%s16680_s3 + $0xe0] sm:$0xff] }
 0x5b2   : > { %v7449_v50 = vpop.f32.mrb[28].mxu0  ;;  %13206 = vmatprep.subr.bf16.mxu1 %v16716_v28  ;;  %v8818_v58 = vmax.f32 %v8816_v31, %v8817_v44  ;;  %v8904_v51 = vmax.f32 %v8902_v32, %v8903_v55  ;;  %v8565_v9 = vmax.f32 %v8563_v62, %v8564_v52  ;;  %v8741_v57 = vld [vmem:[%s16680_s3 + $0xe8] sm:$0xff]  ;;  %v8827_v0 = vld [vmem:[%s16680_s3 + $0xf8] sm:$0xff]  ;;  %v9514_v17 = vld [vmem:[%s16680_s3 + $0x170] sm:$0xff] }
 0x5b3   : > { %v7507_v11 = vmax.f32 %v7490_v29, 0.0  ;;  %v7469_v7 = vadd.f32 %v7449_v50, %v16238_v12  ;;  %v12876_v20 = vpop.f32.mrb[29].mxu0  ;;  %v8991_v19 = vsel %vm7529_vm3, %v8990_v25, -inf  ;;  %v8478_v12 = vrot.slane %v8477_v2, 2  ;;  %v9074_v50 = vld [vmem:[#allocation3 + $0x5a] sm:$0x3] }
 0x5b4   : > { %12931 = vmatmul.mubr.msk.f32.vlgmr.msra.gmra.mrb[10].mxu1 %vm7551_vm4, %v8137_v21  ;;  %v8992_v30 = vrot.slane %v8991_v19, 4  ;;  %v9161_v4 = vld [vmem:[#allocation3 + $0x6a] sm:$0x3]  ;;  %v8819_v40 = vsel %vm7529_vm3, %v8818_v58, -inf  ;;  %v9075_v35 = vld [vmem:[#allocation3 + $0x68] sm:$0x3]  ;;  %v8395_v25 = vmax.f32 %v8393_v37, %v8394_v43 }
 0x5b5   : > { %7524 = vst [vmem:[#allocation3 + $0x78] sm:$0xff] %v7507_v11  ;;  %v7491_v53 = vadd.f32 %v16243_v45, %v7469_v7  ;;  %13208 = vmatpush3.bf16.msra.mxu1 %v13207_v49  ;;  %12937 = vmatprep.mubr.msk.f32.mxu1 %vm13326_vm0, %v16692_v63  ;;  %v9162_v3 = vmax.f32 %v9160_v48, %v9161_v4  ;;  %v8482_v45 = vld [vmem:[%s16680_s3 + $0xb0] sm:$0xff]  ;;  %v8820_v5 = vrot.slane %v8819_v40, 4  ;;  %v8905_v42 = vsel %vm7529_vm3, %v8904_v51, -inf  ;;  %v8655_v4 = vld [vmem:[%s16680_s3 + $0xd8] sm:$0xff] }
 0x5b6   : > { %13209 = vmatprep.subr.bf16.mxu1 %v16716_v28  ;;  %v8993_v33 = vmax.f32 %v8991_v19, %v8992_v30  ;;  %v8479_v15 = vmax.f32 %v8477_v2, %v8478_v12  ;;  %v13216_v10 = vpack.c.bf16 %v8483_v27, %v8482_v45  ;;  %v9343_v2 = vld [vmem:[%s16680_s3 + $0x158] sm:$0xff]  ;;  %v9076_v14 = vmax.f32 %v9074_v50, %v9075_v35  ;;  %v8654_v48 = vld [vmem:[%s16680_s3 + $0xd0] sm:$0xff] }
 0x5b7   : > { %v7508_v38 = vmax.f32 %v7491_v53, 0.0  ;;  %v9163_v36 = vsel %vm7529_vm3, %v9162_v3, -inf  ;;  %v13246_v44 = vpack.c.bf16 %v9343_v2, %v9342_v26  ;;  %v8821_v53 = vmax.f32 %v8819_v40, %v8820_v5  ;;  %v9515_v8 = vld [vmem:[%s16680_s3 + $0x178] sm:$0xff] }
 0x5b8   : > { %12938 = vmatmul.mubr.msk.f32.vlgmr.msra.gmra.mrb[12].mxu1 %vm7551_vm4, %v8223_v23  ;;  %v8994_v46 = vrot.slane %v8993_v33, 2  ;;  %v9164_v56 = vrot.slane %v9163_v36, 4  ;;  %v8480_v29 = vrot.slane %v8479_v15, 1  ;;  %v9332_v11 = vld [vmem:[#allocation3 + $0x72] sm:$0x3]  ;;  %v8906_v3 = vrot.slane %v8905_v42, 4 }
 0x5b9   : > { %7525 = vst [vmem:[#allocation3 + $0x80] sm:$0xff] %v7508_v38  ;;  %13211 = vmatpush3.bf16.msra.mxu1 %v13210_v24  ;;  %12944 = vmatprep.mubr.msk.f32.mxu1 %vm13326_vm0, %v16692_v63  ;;  %v9504_v7 = vld [vmem:[#allocation3 + $0x76] sm:$0x3]  ;;  %v8736_v24 = vrot.slane %v8735_v54, 2  ;;  %v8566_v23 = vrot.slane %v8565_v9, 1  ;;  %v8822_v34 = vrot.slane %v8821_v53, 2  ;;  %v13225_v51 = vpack.c.bf16 %v8741_v57, %v8740_v59 }
 0x5ba   : > { %13212 = vmatprep.subr.bf16.mxu1 %v16716_v28  ;;  %v8995_v22 = vmax.f32 %v8993_v33, %v8994_v46  ;;  %v9165_v41 = vmax.f32 %v9163_v36, %v9164_v56  ;;  %v8481_v62 = vmax.f32 %v8479_v15, %v8480_v29  ;;  %v9077_v33 = vsel %vm7529_vm3, %v9076_v14, -inf  ;;  %v9246_v58 = vld [vmem:[#allocation3 + $0x70] sm:$0x3] }
 0x5bb   : > { %v13222_v36 = vpack.c.bf16 %v8655_v4, %v8654_v48  ;;  %v8737_v56 = vmax.f32 %v8735_v54, %v8736_v24  ;;  %v8907_v60 = vmax.f32 %v8905_v42, %v8906_v3  ;;  %v8567_v43 = vmax.f32 %v8565_v9, %v8566_v23  ;;  %v8912_v24 = vld [vmem:[%s16680_s3 + $0x100] sm:$0xff]  ;;  %v9085_v23 = vld [vmem:[%s16680_s3 + $0x128] sm:$0xff] }
 0x5bc   : > { %12945 = vmatmul.mubr.msk.f32.vlgmr.msra.gmra.mrb[14].mxu1 %vm7551_vm4, %v8309_v18  ;;  %v8996_v39 = vrot.slane %v8995_v22, 1  ;;  %v9166_v49 = vrot.slane %v9165_v41, 2  ;;  %v9247_v20 = vld [vmem:[#allocation3 + $0x7e] sm:$0x3]  ;;  %v9078_v18 = vrot.slane %v9077_v33, 4  ;;  %v8652_v15 = vrot.slane %v16431_v13, 1 }
 0x5bd   : > { %13214 = vmatpush3.bf16.msra.mxu1 %v13213_v47  ;;  %12951 = vmatprep.mubr.msk.f32.mxu1 %vm13326_vm0, %v16692_v63  ;;  %v9248_v45 = vmax.f32 %v9246_v58, %v9247_v20  ;;  %v8823_v54 = vmax.f32 %v8821_v53, %v8822_v34  ;;  %v9590_v50 = vld [vmem:[#allocation3 + $0x78] sm:$0x3] }
 0x5be   : > { %13215 = vmatprep.subr.bf16.mxu1 %v16716_v28  ;;  %v8997_v21 = vmax.f32 %v8995_v22, %v8996_v39  ;;  %v9167_v1 = vmax.f32 %v9165_v41, %v9166_v49  ;;  %v9418_v22 = vld [vmem:[#allocation3 + $0x74] sm:$0x3]  ;;  %v8738_v49 = vrot.slane %v8737_v56, 1  ;;  %v9079_v29 = vmax.f32 %v9077_v33, %v9078_v18  ;;  %v9428_v18 = vld [vmem:[%s16680_s3 + $0x160] sm:$0xff] }
 0x5bf   : > { %v9249_v41 = vsel %vm7529_vm3, %v9248_v45, -inf  ;;  %v8653_v9 = vmax.f32 %v16431_v13, %v8652_v15 }
 0x5c0   : > { %12952 = vmatmul.mubr.msk.f32.vlgmr.msra.gmra.mrb[16].mxu1 %vm7551_vm4, %v8395_v25  ;;  %13001 = vmatmul.mubr.msk.f32.vlgmr.msra.gmra.mrb[30].mxu0 %vm7551_vm4, %v8997_v21  ;;  %v9168_v19 = vrot.slane %v9167_v1, 1  ;;  %v9333_v37 = vld [vmem:[#allocation3 + $0x80] sm:$0x3]  ;;  %v9505_v30 = vld [vmem:[#allocation3 + $0x84] sm:$0x3]  ;;  %v8908_v25 = vrot.slane %v8907_v60, 2 }
 0x5c1   : > { %13217 = vmatpush3.bf16.msra.mxu1 %v13216_v10  ;;  %13241 = vmatpush3.bf16.msra.mxu0 %v13240_v6  ;;  %v9334_v61 = vmax.f32 %v9332_v11, %v9333_v37  ;;  %v9506_v12 = vmax.f32 %v9504_v7, %v9505_v30  ;;  %v9419_v27 = vld [vmem:[#allocation3 + $0x82] sm:$0x3]  ;;  %v8826_v6 = vld [vmem:[%s16680_s3 + $0xf0] sm:$0xff]  ;;  %v9591_v39 = vld [vmem:[#allocation3 + $0x86] sm:$0x3]  ;;  %v9250_v5 = vrot.slane %v9249_v41, 4  ;;  %v8739_v11 = vmax.f32 %v8737_v56, %v8738_v49 }
 0x5c2   : > { %12958 = vmatprep.mubr.msk.f32.mxu1 %vm13326_vm0, %v16692_v63  ;;  %13014 = vmatprep.mubr.msk.f32.mxu0 %vm13326_vm0, %v16692_v63  ;;  %v9169_v31 = vmax.f32 %v9167_v1, %v9168_v19  ;;  %v9420_v40 = vmax.f32 %v9418_v22, %v9419_v27  ;;  %v9592_v1 = vmax.f32 %v9590_v50, %v9591_v39  ;;  %v8824_v7 = vrot.slane %v8823_v54, 1  ;;  %v8913_v37 = vld [vmem:[%s16680_s3 + $0x108] sm:$0xff] }
 0x5c3   : > { %13218 = vmatprep.subr.bf16.mxu1 %v16716_v28  ;;  %13245 = vmatprep.subr.bf16.mxu0 %v16716_v28  ;;  %v9335_v38 = vsel %vm7529_vm3, %v9334_v61, -inf  ;;  %v9507_v47 = vsel %vm7529_vm3, %v9506_v12, -inf  ;;  %v13228_v14 = vpack.c.bf16 %v8827_v0, %v8826_v6  ;;  %v8909_v20 = vmax.f32 %v8907_v60, %v8908_v25  ;;  %v9679_v0 = vld [vmem:[%s16681_s4] sm:$0xff] }
 0x5c4   : > { %12959 = vmatmul.mubr.msk.f32.vlgmr.msra.gmra.mrb[18].mxu1 %vm7551_vm4, %v8481_v62  ;;  %13015 = vmatmul.mubr.msk.f32.vlgmr.msra.gmra.mrb[32].mxu0 %vm7551_vm4, %v9169_v31  ;;  %v9336_v55 = vrot.slane %v9335_v38, 4  ;;  %v9508_v46 = vrot.slane %v9507_v47, 4  ;;  %v9421_v21 = vsel %vm7529_vm3, %v9420_v40, -inf  ;;  %v9080_v19 = vrot.slane %v9079_v29, 2  ;;  %v9084_v31 = vld [vmem:[%s16680_s3 + $0x120] sm:$0xff] }
 0x5c5   : > { %13220 = vmatpush3.bf16.msra.mxu1 %v13219_v16  ;;  %12965 = vmatprep.mubr.msk.f32.mxu1 %vm13326_vm0, %v16692_v63  ;;  %v13252_v16 = vpack.c.bf16 %v9515_v8, %v9514_v17  ;;  %v9251_v30 = vmax.f32 %v9249_v41, %v9250_v5  ;;  %v9422_v48 = vrot.slane %v9421_v21, 4  ;;  %v9593_v4 = vsel %vm7529_vm3, %v9592_v1, -inf  ;;  %v9600_v40 = vld [vmem:[%s16680_s3 + $0x180] sm:$0xff]  ;;  %v9680_v17 = vld [vmem:[%s16681_s4 + $0x8] sm:$0xff]  ;;  %v9686_v5 = vld [vmem:[%s16681_s4 + $0x38] sm:$0xff] }
 0x5c6   : > { %13221 = vmatprep.subr.bf16.mxu1 %v16716_v28  ;;  %13247 = vmatpush3.bf16.msra.mxu0 %v13246_v44  ;;  %v9337_v52 = vmax.f32 %v9335_v38, %v9336_v55  ;;  %v9509_v32 = vmax.f32 %v9507_v47, %v9508_v46  ;;  %v8825_v61 = vmax.f32 %v8823_v54, %v8824_v7  ;;  %v8910_v12 = vrot.slane %v8909_v20, 1  ;;  %v9256_v55 = vld [vmem:[%s16680_s3 + $0x140] sm:$0xff]  ;;  %v9257_v46 = vld [vmem:[%s16680_s3 + $0x148] sm:$0xff]  ;;  %v9681_v54 = vld [vmem:[%s16681_s4 + $0x10] sm:$0xff] }
 0x5c7   : > { %13028 = vmatprep.mubr.msk.f32.mxu0 %vm13326_vm0, %v16692_v63  ;;  %13251 = vmatprep.subr.bf16.mxu0 %v16716_v28  ;;  %v13231_v53 = vpack.c.bf16 %v8913_v37, %v8912_v24  ;;  %v9081_v3 = vmax.f32 %v9079_v29, %v9080_v19  ;;  %v9252_v33 = vrot.slane %v9251_v30, 2  ;;  %v9423_v58 = vmax.f32 %v9421_v21, %v9422_v48  ;;  %v9683_v29 = vld [vmem:[%s16681_s4 + $0x20] sm:$0xff]  ;;  %v9688_v1 = vld [vmem:[%s16681_s4 + $0x48] sm:$0xff]  ;;  %v9693_v19 = vld [vmem:[%s16681_s4 + $0x70] sm:$0xff] }
 0x5c8   : > { %12966 = vmatmul.mubr.msk.f32.vlgmr.msra.gmra.mrb[20].mxu1 %vm7551_vm4, %v8567_v43  ;;  %v9338_v10 = vrot.slane %v9337_v52, 2  ;;  %v9510_v35 = vrot.slane %v9509_v32, 2  ;;  %v9594_v38 = vrot.slane %v9593_v4, 4  ;;  %v8911_v47 = vmax.f32 %v8909_v20, %v8910_v12  ;;  %v9429_v43 = vld [vmem:[%s16680_s3 + $0x168] sm:$0xff]  ;;  %v9687_v21 = vld [vmem:[%s16681_s4 + $0x40] sm:$0xff] }
 0x5c9   : > { %13223 = vmatpush3.bf16.msra.mxu1 %v13222_v36  ;;  %12972 = vmatprep.mubr.msk.f32.mxu1 %vm13326_vm0, %v16692_v63  ;;  %v13237_v45 = vpack.c.bf16 %v9085_v23, %v9084_v31  ;;  %v9082_v36 = vrot.slane %v9081_v3, 1  ;;  %v9253_v27 = vmax.f32 %v9251_v30, %v9252_v33  ;;  %v9424_v59 = vrot.slane %v9423_v58, 2  ;;  %v9691_v7 = vld [vmem:[%s16681_s4 + $0x60] sm:$0xff]  ;;  %v9692_v20 = vld [vmem:[%s16681_s4 + $0x68] sm:$0xff]  ;;  %v9769_v30 = vld [vmem:[%s16682_s5 + $0x10] sm:$0xff] }
 0x5ca   : > { %13224 = vmatprep.subr.bf16.mxu1 %v16716_v28  ;;  %v9339_v26 = vmax.f32 %v9337_v52, %v9338_v10  ;;  %v9511_v2 = vmax.f32 %v9509_v32, %v9510_v35  ;;  %v9595_v57 = vmax.f32 %v9593_v4, %v9594_v38  ;;  %v13243_v56 = vpack.c.bf16 %v9257_v46, %v9256_v55  ;;  %v9767_v24 = vld [vmem:[%s16682_s5] sm:$0xff]  ;;  %v9768_v37 = vld [vmem:[%s16682_s5 + $0x8] sm:$0xff]  ;;  %v9773_v31 = vld [vmem:[%s16682_s5 + $0x30] sm:$0xff] }
 0x5cb   : > { %v9083_v34 = vmax.f32 %v9081_v3, %v9082_v36  ;;  %v9254_v60 = vrot.slane %v9253_v27, 1  ;;  %v9425_v15 = vmax.f32 %v9423_v58, %v9424_v59  ;;  %v13249_v32 = vpack.c.bf16 %v9429_v43, %v9428_v18  ;;  %v9771_v12 = vld [vmem:[%s16682_s5 + $0x20] sm:$0xff]  ;;  %v9772_v3 = vld [vmem:[%s16682_s5 + $0x28] sm:$0xff]  ;;  %v9774_v23 = vld [vmem:[%s16682_s5 + $0x38] sm:$0xff] }
 0x5cc   : > { %12973 = vmatmul.mubr.msk.f32.vlgmr.msra.gmra.mrb[22].mxu1 %vm7551_vm4, %v8653_v9  ;;  %v9340_v42 = vrot.slane %v9339_v26, 1  ;;  %v9512_v44 = vrot.slane %v9511_v2, 1  ;;  %v9596_v52 = vrot.slane %v9595_v57, 2  ;;  %v13258_v8 = vpack.c.bf16 %v9680_v17, %v9679_v0  ;;  %v9684_v9 = vld [vmem:[%s16681_s4 + $0x28] sm:$0xff]  ;;  %v9775_v58 = vld [vmem:[%s16682_s5 + $0x40] sm:$0xff]  ;;  %v9778_v36 = vld [vmem:[%s16682_s5 + $0x58] sm:$0xff] }
 0x5cd   : > { %13226 = vmatpush3.bf16.msra.mxu1 %v13225_v51  ;;  %12979 = vmatprep.mubr.msk.f32.mxu1 %vm13326_vm0, %v16692_v63  ;;  %v9255_v22 = vmax.f32 %v9253_v27, %v9254_v60  ;;  %v9426_v41 = vrot.slane %v9425_v15, 1  ;;  %v9601_v51 = vld [vmem:[%s16680_s3 + $0x188] sm:$0xff]  ;;  %v13282_v4 = vpack.c.bf16 %v9768_v37, %v9767_v24  ;;  %v13291_v33 = vpack.c.bf16 %v9774_v23, %v9773_v31  ;;  %v9779_v46 = vld [vmem:[%s16682_s5 + $0x60] sm:$0xff] }
 0x5ce   : > { %13227 = vmatprep.subr.bf16.mxu1 %v16716_v28  ;;  %v9341_v13 = vmax.f32 %v9339_v26, %v9340_v42  ;;  %v9513_v62 = vmax.f32 %v9511_v2, %v9512_v44  ;;  %v9597_v10 = vmax.f32 %v9595_v57, %v9596_v52  ;;  %v13255_v6 = vpack.c.bf16 %v9601_v51, %v9600_v40  ;;  %v9685_v2 = vld [vmem:[%s16681_s4 + $0x30] sm:$0xff]  ;;  %v9694_v44 = vld [vmem:[%s16681_s4 + $0x78] sm:$0xff]  ;;  %v9776_v38 = vld [vmem:[%s16682_s5 + $0x48] sm:$0xff] }
 0x5cf   : > { %v9427_v35 = vmax.f32 %v9425_v15, %v9426_v41  ;;  %v13264_v26 = vpack.c.bf16 %v9684_v9, %v9683_v29  ;;  %v13267_v50 = vpack.c.bf16 %v9686_v5, %v9685_v2  ;;  %v13270_v42 = vpack.c.bf16 %v9688_v1, %v9687_v21  ;;  %v9780_v27 = vld [vmem:[%s16682_s5 + $0x68] sm:$0xff] }
 0x5d0   : > { %12980 = vmatmul.mubr.msk.f32.vlgmr.msra.gmra.mrb[24].mxu1 %vm7551_vm4, %v8739_v11  ;;  %13029 = vmatmul.mubr.msk.f32.vlgmr.msra.gmra.mrb[34].mxu0 %vm7551_vm4, %v9341_v13  ;;  %v9598_v39 = vrot.slane %v9597_v10, 1  ;;  %v13276_v13 = vpack.c.bf16 %v9692_v20, %v9691_v7  ;;  %v13279_v48 = vpack.c.bf16 %v9694_v44, %v9693_v19  ;;  %v13300_v59 = vpack.c.bf16 %v9780_v27, %v9779_v46 }
 0x5d1   : > { %13229 = vmatpush3.bf16.msra.mxu1 %v13228_v14  ;;  %13253 = vmatpush3.bf16.msra.mxu0 %v13252_v16  ;;  %v9689_v14 = vld [vmem:[%s16681_s4 + $0x50] sm:$0xff]  ;;  %v9690_v16 = vld [vmem:[%s16681_s4 + $0x58] sm:$0xff] }
 0x5d2   : > { %12986 = vmatprep.mubr.msk.f32.mxu1 %vm13326_vm0, %v16692_v63  ;;  %13042 = vmatprep.mubr.msk.f32.mxu0 %vm13326_vm0, %v16692_v63  ;;  %v9599_v49 = vmax.f32 %v9597_v10, %v9598_v39  ;;  %v13273_v11 = vpack.c.bf16 %v9690_v16, %v9689_v14 }
 0x5d3   : > { %13230 = vmatprep.subr.bf16.mxu1 %v16716_v28  ;;  %13257 = vmatprep.subr.bf16.mxu0 %v16716_v28 }
 0x5d4   : > { %12987 = vmatmul.mubr.msk.f32.vlgmr.msra.gmra.mrb[26].mxu1 %vm7551_vm4, %v8825_v61  ;;  %13043 = vmatmul.mubr.msk.f32.vlgmr.msra.gmra.mrb[36].mxu0 %vm7551_vm4, %v9513_v62  ;;  %v9770_v61 = vld [vmem:[%s16682_s5 + $0x18] sm:$0xff]  ;;  %v13288_v62 = vpack.c.bf16 %v9772_v3, %v9771_v12 }
 0x5d5   : > { %13232 = vmatpush3.bf16.msra.mxu1 %v13231_v53  ;;  %12993 = vmatprep.mubr.msk.f32.mxu1 %vm13326_vm0, %v16692_v63  ;;  %v13285_v53 = vpack.c.bf16 %v9770_v61, %v9769_v30 }
 0x5d6   : > { %13236 = vmatprep.subr.bf16.mxu1 %v16716_v28  ;;  %13084 = vmatprep.mubr.msk.f32.mxu0 %vm13326_vm0, %v16692_v63 }
 0x5d7   : > { %13259 = vmatpush3.bf16.msra.mxu0 %v13258_v8 }
 0x5d8   : > { %12994 = vmatmul.mubr.msk.f32.vlgmr.msra.gmra.mrb[28].mxu1 %vm7551_vm4, %v8911_v47  ;;  %13260 = vmatprep.subr.bf16.mxu0 %v16716_v28  ;;  %v13294_v47 = vpack.c.bf16 %v9776_v38, %v9775_v58 }
 0x5d9   : > { %13238 = vmatpush3.bf16.msra.mxu1 %v13237_v45  ;;  %13007 = vmatprep.mubr.msk.f32.mxu1 %vm13326_vm0, %v16692_v63  ;;  %v9777_v45 = vld [vmem:[%s16682_s5 + $0x50] sm:$0xff] }
 0x5da   : > { %13242 = vmatprep.subr.bf16.mxu1 %v16716_v28  ;;  %v13297_v55 = vpack.c.bf16 %v9778_v36, %v9777_v45 }
 0x5dc   : > { %13008 = vmatmul.mubr.msk.f32.vlgmr.msra.gmra.mrb[30].mxu1 %vm7551_vm4, %v9083_v34 }
 0x5dd   : > { %13244 = vmatpush3.bf16.msra.mxu1 %v13243_v56  ;;  %13021 = vmatprep.mubr.msk.f32.mxu1 %vm13326_vm0, %v16692_v63 }
 0x5de   : > { %13248 = vmatprep.subr.bf16.mxu1 %v16716_v28 }
 0x5e0   : > { %13022 = vmatmul.mubr.msk.f32.vlgmr.msra.gmra.mrb[32].mxu1 %vm7551_vm4, %v9255_v22 }
 0x5e1   : > { %13250 = vmatpush3.bf16.msra.mxu1 %v13249_v32  ;;  %13035 = vmatprep.mubr.msk.f32.mxu1 %vm13326_vm0, %v16692_v63 }
 0x5e2   : > { %13254 = vmatprep.subr.bf16.mxu1 %v16716_v28 }
 0x5e4   : > { %13036 = vmatmul.mubr.msk.f32.vlgmr.msra.gmra.mrb[34].mxu1 %vm7551_vm4, %v9427_v35 }
 0x5e5   : > { %13256 = vmatpush3.bf16.msra.mxu1 %v13255_v6  ;;  %13049 = vmatprep.mubr.msk.f32.mxu1 %vm13326_vm0, %v16692_v63 }
 0x5e6   : > { %13281 = vmatprep.subr.bf16.mxu1 %v16716_v28 }
 0x5e8   : > { %13050 = vmatmul.mubr.msk.f32.vlgmr.msra.gmra.mrb[36].mxu1 %vm7551_vm4, %v9599_v49 }
 0x5e9   : > { %13119 = vmatprep.mubr.msk.f32.mxu1 %vm13326_vm0, %v16692_v63  ;;  %v9682_v63 = vld [vmem:[%s16681_s4 + $0x18] sm:$0xff]  ;;  %13283 = vmatpush3.bf16.msra.mxu1 %v13282_v4 }
 0x5ea   : > { %v13261_v25 = vpack.c.bf16 %v9682_v63, %v9681_v54  ;;  %13284 = vmatprep.subr.bf16.mxu1 %v16716_v28 }
 0x5ec   : > { %13262 = vmatpush3.bf16.msra.mxu0 %v13261_v25 }
 0x5ed   : > { %13263 = vmatprep.subr.bf16.mxu0 %v16716_v28  ;;  %13286 = vmatpush3.bf16.msra.mxu1 %v13285_v53 }
 0x5ee   : > { %13287 = vmatprep.subr.bf16.mxu1 %v16716_v28 }
 0x5f0   : > { %13265 = vmatpush3.bf16.msra.mxu0 %v13264_v26 }
 0x5f1   : > { %13266 = vmatprep.subr.bf16.mxu0 %v16716_v28  ;;  %13289 = vmatpush3.bf16.msra.mxu1 %v13288_v62 }
 0x5f2   : > { %13290 = vmatprep.subr.bf16.mxu1 %v16716_v28 }
 0x5f4   : > { %13268 = vmatpush3.bf16.msra.mxu0 %v13267_v50 }
 0x5f5   : > { %13269 = vmatprep.subr.bf16.mxu0 %v16716_v28  ;;  %13292 = vmatpush3.bf16.msra.mxu1 %v13291_v33 }
 0x5f6   : > { %13293 = vmatprep.subr.bf16.mxu1 %v16716_v28 }
 0x5f8   : > { %13271 = vmatpush3.bf16.msra.mxu0 %v13270_v42 }
 0x5f9   : > { %13272 = vmatprep.subr.bf16.mxu0 %v16716_v28  ;;  %13295 = vmatpush3.bf16.msra.mxu1 %v13294_v47 }
 0x5fa   : > { %13296 = vmatprep.subr.bf16.mxu1 %v16716_v28 }
 0x5fc   : > { %13274 = vmatpush3.bf16.msra.mxu0 %v13273_v11 }
 0x5fd   : > { %13275 = vmatprep.subr.bf16.mxu0 %v16716_v28  ;;  %13298 = vmatpush3.bf16.msra.mxu1 %v13297_v55 }
 0x5fe   : > { %13299 = vmatprep.subr.bf16.mxu1 %v16716_v28 }
 0x600   : > { %13277 = vmatpush3.bf16.msra.mxu0 %v13276_v13 }
 0x601   : > { %13278 = vmatprep.subr.bf16.mxu0 %v16716_v28  ;;  %13301 = vmatpush3.bf16.msra.mxu1 %v13300_v59 }
 0x602   : > { %13302 = vmatprep.subr.bf16.mxu1 %v16716_v28 }
 0x604   : > { %13280 = vmatpush3.bf16.msra.mxu0 %v13279_v48 }
 0x66b   : > { %v7621_v57 = vpop.f32.mrb[252].mxu1 }
 0x66c   : > { %v12883_v56 = vpop.f32.mrb[253].mxu1 }
 0x66f   : > { %v7694_v34 = vpop.f32.mrb[254].mxu1 }
 0x670   : > { %v7695_v60 = vadd.f32 %v7694_v34, %v7621_v57  ;;  %v12890_v18 = vpop.f32.mrb[255].mxu1 }
 0x673   : > { %v7779_v43 = vpop.f32.mrb[0].mxu1 }
 0x674   : > { %v7783_v15 = vadd.f32 %v7779_v43, %v7695_v60  ;;  %v12897_v52 = vpop.f32.mrb[1].mxu1 }
 0x677   : > { %v7865_v32 = vpop.f32.mrb[2].mxu1 }
 0x678   : > { %v7869_v22 = vadd.f32 %v7865_v32, %v7783_v15  ;;  %v12904_v41 = vpop.f32.mrb[3].mxu1  ;;  %v9676_v32 = vld [vmem:[%s16683_s6 + $0x2] sm:$0x1] }
 0x67b   : > { %v7951_v40 = vpop.f32.mrb[4].mxu1 }
 0x67c   : > { %v7955_v51 = vadd.f32 %v7951_v40, %v7869_v22  ;;  %v12911_v10 = vpop.f32.mrb[5].mxu1 }
 0x67d   : > { %v9781_v10 = vld [vmem:[%s16682_s5 + $0x70] sm:$0xff] }
 0x67f   : > { %v8037_v6 = vpop.f32.mrb[6].mxu1 }
 0x680   : > { %v8041_v35 = vadd.f32 %v8037_v6, %v7955_v51  ;;  %v12918_v39 = vpop.f32.mrb[7].mxu1  ;;  %v9782_v6 = vld [vmem:[%s16682_s5 + $0x78] sm:$0xff] }
 0x681   : > { %v9695_v39 = vld [vmem:[%s16683_s6 + $0x3] sm:$0x1] }
 0x683   : > { %v8123_v49 = vpop.f32.mrb[8].mxu1 }
 0x684   : > { %v8127_v0 = vadd.f32 %v8123_v49, %v8041_v35  ;;  %v12925_v28 = vpop.f32.mrb[9].mxu1  ;;  %v13303_v35 = vpack.c.bf16 %v9782_v6, %v9781_v10 }
 0x686   : > { %13304 = vmatpush3.bf16.msra.mxu1 %v13303_v35 }
 0x687   : > { %v8209_v17 = vpop.f32.mrb[10].mxu1 }
 0x688   : > { %v8213_v8 = vadd.f32 %v8209_v17, %v8127_v0  ;;  %v12932_v54 = vpop.f32.mrb[11].mxu1 }
 0x68b   : > { %v8295_v63 = vpop.f32.mrb[12].mxu1 }
 0x68c   : > { %v8299_v25 = vadd.f32 %v8295_v63, %v8213_v8  ;;  %v12939_v29 = vpop.f32.mrb[13].mxu1  ;;  %v9854_v8 = vlaneseq  ;;  %v9783_v63 = vld [vmem:[%s16683_s6 + $0x4] sm:$0x1] }
 0x68e   : > { %v9855_v54 = vshrl.u32 %v9854_v8, 7 }
 0x68f   : > { %v8381_v9 = vpop.f32.mrb[14].mxu1 }
 0x690   : > { %v8385_v26 = vadd.f32 %v8381_v9, %v8299_v25  ;;  %v12946_v2 = vpop.f32.mrb[15].mxu1  ;;  %v9856_v25 = vsub.s32 0, %v9855_v54 }
 0x693   : > { %v8467_v5 = vpop.f32.mrb[16].mxu1  ;;  %v9069_v50 = vpop.f32.mrb[30].mxu0 }
 0x694   : > { %v8471_v21 = vadd.f32 %v8467_v5, %v8385_v26  ;;  %v12953_v1 = vpop.f32.mrb[17].mxu1  ;;  %v13002_v42 = vpop.f32.mrb[31].mxu0 }
 0x697   : > { %v8553_v14 = vpop.f32.mrb[18].mxu1  ;;  %v9241_v16 = vpop.f32.mrb[32].mxu0 }
 0x698   : > { %v8557_v11 = vadd.f32 %v8553_v14, %v8471_v21  ;;  %v12960_v7 = vpop.f32.mrb[19].mxu1  ;;  %v13016_v20 = vpop.f32.mrb[33].mxu0 }
 0x69b   : > { %v8639_v19 = vpop.f32.mrb[20].mxu1 }
 0x69c   : > { %v8643_v13 = vadd.f32 %v8639_v19, %v8557_v11  ;;  %v12967_v44 = vpop.f32.mrb[21].mxu1 }
 0x69f   : > { %v8725_v24 = vpop.f32.mrb[22].mxu1 }
 0x6a0   : > { %v8729_v37 = vadd.f32 %v8725_v24, %v8643_v13  ;;  %v12974_v30 = vpop.f32.mrb[23].mxu1 }
 0x6a3   : > { %v8811_v48 = vpop.f32.mrb[24].mxu1  ;;  %v9413_v4 = vpop.f32.mrb[34].mxu0 }
 0x6a4   : > { %v8815_v61 = vadd.f32 %v8811_v48, %v8729_v37  ;;  %v12981_v53 = vpop.f32.mrb[25].mxu1  ;;  %v13030_v12 = vpop.f32.mrb[35].mxu0 }
 0x6a7   : > { %v8897_v3 = vpop.f32.mrb[26].mxu1  ;;  %v9585_v62 = vpop.f32.mrb[36].mxu0 }
 0x6a8   : > { %v8901_v31 = vadd.f32 %v8897_v3, %v8815_v61  ;;  %v12988_v23 = vpop.f32.mrb[27].mxu1  ;;  %v13044_v33 = vpop.f32.mrb[37].mxu0 }
 0x6ab   : > { %v8983_v58 = vpop.f32.mrb[28].mxu1 }
 0x6ac   : > { %v8987_v38 = vadd.f32 %v8983_v58, %v8901_v31  ;;  %v12995_v47 = vpop.f32.mrb[29].mxu1 }
 0x6ae   : > { %v9073_v45 = vadd.f32 %v9069_v50, %v8987_v38 }
 0x6af   : > { %v9155_v36 = vpop.f32.mrb[30].mxu1 }
 0x6b0   : > { %v9159_v55 = vadd.f32 %v9155_v36, %v9073_v45  ;;  %v13009_v46 = vpop.f32.mrb[31].mxu1 }
 0x6b2   : > { %v9245_v27 = vadd.f32 %v9241_v16, %v9159_v55 }
 0x6b3   : > { %v9327_v59 = vpop.f32.mrb[32].mxu1 }
 0x6b4   : > { %v9331_v57 = vadd.f32 %v9327_v59, %v9245_v27  ;;  %v13023_v56 = vpop.f32.mrb[33].mxu1 }
 0x6b6   : > { %v9417_v34 = vadd.f32 %v9413_v4, %v9331_v57 }
 0x6b7   : > { %v9499_v60 = vpop.f32.mrb[34].mxu1 }
 0x6b8   : > { %v9503_v18 = vadd.f32 %v9499_v60, %v9417_v34  ;;  %v13037_v43 = vpop.f32.mrb[35].mxu1 }
 0x6ba   : > { %v9589_v15 = vadd.f32 %v9585_v62, %v9503_v18 }
 0x6bb   : > { %v9671_v52 = vpop.f32.mrb[36].mxu1 }
 0x6bc   : > { %v9675_v22 = vadd.f32 %v9671_v52, %v9589_v15  ;;  %v13051_v41 = vpop.f32.mrb[37].mxu1 }
 0x6be   : > { %v9677_v40 = vadd.f32 %v9676_v32, %v9675_v22 }
 0x6c0   : > { %v9678_v51 = vmax.f32 %v9677_v40, 0.0 }
 0x6c2   : > { %13085 = vmatmul.mubr.f32.vlgmr.msra.gmra.mrb[38].mxu0 %v9678_v51 }
 0x795   : > { %v9762_v49 = vpop.f32.mrb[38].mxu0 }
 0x796   : > { %v9763_v0 = vadd.f32 %v9762_v49, %v9695_v39  ;;  %v13086_v28 = vpop.f32.mrb[39].mxu0 }
 0x798   : > { %v9766_v17 = vmax.f32 %v9763_v0, 0.0 }
 0x79a   : > { %13120 = vmatmul.mubr.f32.vlgmr.msra.gmra.mrb[38].mxu1 %v9766_v17 }
 0x86d   : > { %v9850_v29 = vpop.f32.mrb[38].mxu1 }
 0x86e   : > { %v9851_v9 = vadd.f32 %v9850_v29, %v9783_v63  ;;  %v13121_v26 = vpop.f32.mrb[39].mxu1 }
 0x870   : > { %v9857_v2 = vrot.slane %v9851_v9, %v9856_v25 }
 0x872   : > { %9858 = vst [vmem:[%s276_s23] sm:$0xff] %v9857_v2 }
 0x873 PF: > { %s17_s24 = sadd.s32 1, %s13323_s24  }
 0x874   : > { %p14_p4 = scmp.ge.s32.totalorder %s17_s24, 4  }
 0x876   :  { %16 = sbr.rel (!%p14_p4) target bundleno = 1 (0x1), region = 78 }

</bundles_post_ra>
